<compile_context>
chip_gen: v6e
topology: v6e:2x2x1
jax: 0.10.0
libtpu: 0.0.40
codegen_flags: <defaults>
</compile_context>

<pallas_src>
import functools
import math

import jax
import jax.numpy as jnp
from jax.experimental import pallas as pl
from jax.experimental.pallas import tpu as pltpu

# ------------------------- configuration (scaled down) -------------------------
B = 2
IMG_H = IMG_W = 140
C_IN = 3
C1, C2, C3 = 8, 16, 32            # scaled-down 64 / 512 / 2048
D_MODEL = 8                       # scaled-down d_model_embed (=256 in reference)
N_EMBED = 16                      # must equal H*W after the backbone (4*4)
N_HEADS = 4                       # scaled-down n_aheads (=11)
HEAD_SIZE = N_EMBED // N_HEADS    # 4
PROJ_SCALE = 4
N_QUERIES = 8                     # scaled-down N (=100 object queries)
N_BBOX = 5
LN_EPS = 1e-5


# ----------------------------- tiling policy -----------------------------------
def _pick_tile_m(M, target_blocks=2, align=128):
    """Lane-axis tile size.  Two roughly equal, 128-aligned blocks for large M
    (even split across v7x's 2 TensorCores, few grid steps on single-TC
    v5e/v6e); a single full block for small M."""
    if M <= 1024:
        return M, 1
    tm = pl.cdiv(M, target_blocks)
    tm = pl.cdiv(tm, align) * align
    return tm, pl.cdiv(M, tm)


# --------------------------- backbone Pallas kernels ----------------------------
def _gemm_cm_kernel(w_ref, x_ref, b_ref, o_ref, *, activation):
    # o = W_t @ patches + b, output (Cout, tm): Cout on sublanes, M lane-dense.
    y = jnp.dot(w_ref[...], x_ref[...], preferred_element_type=jnp.float32) + b_ref[...]
    if activation == "relu":
        y = jnp.maximum(y, 0.0)
    o_ref[...] = y


def conv_gemm_cm(w_t, patches, b, activation=None):
    """w_t: (Cout, K) bf16, patches: (K, M) bf16, b: (Cout, 1) f32 -> (Cout, M) f32."""
    Cout, K = w_t.shape
    M = patches.shape[1]
    tm, nblk = _pick_tile_m(M)
    return pl.pallas_call(
        functools.partial(_gemm_cm_kernel, activation=activation),
        out_shape=jax.ShapeDtypeStruct((Cout, M), jnp.float32),
        grid=(nblk,),
        in_specs=[
            pl.BlockSpec((Cout, K), lambda i: (0, 0)),   # weights resident
            pl.BlockSpec((K, tm), lambda i: (0, i)),
            pl.BlockSpec((Cout, 1), lambda i: (0, 0)),
        ],
        out_specs=pl.BlockSpec((Cout, tm), lambda i: (0, i)),
        compiler_params=pltpu.CompilerParams(dimension_semantics=("parallel",)),
    )(w_t, patches, b)


def _im2col_cm(x_cm, KH, KW, stride, pad):
    """x_cm: (Cin, B, H, W) -> patches (KH*KW*Cin, B*Ho*Wo) bf16, K order (kh,kw,cin).
    M (= B*Ho*Wo) is the lane axis, so DMA slices are 128-aligned along M and the
    K=147/392/784 rows only cost sublane padding."""
    Cin, Bv, H, W = x_cm.shape
    Ho = (H + 2 * pad - KH) // stride + 1
    Wo = (W + 2 * pad - KW) // stride + 1
    xp = jnp.pad(x_cm.astype(jnp.bfloat16), ((0, 0), (0, 0), (pad, pad), (pad, pad)))
    cols = []
    for kh in range(KH):
        for kw in range(KW):
            cols.append(xp[:, :, kh:kh + stride * (Ho - 1) + 1:stride,
                           kw:kw + stride * (Wo - 1) + 1:stride].reshape(Cin, Bv * Ho * Wo))
    # TODO(synk): the im2col patch build is still XLA glue that materializes the
    # patches in HBM; a fully fused conv (in-kernel tap loop over a VMEM-resident
    # image block) would remove the remaining backbone HBM amplification.
    return jnp.concatenate(cols, axis=0), Ho, Wo


def conv2d_cm(x_cm, w_t, b, KH, KW, stride, pad, activation=None):
    Bv = x_cm.shape[1]
    patches, Ho, Wo = _im2col_cm(x_cm, KH, KW, stride, pad)
    out = conv_gemm_cm(w_t, patches, b, activation)
    return out.reshape(w_t.shape[0], Bv, Ho, Wo)


def _conv_tail_kernel(w3_ref, x_ref, b3_ref, w4_ref, b4_ref, o_ref):
    # conv3 (GEMM) + ReLU + conv1x1 (GEMM) fused; everything is tiny (M = 32).
    h = jnp.dot(w3_ref[...], x_ref[...], preferred_element_type=jnp.float32) + b3_ref[...]
    h = jnp.maximum(h, 0.0)
    o_ref[...] = jnp.dot(w4_ref[...], h, preferred_element_type=jnp.float32) + b4_ref[...]


def conv3_plus_1x1(x_cm, w3_t, b3, w4_t, b4):
    Bv = x_cm.shape[1]
    patches, Ho, Wo = _im2col_cm(x_cm, 7, 7, 2, 2)
    out = pl.pallas_call(
        _conv_tail_kernel,
        out_shape=jax.ShapeDtypeStruct((w4_t.shape[0], patches.shape[1]), jnp.float32),
    )(w3_t, patches, b3, w4_t, b4)
    return out.reshape(w4_t.shape[0], Bv, Ho, Wo)


def _max9_kernel(*refs):
    o_ref = refs[-1]
    m = refs[0][...]
    for r in refs[1:-1]:
        m = jnp.maximum(m, r[...])
    o_ref[...] = m


def maxpool2d_3x3_s2_p1_cm(x_cm):
    """x_cm: (C, B, H, W) -> (C, B, Ho, Wo).  The 9 shifted windows are XLA strided
    slices reduced in a lane-dense (C, tm) gridded kernel."""
    C, Bv, H, W = x_cm.shape
    Ho = (H + 2 - 3) // 2 + 1
    Wo = (W + 2 - 3) // 2 + 1
    xp = jnp.pad(x_cm, ((0, 0), (0, 0), (1, 1), (1, 1)), constant_values=-jnp.inf)
    wins = [xp[:, :, i:i + 2 * (Ho - 1) + 1:2, j:j + 2 * (Wo - 1) + 1:2]
            .reshape(C, Bv * Ho * Wo)
            for i in range(3) for j in range(3)]
    M = Bv * Ho * Wo
    tm, nblk = _pick_tile_m(M)
    out = pl.pallas_call(
        _max9_kernel,
        out_shape=jax.ShapeDtypeStruct((C, M), jnp.float32),
        grid=(nblk,),
        in_specs=[pl.BlockSpec((C, tm), lambda i: (0, i))] * 9,
        out_specs=pl.BlockSpec((C, tm), lambda i: (0, i)),
        compiler_params=pltpu.CompilerParams(dimension_semantics=("parallel",)),
    )(*wins)
    return out.reshape(C, Bv, Ho, Wo)


# ----------------------- transformer in-kernel math (f32) -----------------------
def _layernorm(x, g, b, eps):
    # Matches the reference's hand-rolled LayerNorm: torch .var() (unbiased, /(n-1)).
    n = x.shape[-1]
    mean = jnp.mean(x, axis=-1, keepdims=True)
    d = x - mean
    var = jnp.sum(d * d, axis=-1, keepdims=True) / (n - 1)
    return g * (d * jax.lax.rsqrt(var + eps)) + b


def _ffn(x, w1, b1, w2, b2):
    h = jnp.maximum(jnp.dot(x, w1, preferred_element_type=jnp.float32) + b1, 0.0)
    return jnp.dot(h, w2, preferred_element_type=jnp.float32) + b2


def _attn_core(k, q, v, wp, bp, scale, H, hs):
    # k, v: (S, H*hs), q: (T, H*hs) from the fused projection; per-head slices.
    outs = []
    for h in range(H):
        kh = k[:, h * hs:(h + 1) * hs]
        qh = q[:, h * hs:(h + 1) * hs]
        vh = v[:, h * hs:(h + 1) * hs]
        logits = jnp.einsum("td,sd->ts", qh, kh,
                            preferred_element_type=jnp.float32) * scale
        logits = logits - jnp.max(logits, axis=-1, keepdims=True)
        p = jnp.exp(logits)
        p = p / jnp.sum(p, axis=-1, keepdims=True)
        outs.append(jnp.dot(p, vh, preferred_element_type=jnp.float32))
    o = jnp.concatenate(outs, axis=-1)                                # (T, H*hs)
    return jnp.dot(o, wp, preferred_element_type=jnp.float32) + bp    # (T, E)


def _mha_self(x, w_qkv, b_qkv, wp, bp, scale, H, hs):
    # Single fused (S,E)@(E,3*H*hs) projection for K|Q|V.
    F = H * hs
    kqv = jnp.dot(x, w_qkv, preferred_element_type=jnp.float32) + b_qkv
    return _attn_core(kqv[:, :F], kqv[:, F:2 * F], kqv[:, 2 * F:], wp, bp, scale, H, hs)


def _mha_cross(kv_in, q_in, w_kv, b_kv, w_q, b_q, wp, bp, scale, H, hs):
    F = H * hs
    kv = jnp.dot(kv_in, w_kv, preferred_element_type=jnp.float32) + b_kv
    q = jnp.dot(q_in, w_q, preferred_element_type=jnp.float32) + b_q
    return _attn_core(kv[:, :F], q, kv[:, F:], wp, bp, scale, H, hs)


# ---------------- fused transformer + prediction-heads kernel -------------------
def _transformer_kernel(
        x_ref, pe_ref, q_ref,
        e_wqkv, e_bqkv, e_wp, e_bp, e_w1, e_b1, e_w2, e_b2, e_g, e_be,
        ds_wqkv, ds_bqkv, ds_wp, ds_bp,
        dc_wkv, dc_bkv, dc_wq, dc_bq, dc_wp, dc_bp,
        d_w1, d_b1, d_w2, d_b2, d_g, d_be,
        h_w1, h_b1,
        c_w2, c_b2, c_w3, c_b3, c_w4, c_b4,
        bb_w2, bb_b2, bb_w3, bb_b3, bb_w4, bb_b4,
        cls_ref, bbox_ref,
        *, scale, eps, H, hs, hidden, n_batch):
    pe = pe_ref[...]
    y = q_ref[...]

    # decoder self-attention: batch-independent, computed once
    t = _mha_self(y, ds_wqkv[...], ds_bqkv[...], ds_wp[...], ds_bp[...], scale, H, hs) + y
    t = _layernorm(t, d_g[...], d_be[...], eps)

    dec_out = []
    for b in range(n_batch):
        # encoder block: x = x+PE ; x = x+MHA(x) ; x = x+FFN(x) ; out = LN(x)
        xb = x_ref[b] + pe
        xb = xb + _mha_self(xb, e_wqkv[...], e_bqkv[...], e_wp[...], e_bp[...], scale, H, hs)
        xb = xb + _ffn(xb, e_w1[...], e_b1[...], e_w2[...], e_b2[...])
        enc_b = _layernorm(xb, e_g[...], e_be[...], eps)

        # decoder: cross-attn + LN (shared gamma/beta with the first LN, no LN after FFN)
        u = _mha_cross(enc_b, t, dc_wkv[...], dc_bkv[...], dc_wq[...], dc_bq[...],
                       dc_wp[...], dc_bp[...], scale, H, hs) + t
        u = _layernorm(u, d_g[...], d_be[...], eps)
        dec_out.append(u + _ffn(u, d_w1[...], d_b1[...], d_w2[...], d_b2[...]))

    d_all = jnp.concatenate(dec_out, axis=0)                          # (B*T, E)

    # prediction heads: layer 1 of both MLPs fused as one lane-dense (E -> 8E=128) GEMM
    h1 = jnp.maximum(jnp.dot(d_all, h_w1[...], preferred_element_type=jnp.float32)
                     + h_b1[...], 0.0)
    hc = h1[:, :hidden]
    hb = h1[:, hidden:]
    # class head (+ softmax fused in)
    c = jnp.maximum(jnp.dot(hc, c_w2[...], preferred_element_type=jnp.float32) + c_b2[...], 0.0)
    c = jnp.maximum(jnp.dot(c, c_w3[...], preferred_element_type=jnp.float32) + c_b3[...], 0.0)
    c = jnp.dot(c, c_w4[...], preferred_element_type=jnp.float32) + c_b4[...]
    c = c - jnp.max(c, axis=-1, keepdims=True)
    ec = jnp.exp(c)
    cls_ref[...] = ec / jnp.sum(ec, axis=-1, keepdims=True)
    # bbox head
    bx = jnp.maximum(jnp.dot(hb, bb_w2[...], preferred_element_type=jnp.float32) + bb_b2[...], 0.0)
    bx = jnp.maximum(jnp.dot(bx, bb_w3[...], preferred_element_type=jnp.float32) + bb_b3[...], 0.0)
    bbox_ref[...] = jnp.dot(bx, bb_w4[...], preferred_element_type=jnp.float32) + bb_b4[...]


def transformer_and_heads(x, queries, p):
    Bv, S, E = x.shape
    T = queries.shape[0]
    enc, dsa, dca, dec, hd = p["enc"], p["dec_self"], p["dec_cross"], p["dec"], p["heads"]
    args = (x, p["pe_t"], queries,
            enc["wqkv"], enc["bqkv"], enc["wp"], enc["bp"],
            enc["w1"], enc["b1"], enc["w2"], enc["b2"], enc["g"], enc["be"],
            dsa["wqkv"], dsa["bqkv"], dsa["wp"], dsa["bp"],
            dca["wkv"], dca["bkv"], dca["wq"], dca["bq"], dca["wp"], dca["bp"],
            dec["w1"], dec["b1"], dec["w2"], dec["b2"], dec["g"], dec["be"],
            hd["w1"], hd["b1"],
            hd["cw2"], hd["cb2"], hd["cw3"], hd["cb3"], hd["cw4"], hd["cb4"],
            hd["bw2"], hd["bb2"], hd["bw3"], hd["bb3"], hd["bw4"], hd["bb4"])
    cls, bbox = pl.pallas_call(
        functools.partial(_transformer_kernel, scale=float(HEAD_SIZE) ** -0.5, eps=LN_EPS,
                          H=N_HEADS, hs=HEAD_SIZE, hidden=4 * E, n_batch=Bv),
        out_shape=(jax.ShapeDtypeStruct((Bv * T, 2), jnp.float32),
                   jax.ShapeDtypeStruct((Bv * T, N_BBOX), jnp.float32)),
    )(*args)
    return cls.reshape(Bv, T, 2), bbox.reshape(Bv, T, N_BBOX)


# --------------------------- parameter initialization --------------------------
def _uniform(key, shape, fan_in):
    bound = 1.0 / math.sqrt(fan_in)
    return jax.random.uniform(key, shape, jnp.float32, -bound, bound)


def _init_linear(it, fan_in, fan_out):
    w = _uniform(next(it), (fan_in, fan_out), fan_in)     # stored (in, out)
    b = _uniform(next(it), (fan_out,), fan_in)
    return w, b


def _init_conv_t(it, kh, kw, cin, cout, dtype=jnp.bfloat16):
    fan_in = kh * kw * cin
    w_t = _uniform(next(it), (cout, fan_in), fan_in).astype(dtype)    # (Cout, K), K=(kh,kw,cin)
    b = _uniform(next(it), (cout, 1), fan_in)
    return w_t, b


def _init_attention(it, E, H, hs):
    F = H * hs
    wk, bk = _init_linear(it, E, F)       # per-head key/query/value Linears, head-concatenated
    wq, bq = _init_linear(it, E, F)
    wv, bv = _init_linear(it, E, F)
    wp, bp = _init_linear(it, F, E)       # proj Linear(n_embed, n_embed)
    return dict(wk=wk, bk=bk, wq=wq, bq=bq, wv=wv, bv=bv, wp=wp, bp=bp)


def _fuse_self_attn(a):
    return dict(wqkv=jnp.concatenate([a["wk"], a["wq"], a["wv"]], axis=1),
                bqkv=jnp.concatenate([a["bk"], a["bq"], a["bv"]]).reshape(1, -1),
                wp=a["wp"], bp=a["bp"].reshape(1, -1))


def _fuse_cross_attn(a):
    return dict(wkv=jnp.concatenate([a["wk"], a["wv"]], axis=1),
                bkv=jnp.concatenate([a["bk"], a["bv"]]).reshape(1, -1),
                wq=a["wq"], bq=a["bq"].reshape(1, -1),
                wp=a["wp"], bp=a["bp"].reshape(1, -1))


def positional_encoding(max_len, d_model):
    pos = jnp.arange(max_len, dtype=jnp.float32)[:, None]
    _2i = jnp.arange(0, d_model, 2, dtype=jnp.float32)
    angles = pos / (10000.0 ** (_2i / d_model))
    enc = jnp.zeros((max_len, d_model), jnp.float32)
    enc = enc.at[:, 0::2].set(jnp.sin(angles))
    enc = enc.at[:, 1::2].set(jnp.cos(angles))
    return enc


def init_params(key):
    it = iter(jax.random.split(key, 128))
    E = N_EMBED
    p = {}
    p["conv1"] = _init_conv_t(it, 7, 7, C_IN, C1)
    p["conv2"] = _init_conv_t(it, 7, 7, C1, C2)
    p["conv3"] = _init_conv_t(it, 7, 7, C2, C3)
    p["conv1x1"] = _init_conv_t(it, 1, 1, C3, D_MODEL, dtype=jnp.float32)
    # PE is added inside the fused transformer kernel; stored pre-transposed (D_MODEL, N_EMBED)
    p["pe_t"] = positional_encoding(N_EMBED, D_MODEL)[:N_EMBED, :].T

    enc_attn = _fuse_self_attn(_init_attention(it, E, N_HEADS, HEAD_SIZE))
    ew1, eb1 = _init_linear(it, E, PROJ_SCALE * E)
    ew2, eb2 = _init_linear(it, PROJ_SCALE * E, E)
    p["enc"] = dict(enc_attn, w1=ew1, b1=eb1.reshape(1, -1), w2=ew2, b2=eb2.reshape(1, -1),
                    g=jnp.ones((1, E), jnp.float32), be=jnp.zeros((1, E), jnp.float32))

    p["dec_self"] = _fuse_self_attn(_init_attention(it, E, N_HEADS, HEAD_SIZE))
    p["dec_cross"] = _fuse_cross_attn(_init_attention(it, E, N_HEADS, HEAD_SIZE))
    dw1, db1 = _init_linear(it, E, PROJ_SCALE * E)
    dw2, db2 = _init_linear(it, PROJ_SCALE * E, E)
    p["dec"] = dict(w1=dw1, b1=db1.reshape(1, -1), w2=dw2, b2=db2.reshape(1, -1),
                    g=jnp.ones((1, E), jnp.float32), be=jnp.zeros((1, E), jnp.float32))

    cw1, cb1 = _init_linear(it, E, 4 * E)
    cw2, cb2 = _init_linear(it, 4 * E, E)
    cw3, cb3 = _init_linear(it, E, E // 4)
    cw4, cb4 = _init_linear(it, E // 4, 2)
    bw1, bb1 = _init_linear(it, E, 4 * E)
    bw2, bb2 = _init_linear(it, 4 * E, E)
    bw3, bb3 = _init_linear(it, E, E // 4)
    bw4, bb4 = _init_linear(it, E // 4, N_BBOX)
    p["heads"] = dict(
        w1=jnp.concatenate([cw1, bw1], axis=1),                 # (E, 8E) = (16, 128) lane-dense
        b1=jnp.concatenate([cb1, bb1]).reshape(1, -1),
        cw2=cw2, cb2=cb2.reshape(1, -1), cw3=cw3, cb3=cb3.reshape(1, -1),
        cw4=cw4, cb4=cb4.reshape(1, -1),
        bw2=bw2, bb2=bb2.reshape(1, -1), bw3=bw3, bb3=bb3.reshape(1, -1),
        bw4=bw4, bb4=bb4.reshape(1, -1))
    return p


# --------------------------------- forward -------------------------------------
def detr_forward(params, image_nchw, object_queries):
    # ---- backbone in channel-major (C, B, H, W) layout: lane-dense GEMM/pool
    #      outputs, and the PyTorch x.view(B, C, H*W) flatten is already this layout.
    x = jnp.transpose(image_nchw, (1, 0, 2, 3))                       # (3, B, H, W)
    x = conv2d_cm(x, *params["conv1"], 7, 7, 2, 2, "relu")            # (8, B, 69, 69)
    x = maxpool2d_3x3_s2_p1_cm(x)                                     # (8, B, 35, 35)
    x = conv2d_cm(x, *params["conv2"], 7, 7, 2, 2, "relu")            # (16, B, 17, 17)
    x = maxpool2d_3x3_s2_p1_cm(x)                                     # (16, B, 9, 9)
    x = conv3_plus_1x1(x, *params["conv3"], *params["conv1x1"])       # (D_MODEL, B, 4, 4)

    Cd, Bv, Ho, Wo = x.shape
    x = jnp.transpose(x.reshape(Cd, Bv, Ho * Wo), (1, 0, 2))          # (B, D_MODEL, N_EMBED), ~1 KB

    # ---- single fused transformer + heads kernel (PE add, encoder, decoder, MLPs, softmax)
    cls, bbox = transformer_and_heads(x, object_queries, params)
    return cls, bbox


# TODO(synk): the reference LayerNorm's running_mean/running_var buffer updates
# are training-time state with no effect on the forward output; omitted.


# ----------------------------------- main ---------------------------------------
if __name__ == "__main__":
    key = jax.random.PRNGKey(0)
    k_img, k_q, k_params = jax.random.split(key, 3)
    image = jax.random.normal(k_img, (B, C_IN, IMG_H, IMG_W), jnp.float32)   # NCHW input
    object_queries = jax.random.normal(k_q, (N_QUERIES, N_EMBED), jnp.float32)
    params = init_params(k_params)

    cls, bbox = jax.jit(detr_forward)(params, image, object_queries)
    jax.block_until_ready((cls, bbox))

    assert cls.shape == (B, N_QUERIES, 2)
    assert bbox.shape == (B, N_QUERIES, N_BBOX)
    assert bool(jnp.all(jnp.isfinite(cls))) and bool(jnp.all(jnp.isfinite(bbox)))
    print("KERNEL_OK")
</pallas_src>

<mosaic_0001>
module attributes {stable_mosaic.version = 11 : i64} {
  func.func @_gemm_cm_kernel(%arg0: i32, %arg1: memref<8x147xbf16, #tpu.memory_space<vmem>>, %arg2: memref<147x4864xbf16, #tpu.memory_space<vmem>>, %arg3: memref<8x1xf32, #tpu.memory_space<vmem>>, %arg4: memref<8x4864xf32, #tpu.memory_space<vmem>>) attributes {dimension_semantics = [#tpu.dimension_semantics<parallel>], iteration_bounds = array<i64: 2>, scalar_prefetch = 0 : i64, scratch_operands = 0 : i64, tpu.core_type = #tpu.core_type<tc>, window_params = [{pipeline_mode = #tpu.pipeline_mode<synchronous>, transform_indices = @transform_0, window_bounds = array<i64: 8, 147>}, {transform_indices = @transform_1, window_bounds = array<i64: 147, 4864>}, {pipeline_mode = #tpu.pipeline_mode<synchronous>, transform_indices = @transform_2, window_bounds = array<i64: 8, 1>}, {transform_indices = @transform_3, window_bounds = array<i64: 8, 4864>}]} {
    %c0 = arith.constant 0 : index
    %c0_0 = arith.constant 0 : index
    %0 = vector.load %arg1[%c0, %c0_0] : memref<8x147xbf16, #tpu.memory_space<vmem>>, vector<8x147xbf16>
    %c0_1 = arith.constant 0 : index
    %c0_2 = arith.constant 0 : index
    %1 = vector.load %arg2[%c0_1, %c0_2] : memref<147x4864xbf16, #tpu.memory_space<vmem>>, vector<147x4864xbf16>
    %cst = arith.constant dense<0.000000e+00> : vector<8x4864xf32>
    %2 = tpu.matmul %0, %1, %cst {dimension_numbers = #tpu.dot_dimension_numbers<[1], [0], [0], [1], [0, 0, 1, 1], [], []>} : vector<8x147xbf16>, vector<147x4864xbf16>, vector<8x4864xf32> -> vector<8x4864xf32>
    %c0_3 = arith.constant 0 : index
    %c0_4 = arith.constant 0 : index
    %3 = vector.load %arg3[%c0_3, %c0_4] : memref<8x1xf32, #tpu.memory_space<vmem>>, vector<8x1xf32>
    %4 = vector.broadcast %3 : vector<8x1xf32> to vector<8x4864xf32>
    %5 = arith.addf %2, %4 : vector<8x4864xf32>
    %cst_5 = arith.constant 0.000000e+00 : f32
    %6 = vector.broadcast %cst_5 : f32 to vector<8x4864xf32>
    %7 = arith.maximumf %5, %6 : vector<8x4864xf32>
    %c0_6 = arith.constant 0 : index
    %c0_7 = arith.constant 0 : index
    %8 = vector.load %arg4[%c0_6, %c0_7] : memref<8x4864xf32, #tpu.memory_space<vmem>>, vector<8x4864xf32>
    tpu.vector_store %arg4[%c0_6, %c0_7], %7 {strides = array<i32>} : memref<8x4864xf32, #tpu.memory_space<vmem>>, vector<8x4864xf32>,
    return
  }
  func.func @transform_0(%arg0: i32) -> (i32, i32) {
    %c0_i32 = arith.constant 0 : i32
    %c0_i32_0 = arith.constant 0 : i32
    %c0_i32_1 = arith.constant 0 : i32
    return %c0_i32, %c0_i32_0 : i32, i32
  }
  func.func @transform_1(%arg0: i32) -> (i32, i32) {
    %c0_i32 = arith.constant 0 : i32
    %c0_i32_0 = arith.constant 0 : i32
    return %c0_i32, %arg0 : i32, i32
  }
  func.func @transform_2(%arg0: i32) -> (i32, i32) {
    %c0_i32 = arith.constant 0 : i32
    %c0_i32_0 = arith.constant 0 : i32
    %c0_i32_1 = arith.constant 0 : i32
    return %c0_i32, %c0_i32_0 : i32, i32
  }
  func.func @transform_3(%arg0: i32) -> (i32, i32) {
    %c0_i32 = arith.constant 0 : i32
    %c0_i32_0 = arith.constant 0 : i32
    return %c0_i32, %arg0 : i32, i32
  }
}

module attributes {stable_mosaic.version = 11 : i64} {
  func.func @_max9_kernel(%arg0: i32, %arg1: memref<8x1280xf32, #tpu.memory_space<vmem>>, %arg2: memref<8x1280xf32, #tpu.memory_space<vmem>>, %arg3: memref<8x1280xf32, #tpu.memory_space<vmem>>, %arg4: memref<8x1280xf32, #tpu.memory_space<vmem>>, %arg5: memref<8x1280xf32, #tpu.memory_space<vmem>>, %arg6: memref<8x1280xf32, #tpu.memory_space<vmem>>, %arg7: memref<8x1280xf32, #tpu.memory_space<vmem>>, %arg8: memref<8x1280xf32, #tpu.memory_space<vmem>>, %arg9: memref<8x1280xf32, #tpu.memory_space<vmem>>, %arg10: memref<8x1280xf32, #tpu.memory_space<vmem>>) attributes {dimension_semantics = [#tpu.dimension_semantics<parallel>], iteration_bounds = array<i64: 2>, scalar_prefetch = 0 : i64, scratch_operands = 0 : i64, tpu.core_type = #tpu.core_type<tc>, window_params = [{transform_indices = @transform_0, window_bounds = array<i64: 8, 1280>}, {transform_indices = @transform_1, window_bounds = array<i64: 8, 1280>}, {transform_indices = @transform_2, window_bounds = array<i64: 8, 1280>}, {transform_indices = @transform_3, window_bounds = array<i64: 8, 1280>}, {transform_indices = @transform_4, window_bounds = array<i64: 8, 1280>}, {transform_indices = @transform_5, window_bounds = array<i64: 8, 1280>}, {transform_indices = @transform_6, window_bounds = array<i64: 8, 1280>}, {transform_indices = @transform_7, window_bounds = array<i64: 8, 1280>}, {transform_indices = @transform_8, window_bounds = array<i64: 8, 1280>}, {transform_indices = @transform_9, window_bounds = array<i64: 8, 1280>}]} {
    %c0 = arith.constant 0 : index
    %c0_0 = arith.constant 0 : index
    %0 = vector.load %arg1[%c0, %c0_0] : memref<8x1280xf32, #tpu.memory_space<vmem>>, vector<8x1280xf32>
    %c0_1 = arith.constant 0 : index
    %c0_2 = arith.constant 0 : index
    %1 = vector.load %arg2[%c0_1, %c0_2] : memref<8x1280xf32, #tpu.memory_space<vmem>>, vector<8x1280xf32>
    %2 = arith.maximumf %0, %1 : vector<8x1280xf32>
    %c0_3 = arith.constant 0 : index
    %c0_4 = arith.constant 0 : index
    %3 = vector.load %arg3[%c0_3, %c0_4] : memref<8x1280xf32, #tpu.memory_space<vmem>>, vector<8x1280xf32>
    %4 = arith.maximumf %2, %3 : vector<8x1280xf32>
    %c0_5 = arith.constant 0 : index
    %c0_6 = arith.constant 0 : index
    %5 = vector.load %arg4[%c0_5, %c0_6] : memref<8x1280xf32, #tpu.memory_space<vmem>>, vector<8x1280xf32>
    %6 = arith.maximumf %4, %5 : vector<8x1280xf32>
    %c0_7 = arith.constant 0 : index
    %c0_8 = arith.constant 0 : index
    %7 = vector.load %arg5[%c0_7, %c0_8] : memref<8x1280xf32, #tpu.memory_space<vmem>>, vector<8x1280xf32>
    %8 = arith.maximumf %6, %7 : vector<8x1280xf32>
    %c0_9 = arith.constant 0 : index
    %c0_10 = arith.constant 0 : index
    %9 = vector.load %arg6[%c0_9, %c0_10] : memref<8x1280xf32, #tpu.memory_space<vmem>>, vector<8x1280xf32>
    %10 = arith.maximumf %8, %9 : vector<8x1280xf32>
    %c0_11 = arith.constant 0 : index
    %c0_12 = arith.constant 0 : index
    %11 = vector.load %arg7[%c0_11, %c0_12] : memref<8x1280xf32, #tpu.memory_space<vmem>>, vector<8x1280xf32>
    %12 = arith.maximumf %10, %11 : vector<8x1280xf32>
    %c0_13 = arith.constant 0 : index
    %c0_14 = arith.constant 0 : index
    %13 = vector.load %arg8[%c0_13, %c0_14] : memref<8x1280xf32, #tpu.memory_space<vmem>>, vector<8x1280xf32>
    %14 = arith.maximumf %12, %13 : vector<8x1280xf32>
    %c0_15 = arith.constant 0 : index
    %c0_16 = arith.constant 0 : index
    %15 = vector.load %arg9[%c0_15, %c0_16] : memref<8x1280xf32, #tpu.memory_space<vmem>>, vector<8x1280xf32>
    %16 = arith.maximumf %14, %15 : vector<8x1280xf32>
    %c0_17 = arith.constant 0 : index
    %c0_18 = arith.constant 0 : index
    %17 = vector.load %arg10[%c0_17, %c0_18] : memref<8x1280xf32, #tpu.memory_space<vmem>>, vector<8x1280xf32>
    tpu.vector_store %arg10[%c0_17, %c0_18], %16 {strides = array<i32>} : memref<8x1280xf32, #tpu.memory_space<vmem>>, vector<8x1280xf32>,
    return
  }
  func.func @transform_0(%arg0: i32) -> (i32, i32) {
    %c0_i32 = arith.constant 0 : i32
    %c0_i32_0 = arith.constant 0 : i32
    return %c0_i32, %arg0 : i32, i32
  }
  func.func @transform_1(%arg0: i32) -> (i32, i32) {
    %c0_i32 = arith.constant 0 : i32
    %c0_i32_0 = arith.constant 0 : i32
    return %c0_i32, %arg0 : i32, i32
  }
  func.func @transform_2(%arg0: i32) -> (i32, i32) {
    %c0_i32 = arith.constant 0 : i32
    %c0_i32_0 = arith.constant 0 : i32
    return %c0_i32, %arg0 : i32, i32
  }
  func.func @transform_3(%arg0: i32) -> (i32, i32) {
    %c0_i32 = arith.constant 0 : i32
    %c0_i32_0 = arith.constant 0 : i32
    return %c0_i32, %arg0 : i32, i32
  }
  func.func @transform_4(%arg0: i32) -> (i32, i32) {
    %c0_i32 = arith.constant 0 : i32
    %c0_i32_0 = arith.constant 0 : i32
    return %c0_i32, %arg0 : i32, i32
  }
  func.func @transform_5(%arg0: i32) -> (i32, i32) {
    %c0_i32 = arith.constant 0 : i32
    %c0_i32_0 = arith.constant 0 : i32
    return %c0_i32, %arg0 : i32, i32
  }
  func.func @transform_6(%arg0: i32) -> (i32, i32) {
    %c0_i32 = arith.constant 0 : i32
    %c0_i32_0 = arith.constant 0 : i32
    return %c0_i32, %arg0 : i32, i32
  }
  func.func @transform_7(%arg0: i32) -> (i32, i32) {
    %c0_i32 = arith.constant 0 : i32
    %c0_i32_0 = arith.constant 0 : i32
    return %c0_i32, %arg0 : i32, i32
  }
  func.func @transform_8(%arg0: i32) -> (i32, i32) {
    %c0_i32 = arith.constant 0 : i32
    %c0_i32_0 = arith.constant 0 : i32
    return %c0_i32, %arg0 : i32, i32
  }
  func.func @transform_9(%arg0: i32) -> (i32, i32) {
    %c0_i32 = arith.constant 0 : i32
    %c0_i32_0 = arith.constant 0 : i32
    return %c0_i32, %arg0 : i32, i32
  }
}

module attributes {stable_mosaic.version = 11 : i64} {
  func.func @_gemm_cm_kernel(%arg0: i32, %arg1: memref<16x392xbf16, #tpu.memory_space<vmem>>, %arg2: memref<392x578xbf16, #tpu.memory_space<vmem>>, %arg3: memref<16x1xf32, #tpu.memory_space<vmem>>, %arg4: memref<16x578xf32, #tpu.memory_space<vmem>>) attributes {dimension_semantics = [#tpu.dimension_semantics<parallel>], iteration_bounds = array<i64: 1>, scalar_prefetch = 0 : i64, scratch_operands = 0 : i64, tpu.core_type = #tpu.core_type<tc>, window_params = [{pipeline_mode = #tpu.pipeline_mode<synchronous>, transform_indices = @transform_0, window_bounds = array<i64: 16, 392>}, {transform_indices = @transform_1, window_bounds = array<i64: 392, 578>}, {pipeline_mode = #tpu.pipeline_mode<synchronous>, transform_indices = @transform_2, window_bounds = array<i64: 16, 1>}, {transform_indices = @transform_3, window_bounds = array<i64: 16, 578>}]} {
    %c0 = arith.constant 0 : index
    %c0_0 = arith.constant 0 : index
    %0 = vector.load %arg1[%c0, %c0_0] : memref<16x392xbf16, #tpu.memory_space<vmem>>, vector<16x392xbf16>
    %c0_1 = arith.constant 0 : index
    %c0_2 = arith.constant 0 : index
    %1 = vector.load %arg2[%c0_1, %c0_2] : memref<392x578xbf16, #tpu.memory_space<vmem>>, vector<392x578xbf16>
    %cst = arith.constant dense<0.000000e+00> : vector<16x578xf32>
    %2 = tpu.matmul %0, %1, %cst {dimension_numbers = #tpu.dot_dimension_numbers<[1], [0], [0], [1], [0, 0, 1, 1], [], []>} : vector<16x392xbf16>, vector<392x578xbf16>, vector<16x578xf32> -> vector<16x578xf32>
    %c0_3 = arith.constant 0 : index
    %c0_4 = arith.constant 0 : index
    %3 = vector.load %arg3[%c0_3, %c0_4] : memref<16x1xf32, #tpu.memory_space<vmem>>, vector<16x1xf32>
    %4 = vector.broadcast %3 : vector<16x1xf32> to vector<16x578xf32>
    %5 = arith.addf %2, %4 : vector<16x578xf32>
    %cst_5 = arith.constant 0.000000e+00 : f32
    %6 = vector.broadcast %cst_5 : f32 to vector<16x578xf32>
    %7 = arith.maximumf %5, %6 : vector<16x578xf32>
    %c0_6 = arith.constant 0 : index
    %c0_7 = arith.constant 0 : index
    %8 = vector.load %arg4[%c0_6, %c0_7] : memref<16x578xf32, #tpu.memory_space<vmem>>, vector<16x578xf32>
    tpu.vector_store %arg4[%c0_6, %c0_7], %7 {strides = array<i32>} : memref<16x578xf32, #tpu.memory_space<vmem>>, vector<16x578xf32>,
    return
  }
  func.func @transform_0(%arg0: i32) -> (i32, i32) {
    %c0_i32 = arith.constant 0 : i32
    %c0_i32_0 = arith.constant 0 : i32
    %c0_i32_1 = arith.constant 0 : i32
    return %c0_i32, %c0_i32_0 : i32, i32
  }
  func.func @transform_1(%arg0: i32) -> (i32, i32) {
    %c0_i32 = arith.constant 0 : i32
    %c0_i32_0 = arith.constant 0 : i32
    return %c0_i32, %arg0 : i32, i32
  }
  func.func @transform_2(%arg0: i32) -> (i32, i32) {
    %c0_i32 = arith.constant 0 : i32
    %c0_i32_0 = arith.constant 0 : i32
    %c0_i32_1 = arith.constant 0 : i32
    return %c0_i32, %c0_i32_0 : i32, i32
  }
  func.func @transform_3(%arg0: i32) -> (i32, i32) {
    %c0_i32 = arith.constant 0 : i32
    %c0_i32_0 = arith.constant 0 : i32
    return %c0_i32, %arg0 : i32, i32
  }
}

module attributes {stable_mosaic.version = 11 : i64} {
  func.func @_max9_kernel(%arg0: i32, %arg1: memref<16x162xf32, #tpu.memory_space<vmem>>, %arg2: memref<16x162xf32, #tpu.memory_space<vmem>>, %arg3: memref<16x162xf32, #tpu.memory_space<vmem>>, %arg4: memref<16x162xf32, #tpu.memory_space<vmem>>, %arg5: memref<16x162xf32, #tpu.memory_space<vmem>>, %arg6: memref<16x162xf32, #tpu.memory_space<vmem>>, %arg7: memref<16x162xf32, #tpu.memory_space<vmem>>, %arg8: memref<16x162xf32, #tpu.memory_space<vmem>>, %arg9: memref<16x162xf32, #tpu.memory_space<vmem>>, %arg10: memref<16x162xf32, #tpu.memory_space<vmem>>) attributes {dimension_semantics = [#tpu.dimension_semantics<parallel>], iteration_bounds = array<i64: 1>, scalar_prefetch = 0 : i64, scratch_operands = 0 : i64, tpu.core_type = #tpu.core_type<tc>, window_params = [{transform_indices = @transform_0, window_bounds = array<i64: 16, 162>}, {transform_indices = @transform_1, window_bounds = array<i64: 16, 162>}, {transform_indices = @transform_2, window_bounds = array<i64: 16, 162>}, {transform_indices = @transform_3, window_bounds = array<i64: 16, 162>}, {transform_indices = @transform_4, window_bounds = array<i64: 16, 162>}, {transform_indices = @transform_5, window_bounds = array<i64: 16, 162>}, {transform_indices = @transform_6, window_bounds = array<i64: 16, 162>}, {transform_indices = @transform_7, window_bounds = array<i64: 16, 162>}, {transform_indices = @transform_8, window_bounds = array<i64: 16, 162>}, {transform_indices = @transform_9, window_bounds = array<i64: 16, 162>}]} {
    %c0 = arith.constant 0 : index
    %c0_0 = arith.constant 0 : index
    %0 = vector.load %arg1[%c0, %c0_0] : memref<16x162xf32, #tpu.memory_space<vmem>>, vector<16x162xf32>
    %c0_1 = arith.constant 0 : index
    %c0_2 = arith.constant 0 : index
    %1 = vector.load %arg2[%c0_1, %c0_2] : memref<16x162xf32, #tpu.memory_space<vmem>>, vector<16x162xf32>
    %2 = arith.maximumf %0, %1 : vector<16x162xf32>
    %c0_3 = arith.constant 0 : index
    %c0_4 = arith.constant 0 : index
    %3 = vector.load %arg3[%c0_3, %c0_4] : memref<16x162xf32, #tpu.memory_space<vmem>>, vector<16x162xf32>
    %4 = arith.maximumf %2, %3 : vector<16x162xf32>
    %c0_5 = arith.constant 0 : index
    %c0_6 = arith.constant 0 : index
    %5 = vector.load %arg4[%c0_5, %c0_6] : memref<16x162xf32, #tpu.memory_space<vmem>>, vector<16x162xf32>
    %6 = arith.maximumf %4, %5 : vector<16x162xf32>
    %c0_7 = arith.constant 0 : index
    %c0_8 = arith.constant 0 : index
    %7 = vector.load %arg5[%c0_7, %c0_8] : memref<16x162xf32, #tpu.memory_space<vmem>>, vector<16x162xf32>
    %8 = arith.maximumf %6, %7 : vector<16x162xf32>
    %c0_9 = arith.constant 0 : index
    %c0_10 = arith.constant 0 : index
    %9 = vector.load %arg6[%c0_9, %c0_10] : memref<16x162xf32, #tpu.memory_space<vmem>>, vector<16x162xf32>
    %10 = arith.maximumf %8, %9 : vector<16x162xf32>
    %c0_11 = arith.constant 0 : index
    %c0_12 = arith.constant 0 : index
    %11 = vector.load %arg7[%c0_11, %c0_12] : memref<16x162xf32, #tpu.memory_space<vmem>>, vector<16x162xf32>
    %12 = arith.maximumf %10, %11 : vector<16x162xf32>
    %c0_13 = arith.constant 0 : index
    %c0_14 = arith.constant 0 : index
    %13 = vector.load %arg8[%c0_13, %c0_14] : memref<16x162xf32, #tpu.memory_space<vmem>>, vector<16x162xf32>
    %14 = arith.maximumf %12, %13 : vector<16x162xf32>
    %c0_15 = arith.constant 0 : index
    %c0_16 = arith.constant 0 : index
    %15 = vector.load %arg9[%c0_15, %c0_16] : memref<16x162xf32, #tpu.memory_space<vmem>>, vector<16x162xf32>
    %16 = arith.maximumf %14, %15 : vector<16x162xf32>
    %c0_17 = arith.constant 0 : index
    %c0_18 = arith.constant 0 : index
    %17 = vector.load %arg10[%c0_17, %c0_18] : memref<16x162xf32, #tpu.memory_space<vmem>>, vector<16x162xf32>
    tpu.vector_store %arg10[%c0_17, %c0_18], %16 {strides = array<i32>} : memref<16x162xf32, #tpu.memory_space<vmem>>, vector<16x162xf32>,
    return
  }
  func.func @transform_0(%arg0: i32) -> (i32, i32) {
    %c0_i32 = arith.constant 0 : i32
    %c0_i32_0 = arith.constant 0 : i32
    return %c0_i32, %arg0 : i32, i32
  }
  func.func @transform_1(%arg0: i32) -> (i32, i32) {
    %c0_i32 = arith.constant 0 : i32
    %c0_i32_0 = arith.constant 0 : i32
    return %c0_i32, %arg0 : i32, i32
  }
  func.func @transform_2(%arg0: i32) -> (i32, i32) {
    %c0_i32 = arith.constant 0 : i32
    %c0_i32_0 = arith.constant 0 : i32
    return %c0_i32, %arg0 : i32, i32
  }
  func.func @transform_3(%arg0: i32) -> (i32, i32) {
    %c0_i32 = arith.constant 0 : i32
    %c0_i32_0 = arith.constant 0 : i32
    return %c0_i32, %arg0 : i32, i32
  }
  func.func @transform_4(%arg0: i32) -> (i32, i32) {
    %c0_i32 = arith.constant 0 : i32
    %c0_i32_0 = arith.constant 0 : i32
    return %c0_i32, %arg0 : i32, i32
  }
  func.func @transform_5(%arg0: i32) -> (i32, i32) {
    %c0_i32 = arith.constant 0 : i32
    %c0_i32_0 = arith.constant 0 : i32
    return %c0_i32, %arg0 : i32, i32
  }
  func.func @transform_6(%arg0: i32) -> (i32, i32) {
    %c0_i32 = arith.constant 0 : i32
    %c0_i32_0 = arith.constant 0 : i32
    return %c0_i32, %arg0 : i32, i32
  }
  func.func @transform_7(%arg0: i32) -> (i32, i32) {
    %c0_i32 = arith.constant 0 : i32
    %c0_i32_0 = arith.constant 0 : i32
    return %c0_i32, %arg0 : i32, i32
  }
  func.func @transform_8(%arg0: i32) -> (i32, i32) {
    %c0_i32 = arith.constant 0 : i32
    %c0_i32_0 = arith.constant 0 : i32
    return %c0_i32, %arg0 : i32, i32
  }
  func.func @transform_9(%arg0: i32) -> (i32, i32) {
    %c0_i32 = arith.constant 0 : i32
    %c0_i32_0 = arith.constant 0 : i32
    return %c0_i32, %arg0 : i32, i32
  }
}

module attributes {stable_mosaic.version = 11 : i64} {
  func.func @_conv_tail_kernel(%arg0: memref<32x784xbf16, #tpu.memory_space<vmem>>, %arg1: memref<784x32xbf16, #tpu.memory_space<vmem>>, %arg2: memref<32x1xf32, #tpu.memory_space<vmem>>, %arg3: memref<8x32xf32, #tpu.memory_space<vmem>>, %arg4: memref<8x1xf32, #tpu.memory_space<vmem>>, %arg5: memref<8x32xf32, #tpu.memory_space<vmem>>) attributes {dimension_semantics = [], scalar_prefetch = 0 : i64, scratch_operands = 0 : i64, tpu.core_type = #tpu.core_type<tc>} {
    %c0 = arith.constant 0 : index
    %c0_0 = arith.constant 0 : index
    %0 = vector.load %arg0[%c0, %c0_0] : memref<32x784xbf16, #tpu.memory_space<vmem>>, vector<32x784xbf16>
    %c0_1 = arith.constant 0 : index
    %c0_2 = arith.constant 0 : index
    %1 = vector.load %arg1[%c0_1, %c0_2] : memref<784x32xbf16, #tpu.memory_space<vmem>>, vector<784x32xbf16>
    %cst = arith.constant dense<0.000000e+00> : vector<32x32xf32>
    %2 = tpu.matmul %0, %1, %cst {dimension_numbers = #tpu.dot_dimension_numbers<[1], [0], [0], [1], [0, 0, 1, 1], [], []>} : vector<32x784xbf16>, vector<784x32xbf16>, vector<32x32xf32> -> vector<32x32xf32>
    %c0_3 = arith.constant 0 : index
    %c0_4 = arith.constant 0 : index
    %3 = vector.load %arg2[%c0_3, %c0_4] : memref<32x1xf32, #tpu.memory_space<vmem>>, vector<32x1xf32>
    %4 = vector.broadcast %3 : vector<32x1xf32> to vector<32x32xf32>
    %5 = arith.addf %2, %4 : vector<32x32xf32>
    %cst_5 = arith.constant 0.000000e+00 : f32
    %6 = vector.broadcast %cst_5 : f32 to vector<32x32xf32>
    %7 = arith.maximumf %5, %6 : vector<32x32xf32>
    %c0_6 = arith.constant 0 : index
    %c0_7 = arith.constant 0 : index
    %8 = vector.load %arg3[%c0_6, %c0_7] : memref<8x32xf32, #tpu.memory_space<vmem>>, vector<8x32xf32>
    %cst_8 = arith.constant dense<0.000000e+00> : vector<8x32xf32>
    %9 = tpu.matmul %8, %7, %cst_8 {dimension_numbers = #tpu.dot_dimension_numbers<[1], [0], [0], [1], [0, 0, 1, 1], [], []>} : vector<8x32xf32>, vector<32x32xf32>, vector<8x32xf32> -> vector<8x32xf32>
    %c0_9 = arith.constant 0 : index
    %c0_10 = arith.constant 0 : index
    %10 = vector.load %arg4[%c0_9, %c0_10] : memref<8x1xf32, #tpu.memory_space<vmem>>, vector<8x1xf32>
    %11 = vector.broadcast %10 : vector<8x1xf32> to vector<8x32xf32>
    %12 = arith.addf %9, %11 : vector<8x32xf32>
    %c0_11 = arith.constant 0 : index
    %c0_12 = arith.constant 0 : index
    %13 = vector.load %arg5[%c0_11, %c0_12] : memref<8x32xf32, #tpu.memory_space<vmem>>, vector<8x32xf32>
    tpu.vector_store %arg5[%c0_11, %c0_12], %12 {strides = array<i32>} : memref<8x32xf32, #tpu.memory_space<vmem>>, vector<8x32xf32>,
    return
  }
}

module attributes {stable_mosaic.version = 11 : i64} {
  func.func @_transformer_kernel(%arg0: memref<2x8x16xf32, #tpu.memory_space<vmem>>, %arg1: memref<8x16xf32, #tpu.memory_space<vmem>>, %arg2: memref<8x16xf32, #tpu.memory_space<vmem>>, %arg3: memref<16x48xf32, #tpu.memory_space<vmem>>, %arg4: memref<1x48xf32, #tpu.memory_space<vmem>>, %arg5: memref<16x16xf32, #tpu.memory_space<vmem>>, %arg6: memref<1x16xf32, #tpu.memory_space<vmem>>, %arg7: memref<16x64xf32, #tpu.memory_space<vmem>>, %arg8: memref<1x64xf32, #tpu.memory_space<vmem>>, %arg9: memref<64x16xf32, #tpu.memory_space<vmem>>, %arg10: memref<1x16xf32, #tpu.memory_space<vmem>>, %arg11: memref<1x16xf32, #tpu.memory_space<vmem>>, %arg12: memref<1x16xf32, #tpu.memory_space<vmem>>, %arg13: memref<16x48xf32, #tpu.memory_space<vmem>>, %arg14: memref<1x48xf32, #tpu.memory_space<vmem>>, %arg15: memref<16x16xf32, #tpu.memory_space<vmem>>, %arg16: memref<1x16xf32, #tpu.memory_space<vmem>>, %arg17: memref<16x32xf32, #tpu.memory_space<vmem>>, %arg18: memref<1x32xf32, #tpu.memory_space<vmem>>, %arg19: memref<16x16xf32, #tpu.memory_space<vmem>>, %arg20: memref<1x16xf32, #tpu.memory_space<vmem>>, %arg21: memref<16x16xf32, #tpu.memory_space<vmem>>, %arg22: memref<1x16xf32, #tpu.memory_space<vmem>>, %arg23: memref<16x64xf32, #tpu.memory_space<vmem>>, %arg24: memref<1x64xf32, #tpu.memory_space<vmem>>, %arg25: memref<64x16xf32, #tpu.memory_space<vmem>>, %arg26: memref<1x16xf32, #tpu.memory_space<vmem>>, %arg27: memref<1x16xf32, #tpu.memory_space<vmem>>, %arg28: memref<1x16xf32, #tpu.memory_space<vmem>>, %arg29: memref<16x128xf32, #tpu.memory_space<vmem>>, %arg30: memref<1x128xf32, #tpu.memory_space<vmem>>, %arg31: memref<64x16xf32, #tpu.memory_space<vmem>>, %arg32: memref<1x16xf32, #tpu.memory_space<vmem>>, %arg33: memref<16x4xf32, #tpu.memory_space<vmem>>, %arg34: memref<1x4xf32, #tpu.memory_space<vmem>>, %arg35: memref<4x2xf32, #tpu.memory_space<vmem>>, %arg36: memref<1x2xf32, #tpu.memory_space<vmem>>, %arg37: memref<64x16xf32, #tpu.memory_space<vmem>>, %arg38: memref<1x16xf32, #tpu.memory_space<vmem>>, %arg39: memref<16x4xf32, #tpu.memory_space<vmem>>, %arg40: memref<1x4xf32, #tpu.memory_space<vmem>>, %arg41: memref<4x5xf32, #tpu.memory_space<vmem>>, %arg42: memref<1x5xf32, #tpu.memory_space<vmem>>, %arg43: memref<16x2xf32, #tpu.memory_space<vmem>>, %arg44: memref<16x5xf32, #tpu.memory_space<vmem>>) attributes {dimension_semantics = [], scalar_prefetch = 0 : i64, scratch_operands = 0 : i64, tpu.core_type = #tpu.core_type<tc>} {
    %c0 = arith.constant 0 : index
    %c0_0 = arith.constant 0 : index
    %0 = vector.load %arg1[%c0, %c0_0] : memref<8x16xf32, #tpu.memory_space<vmem>>, vector<8x16xf32>
    %c0_1 = arith.constant 0 : index
    %c0_2 = arith.constant 0 : index
    %1 = vector.load %arg2[%c0_1, %c0_2] : memref<8x16xf32, #tpu.memory_space<vmem>>, vector<8x16xf32>
    %c0_3 = arith.constant 0 : index
    %c0_4 = arith.constant 0 : index
    %2 = vector.load %arg13[%c0_3, %c0_4] : memref<16x48xf32, #tpu.memory_space<vmem>>, vector<16x48xf32>
    %c0_5 = arith.constant 0 : index
    %c0_6 = arith.constant 0 : index
    %3 = vector.load %arg14[%c0_5, %c0_6] : memref<1x48xf32, #tpu.memory_space<vmem>>, vector<1x48xf32>
    %c0_7 = arith.constant 0 : index
    %c0_8 = arith.constant 0 : index
    %4 = vector.load %arg15[%c0_7, %c0_8] : memref<16x16xf32, #tpu.memory_space<vmem>>, vector<16x16xf32>
    %c0_9 = arith.constant 0 : index
    %c0_10 = arith.constant 0 : index
    %5 = vector.load %arg16[%c0_9, %c0_10] : memref<1x16xf32, #tpu.memory_space<vmem>>, vector<1x16xf32>
    %cst = arith.constant dense<0.000000e+00> : vector<8x48xf32>
    %6 = tpu.matmul %1, %2, %cst {dimension_numbers = #tpu.dot_dimension_numbers<[1], [0], [0], [1], [0, 0, 1, 1], [], []>} : vector<8x16xf32>, vector<16x48xf32>, vector<8x48xf32> -> vector<8x48xf32>
    %7 = vector.broadcast %3 : vector<1x48xf32> to vector<8x48xf32>
    %8 = arith.addf %6, %7 : vector<8x48xf32>
    %9 = vector.extract_strided_slice %8 {offsets = [0, 0], sizes = [8, 16], strides = [1, 1]} : vector<8x48xf32> to vector<8x16xf32>
    %10 = vector.extract_strided_slice %8 {offsets = [0, 16], sizes = [8, 16], strides = [1, 1]} : vector<8x48xf32> to vector<8x16xf32>
    %11 = vector.extract_strided_slice %8 {offsets = [0, 32], sizes = [8, 16], strides = [1, 1]} : vector<8x48xf32> to vector<8x16xf32>
    %12 = vector.extract_strided_slice %9 {offsets = [0, 0], sizes = [8, 4], strides = [1, 1]} : vector<8x16xf32> to vector<8x4xf32>
    %13 = vector.extract_strided_slice %10 {offsets = [0, 0], sizes = [8, 4], strides = [1, 1]} : vector<8x16xf32> to vector<8x4xf32>
    %14 = vector.extract_strided_slice %11 {offsets = [0, 0], sizes = [8, 4], strides = [1, 1]} : vector<8x16xf32> to vector<8x4xf32>
    "tpu.trace_start"() <{level = 10 : i32, message = "td,sd->ts"}> : () -> ()
    %cst_11 = arith.constant dense<0.000000e+00> : vector<8x8xf32>
    %15 = tpu.matmul %13, %12, %cst_11 {dimension_numbers = #tpu.dot_dimension_numbers<[1], [1], [0], [0], [0, 0, 1, 0], [], []>} : vector<8x4xf32>, vector<8x4xf32>, vector<8x8xf32> -> vector<8x8xf32>
    "tpu.trace_stop"() : () -> ()
    %cst_12 = arith.constant 5.000000e-01 : f32
    %16 = vector.broadcast %cst_12 : f32 to vector<8x8xf32>
    %17 = arith.mulf %15, %16 : vector<8x8xf32>
    %cst_13 = arith.constant dense<0xFF800000> : vector<8xf32>
    %18 = vector.multi_reduction <maximumf>, %17, %cst_13 [1] : vector<8x8xf32> to vector<8xf32>
    %19 = vector.shape_cast %18 : vector<8xf32> to vector<8x1xf32>
    %20 = vector.broadcast %19 : vector<8x1xf32> to vector<8x8xf32>
    %21 = arith.subf %17, %20 : vector<8x8xf32>
    %22 = math.exp %21 : vector<8x8xf32>
    %cst_14 = arith.constant dense<0.000000e+00> : vector<8xf32>
    %23 = vector.multi_reduction <add>, %22, %cst_14 [1] : vector<8x8xf32> to vector<8xf32>
    %24 = vector.shape_cast %23 : vector<8xf32> to vector<8x1xf32>
    %25 = vector.broadcast %24 : vector<8x1xf32> to vector<8x8xf32>
    %26 = arith.divf %22, %25 : vector<8x8xf32>
    %cst_15 = arith.constant dense<0.000000e+00> : vector<8x4xf32>
    %27 = tpu.matmul %26, %14, %cst_15 {dimension_numbers = #tpu.dot_dimension_numbers<[1], [0], [0], [1], [0, 0, 1, 1], [], []>} : vector<8x8xf32>, vector<8x4xf32>, vector<8x4xf32> -> vector<8x4xf32>
    %28 = vector.extract_strided_slice %9 {offsets = [0, 4], sizes = [8, 4], strides = [1, 1]} : vector<8x16xf32> to vector<8x4xf32>
    %29 = vector.extract_strided_slice %10 {offsets = [0, 4], sizes = [8, 4], strides = [1, 1]} : vector<8x16xf32> to vector<8x4xf32>
    %30 = vector.extract_strided_slice %11 {offsets = [0, 4], sizes = [8, 4], strides = [1, 1]} : vector<8x16xf32> to vector<8x4xf32>
    "tpu.trace_start"() <{level = 10 : i32, message = "td,sd->ts"}> : () -> ()
    %cst_16 = arith.constant dense<0.000000e+00> : vector<8x8xf32>
    %31 = tpu.matmul %29, %28, %cst_16 {dimension_numbers = #tpu.dot_dimension_numbers<[1], [1], [0], [0], [0, 0, 1, 0], [], []>} : vector<8x4xf32>, vector<8x4xf32>, vector<8x8xf32> -> vector<8x8xf32>
    "tpu.trace_stop"() : () -> ()
    %cst_17 = arith.constant 5.000000e-01 : f32
    %32 = vector.broadcast %cst_17 : f32 to vector<8x8xf32>
    %33 = arith.mulf %31, %32 : vector<8x8xf32>
    %cst_18 = arith.constant dense<0xFF800000> : vector<8xf32>
    %34 = vector.multi_reduction <maximumf>, %33, %cst_18 [1] : vector<8x8xf32> to vector<8xf32>
    %35 = vector.shape_cast %34 : vector<8xf32> to vector<8x1xf32>
    %36 = vector.broadcast %35 : vector<8x1xf32> to vector<8x8xf32>
    %37 = arith.subf %33, %36 : vector<8x8xf32>
    %38 = math.exp %37 : vector<8x8xf32>
    %cst_19 = arith.constant dense<0.000000e+00> : vector<8xf32>
    %39 = vector.multi_reduction <add>, %38, %cst_19 [1] : vector<8x8xf32> to vector<8xf32>
    %40 = vector.shape_cast %39 : vector<8xf32> to vector<8x1xf32>
    %41 = vector.broadcast %40 : vector<8x1xf32> to vector<8x8xf32>
    %42 = arith.divf %38, %41 : vector<8x8xf32>
    %cst_20 = arith.constant dense<0.000000e+00> : vector<8x4xf32>
    %43 = tpu.matmul %42, %30, %cst_20 {dimension_numbers = #tpu.dot_dimension_numbers<[1], [0], [0], [1], [0, 0, 1, 1], [], []>} : vector<8x8xf32>, vector<8x4xf32>, vector<8x4xf32> -> vector<8x4xf32>
    %44 = vector.extract_strided_slice %9 {offsets = [0, 8], sizes = [8, 4], strides = [1, 1]} : vector<8x16xf32> to vector<8x4xf32>
    %45 = vector.extract_strided_slice %10 {offsets = [0, 8], sizes = [8, 4], strides = [1, 1]} : vector<8x16xf32> to vector<8x4xf32>
    %46 = vector.extract_strided_slice %11 {offsets = [0, 8], sizes = [8, 4], strides = [1, 1]} : vector<8x16xf32> to vector<8x4xf32>
    "tpu.trace_start"() <{level = 10 : i32, message = "td,sd->ts"}> : () -> ()
    %cst_21 = arith.constant dense<0.000000e+00> : vector<8x8xf32>
    %47 = tpu.matmul %45, %44, %cst_21 {dimension_numbers = #tpu.dot_dimension_numbers<[1], [1], [0], [0], [0, 0, 1, 0], [], []>} : vector<8x4xf32>, vector<8x4xf32>, vector<8x8xf32> -> vector<8x8xf32>
    "tpu.trace_stop"() : () -> ()
    %cst_22 = arith.constant 5.000000e-01 : f32
    %48 = vector.broadcast %cst_22 : f32 to vector<8x8xf32>
    %49 = arith.mulf %47, %48 : vector<8x8xf32>
    %cst_23 = arith.constant dense<0xFF800000> : vector<8xf32>
    %50 = vector.multi_reduction <maximumf>, %49, %cst_23 [1] : vector<8x8xf32> to vector<8xf32>
    %51 = vector.shape_cast %50 : vector<8xf32> to vector<8x1xf32>
    %52 = vector.broadcast %51 : vector<8x1xf32> to vector<8x8xf32>
    %53 = arith.subf %49, %52 : vector<8x8xf32>
    %54 = math.exp %53 : vector<8x8xf32>
    %cst_24 = arith.constant dense<0.000000e+00> : vector<8xf32>
    %55 = vector.multi_reduction <add>, %54, %cst_24 [1] : vector<8x8xf32> to vector<8xf32>
    %56 = vector.shape_cast %55 : vector<8xf32> to vector<8x1xf32>
    %57 = vector.broadcast %56 : vector<8x1xf32> to vector<8x8xf32>
    %58 = arith.divf %54, %57 : vector<8x8xf32>
    %cst_25 = arith.constant dense<0.000000e+00> : vector<8x4xf32>
    %59 = tpu.matmul %58, %46, %cst_25 {dimension_numbers = #tpu.dot_dimension_numbers<[1], [0], [0], [1], [0, 0, 1, 1], [], []>} : vector<8x8xf32>, vector<8x4xf32>, vector<8x4xf32> -> vector<8x4xf32>
    %60 = vector.extract_strided_slice %9 {offsets = [0, 12], sizes = [8, 4], strides = [1, 1]} : vector<8x16xf32> to vector<8x4xf32>
    %61 = vector.extract_strided_slice %10 {offsets = [0, 12], sizes = [8, 4], strides = [1, 1]} : vector<8x16xf32> to vector<8x4xf32>
    %62 = vector.extract_strided_slice %11 {offsets = [0, 12], sizes = [8, 4], strides = [1, 1]} : vector<8x16xf32> to vector<8x4xf32>
    "tpu.trace_start"() <{level = 10 : i32, message = "td,sd->ts"}> : () -> ()
    %cst_26 = arith.constant dense<0.000000e+00> : vector<8x8xf32>
    %63 = tpu.matmul %61, %60, %cst_26 {dimension_numbers = #tpu.dot_dimension_numbers<[1], [1], [0], [0], [0, 0, 1, 0], [], []>} : vector<8x4xf32>, vector<8x4xf32>, vector<8x8xf32> -> vector<8x8xf32>
    "tpu.trace_stop"() : () -> ()
    %cst_27 = arith.constant 5.000000e-01 : f32
    %64 = vector.broadcast %cst_27 : f32 to vector<8x8xf32>
    %65 = arith.mulf %63, %64 : vector<8x8xf32>
    %cst_28 = arith.constant dense<0xFF800000> : vector<8xf32>
    %66 = vector.multi_reduction <maximumf>, %65, %cst_28 [1] : vector<8x8xf32> to vector<8xf32>
    %67 = vector.shape_cast %66 : vector<8xf32> to vector<8x1xf32>
    %68 = vector.broadcast %67 : vector<8x1xf32> to vector<8x8xf32>
    %69 = arith.subf %65, %68 : vector<8x8xf32>
    %70 = math.exp %69 : vector<8x8xf32>
    %cst_29 = arith.constant dense<0.000000e+00> : vector<8xf32>
    %71 = vector.multi_reduction <add>, %70, %cst_29 [1] : vector<8x8xf32> to vector<8xf32>
    %72 = vector.shape_cast %71 : vector<8xf32> to vector<8x1xf32>
    %73 = vector.broadcast %72 : vector<8x1xf32> to vector<8x8xf32>
    %74 = arith.divf %70, %73 : vector<8x8xf32>
    %cst_30 = arith.constant dense<0.000000e+00> : vector<8x4xf32>
    %75 = tpu.matmul %74, %62, %cst_30 {dimension_numbers = #tpu.dot_dimension_numbers<[1], [0], [0], [1], [0, 0, 1, 1], [], []>} : vector<8x8xf32>, vector<8x4xf32>, vector<8x4xf32> -> vector<8x4xf32>
    %76 = tpu.concatenate %27, %43, %59, %75 in 1 : vector<8x4xf32>, vector<8x4xf32>, vector<8x4xf32>, vector<8x4xf32> -> vector<8x16xf32>
    %cst_31 = arith.constant dense<0.000000e+00> : vector<8x16xf32>
    %77 = tpu.matmul %76, %4, %cst_31 {dimension_numbers = #tpu.dot_dimension_numbers<[1], [0], [0], [1], [0, 0, 1, 1], [], []>} : vector<8x16xf32>, vector<16x16xf32>, vector<8x16xf32> -> vector<8x16xf32>
    %78 = vector.broadcast %5 : vector<1x16xf32> to vector<8x16xf32>
    %79 = arith.addf %77, %78 : vector<8x16xf32>
    %80 = arith.addf %79, %1 : vector<8x16xf32>
    %c0_32 = arith.constant 0 : index
    %c0_33 = arith.constant 0 : index
    %81 = vector.load %arg27[%c0_32, %c0_33] : memref<1x16xf32, #tpu.memory_space<vmem>>, vector<1x16xf32>
    %c0_34 = arith.constant 0 : index
    %c0_35 = arith.constant 0 : index
    %82 = vector.load %arg28[%c0_34, %c0_35] : memref<1x16xf32, #tpu.memory_space<vmem>>, vector<1x16xf32>
    %cst_36 = arith.constant dense<0.000000e+00> : vector<8xf32>
    %83 = vector.multi_reduction <add>, %80, %cst_36 [1] : vector<8x16xf32> to vector<8xf32>
    %84 = vector.shape_cast %83 : vector<8xf32> to vector<8x1xf32>
    %cst_37 = arith.constant 1.600000e+01 : f32
    %85 = vector.broadcast %cst_37 : f32 to vector<8x1xf32>
    %86 = arith.divf %84, %85 : vector<8x1xf32>
    %87 = vector.broadcast %86 : vector<8x1xf32> to vector<8x16xf32>
    %88 = arith.subf %80, %87 : vector<8x16xf32>
    %89 = arith.mulf %88, %88 : vector<8x16xf32>
    %cst_38 = arith.constant dense<0.000000e+00> : vector<8xf32>
    %90 = vector.multi_reduction <add>, %89, %cst_38 [1] : vector<8x16xf32> to vector<8xf32>
    %91 = vector.shape_cast %90 : vector<8xf32> to vector<8x1xf32>
    %cst_39 = arith.constant 1.500000e+01 : f32
    %92 = vector.broadcast %cst_39 : f32 to vector<8x1xf32>
    %93 = arith.divf %91, %92 : vector<8x1xf32>
    %cst_40 = arith.constant 9.99999974E-6 : f32
    %94 = vector.broadcast %cst_40 : f32 to vector<8x1xf32>
    %95 = arith.addf %93, %94 : vector<8x1xf32>
    %96 = math.rsqrt %95 : vector<8x1xf32>
    %97 = vector.broadcast %96 : vector<8x1xf32> to vector<8x16xf32>
    %98 = arith.mulf %88, %97 : vector<8x16xf32>
    %99 = vector.broadcast %81 : vector<1x16xf32> to vector<8x16xf32>
    %100 = arith.mulf %99, %98 : vector<8x16xf32>
    %101 = vector.broadcast %82 : vector<1x16xf32> to vector<8x16xf32>
    %102 = arith.addf %100, %101 : vector<8x16xf32>
    %c0_41 = arith.constant 0 : index
    %c0_42 = arith.constant 0 : index
    %c0_43 = arith.constant 0 : index
    %103 = vector.load %arg0[%c0_41, %c0_42, %c0_43] : memref<2x8x16xf32, #tpu.memory_space<vmem>>, vector<1x8x16xf32>
    %104 = vector.shape_cast %103 : vector<1x8x16xf32> to vector<8x16xf32>
    %105 = arith.addf %104, %0 : vector<8x16xf32>
    %c0_44 = arith.constant 0 : index
    %c0_45 = arith.constant 0 : index
    %106 = vector.load %arg3[%c0_44, %c0_45] : memref<16x48xf32, #tpu.memory_space<vmem>>, vector<16x48xf32>
    %c0_46 = arith.constant 0 : index
    %c0_47 = arith.constant 0 : index
    %107 = vector.load %arg4[%c0_46, %c0_47] : memref<1x48xf32, #tpu.memory_space<vmem>>, vector<1x48xf32>
    %c0_48 = arith.constant 0 : index
    %c0_49 = arith.constant 0 : index
    %108 = vector.load %arg5[%c0_48, %c0_49] : memref<16x16xf32, #tpu.memory_space<vmem>>, vector<16x16xf32>
    %c0_50 = arith.constant 0 : index
    %c0_51 = arith.constant 0 : index
    %109 = vector.load %arg6[%c0_50, %c0_51] : memref<1x16xf32, #tpu.memory_space<vmem>>, vector<1x16xf32>
    %cst_52 = arith.constant dense<0.000000e+00> : vector<8x48xf32>
    %110 = tpu.matmul %105, %106, %cst_52 {dimension_numbers = #tpu.dot_dimension_numbers<[1], [0], [0], [1], [0, 0, 1, 1], [], []>} : vector<8x16xf32>, vector<16x48xf32>, vector<8x48xf32> -> vector<8x48xf32>
    %111 = vector.broadcast %107 : vector<1x48xf32> to vector<8x48xf32>
    %112 = arith.addf %110, %111 : vector<8x48xf32>
    %113 = vector.extract_strided_slice %112 {offsets = [0, 0], sizes = [8, 16], strides = [1, 1]} : vector<8x48xf32> to vector<8x16xf32>
    %114 = vector.extract_strided_slice %112 {offsets = [0, 16], sizes = [8, 16], strides = [1, 1]} : vector<8x48xf32> to vector<8x16xf32>
    %115 = vector.extract_strided_slice %112 {offsets = [0, 32], sizes = [8, 16], strides = [1, 1]} : vector<8x48xf32> to vector<8x16xf32>
    %116 = vector.extract_strided_slice %113 {offsets = [0, 0], sizes = [8, 4], strides = [1, 1]} : vector<8x16xf32> to vector<8x4xf32>
    %117 = vector.extract_strided_slice %114 {offsets = [0, 0], sizes = [8, 4], strides = [1, 1]} : vector<8x16xf32> to vector<8x4xf32>
    %118 = vector.extract_strided_slice %115 {offsets = [0, 0], sizes = [8, 4], strides = [1, 1]} : vector<8x16xf32> to vector<8x4xf32>
    "tpu.trace_start"() <{level = 10 : i32, message = "td,sd->ts"}> : () -> ()
    %cst_53 = arith.constant dense<0.000000e+00> : vector<8x8xf32>
    %119 = tpu.matmul %117, %116, %cst_53 {dimension_numbers = #tpu.dot_dimension_numbers<[1], [1], [0], [0], [0, 0, 1, 0], [], []>} : vector<8x4xf32>, vector<8x4xf32>, vector<8x8xf32> -> vector<8x8xf32>
    "tpu.trace_stop"() : () -> ()
    %cst_54 = arith.constant 5.000000e-01 : f32
    %120 = vector.broadcast %cst_54 : f32 to vector<8x8xf32>
    %121 = arith.mulf %119, %120 : vector<8x8xf32>
    %cst_55 = arith.constant dense<0xFF800000> : vector<8xf32>
    %122 = vector.multi_reduction <maximumf>, %121, %cst_55 [1] : vector<8x8xf32> to vector<8xf32>
    %123 = vector.shape_cast %122 : vector<8xf32> to vector<8x1xf32>
    %124 = vector.broadcast %123 : vector<8x1xf32> to vector<8x8xf32>
    %125 = arith.subf %121, %124 : vector<8x8xf32>
    %126 = math.exp %125 : vector<8x8xf32>
    %cst_56 = arith.constant dense<0.000000e+00> : vector<8xf32>
    %127 = vector.multi_reduction <add>, %126, %cst_56 [1] : vector<8x8xf32> to vector<8xf32>
    %128 = vector.shape_cast %127 : vector<8xf32> to vector<8x1xf32>
    %129 = vector.broadcast %128 : vector<8x1xf32> to vector<8x8xf32>
    %130 = arith.divf %126, %129 : vector<8x8xf32>
    %cst_57 = arith.constant dense<0.000000e+00> : vector<8x4xf32>
    %131 = tpu.matmul %130, %118, %cst_57 {dimension_numbers = #tpu.dot_dimension_numbers<[1], [0], [0], [1], [0, 0, 1, 1], [], []>} : vector<8x8xf32>, vector<8x4xf32>, vector<8x4xf32> -> vector<8x4xf32>
    %132 = vector.extract_strided_slice %113 {offsets = [0, 4], sizes = [8, 4], strides = [1, 1]} : vector<8x16xf32> to vector<8x4xf32>
    %133 = vector.extract_strided_slice %114 {offsets = [0, 4], sizes = [8, 4], strides = [1, 1]} : vector<8x16xf32> to vector<8x4xf32>
    %134 = vector.extract_strided_slice %115 {offsets = [0, 4], sizes = [8, 4], strides = [1, 1]} : vector<8x16xf32> to vector<8x4xf32>
    "tpu.trace_start"() <{level = 10 : i32, message = "td,sd->ts"}> : () -> ()
    %cst_58 = arith.constant dense<0.000000e+00> : vector<8x8xf32>
    %135 = tpu.matmul %133, %132, %cst_58 {dimension_numbers = #tpu.dot_dimension_numbers<[1], [1], [0], [0], [0, 0, 1, 0], [], []>} : vector<8x4xf32>, vector<8x4xf32>, vector<8x8xf32> -> vector<8x8xf32>
    "tpu.trace_stop"() : () -> ()
    %cst_59 = arith.constant 5.000000e-01 : f32
    %136 = vector.broadcast %cst_59 : f32 to vector<8x8xf32>
    %137 = arith.mulf %135, %136 : vector<8x8xf32>
    %cst_60 = arith.constant dense<0xFF800000> : vector<8xf32>
    %138 = vector.multi_reduction <maximumf>, %137, %cst_60 [1] : vector<8x8xf32> to vector<8xf32>
    %139 = vector.shape_cast %138 : vector<8xf32> to vector<8x1xf32>
    %140 = vector.broadcast %139 : vector<8x1xf32> to vector<8x8xf32>
    %141 = arith.subf %137, %140 : vector<8x8xf32>
    %142 = math.exp %141 : vector<8x8xf32>
    %cst_61 = arith.constant dense<0.000000e+00> : vector<8xf32>
    %143 = vector.multi_reduction <add>, %142, %cst_61 [1] : vector<8x8xf32> to vector<8xf32>
    %144 = vector.shape_cast %143 : vector<8xf32> to vector<8x1xf32>
    %145 = vector.broadcast %144 : vector<8x1xf32> to vector<8x8xf32>
    %146 = arith.divf %142, %145 : vector<8x8xf32>
    %cst_62 = arith.constant dense<0.000000e+00> : vector<8x4xf32>
    %147 = tpu.matmul %146, %134, %cst_62 {dimension_numbers = #tpu.dot_dimension_numbers<[1], [0], [0], [1], [0, 0, 1, 1], [], []>} : vector<8x8xf32>, vector<8x4xf32>, vector<8x4xf32> -> vector<8x4xf32>
    %148 = vector.extract_strided_slice %113 {offsets = [0, 8], sizes = [8, 4], strides = [1, 1]} : vector<8x16xf32> to vector<8x4xf32>
    %149 = vector.extract_strided_slice %114 {offsets = [0, 8], sizes = [8, 4], strides = [1, 1]} : vector<8x16xf32> to vector<8x4xf32>
    %150 = vector.extract_strided_slice %115 {offsets = [0, 8], sizes = [8, 4], strides = [1, 1]} : vector<8x16xf32> to vector<8x4xf32>
    "tpu.trace_start"() <{level = 10 : i32, message = "td,sd->ts"}> : () -> ()
    %cst_63 = arith.constant dense<0.000000e+00> : vector<8x8xf32>
    %151 = tpu.matmul %149, %148, %cst_63 {dimension_numbers = #tpu.dot_dimension_numbers<[1], [1], [0], [0], [0, 0, 1, 0], [], []>} : vector<8x4xf32>, vector<8x4xf32>, vector<8x8xf32> -> vector<8x8xf32>
    "tpu.trace_stop"() : () -> ()
    %cst_64 = arith.constant 5.000000e-01 : f32
    %152 = vector.broadcast %cst_64 : f32 to vector<8x8xf32>
    %153 = arith.mulf %151, %152 : vector<8x8xf32>
    %cst_65 = arith.constant dense<0xFF800000> : vector<8xf32>
    %154 = vector.multi_reduction <maximumf>, %153, %cst_65 [1] : vector<8x8xf32> to vector<8xf32>
    %155 = vector.shape_cast %154 : vector<8xf32> to vector<8x1xf32>
    %156 = vector.broadcast %155 : vector<8x1xf32> to vector<8x8xf32>
    %157 = arith.subf %153, %156 : vector<8x8xf32>
    %158 = math.exp %157 : vector<8x8xf32>
    %cst_66 = arith.constant dense<0.000000e+00> : vector<8xf32>
    %159 = vector.multi_reduction <add>, %158, %cst_66 [1] : vector<8x8xf32> to vector<8xf32>
    %160 = vector.shape_cast %159 : vector<8xf32> to vector<8x1xf32>
    %161 = vector.broadcast %160 : vector<8x1xf32> to vector<8x8xf32>
    %162 = arith.divf %158, %161 : vector<8x8xf32>
    %cst_67 = arith.constant dense<0.000000e+00> : vector<8x4xf32>
    %163 = tpu.matmul %162, %150, %cst_67 {dimension_numbers = #tpu.dot_dimension_numbers<[1], [0], [0], [1], [0, 0, 1, 1], [], []>} : vector<8x8xf32>, vector<8x4xf32>, vector<8x4xf32> -> vector<8x4xf32>
    %164 = vector.extract_strided_slice %113 {offsets = [0, 12], sizes = [8, 4], strides = [1, 1]} : vector<8x16xf32> to vector<8x4xf32>
    %165 = vector.extract_strided_slice %114 {offsets = [0, 12], sizes = [8, 4], strides = [1, 1]} : vector<8x16xf32> to vector<8x4xf32>
    %166 = vector.extract_strided_slice %115 {offsets = [0, 12], sizes = [8, 4], strides = [1, 1]} : vector<8x16xf32> to vector<8x4xf32>
    "tpu.trace_start"() <{level = 10 : i32, message = "td,sd->ts"}> : () -> ()
    %cst_68 = arith.constant dense<0.000000e+00> : vector<8x8xf32>
    %167 = tpu.matmul %165, %164, %cst_68 {dimension_numbers = #tpu.dot_dimension_numbers<[1], [1], [0], [0], [0, 0, 1, 0], [], []>} : vector<8x4xf32>, vector<8x4xf32>, vector<8x8xf32> -> vector<8x8xf32>
    "tpu.trace_stop"() : () -> ()
    %cst_69 = arith.constant 5.000000e-01 : f32
    %168 = vector.broadcast %cst_69 : f32 to vector<8x8xf32>
    %169 = arith.mulf %167, %168 : vector<8x8xf32>
    %cst_70 = arith.constant dense<0xFF800000> : vector<8xf32>
    %170 = vector.multi_reduction <maximumf>, %169, %cst_70 [1] : vector<8x8xf32> to vector<8xf32>
    %171 = vector.shape_cast %170 : vector<8xf32> to vector<8x1xf32>
    %172 = vector.broadcast %171 : vector<8x1xf32> to vector<8x8xf32>
    %173 = arith.subf %169, %172 : vector<8x8xf32>
    %174 = math.exp %173 : vector<8x8xf32>
    %cst_71 = arith.constant dense<0.000000e+00> : vector<8xf32>
    %175 = vector.multi_reduction <add>, %174, %cst_71 [1] : vector<8x8xf32> to vector<8xf32>
    %176 = vector.shape_cast %175 : vector<8xf32> to vector<8x1xf32>
    %177 = vector.broadcast %176 : vector<8x1xf32> to vector<8x8xf32>
    %178 = arith.divf %174, %177 : vector<8x8xf32>
    %cst_72 = arith.constant dense<0.000000e+00> : vector<8x4xf32>
    %179 = tpu.matmul %178, %166, %cst_72 {dimension_numbers = #tpu.dot_dimension_numbers<[1], [0], [0], [1], [0, 0, 1, 1], [], []>} : vector<8x8xf32>, vector<8x4xf32>, vector<8x4xf32> -> vector<8x4xf32>
    %180 = tpu.concatenate %131, %147, %163, %179 in 1 : vector<8x4xf32>, vector<8x4xf32>, vector<8x4xf32>, vector<8x4xf32> -> vector<8x16xf32>
    %cst_73 = arith.constant dense<0.000000e+00> : vector<8x16xf32>
    %181 = tpu.matmul %180, %108, %cst_73 {dimension_numbers = #tpu.dot_dimension_numbers<[1], [0], [0], [1], [0, 0, 1, 1], [], []>} : vector<8x16xf32>, vector<16x16xf32>, vector<8x16xf32> -> vector<8x16xf32>
    %182 = vector.broadcast %109 : vector<1x16xf32> to vector<8x16xf32>
    %183 = arith.addf %181, %182 : vector<8x16xf32>
    %184 = arith.addf %105, %183 : vector<8x16xf32>
    %c0_74 = arith.constant 0 : index
    %c0_75 = arith.constant 0 : index
    %185 = vector.load %arg7[%c0_74, %c0_75] : memref<16x64xf32, #tpu.memory_space<vmem>>, vector<16x64xf32>
    %c0_76 = arith.constant 0 : index
    %c0_77 = arith.constant 0 : index
    %186 = vector.load %arg8[%c0_76, %c0_77] : memref<1x64xf32, #tpu.memory_space<vmem>>, vector<1x64xf32>
    %c0_78 = arith.constant 0 : index
    %c0_79 = arith.constant 0 : index
    %187 = vector.load %arg9[%c0_78, %c0_79] : memref<64x16xf32, #tpu.memory_space<vmem>>, vector<64x16xf32>
    %c0_80 = arith.constant 0 : index
    %c0_81 = arith.constant 0 : index
    %188 = vector.load %arg10[%c0_80, %c0_81] : memref<1x16xf32, #tpu.memory_space<vmem>>, vector<1x16xf32>
    %cst_82 = arith.constant dense<0.000000e+00> : vector<8x64xf32>
    %189 = tpu.matmul %184, %185, %cst_82 {dimension_numbers = #tpu.dot_dimension_numbers<[1], [0], [0], [1], [0, 0, 1, 1], [], []>} : vector<8x16xf32>, vector<16x64xf32>, vector<8x64xf32> -> vector<8x64xf32>
    %190 = vector.broadcast %186 : vector<1x64xf32> to vector<8x64xf32>
    %191 = arith.addf %189, %190 : vector<8x64xf32>
    %cst_83 = arith.constant 0.000000e+00 : f32
    %192 = vector.broadcast %cst_83 : f32 to vector<8x64xf32>
    %193 = arith.maximumf %191, %192 : vector<8x64xf32>
    %cst_84 = arith.constant dense<0.000000e+00> : vector<8x16xf32>
    %194 = tpu.matmul %193, %187, %cst_84 {dimension_numbers = #tpu.dot_dimension_numbers<[1], [0], [0], [1], [0, 0, 1, 1], [], []>} : vector<8x64xf32>, vector<64x16xf32>, vector<8x16xf32> -> vector<8x16xf32>
    %195 = vector.broadcast %188 : vector<1x16xf32> to vector<8x16xf32>
    %196 = arith.addf %194, %195 : vector<8x16xf32>
    %197 = arith.addf %184, %196 : vector<8x16xf32>
    %c0_85 = arith.constant 0 : index
    %c0_86 = arith.constant 0 : index
    %198 = vector.load %arg11[%c0_85, %c0_86] : memref<1x16xf32, #tpu.memory_space<vmem>>, vector<1x16xf32>
    %c0_87 = arith.constant 0 : index
    %c0_88 = arith.constant 0 : index
    %199 = vector.load %arg12[%c0_87, %c0_88] : memref<1x16xf32, #tpu.memory_space<vmem>>, vector<1x16xf32>
    %cst_89 = arith.constant dense<0.000000e+00> : vector<8xf32>
    %200 = vector.multi_reduction <add>, %197, %cst_89 [1] : vector<8x16xf32> to vector<8xf32>
    %201 = vector.shape_cast %200 : vector<8xf32> to vector<8x1xf32>
    %cst_90 = arith.constant 1.600000e+01 : f32
    %202 = vector.broadcast %cst_90 : f32 to vector<8x1xf32>
    %203 = arith.divf %201, %202 : vector<8x1xf32>
    %204 = vector.broadcast %203 : vector<8x1xf32> to vector<8x16xf32>
    %205 = arith.subf %197, %204 : vector<8x16xf32>
    %206 = arith.mulf %205, %205 : vector<8x16xf32>
    %cst_91 = arith.constant dense<0.000000e+00> : vector<8xf32>
    %207 = vector.multi_reduction <add>, %206, %cst_91 [1] : vector<8x16xf32> to vector<8xf32>
    %208 = vector.shape_cast %207 : vector<8xf32> to vector<8x1xf32>
    %cst_92 = arith.constant 1.500000e+01 : f32
    %209 = vector.broadcast %cst_92 : f32 to vector<8x1xf32>
    %210 = arith.divf %208, %209 : vector<8x1xf32>
    %cst_93 = arith.constant 9.99999974E-6 : f32
    %211 = vector.broadcast %cst_93 : f32 to vector<8x1xf32>
    %212 = arith.addf %210, %211 : vector<8x1xf32>
    %213 = math.rsqrt %212 : vector<8x1xf32>
    %214 = vector.broadcast %213 : vector<8x1xf32> to vector<8x16xf32>
    %215 = arith.mulf %205, %214 : vector<8x16xf32>
    %216 = vector.broadcast %198 : vector<1x16xf32> to vector<8x16xf32>
    %217 = arith.mulf %216, %215 : vector<8x16xf32>
    %218 = vector.broadcast %199 : vector<1x16xf32> to vector<8x16xf32>
    %219 = arith.addf %217, %218 : vector<8x16xf32>
    %c0_94 = arith.constant 0 : index
    %c0_95 = arith.constant 0 : index
    %220 = vector.load %arg17[%c0_94, %c0_95] : memref<16x32xf32, #tpu.memory_space<vmem>>, vector<16x32xf32>
    %c0_96 = arith.constant 0 : index
    %c0_97 = arith.constant 0 : index
    %221 = vector.load %arg18[%c0_96, %c0_97] : memref<1x32xf32, #tpu.memory_space<vmem>>, vector<1x32xf32>
    %c0_98 = arith.constant 0 : index
    %c0_99 = arith.constant 0 : index
    %222 = vector.load %arg19[%c0_98, %c0_99] : memref<16x16xf32, #tpu.memory_space<vmem>>, vector<16x16xf32>
    %c0_100 = arith.constant 0 : index
    %c0_101 = arith.constant 0 : index
    %223 = vector.load %arg20[%c0_100, %c0_101] : memref<1x16xf32, #tpu.memory_space<vmem>>, vector<1x16xf32>
    %c0_102 = arith.constant 0 : index
    %c0_103 = arith.constant 0 : index
    %224 = vector.load %arg21[%c0_102, %c0_103] : memref<16x16xf32, #tpu.memory_space<vmem>>, vector<16x16xf32>
    %c0_104 = arith.constant 0 : index
    %c0_105 = arith.constant 0 : index
    %225 = vector.load %arg22[%c0_104, %c0_105] : memref<1x16xf32, #tpu.memory_space<vmem>>, vector<1x16xf32>
    %cst_106 = arith.constant dense<0.000000e+00> : vector<8x32xf32>
    %226 = tpu.matmul %219, %220, %cst_106 {dimension_numbers = #tpu.dot_dimension_numbers<[1], [0], [0], [1], [0, 0, 1, 1], [], []>} : vector<8x16xf32>, vector<16x32xf32>, vector<8x32xf32> -> vector<8x32xf32>
    %227 = vector.broadcast %221 : vector<1x32xf32> to vector<8x32xf32>
    %228 = arith.addf %226, %227 : vector<8x32xf32>
    %cst_107 = arith.constant dense<0.000000e+00> : vector<8x16xf32>
    %229 = tpu.matmul %102, %222, %cst_107 {dimension_numbers = #tpu.dot_dimension_numbers<[1], [0], [0], [1], [0, 0, 1, 1], [], []>} : vector<8x16xf32>, vector<16x16xf32>, vector<8x16xf32> -> vector<8x16xf32>
    %230 = vector.broadcast %223 : vector<1x16xf32> to vector<8x16xf32>
    %231 = arith.addf %229, %230 : vector<8x16xf32>
    %232 = vector.extract_strided_slice %228 {offsets = [0, 0], sizes = [8, 16], strides = [1, 1]} : vector<8x32xf32> to vector<8x16xf32>
    %233 = vector.extract_strided_slice %228 {offsets = [0, 16], sizes = [8, 16], strides = [1, 1]} : vector<8x32xf32> to vector<8x16xf32>
    %234 = vector.extract_strided_slice %232 {offsets = [0, 0], sizes = [8, 4], strides = [1, 1]} : vector<8x16xf32> to vector<8x4xf32>
    %235 = vector.extract_strided_slice %231 {offsets = [0, 0], sizes = [8, 4], strides = [1, 1]} : vector<8x16xf32> to vector<8x4xf32>
    %236 = vector.extract_strided_slice %233 {offsets = [0, 0], sizes = [8, 4], strides = [1, 1]} : vector<8x16xf32> to vector<8x4xf32>
    "tpu.trace_start"() <{level = 10 : i32, message = "td,sd->ts"}> : () -> ()
    %cst_108 = arith.constant dense<0.000000e+00> : vector<8x8xf32>
    %237 = tpu.matmul %235, %234, %cst_108 {dimension_numbers = #tpu.dot_dimension_numbers<[1], [1], [0], [0], [0, 0, 1, 0], [], []>} : vector<8x4xf32>, vector<8x4xf32>, vector<8x8xf32> -> vector<8x8xf32>
    "tpu.trace_stop"() : () -> ()
    %cst_109 = arith.constant 5.000000e-01 : f32
    %238 = vector.broadcast %cst_109 : f32 to vector<8x8xf32>
    %239 = arith.mulf %237, %238 : vector<8x8xf32>
    %cst_110 = arith.constant dense<0xFF800000> : vector<8xf32>
    %240 = vector.multi_reduction <maximumf>, %239, %cst_110 [1] : vector<8x8xf32> to vector<8xf32>
    %241 = vector.shape_cast %240 : vector<8xf32> to vector<8x1xf32>
    %242 = vector.broadcast %241 : vector<8x1xf32> to vector<8x8xf32>
    %243 = arith.subf %239, %242 : vector<8x8xf32>
    %244 = math.exp %243 : vector<8x8xf32>
    %cst_111 = arith.constant dense<0.000000e+00> : vector<8xf32>
    %245 = vector.multi_reduction <add>, %244, %cst_111 [1] : vector<8x8xf32> to vector<8xf32>
    %246 = vector.shape_cast %245 : vector<8xf32> to vector<8x1xf32>
    %247 = vector.broadcast %246 : vector<8x1xf32> to vector<8x8xf32>
    %248 = arith.divf %244, %247 : vector<8x8xf32>
    %cst_112 = arith.constant dense<0.000000e+00> : vector<8x4xf32>
    %249 = tpu.matmul %248, %236, %cst_112 {dimension_numbers = #tpu.dot_dimension_numbers<[1], [0], [0], [1], [0, 0, 1, 1], [], []>} : vector<8x8xf32>, vector<8x4xf32>, vector<8x4xf32> -> vector<8x4xf32>
    %250 = vector.extract_strided_slice %232 {offsets = [0, 4], sizes = [8, 4], strides = [1, 1]} : vector<8x16xf32> to vector<8x4xf32>
    %251 = vector.extract_strided_slice %231 {offsets = [0, 4], sizes = [8, 4], strides = [1, 1]} : vector<8x16xf32> to vector<8x4xf32>
    %252 = vector.extract_strided_slice %233 {offsets = [0, 4], sizes = [8, 4], strides = [1, 1]} : vector<8x16xf32> to vector<8x4xf32>
    "tpu.trace_start"() <{level = 10 : i32, message = "td,sd->ts"}> : () -> ()
    %cst_113 = arith.constant dense<0.000000e+00> : vector<8x8xf32>
    %253 = tpu.matmul %251, %250, %cst_113 {dimension_numbers = #tpu.dot_dimension_numbers<[1], [1], [0], [0], [0, 0, 1, 0], [], []>} : vector<8x4xf32>, vector<8x4xf32>, vector<8x8xf32> -> vector<8x8xf32>
    "tpu.trace_stop"() : () -> ()
    %cst_114 = arith.constant 5.000000e-01 : f32
    %254 = vector.broadcast %cst_114 : f32 to vector<8x8xf32>
    %255 = arith.mulf %253, %254 : vector<8x8xf32>
    %cst_115 = arith.constant dense<0xFF800000> : vector<8xf32>
    %256 = vector.multi_reduction <maximumf>, %255, %cst_115 [1] : vector<8x8xf32> to vector<8xf32>
    %257 = vector.shape_cast %256 : vector<8xf32> to vector<8x1xf32>
    %258 = vector.broadcast %257 : vector<8x1xf32> to vector<8x8xf32>
    %259 = arith.subf %255, %258 : vector<8x8xf32>
    %260 = math.exp %259 : vector<8x8xf32>
    %cst_116 = arith.constant dense<0.000000e+00> : vector<8xf32>
    %261 = vector.multi_reduction <add>, %260, %cst_116 [1] : vector<8x8xf32> to vector<8xf32>
    %262 = vector.shape_cast %261 : vector<8xf32> to vector<8x1xf32>
    %263 = vector.broadcast %262 : vector<8x1xf32> to vector<8x8xf32>
    %264 = arith.divf %260, %263 : vector<8x8xf32>
    %cst_117 = arith.constant dense<0.000000e+00> : vector<8x4xf32>
    %265 = tpu.matmul %264, %252, %cst_117 {dimension_numbers = #tpu.dot_dimension_numbers<[1], [0], [0], [1], [0, 0, 1, 1], [], []>} : vector<8x8xf32>, vector<8x4xf32>, vector<8x4xf32> -> vector<8x4xf32>
    %266 = vector.extract_strided_slice %232 {offsets = [0, 8], sizes = [8, 4], strides = [1, 1]} : vector<8x16xf32> to vector<8x4xf32>
    %267 = vector.extract_strided_slice %231 {offsets = [0, 8], sizes = [8, 4], strides = [1, 1]} : vector<8x16xf32> to vector<8x4xf32>
    %268 = vector.extract_strided_slice %233 {offsets = [0, 8], sizes = [8, 4], strides = [1, 1]} : vector<8x16xf32> to vector<8x4xf32>
    "tpu.trace_start"() <{level = 10 : i32, message = "td,sd->ts"}> : () -> ()
    %cst_118 = arith.constant dense<0.000000e+00> : vector<8x8xf32>
    %269 = tpu.matmul %267, %266, %cst_118 {dimension_numbers = #tpu.dot_dimension_numbers<[1], [1], [0], [0], [0, 0, 1, 0], [], []>} : vector<8x4xf32>, vector<8x4xf32>, vector<8x8xf32> -> vector<8x8xf32>
    "tpu.trace_stop"() : () -> ()
    %cst_119 = arith.constant 5.000000e-01 : f32
    %270 = vector.broadcast %cst_119 : f32 to vector<8x8xf32>
    %271 = arith.mulf %269, %270 : vector<8x8xf32>
    %cst_120 = arith.constant dense<0xFF800000> : vector<8xf32>
    %272 = vector.multi_reduction <maximumf>, %271, %cst_120 [1] : vector<8x8xf32> to vector<8xf32>
    %273 = vector.shape_cast %272 : vector<8xf32> to vector<8x1xf32>
    %274 = vector.broadcast %273 : vector<8x1xf32> to vector<8x8xf32>
    %275 = arith.subf %271, %274 : vector<8x8xf32>
    %276 = math.exp %275 : vector<8x8xf32>
    %cst_121 = arith.constant dense<0.000000e+00> : vector<8xf32>
    %277 = vector.multi_reduction <add>, %276, %cst_121 [1] : vector<8x8xf32> to vector<8xf32>
    %278 = vector.shape_cast %277 : vector<8xf32> to vector<8x1xf32>
    %279 = vector.broadcast %278 : vector<8x1xf32> to vector<8x8xf32>
    %280 = arith.divf %276, %279 : vector<8x8xf32>
    %cst_122 = arith.constant dense<0.000000e+00> : vector<8x4xf32>
    %281 = tpu.matmul %280, %268, %cst_122 {dimension_numbers = #tpu.dot_dimension_numbers<[1], [0], [0], [1], [0, 0, 1, 1], [], []>} : vector<8x8xf32>, vector<8x4xf32>, vector<8x4xf32> -> vector<8x4xf32>
    %282 = vector.extract_strided_slice %232 {offsets = [0, 12], sizes = [8, 4], strides = [1, 1]} : vector<8x16xf32> to vector<8x4xf32>
    %283 = vector.extract_strided_slice %231 {offsets = [0, 12], sizes = [8, 4], strides = [1, 1]} : vector<8x16xf32> to vector<8x4xf32>
    %284 = vector.extract_strided_slice %233 {offsets = [0, 12], sizes = [8, 4], strides = [1, 1]} : vector<8x16xf32> to vector<8x4xf32>
    "tpu.trace_start"() <{level = 10 : i32, message = "td,sd->ts"}> : () -> ()
    %cst_123 = arith.constant dense<0.000000e+00> : vector<8x8xf32>
    %285 = tpu.matmul %283, %282, %cst_123 {dimension_numbers = #tpu.dot_dimension_numbers<[1], [1], [0], [0], [0, 0, 1, 0], [], []>} : vector<8x4xf32>, vector<8x4xf32>, vector<8x8xf32> -> vector<8x8xf32>
    "tpu.trace_stop"() : () -> ()
    %cst_124 = arith.constant 5.000000e-01 : f32
    %286 = vector.broadcast %cst_124 : f32 to vector<8x8xf32>
    %287 = arith.mulf %285, %286 : vector<8x8xf32>
    %cst_125 = arith.constant dense<0xFF800000> : vector<8xf32>
    %288 = vector.multi_reduction <maximumf>, %287, %cst_125 [1] : vector<8x8xf32> to vector<8xf32>
    %289 = vector.shape_cast %288 : vector<8xf32> to vector<8x1xf32>
    %290 = vector.broadcast %289 : vector<8x1xf32> to vector<8x8xf32>
    %291 = arith.subf %287, %290 : vector<8x8xf32>
    %292 = math.exp %291 : vector<8x8xf32>
    %cst_126 = arith.constant dense<0.000000e+00> : vector<8xf32>
    %293 = vector.multi_reduction <add>, %292, %cst_126 [1] : vector<8x8xf32> to vector<8xf32>
    %294 = vector.shape_cast %293 : vector<8xf32> to vector<8x1xf32>
    %295 = vector.broadcast %294 : vector<8x1xf32> to vector<8x8xf32>
    %296 = arith.divf %292, %295 : vector<8x8xf32>
    %cst_127 = arith.constant dense<0.000000e+00> : vector<8x4xf32>
    %297 = tpu.matmul %296, %284, %cst_127 {dimension_numbers = #tpu.dot_dimension_numbers<[1], [0], [0], [1], [0, 0, 1, 1], [], []>} : vector<8x8xf32>, vector<8x4xf32>, vector<8x4xf32> -> vector<8x4xf32>
    %298 = tpu.concatenate %249, %265, %281, %297 in 1 : vector<8x4xf32>, vector<8x4xf32>, vector<8x4xf32>, vector<8x4xf32> -> vector<8x16xf32>
    %cst_128 = arith.constant dense<0.000000e+00> : vector<8x16xf32>
    %299 = tpu.matmul %298, %224, %cst_128 {dimension_numbers = #tpu.dot_dimension_numbers<[1], [0], [0], [1], [0, 0, 1, 1], [], []>} : vector<8x16xf32>, vector<16x16xf32>, vector<8x16xf32> -> vector<8x16xf32>
    %300 = vector.broadcast %225 : vector<1x16xf32> to vector<8x16xf32>
    %301 = arith.addf %299, %300 : vector<8x16xf32>
    %302 = arith.addf %301, %102 : vector<8x16xf32>
    %c0_129 = arith.constant 0 : index
    %c0_130 = arith.constant 0 : index
    %303 = vector.load %arg27[%c0_129, %c0_130] : memref<1x16xf32, #tpu.memory_space<vmem>>, vector<1x16xf32>
    %c0_131 = arith.constant 0 : index
    %c0_132 = arith.constant 0 : index
    %304 = vector.load %arg28[%c0_131, %c0_132] : memref<1x16xf32, #tpu.memory_space<vmem>>, vector<1x16xf32>
    %cst_133 = arith.constant dense<0.000000e+00> : vector<8xf32>
    %305 = vector.multi_reduction <add>, %302, %cst_133 [1] : vector<8x16xf32> to vector<8xf32>
    %306 = vector.shape_cast %305 : vector<8xf32> to vector<8x1xf32>
    %cst_134 = arith.constant 1.600000e+01 : f32
    %307 = vector.broadcast %cst_134 : f32 to vector<8x1xf32>
    %308 = arith.divf %306, %307 : vector<8x1xf32>
    %309 = vector.broadcast %308 : vector<8x1xf32> to vector<8x16xf32>
    %310 = arith.subf %302, %309 : vector<8x16xf32>
    %311 = arith.mulf %310, %310 : vector<8x16xf32>
    %cst_135 = arith.constant dense<0.000000e+00> : vector<8xf32>
    %312 = vector.multi_reduction <add>, %311, %cst_135 [1] : vector<8x16xf32> to vector<8xf32>
    %313 = vector.shape_cast %312 : vector<8xf32> to vector<8x1xf32>
    %cst_136 = arith.constant 1.500000e+01 : f32
    %314 = vector.broadcast %cst_136 : f32 to vector<8x1xf32>
    %315 = arith.divf %313, %314 : vector<8x1xf32>
    %cst_137 = arith.constant 9.99999974E-6 : f32
    %316 = vector.broadcast %cst_137 : f32 to vector<8x1xf32>
    %317 = arith.addf %315, %316 : vector<8x1xf32>
    %318 = math.rsqrt %317 : vector<8x1xf32>
    %319 = vector.broadcast %318 : vector<8x1xf32> to vector<8x16xf32>
    %320 = arith.mulf %310, %319 : vector<8x16xf32>
    %321 = vector.broadcast %303 : vector<1x16xf32> to vector<8x16xf32>
    %322 = arith.mulf %321, %320 : vector<8x16xf32>
    %323 = vector.broadcast %304 : vector<1x16xf32> to vector<8x16xf32>
    %324 = arith.addf %322, %323 : vector<8x16xf32>
    %c0_138 = arith.constant 0 : index
    %c0_139 = arith.constant 0 : index
    %325 = vector.load %arg23[%c0_138, %c0_139] : memref<16x64xf32, #tpu.memory_space<vmem>>, vector<16x64xf32>
    %c0_140 = arith.constant 0 : index
    %c0_141 = arith.constant 0 : index
    %326 = vector.load %arg24[%c0_140, %c0_141] : memref<1x64xf32, #tpu.memory_space<vmem>>, vector<1x64xf32>
    %c0_142 = arith.constant 0 : index
    %c0_143 = arith.constant 0 : index
    %327 = vector.load %arg25[%c0_142, %c0_143] : memref<64x16xf32, #tpu.memory_space<vmem>>, vector<64x16xf32>
    %c0_144 = arith.constant 0 : index
    %c0_145 = arith.constant 0 : index
    %328 = vector.load %arg26[%c0_144, %c0_145] : memref<1x16xf32, #tpu.memory_space<vmem>>, vector<1x16xf32>
    %cst_146 = arith.constant dense<0.000000e+00> : vector<8x64xf32>
    %329 = tpu.matmul %324, %325, %cst_146 {dimension_numbers = #tpu.dot_dimension_numbers<[1], [0], [0], [1], [0, 0, 1, 1], [], []>} : vector<8x16xf32>, vector<16x64xf32>, vector<8x64xf32> -> vector<8x64xf32>
    %330 = vector.broadcast %326 : vector<1x64xf32> to vector<8x64xf32>
    %331 = arith.addf %329, %330 : vector<8x64xf32>
    %cst_147 = arith.constant 0.000000e+00 : f32
    %332 = vector.broadcast %cst_147 : f32 to vector<8x64xf32>
    %333 = arith.maximumf %331, %332 : vector<8x64xf32>
    %cst_148 = arith.constant dense<0.000000e+00> : vector<8x16xf32>
    %334 = tpu.matmul %333, %327, %cst_148 {dimension_numbers = #tpu.dot_dimension_numbers<[1], [0], [0], [1], [0, 0, 1, 1], [], []>} : vector<8x64xf32>, vector<64x16xf32>, vector<8x16xf32> -> vector<8x16xf32>
    %335 = vector.broadcast %328 : vector<1x16xf32> to vector<8x16xf32>
    %336 = arith.addf %334, %335 : vector<8x16xf32>
    %337 = arith.addf %324, %336 : vector<8x16xf32>
    %c1 = arith.constant 1 : index
    %c0_149 = arith.constant 0 : index
    %c0_150 = arith.constant 0 : index
    %338 = vector.load %arg0[%c1, %c0_149, %c0_150] : memref<2x8x16xf32, #tpu.memory_space<vmem>>, vector<1x8x16xf32>
    %339 = vector.shape_cast %338 : vector<1x8x16xf32> to vector<8x16xf32>
    %340 = arith.addf %339, %0 : vector<8x16xf32>
    %c0_151 = arith.constant 0 : index
    %c0_152 = arith.constant 0 : index
    %341 = vector.load %arg3[%c0_151, %c0_152] : memref<16x48xf32, #tpu.memory_space<vmem>>, vector<16x48xf32>
    %c0_153 = arith.constant 0 : index
    %c0_154 = arith.constant 0 : index
    %342 = vector.load %arg4[%c0_153, %c0_154] : memref<1x48xf32, #tpu.memory_space<vmem>>, vector<1x48xf32>
    %c0_155 = arith.constant 0 : index
    %c0_156 = arith.constant 0 : index
    %343 = vector.load %arg5[%c0_155, %c0_156] : memref<16x16xf32, #tpu.memory_space<vmem>>, vector<16x16xf32>
    %c0_157 = arith.constant 0 : index
    %c0_158 = arith.constant 0 : index
    %344 = vector.load %arg6[%c0_157, %c0_158] : memref<1x16xf32, #tpu.memory_space<vmem>>, vector<1x16xf32>
    %cst_159 = arith.constant dense<0.000000e+00> : vector<8x48xf32>
    %345 = tpu.matmul %340, %341, %cst_159 {dimension_numbers = #tpu.dot_dimension_numbers<[1], [0], [0], [1], [0, 0, 1, 1], [], []>} : vector<8x16xf32>, vector<16x48xf32>, vector<8x48xf32> -> vector<8x48xf32>
    %346 = vector.broadcast %342 : vector<1x48xf32> to vector<8x48xf32>
    %347 = arith.addf %345, %346 : vector<8x48xf32>
    %348 = vector.extract_strided_slice %347 {offsets = [0, 0], sizes = [8, 16], strides = [1, 1]} : vector<8x48xf32> to vector<8x16xf32>
    %349 = vector.extract_strided_slice %347 {offsets = [0, 16], sizes = [8, 16], strides = [1, 1]} : vector<8x48xf32> to vector<8x16xf32>
    %350 = vector.extract_strided_slice %347 {offsets = [0, 32], sizes = [8, 16], strides = [1, 1]} : vector<8x48xf32> to vector<8x16xf32>
    %351 = vector.extract_strided_slice %348 {offsets = [0, 0], sizes = [8, 4], strides = [1, 1]} : vector<8x16xf32> to vector<8x4xf32>
    %352 = vector.extract_strided_slice %349 {offsets = [0, 0], sizes = [8, 4], strides = [1, 1]} : vector<8x16xf32> to vector<8x4xf32>
    %353 = vector.extract_strided_slice %350 {offsets = [0, 0], sizes = [8, 4], strides = [1, 1]} : vector<8x16xf32> to vector<8x4xf32>
    "tpu.trace_start"() <{level = 10 : i32, message = "td,sd->ts"}> : () -> ()
    %cst_160 = arith.constant dense<0.000000e+00> : vector<8x8xf32>
    %354 = tpu.matmul %352, %351, %cst_160 {dimension_numbers = #tpu.dot_dimension_numbers<[1], [1], [0], [0], [0, 0, 1, 0], [], []>} : vector<8x4xf32>, vector<8x4xf32>, vector<8x8xf32> -> vector<8x8xf32>
    "tpu.trace_stop"() : () -> ()
    %cst_161 = arith.constant 5.000000e-01 : f32
    %355 = vector.broadcast %cst_161 : f32 to vector<8x8xf32>
    %356 = arith.mulf %354, %355 : vector<8x8xf32>
    %cst_162 = arith.constant dense<0xFF800000> : vector<8xf32>
    %357 = vector.multi_reduction <maximumf>, %356, %cst_162 [1] : vector<8x8xf32> to vector<8xf32>
    %358 = vector.shape_cast %357 : vector<8xf32> to vector<8x1xf32>
    %359 = vector.broadcast %358 : vector<8x1xf32> to vector<8x8xf32>
    %360 = arith.subf %356, %359 : vector<8x8xf32>
    %361 = math.exp %360 : vector<8x8xf32>
    %cst_163 = arith.constant dense<0.000000e+00> : vector<8xf32>
    %362 = vector.multi_reduction <add>, %361, %cst_163 [1] : vector<8x8xf32> to vector<8xf32>
    %363 = vector.shape_cast %362 : vector<8xf32> to vector<8x1xf32>
    %364 = vector.broadcast %363 : vector<8x1xf32> to vector<8x8xf32>
    %365 = arith.divf %361, %364 : vector<8x8xf32>
    %cst_164 = arith.constant dense<0.000000e+00> : vector<8x4xf32>
    %366 = tpu.matmul %365, %353, %cst_164 {dimension_numbers = #tpu.dot_dimension_numbers<[1], [0], [0], [1], [0, 0, 1, 1], [], []>} : vector<8x8xf32>, vector<8x4xf32>, vector<8x4xf32> -> vector<8x4xf32>
    %367 = vector.extract_strided_slice %348 {offsets = [0, 4], sizes = [8, 4], strides = [1, 1]} : vector<8x16xf32> to vector<8x4xf32>
    %368 = vector.extract_strided_slice %349 {offsets = [0, 4], sizes = [8, 4], strides = [1, 1]} : vector<8x16xf32> to vector<8x4xf32>
    %369 = vector.extract_strided_slice %350 {offsets = [0, 4], sizes = [8, 4], strides = [1, 1]} : vector<8x16xf32> to vector<8x4xf32>
    "tpu.trace_start"() <{level = 10 : i32, message = "td,sd->ts"}> : () -> ()
    %cst_165 = arith.constant dense<0.000000e+00> : vector<8x8xf32>
    %370 = tpu.matmul %368, %367, %cst_165 {dimension_numbers = #tpu.dot_dimension_numbers<[1], [1], [0], [0], [0, 0, 1, 0], [], []>} : vector<8x4xf32>, vector<8x4xf32>, vector<8x8xf32> -> vector<8x8xf32>
    "tpu.trace_stop"() : () -> ()
    %cst_166 = arith.constant 5.000000e-01 : f32
    %371 = vector.broadcast %cst_166 : f32 to vector<8x8xf32>
    %372 = arith.mulf %370, %371 : vector<8x8xf32>
    %cst_167 = arith.constant dense<0xFF800000> : vector<8xf32>
    %373 = vector.multi_reduction <maximumf>, %372, %cst_167 [1] : vector<8x8xf32> to vector<8xf32>
    %374 = vector.shape_cast %373 : vector<8xf32> to vector<8x1xf32>
    %375 = vector.broadcast %374 : vector<8x1xf32> to vector<8x8xf32>
    %376 = arith.subf %372, %375 : vector<8x8xf32>
    %377 = math.exp %376 : vector<8x8xf32>
    %cst_168 = arith.constant dense<0.000000e+00> : vector<8xf32>
    %378 = vector.multi_reduction <add>, %377, %cst_168 [1] : vector<8x8xf32> to vector<8xf32>
    %379 = vector.shape_cast %378 : vector<8xf32> to vector<8x1xf32>
    %380 = vector.broadcast %379 : vector<8x1xf32> to vector<8x8xf32>
    %381 = arith.divf %377, %380 : vector<8x8xf32>
    %cst_169 = arith.constant dense<0.000000e+00> : vector<8x4xf32>
    %382 = tpu.matmul %381, %369, %cst_169 {dimension_numbers = #tpu.dot_dimension_numbers<[1], [0], [0], [1], [0, 0, 1, 1], [], []>} : vector<8x8xf32>, vector<8x4xf32>, vector<8x4xf32> -> vector<8x4xf32>
    %383 = vector.extract_strided_slice %348 {offsets = [0, 8], sizes = [8, 4], strides = [1, 1]} : vector<8x16xf32> to vector<8x4xf32>
    %384 = vector.extract_strided_slice %349 {offsets = [0, 8], sizes = [8, 4], strides = [1, 1]} : vector<8x16xf32> to vector<8x4xf32>
    %385 = vector.extract_strided_slice %350 {offsets = [0, 8], sizes = [8, 4], strides = [1, 1]} : vector<8x16xf32> to vector<8x4xf32>
    "tpu.trace_start"() <{level = 10 : i32, message = "td,sd->ts"}> : () -> ()
    %cst_170 = arith.constant dense<0.000000e+00> : vector<8x8xf32>
    %386 = tpu.matmul %384, %383, %cst_170 {dimension_numbers = #tpu.dot_dimension_numbers<[1], [1], [0], [0], [0, 0, 1, 0], [], []>} : vector<8x4xf32>, vector<8x4xf32>, vector<8x8xf32> -> vector<8x8xf32>
    "tpu.trace_stop"() : () -> ()
    %cst_171 = arith.constant 5.000000e-01 : f32
    %387 = vector.broadcast %cst_171 : f32 to vector<8x8xf32>
    %388 = arith.mulf %386, %387 : vector<8x8xf32>
    %cst_172 = arith.constant dense<0xFF800000> : vector<8xf32>
    %389 = vector.multi_reduction <maximumf>, %388, %cst_172 [1] : vector<8x8xf32> to vector<8xf32>
    %390 = vector.shape_cast %389 : vector<8xf32> to vector<8x1xf32>
    %391 = vector.broadcast %390 : vector<8x1xf32> to vector<8x8xf32>
    %392 = arith.subf %388, %391 : vector<8x8xf32>
    %393 = math.exp %392 : vector<8x8xf32>
    %cst_173 = arith.constant dense<0.000000e+00> : vector<8xf32>
    %394 = vector.multi_reduction <add>, %393, %cst_173 [1] : vector<8x8xf32> to vector<8xf32>
    %395 = vector.shape_cast %394 : vector<8xf32> to vector<8x1xf32>
    %396 = vector.broadcast %395 : vector<8x1xf32> to vector<8x8xf32>
    %397 = arith.divf %393, %396 : vector<8x8xf32>
    %cst_174 = arith.constant dense<0.000000e+00> : vector<8x4xf32>
    %398 = tpu.matmul %397, %385, %cst_174 {dimension_numbers = #tpu.dot_dimension_numbers<[1], [0], [0], [1], [0, 0, 1, 1], [], []>} : vector<8x8xf32>, vector<8x4xf32>, vector<8x4xf32> -> vector<8x4xf32>
    %399 = vector.extract_strided_slice %348 {offsets = [0, 12], sizes = [8, 4], strides = [1, 1]} : vector<8x16xf32> to vector<8x4xf32>
    %400 = vector.extract_strided_slice %349 {offsets = [0, 12], sizes = [8, 4], strides = [1, 1]} : vector<8x16xf32> to vector<8x4xf32>
    %401 = vector.extract_strided_slice %350 {offsets = [0, 12], sizes = [8, 4], strides = [1, 1]} : vector<8x16xf32> to vector<8x4xf32>
    "tpu.trace_start"() <{level = 10 : i32, message = "td,sd->ts"}> : () -> ()
    %cst_175 = arith.constant dense<0.000000e+00> : vector<8x8xf32>
    %402 = tpu.matmul %400, %399, %cst_175 {dimension_numbers = #tpu.dot_dimension_numbers<[1], [1], [0], [0], [0, 0, 1, 0], [], []>} : vector<8x4xf32>, vector<8x4xf32>, vector<8x8xf32> -> vector<8x8xf32>
    "tpu.trace_stop"() : () -> ()
    %cst_176 = arith.constant 5.000000e-01 : f32
    %403 = vector.broadcast %cst_176 : f32 to vector<8x8xf32>
    %404 = arith.mulf %402, %403 : vector<8x8xf32>
    %cst_177 = arith.constant dense<0xFF800000> : vector<8xf32>
    %405 = vector.multi_reduction <maximumf>, %404, %cst_177 [1] : vector<8x8xf32> to vector<8xf32>
    %406 = vector.shape_cast %405 : vector<8xf32> to vector<8x1xf32>
    %407 = vector.broadcast %406 : vector<8x1xf32> to vector<8x8xf32>
    %408 = arith.subf %404, %407 : vector<8x8xf32>
    %409 = math.exp %408 : vector<8x8xf32>
    %cst_178 = arith.constant dense<0.000000e+00> : vector<8xf32>
    %410 = vector.multi_reduction <add>, %409, %cst_178 [1] : vector<8x8xf32> to vector<8xf32>
    %411 = vector.shape_cast %410 : vector<8xf32> to vector<8x1xf32>
    %412 = vector.broadcast %411 : vector<8x1xf32> to vector<8x8xf32>
    %413 = arith.divf %409, %412 : vector<8x8xf32>
    %cst_179 = arith.constant dense<0.000000e+00> : vector<8x4xf32>
    %414 = tpu.matmul %413, %401, %cst_179 {dimension_numbers = #tpu.dot_dimension_numbers<[1], [0], [0], [1], [0, 0, 1, 1], [], []>} : vector<8x8xf32>, vector<8x4xf32>, vector<8x4xf32> -> vector<8x4xf32>
    %415 = tpu.concatenate %366, %382, %398, %414 in 1 : vector<8x4xf32>, vector<8x4xf32>, vector<8x4xf32>, vector<8x4xf32> -> vector<8x16xf32>
    %cst_180 = arith.constant dense<0.000000e+00> : vector<8x16xf32>
    %416 = tpu.matmul %415, %343, %cst_180 {dimension_numbers = #tpu.dot_dimension_numbers<[1], [0], [0], [1], [0, 0, 1, 1], [], []>} : vector<8x16xf32>, vector<16x16xf32>, vector<8x16xf32> -> vector<8x16xf32>
    %417 = vector.broadcast %344 : vector<1x16xf32> to vector<8x16xf32>
    %418 = arith.addf %416, %417 : vector<8x16xf32>
    %419 = arith.addf %340, %418 : vector<8x16xf32>
    %c0_181 = arith.constant 0 : index
    %c0_182 = arith.constant 0 : index
    %420 = vector.load %arg7[%c0_181, %c0_182] : memref<16x64xf32, #tpu.memory_space<vmem>>, vector<16x64xf32>
    %c0_183 = arith.constant 0 : index
    %c0_184 = arith.constant 0 : index
    %421 = vector.load %arg8[%c0_183, %c0_184] : memref<1x64xf32, #tpu.memory_space<vmem>>, vector<1x64xf32>
    %c0_185 = arith.constant 0 : index
    %c0_186 = arith.constant 0 : index
    %422 = vector.load %arg9[%c0_185, %c0_186] : memref<64x16xf32, #tpu.memory_space<vmem>>, vector<64x16xf32>
    %c0_187 = arith.constant 0 : index
    %c0_188 = arith.constant 0 : index
    %423 = vector.load %arg10[%c0_187, %c0_188] : memref<1x16xf32, #tpu.memory_space<vmem>>, vector<1x16xf32>
    %cst_189 = arith.constant dense<0.000000e+00> : vector<8x64xf32>
    %424 = tpu.matmul %419, %420, %cst_189 {dimension_numbers = #tpu.dot_dimension_numbers<[1], [0], [0], [1], [0, 0, 1, 1], [], []>} : vector<8x16xf32>, vector<16x64xf32>, vector<8x64xf32> -> vector<8x64xf32>
    %425 = vector.broadcast %421 : vector<1x64xf32> to vector<8x64xf32>
    %426 = arith.addf %424, %425 : vector<8x64xf32>
    %cst_190 = arith.constant 0.000000e+00 : f32
    %427 = vector.broadcast %cst_190 : f32 to vector<8x64xf32>
    %428 = arith.maximumf %426, %427 : vector<8x64xf32>
    %cst_191 = arith.constant dense<0.000000e+00> : vector<8x16xf32>
    %429 = tpu.matmul %428, %422, %cst_191 {dimension_numbers = #tpu.dot_dimension_numbers<[1], [0], [0], [1], [0, 0, 1, 1], [], []>} : vector<8x64xf32>, vector<64x16xf32>, vector<8x16xf32> -> vector<8x16xf32>
    %430 = vector.broadcast %423 : vector<1x16xf32> to vector<8x16xf32>
    %431 = arith.addf %429, %430 : vector<8x16xf32>
    %432 = arith.addf %419, %431 : vector<8x16xf32>
    %c0_192 = arith.constant 0 : index
    %c0_193 = arith.constant 0 : index
    %433 = vector.load %arg11[%c0_192, %c0_193] : memref<1x16xf32, #tpu.memory_space<vmem>>, vector<1x16xf32>
    %c0_194 = arith.constant 0 : index
    %c0_195 = arith.constant 0 : index
    %434 = vector.load %arg12[%c0_194, %c0_195] : memref<1x16xf32, #tpu.memory_space<vmem>>, vector<1x16xf32>
    %cst_196 = arith.constant dense<0.000000e+00> : vector<8xf32>
    %435 = vector.multi_reduction <add>, %432, %cst_196 [1] : vector<8x16xf32> to vector<8xf32>
    %436 = vector.shape_cast %435 : vector<8xf32> to vector<8x1xf32>
    %cst_197 = arith.constant 1.600000e+01 : f32
    %437 = vector.broadcast %cst_197 : f32 to vector<8x1xf32>
    %438 = arith.divf %436, %437 : vector<8x1xf32>
    %439 = vector.broadcast %438 : vector<8x1xf32> to vector<8x16xf32>
    %440 = arith.subf %432, %439 : vector<8x16xf32>
    %441 = arith.mulf %440, %440 : vector<8x16xf32>
    %cst_198 = arith.constant dense<0.000000e+00> : vector<8xf32>
    %442 = vector.multi_reduction <add>, %441, %cst_198 [1] : vector<8x16xf32> to vector<8xf32>
    %443 = vector.shape_cast %442 : vector<8xf32> to vector<8x1xf32>
    %cst_199 = arith.constant 1.500000e+01 : f32
    %444 = vector.broadcast %cst_199 : f32 to vector<8x1xf32>
    %445 = arith.divf %443, %444 : vector<8x1xf32>
    %cst_200 = arith.constant 9.99999974E-6 : f32
    %446 = vector.broadcast %cst_200 : f32 to vector<8x1xf32>
    %447 = arith.addf %445, %446 : vector<8x1xf32>
    %448 = math.rsqrt %447 : vector<8x1xf32>
    %449 = vector.broadcast %448 : vector<8x1xf32> to vector<8x16xf32>
    %450 = arith.mulf %440, %449 : vector<8x16xf32>
    %451 = vector.broadcast %433 : vector<1x16xf32> to vector<8x16xf32>
    %452 = arith.mulf %451, %450 : vector<8x16xf32>
    %453 = vector.broadcast %434 : vector<1x16xf32> to vector<8x16xf32>
    %454 = arith.addf %452, %453 : vector<8x16xf32>
    %c0_201 = arith.constant 0 : index
    %c0_202 = arith.constant 0 : index
    %455 = vector.load %arg17[%c0_201, %c0_202] : memref<16x32xf32, #tpu.memory_space<vmem>>, vector<16x32xf32>
    %c0_203 = arith.constant 0 : index
    %c0_204 = arith.constant 0 : index
    %456 = vector.load %arg18[%c0_203, %c0_204] : memref<1x32xf32, #tpu.memory_space<vmem>>, vector<1x32xf32>
    %c0_205 = arith.constant 0 : index
    %c0_206 = arith.constant 0 : index
    %457 = vector.load %arg19[%c0_205, %c0_206] : memref<16x16xf32, #tpu.memory_space<vmem>>, vector<16x16xf32>
    %c0_207 = arith.constant 0 : index
    %c0_208 = arith.constant 0 : index
    %458 = vector.load %arg20[%c0_207, %c0_208] : memref<1x16xf32, #tpu.memory_space<vmem>>, vector<1x16xf32>
    %c0_209 = arith.constant 0 : index
    %c0_210 = arith.constant 0 : index
    %459 = vector.load %arg21[%c0_209, %c0_210] : memref<16x16xf32, #tpu.memory_space<vmem>>, vector<16x16xf32>
    %c0_211 = arith.constant 0 : index
    %c0_212 = arith.constant 0 : index
    %460 = vector.load %arg22[%c0_211, %c0_212] : memref<1x16xf32, #tpu.memory_space<vmem>>, vector<1x16xf32>
    %cst_213 = arith.constant dense<0.000000e+00> : vector<8x32xf32>
    %461 = tpu.matmul %454, %455, %cst_213 {dimension_numbers = #tpu.dot_dimension_numbers<[1], [0], [0], [1], [0, 0, 1, 1], [], []>} : vector<8x16xf32>, vector<16x32xf32>, vector<8x32xf32> -> vector<8x32xf32>
    %462 = vector.broadcast %456 : vector<1x32xf32> to vector<8x32xf32>
    %463 = arith.addf %461, %462 : vector<8x32xf32>
    %cst_214 = arith.constant dense<0.000000e+00> : vector<8x16xf32>
    %464 = tpu.matmul %102, %457, %cst_214 {dimension_numbers = #tpu.dot_dimension_numbers<[1], [0], [0], [1], [0, 0, 1, 1], [], []>} : vector<8x16xf32>, vector<16x16xf32>, vector<8x16xf32> -> vector<8x16xf32>
    %465 = vector.broadcast %458 : vector<1x16xf32> to vector<8x16xf32>
    %466 = arith.addf %464, %465 : vector<8x16xf32>
    %467 = vector.extract_strided_slice %463 {offsets = [0, 0], sizes = [8, 16], strides = [1, 1]} : vector<8x32xf32> to vector<8x16xf32>
    %468 = vector.extract_strided_slice %463 {offsets = [0, 16], sizes = [8, 16], strides = [1, 1]} : vector<8x32xf32> to vector<8x16xf32>
    %469 = vector.extract_strided_slice %467 {offsets = [0, 0], sizes = [8, 4], strides = [1, 1]} : vector<8x16xf32> to vector<8x4xf32>
    %470 = vector.extract_strided_slice %466 {offsets = [0, 0], sizes = [8, 4], strides = [1, 1]} : vector<8x16xf32> to vector<8x4xf32>
    %471 = vector.extract_strided_slice %468 {offsets = [0, 0], sizes = [8, 4], strides = [1, 1]} : vector<8x16xf32> to vector<8x4xf32>
    "tpu.trace_start"() <{level = 10 : i32, message = "td,sd->ts"}> : () -> ()
    %cst_215 = arith.constant dense<0.000000e+00> : vector<8x8xf32>
    %472 = tpu.matmul %470, %469, %cst_215 {dimension_numbers = #tpu.dot_dimension_numbers<[1], [1], [0], [0], [0, 0, 1, 0], [], []>} : vector<8x4xf32>, vector<8x4xf32>, vector<8x8xf32> -> vector<8x8xf32>
    "tpu.trace_stop"() : () -> ()
    %cst_216 = arith.constant 5.000000e-01 : f32
    %473 = vector.broadcast %cst_216 : f32 to vector<8x8xf32>
    %474 = arith.mulf %472, %473 : vector<8x8xf32>
    %cst_217 = arith.constant dense<0xFF800000> : vector<8xf32>
    %475 = vector.multi_reduction <maximumf>, %474, %cst_217 [1] : vector<8x8xf32> to vector<8xf32>
    %476 = vector.shape_cast %475 : vector<8xf32> to vector<8x1xf32>
    %477 = vector.broadcast %476 : vector<8x1xf32> to vector<8x8xf32>
    %478 = arith.subf %474, %477 : vector<8x8xf32>
    %479 = math.exp %478 : vector<8x8xf32>
    %cst_218 = arith.constant dense<0.000000e+00> : vector<8xf32>
    %480 = vector.multi_reduction <add>, %479, %cst_218 [1] : vector<8x8xf32> to vector<8xf32>
    %481 = vector.shape_cast %480 : vector<8xf32> to vector<8x1xf32>
    %482 = vector.broadcast %481 : vector<8x1xf32> to vector<8x8xf32>
    %483 = arith.divf %479, %482 : vector<8x8xf32>
    %cst_219 = arith.constant dense<0.000000e+00> : vector<8x4xf32>
    %484 = tpu.matmul %483, %471, %cst_219 {dimension_numbers = #tpu.dot_dimension_numbers<[1], [0], [0], [1], [0, 0, 1, 1], [], []>} : vector<8x8xf32>, vector<8x4xf32>, vector<8x4xf32> -> vector<8x4xf32>
    %485 = vector.extract_strided_slice %467 {offsets = [0, 4], sizes = [8, 4], strides = [1, 1]} : vector<8x16xf32> to vector<8x4xf32>
    %486 = vector.extract_strided_slice %466 {offsets = [0, 4], sizes = [8, 4], strides = [1, 1]} : vector<8x16xf32> to vector<8x4xf32>
    %487 = vector.extract_strided_slice %468 {offsets = [0, 4], sizes = [8, 4], strides = [1, 1]} : vector<8x16xf32> to vector<8x4xf32>
    "tpu.trace_start"() <{level = 10 : i32, message = "td,sd->ts"}> : () -> ()
    %cst_220 = arith.constant dense<0.000000e+00> : vector<8x8xf32>
    %488 = tpu.matmul %486, %485, %cst_220 {dimension_numbers = #tpu.dot_dimension_numbers<[1], [1], [0], [0], [0, 0, 1, 0], [], []>} : vector<8x4xf32>, vector<8x4xf32>, vector<8x8xf32> -> vector<8x8xf32>
    "tpu.trace_stop"() : () -> ()
    %cst_221 = arith.constant 5.000000e-01 : f32
    %489 = vector.broadcast %cst_221 : f32 to vector<8x8xf32>
    %490 = arith.mulf %488, %489 : vector<8x8xf32>
    %cst_222 = arith.constant dense<0xFF800000> : vector<8xf32>
    %491 = vector.multi_reduction <maximumf>, %490, %cst_222 [1] : vector<8x8xf32> to vector<8xf32>
    %492 = vector.shape_cast %491 : vector<8xf32> to vector<8x1xf32>
    %493 = vector.broadcast %492 : vector<8x1xf32> to vector<8x8xf32>
    %494 = arith.subf %490, %493 : vector<8x8xf32>
    %495 = math.exp %494 : vector<8x8xf32>
    %cst_223 = arith.constant dense<0.000000e+00> : vector<8xf32>
    %496 = vector.multi_reduction <add>, %495, %cst_223 [1] : vector<8x8xf32> to vector<8xf32>
    %497 = vector.shape_cast %496 : vector<8xf32> to vector<8x1xf32>
    %498 = vector.broadcast %497 : vector<8x1xf32> to vector<8x8xf32>
    %499 = arith.divf %495, %498 : vector<8x8xf32>
    %cst_224 = arith.constant dense<0.000000e+00> : vector<8x4xf32>
    %500 = tpu.matmul %499, %487, %cst_224 {dimension_numbers = #tpu.dot_dimension_numbers<[1], [0], [0], [1], [0, 0, 1, 1], [], []>} : vector<8x8xf32>, vector<8x4xf32>, vector<8x4xf32> -> vector<8x4xf32>
    %501 = vector.extract_strided_slice %467 {offsets = [0, 8], sizes = [8, 4], strides = [1, 1]} : vector<8x16xf32> to vector<8x4xf32>
    %502 = vector.extract_strided_slice %466 {offsets = [0, 8], sizes = [8, 4], strides = [1, 1]} : vector<8x16xf32> to vector<8x4xf32>
    %503 = vector.extract_strided_slice %468 {offsets = [0, 8], sizes = [8, 4], strides = [1, 1]} : vector<8x16xf32> to vector<8x4xf32>
    "tpu.trace_start"() <{level = 10 : i32, message = "td,sd->ts"}> : () -> ()
    %cst_225 = arith.constant dense<0.000000e+00> : vector<8x8xf32>
    %504 = tpu.matmul %502, %501, %cst_225 {dimension_numbers = #tpu.dot_dimension_numbers<[1], [1], [0], [0], [0, 0, 1, 0], [], []>} : vector<8x4xf32>, vector<8x4xf32>, vector<8x8xf32> -> vector<8x8xf32>
    "tpu.trace_stop"() : () -> ()
    %cst_226 = arith.constant 5.000000e-01 : f32
    %505 = vector.broadcast %cst_226 : f32 to vector<8x8xf32>
    %506 = arith.mulf %504, %505 : vector<8x8xf32>
    %cst_227 = arith.constant dense<0xFF800000> : vector<8xf32>
    %507 = vector.multi_reduction <maximumf>, %506, %cst_227 [1] : vector<8x8xf32> to vector<8xf32>
    %508 = vector.shape_cast %507 : vector<8xf32> to vector<8x1xf32>
    %509 = vector.broadcast %508 : vector<8x1xf32> to vector<8x8xf32>
    %510 = arith.subf %506, %509 : vector<8x8xf32>
    %511 = math.exp %510 : vector<8x8xf32>
    %cst_228 = arith.constant dense<0.000000e+00> : vector<8xf32>
    %512 = vector.multi_reduction <add>, %511, %cst_228 [1] : vector<8x8xf32> to vector<8xf32>
    %513 = vector.shape_cast %512 : vector<8xf32> to vector<8x1xf32>
    %514 = vector.broadcast %513 : vector<8x1xf32> to vector<8x8xf32>
    %515 = arith.divf %511, %514 : vector<8x8xf32>
    %cst_229 = arith.constant dense<0.000000e+00> : vector<8x4xf32>
    %516 = tpu.matmul %515, %503, %cst_229 {dimension_numbers = #tpu.dot_dimension_numbers<[1], [0], [0], [1], [0, 0, 1, 1], [], []>} : vector<8x8xf32>, vector<8x4xf32>, vector<8x4xf32> -> vector<8x4xf32>
    %517 = vector.extract_strided_slice %467 {offsets = [0, 12], sizes = [8, 4], strides = [1, 1]} : vector<8x16xf32> to vector<8x4xf32>
    %518 = vector.extract_strided_slice %466 {offsets = [0, 12], sizes = [8, 4], strides = [1, 1]} : vector<8x16xf32> to vector<8x4xf32>
    %519 = vector.extract_strided_slice %468 {offsets = [0, 12], sizes = [8, 4], strides = [1, 1]} : vector<8x16xf32> to vector<8x4xf32>
    "tpu.trace_start"() <{level = 10 : i32, message = "td,sd->ts"}> : () -> ()
    %cst_230 = arith.constant dense<0.000000e+00> : vector<8x8xf32>
    %520 = tpu.matmul %518, %517, %cst_230 {dimension_numbers = #tpu.dot_dimension_numbers<[1], [1], [0], [0], [0, 0, 1, 0], [], []>} : vector<8x4xf32>, vector<8x4xf32>, vector<8x8xf32> -> vector<8x8xf32>
    "tpu.trace_stop"() : () -> ()
    %cst_231 = arith.constant 5.000000e-01 : f32
    %521 = vector.broadcast %cst_231 : f32 to vector<8x8xf32>
    %522 = arith.mulf %520, %521 : vector<8x8xf32>
    %cst_232 = arith.constant dense<0xFF800000> : vector<8xf32>
    %523 = vector.multi_reduction <maximumf>, %522, %cst_232 [1] : vector<8x8xf32> to vector<8xf32>
    %524 = vector.shape_cast %523 : vector<8xf32> to vector<8x1xf32>
    %525 = vector.broadcast %524 : vector<8x1xf32> to vector<8x8xf32>
    %526 = arith.subf %522, %525 : vector<8x8xf32>
    %527 = math.exp %526 : vector<8x8xf32>
    %cst_233 = arith.constant dense<0.000000e+00> : vector<8xf32>
    %528 = vector.multi_reduction <add>, %527, %cst_233 [1] : vector<8x8xf32> to vector<8xf32>
    %529 = vector.shape_cast %528 : vector<8xf32> to vector<8x1xf32>
    %530 = vector.broadcast %529 : vector<8x1xf32> to vector<8x8xf32>
    %531 = arith.divf %527, %530 : vector<8x8xf32>
    %cst_234 = arith.constant dense<0.000000e+00> : vector<8x4xf32>
    %532 = tpu.matmul %531, %519, %cst_234 {dimension_numbers = #tpu.dot_dimension_numbers<[1], [0], [0], [1], [0, 0, 1, 1], [], []>} : vector<8x8xf32>, vector<8x4xf32>, vector<8x4xf32> -> vector<8x4xf32>
    %533 = tpu.concatenate %484, %500, %516, %532 in 1 : vector<8x4xf32>, vector<8x4xf32>, vector<8x4xf32>, vector<8x4xf32> -> vector<8x16xf32>
    %cst_235 = arith.constant dense<0.000000e+00> : vector<8x16xf32>
    %534 = tpu.matmul %533, %459, %cst_235 {dimension_numbers = #tpu.dot_dimension_numbers<[1], [0], [0], [1], [0, 0, 1, 1], [], []>} : vector<8x16xf32>, vector<16x16xf32>, vector<8x16xf32> -> vector<8x16xf32>
    %535 = vector.broadcast %460 : vector<1x16xf32> to vector<8x16xf32>
    %536 = arith.addf %534, %535 : vector<8x16xf32>
    %537 = arith.addf %536, %102 : vector<8x16xf32>
    %c0_236 = arith.constant 0 : index
    %c0_237 = arith.constant 0 : index
    %538 = vector.load %arg27[%c0_236, %c0_237] : memref<1x16xf32, #tpu.memory_space<vmem>>, vector<1x16xf32>
    %c0_238 = arith.constant 0 : index
    %c0_239 = arith.constant 0 : index
    %539 = vector.load %arg28[%c0_238, %c0_239] : memref<1x16xf32, #tpu.memory_space<vmem>>, vector<1x16xf32>
    %cst_240 = arith.constant dense<0.000000e+00> : vector<8xf32>
    %540 = vector.multi_reduction <add>, %537, %cst_240 [1] : vector<8x16xf32> to vector<8xf32>
    %541 = vector.shape_cast %540 : vector<8xf32> to vector<8x1xf32>
    %cst_241 = arith.constant 1.600000e+01 : f32
    %542 = vector.broadcast %cst_241 : f32 to vector<8x1xf32>
    %543 = arith.divf %541, %542 : vector<8x1xf32>
    %544 = vector.broadcast %543 : vector<8x1xf32> to vector<8x16xf32>
    %545 = arith.subf %537, %544 : vector<8x16xf32>
    %546 = arith.mulf %545, %545 : vector<8x16xf32>
    %cst_242 = arith.constant dense<0.000000e+00> : vector<8xf32>
    %547 = vector.multi_reduction <add>, %546, %cst_242 [1] : vector<8x16xf32> to vector<8xf32>
    %548 = vector.shape_cast %547 : vector<8xf32> to vector<8x1xf32>
    %cst_243 = arith.constant 1.500000e+01 : f32
    %549 = vector.broadcast %cst_243 : f32 to vector<8x1xf32>
    %550 = arith.divf %548, %549 : vector<8x1xf32>
    %cst_244 = arith.constant 9.99999974E-6 : f32
    %551 = vector.broadcast %cst_244 : f32 to vector<8x1xf32>
    %552 = arith.addf %550, %551 : vector<8x1xf32>
    %553 = math.rsqrt %552 : vector<8x1xf32>
    %554 = vector.broadcast %553 : vector<8x1xf32> to vector<8x16xf32>
    %555 = arith.mulf %545, %554 : vector<8x16xf32>
    %556 = vector.broadcast %538 : vector<1x16xf32> to vector<8x16xf32>
    %557 = arith.mulf %556, %555 : vector<8x16xf32>
    %558 = vector.broadcast %539 : vector<1x16xf32> to vector<8x16xf32>
    %559 = arith.addf %557, %558 : vector<8x16xf32>
    %c0_245 = arith.constant 0 : index
    %c0_246 = arith.constant 0 : index
    %560 = vector.load %arg23[%c0_245, %c0_246] : memref<16x64xf32, #tpu.memory_space<vmem>>, vector<16x64xf32>
    %c0_247 = arith.constant 0 : index
    %c0_248 = arith.constant 0 : index
    %561 = vector.load %arg24[%c0_247, %c0_248] : memref<1x64xf32, #tpu.memory_space<vmem>>, vector<1x64xf32>
    %c0_249 = arith.constant 0 : index
    %c0_250 = arith.constant 0 : index
    %562 = vector.load %arg25[%c0_249, %c0_250] : memref<64x16xf32, #tpu.memory_space<vmem>>, vector<64x16xf32>
    %c0_251 = arith.constant 0 : index
    %c0_252 = arith.constant 0 : index
    %563 = vector.load %arg26[%c0_251, %c0_252] : memref<1x16xf32, #tpu.memory_space<vmem>>, vector<1x16xf32>
    %cst_253 = arith.constant dense<0.000000e+00> : vector<8x64xf32>
    %564 = tpu.matmul %559, %560, %cst_253 {dimension_numbers = #tpu.dot_dimension_numbers<[1], [0], [0], [1], [0, 0, 1, 1], [], []>} : vector<8x16xf32>, vector<16x64xf32>, vector<8x64xf32> -> vector<8x64xf32>
    %565 = vector.broadcast %561 : vector<1x64xf32> to vector<8x64xf32>
    %566 = arith.addf %564, %565 : vector<8x64xf32>
    %cst_254 = arith.constant 0.000000e+00 : f32
    %567 = vector.broadcast %cst_254 : f32 to vector<8x64xf32>
    %568 = arith.maximumf %566, %567 : vector<8x64xf32>
    %cst_255 = arith.constant dense<0.000000e+00> : vector<8x16xf32>
    %569 = tpu.matmul %568, %562, %cst_255 {dimension_numbers = #tpu.dot_dimension_numbers<[1], [0], [0], [1], [0, 0, 1, 1], [], []>} : vector<8x64xf32>, vector<64x16xf32>, vector<8x16xf32> -> vector<8x16xf32>
    %570 = vector.broadcast %563 : vector<1x16xf32> to vector<8x16xf32>
    %571 = arith.addf %569, %570 : vector<8x16xf32>
    %572 = arith.addf %559, %571 : vector<8x16xf32>
    %573 = tpu.concatenate %337, %572 in 0 : vector<8x16xf32>, vector<8x16xf32> -> vector<16x16xf32>
    %c0_256 = arith.constant 0 : index
    %c0_257 = arith.constant 0 : index
    %574 = vector.load %arg29[%c0_256, %c0_257] : memref<16x128xf32, #tpu.memory_space<vmem>>, vector<16x128xf32>
    %cst_258 = arith.constant dense<0.000000e+00> : vector<16x128xf32>
    %575 = tpu.matmul %573, %574, %cst_258 {dimension_numbers = #tpu.dot_dimension_numbers<[1], [0], [0], [1], [0, 0, 1, 1], [], []>} : vector<16x16xf32>, vector<16x128xf32>, vector<16x128xf32> -> vector<16x128xf32>
    %c0_259 = arith.constant 0 : index
    %c0_260 = arith.constant 0 : index
    %576 = vector.load %arg30[%c0_259, %c0_260] : memref<1x128xf32, #tpu.memory_space<vmem>>, vector<1x128xf32>
    %577 = vector.broadcast %576 : vector<1x128xf32> to vector<16x128xf32>
    %578 = arith.addf %575, %577 : vector<16x128xf32>
    %cst_261 = arith.constant 0.000000e+00 : f32
    %579 = vector.broadcast %cst_261 : f32 to vector<16x128xf32>
    %580 = arith.maximumf %578, %579 : vector<16x128xf32>
    %581 = vector.extract_strided_slice %580 {offsets = [0, 0], sizes = [16, 64], strides = [1, 1]} : vector<16x128xf32> to vector<16x64xf32>
    %582 = vector.extract_strided_slice %580 {offsets = [0, 64], sizes = [16, 64], strides = [1, 1]} : vector<16x128xf32> to vector<16x64xf32>
    %c0_262 = arith.constant 0 : index
    %c0_263 = arith.constant 0 : index
    %583 = vector.load %arg31[%c0_262, %c0_263] : memref<64x16xf32, #tpu.memory_space<vmem>>, vector<64x16xf32>
    %cst_264 = arith.constant dense<0.000000e+00> : vector<16x16xf32>
    %584 = tpu.matmul %581, %583, %cst_264 {dimension_numbers = #tpu.dot_dimension_numbers<[1], [0], [0], [1], [0, 0, 1, 1], [], []>} : vector<16x64xf32>, vector<64x16xf32>, vector<16x16xf32> -> vector<16x16xf32>
    %c0_265 = arith.constant 0 : index
    %c0_266 = arith.constant 0 : index
    %585 = vector.load %arg32[%c0_265, %c0_266] : memref<1x16xf32, #tpu.memory_space<vmem>>, vector<1x16xf32>
    %586 = vector.broadcast %585 : vector<1x16xf32> to vector<16x16xf32>
    %587 = arith.addf %584, %586 : vector<16x16xf32>
    %cst_267 = arith.constant 0.000000e+00 : f32
    %588 = vector.broadcast %cst_267 : f32 to vector<16x16xf32>
    %589 = arith.maximumf %587, %588 : vector<16x16xf32>
    %c0_268 = arith.constant 0 : index
    %c0_269 = arith.constant 0 : index
    %590 = vector.load %arg33[%c0_268, %c0_269] : memref<16x4xf32, #tpu.memory_space<vmem>>, vector<16x4xf32>
    %cst_270 = arith.constant dense<0.000000e+00> : vector<16x4xf32>
    %591 = tpu.matmul %589, %590, %cst_270 {dimension_numbers = #tpu.dot_dimension_numbers<[1], [0], [0], [1], [0, 0, 1, 1], [], []>} : vector<16x16xf32>, vector<16x4xf32>, vector<16x4xf32> -> vector<16x4xf32>
    %c0_271 = arith.constant 0 : index
    %c0_272 = arith.constant 0 : index
    %592 = vector.load %arg34[%c0_271, %c0_272] : memref<1x4xf32, #tpu.memory_space<vmem>>, vector<1x4xf32>
    %593 = vector.broadcast %592 : vector<1x4xf32> to vector<16x4xf32>
    %594 = arith.addf %591, %593 : vector<16x4xf32>
    %cst_273 = arith.constant 0.000000e+00 : f32
    %595 = vector.broadcast %cst_273 : f32 to vector<16x4xf32>
    %596 = arith.maximumf %594, %595 : vector<16x4xf32>
    %c0_274 = arith.constant 0 : index
    %c0_275 = arith.constant 0 : index
    %597 = vector.load %arg35[%c0_274, %c0_275] : memref<4x2xf32, #tpu.memory_space<vmem>>, vector<4x2xf32>
    %cst_276 = arith.constant dense<0.000000e+00> : vector<16x2xf32>
    %598 = tpu.matmul %596, %597, %cst_276 {dimension_numbers = #tpu.dot_dimension_numbers<[1], [0], [0], [1], [0, 0, 1, 1], [], []>} : vector<16x4xf32>, vector<4x2xf32>, vector<16x2xf32> -> vector<16x2xf32>
    %c0_277 = arith.constant 0 : index
    %c0_278 = arith.constant 0 : index
    %599 = vector.load %arg36[%c0_277, %c0_278] : memref<1x2xf32, #tpu.memory_space<vmem>>, vector<1x2xf32>
    %600 = vector.broadcast %599 : vector<1x2xf32> to vector<16x2xf32>
    %601 = arith.addf %598, %600 : vector<16x2xf32>
    %cst_279 = arith.constant dense<0xFF800000> : vector<16xf32>
    %602 = vector.multi_reduction <maximumf>, %601, %cst_279 [1] : vector<16x2xf32> to vector<16xf32>
    %603 = vector.shape_cast %602 : vector<16xf32> to vector<16x1xf32>
    %604 = vector.broadcast %603 : vector<16x1xf32> to vector<16x2xf32>
    %605 = arith.subf %601, %604 : vector<16x2xf32>
    %606 = math.exp %605 : vector<16x2xf32>
    %cst_280 = arith.constant dense<0.000000e+00> : vector<16xf32>
    %607 = vector.multi_reduction <add>, %606, %cst_280 [1] : vector<16x2xf32> to vector<16xf32>
    %608 = vector.shape_cast %607 : vector<16xf32> to vector<16x1xf32>
    %609 = vector.broadcast %608 : vector<16x1xf32> to vector<16x2xf32>
    %610 = arith.divf %606, %609 : vector<16x2xf32>
    %c0_281 = arith.constant 0 : index
    %c0_282 = arith.constant 0 : index
    %611 = vector.load %arg43[%c0_281, %c0_282] : memref<16x2xf32, #tpu.memory_space<vmem>>, vector<16x2xf32>
    tpu.vector_store %arg43[%c0_281, %c0_282], %610 {strides = array<i32>} : memref<16x2xf32, #tpu.memory_space<vmem>>, vector<16x2xf32>,
    %c0_283 = arith.constant 0 : index
    %c0_284 = arith.constant 0 : index
    %612 = vector.load %arg37[%c0_283, %c0_284] : memref<64x16xf32, #tpu.memory_space<vmem>>, vector<64x16xf32>
    %cst_285 = arith.constant dense<0.000000e+00> : vector<16x16xf32>
    %613 = tpu.matmul %582, %612, %cst_285 {dimension_numbers = #tpu.dot_dimension_numbers<[1], [0], [0], [1], [0, 0, 1, 1], [], []>} : vector<16x64xf32>, vector<64x16xf32>, vector<16x16xf32> -> vector<16x16xf32>
    %c0_286 = arith.constant 0 : index
    %c0_287 = arith.constant 0 : index
    %614 = vector.load %arg38[%c0_286, %c0_287] : memref<1x16xf32, #tpu.memory_space<vmem>>, vector<1x16xf32>
    %615 = vector.broadcast %614 : vector<1x16xf32> to vector<16x16xf32>
    %616 = arith.addf %613, %615 : vector<16x16xf32>
    %cst_288 = arith.constant 0.000000e+00 : f32
    %617 = vector.broadcast %cst_288 : f32 to vector<16x16xf32>
    %618 = arith.maximumf %616, %617 : vector<16x16xf32>
    %c0_289 = arith.constant 0 : index
    %c0_290 = arith.constant 0 : index
    %619 = vector.load %arg39[%c0_289, %c0_290] : memref<16x4xf32, #tpu.memory_space<vmem>>, vector<16x4xf32>
    %cst_291 = arith.constant dense<0.000000e+00> : vector<16x4xf32>
    %620 = tpu.matmul %618, %619, %cst_291 {dimension_numbers = #tpu.dot_dimension_numbers<[1], [0], [0], [1], [0, 0, 1, 1], [], []>} : vector<16x16xf32>, vector<16x4xf32>, vector<16x4xf32> -> vector<16x4xf32>
    %c0_292 = arith.constant 0 : index
    %c0_293 = arith.constant 0 : index
    %621 = vector.load %arg40[%c0_292, %c0_293] : memref<1x4xf32, #tpu.memory_space<vmem>>, vector<1x4xf32>
    %622 = vector.broadcast %621 : vector<1x4xf32> to vector<16x4xf32>
    %623 = arith.addf %620, %622 : vector<16x4xf32>
    %cst_294 = arith.constant 0.000000e+00 : f32
    %624 = vector.broadcast %cst_294 : f32 to vector<16x4xf32>
    %625 = arith.maximumf %623, %624 : vector<16x4xf32>
    %c0_295 = arith.constant 0 : index
    %c0_296 = arith.constant 0 : index
    %626 = vector.load %arg41[%c0_295, %c0_296] : memref<4x5xf32, #tpu.memory_space<vmem>>, vector<4x5xf32>
    %cst_297 = arith.constant dense<0.000000e+00> : vector<16x5xf32>
    %627 = tpu.matmul %625, %626, %cst_297 {dimension_numbers = #tpu.dot_dimension_numbers<[1], [0], [0], [1], [0, 0, 1, 1], [], []>} : vector<16x4xf32>, vector<4x5xf32>, vector<16x5xf32> -> vector<16x5xf32>
    %c0_298 = arith.constant 0 : index
    %c0_299 = arith.constant 0 : index
    %628 = vector.load %arg42[%c0_298, %c0_299] : memref<1x5xf32, #tpu.memory_space<vmem>>, vector<1x5xf32>
    %629 = vector.broadcast %628 : vector<1x5xf32> to vector<16x5xf32>
    %630 = arith.addf %627, %629 : vector<16x5xf32>
    %c0_300 = arith.constant 0 : index
    %c0_301 = arith.constant 0 : index
    %631 = vector.load %arg44[%c0_300, %c0_301] : memref<16x5xf32, #tpu.memory_space<vmem>>, vector<16x5xf32>
    tpu.vector_store %arg44[%c0_300, %c0_301], %630 {strides = array<i32>} : memref<16x5xf32, #tpu.memory_space<vmem>>, vector<16x5xf32>,
    return
  }
}

</mosaic_0001>

<bundles_post_ra>
// kernel: detr_forward.6
= control target key start
LH: loop header
LB: loop body
LE: loop exit
PB: predicated region body
PF: predicated region fallthrough
CT: control target
= control target key end

     0   :  { %s6193_s12 = smov 0   ;;  %s6195_s13 = smov 0   ;;  %s7969_s0 = inlined_call_operand.vmem [shape: bf16[8,147], index: 0, kind: input, shape index: {}]   ;;  %s7970_s1 = inlined_call_operand.vmem [shape: bf16[147,9522], index: 1, kind: input, shape index: {}]   ;;  %s7971_s2 = inlined_call_operand.vmem [shape: f32[8,1], index: 2, kind: input, shape index: {}]   ;;  %s7972_s3 = inlined_call_operand.vmem [shape: f32[8,9522], index: 3, kind: output, shape index: {}]  }
   0x1   :  { %s6197_s14 = smov 0  }
   0x2 LB: > { %s6209_s15 = sadd.s32 4294967295, %s6037_s14   ;;  %s6212_s16 = sadd.s32 1, %s6037_s14   ;;  %s6037_s14 = sphi %s6197_s14, %s8004_s14   ;;  %s6033_s13 = sphi %s6195_s13, %s8003_s13   ;;  %s6029_s12 = sphi %s6193_s12, %s8002_s12  }
   0x3   : > { %s38_s17 = ssub.s32 %s6037_s14, %s6212_s16  ;;  %s41_s18 = sadd.s32 1, %s6033_s13 }
   0x4   : > { %p39_p0 = scmp.eq.s32.totalorder %s38_s17, 0  ;;  %p48_p1 = scmp.ne.s32.totalorder %s6033_s13, %s6029_s12 }
   0x5   : > { %p49_p2 = scmp.eq.s32.totalorder %s6037_s14, 0  ;;  %p99_p3 = scmp.eq.s32.totalorder %s6209_s15, 1 }
   0x6   : > { %s6222_s19 = scalar_select %p39_p0, %s6033_s13, %s41_s18  }
   0x7   : > { %p50_p4 = por %p49_p2, %p48_p1  ;;  %p6224_p5 = por %p99_p3, %p48_p1 }
   0x8   : > { %p4576_p6 = scmp.ge.s32.totalorder %s6037_s14, 2 }
   0xa   : > { %127 = sbr.rel (%p4576_p6) target bundleno = 222 (0xde), region = 24 }
   0xf   : > { %130 = sbr.rel (!%p50_p4) target bundleno = 222 (0xde), region = 28  ;;  %s132_s21 = sand.u32 (%p50_p4), 1, %s6033_s13  }
  0x10   : > { %s135_s22 = smul.u32 (%p50_p4), 38, %s6037_s14 }
  0x11   : > { %s5044_s23 = smul.u32 (%p50_p4), 2888, %s132_s21 }
  0x12   : > { %s136_s24 = ssub.s32 (%p50_p4), 75, %s135_s22  ;;  %s5034_s25 = smul.u32 (%p50_p4), 152, %s6037_s14 }
  0x13   : > { %p137_p7 = scmp.lt.s32.totalorder (%p50_p4), %s136_s24, 38  ;;  %s6239_s4 = scalar_lea.vmem (%p50_p4), [#allocation2], %s5044_s23  }
  0x14   : > { %s6235_s28 = scalar_lea.vmem %s7970_s1, %s5034_s25  }
  0x15   : > { %s8006_s24 = smov (!%p137_p7, %s136_s24), 38 }
  0x16   : > { %s139_s29 = smul.u32 1216, %s8006_s24  ;;  %s6237_s30 = sshll.u32 %s8006_s24, 2 }
  0x18   : > { %p4580_p8 = scmp.eq.s32.totalorder %s139_s29, 0 }
  0x19   : > { %p147_p9 = scmp.lt.u32.totalorder (!%p4580_p8), %s6237_s30, 8 }
  0x1a   : > { %146 = sbr.rel (%p4580_p8) target bundleno = 222 (0xde), region = 32 }
  0x1f   : > { %150 = sbr.rel (%p147_p9) target bundleno = 195 (0xc3), region = 36  ;;  %s6243_s5 = sand.u32 (!%p147_p9), 7, %s6237_s30  }
  0x20   : > { %p203_p10 = scmp.eq.s32.totalorder (!%p147_p9), %s6243_s5, 0  ;;  %p4581_p11 = scmp.ne.s32.totalorder (!%p147_p9), %s6243_s5, 0 }
  0x24   : > { %206 = sbr.rel (%p4581_p11) target bundleno = 104 (0x68), region = 51  ;;  %s207_s6 = sshrl.u32 (!%p4581_p11), %s6237_s30, 3 }
  0x25   : > { %s6250_s7 = sshrl.u32 (!%p4581_p11), %s207_s6, 2 }
  0x26   : > { %p4582_p12 = scmp.le.s32.totalorder (!%p4581_p11), %s6250_s7, 0 }
  0x29   : > { %4446 = sbr.rel (%p4582_p12) target bundleno = 85 (0x55), region = 229  ;;  %s7974_s8 = smov (!%p4582_p12), %s6239_s4 }
  0x2a   : > { %s7975_s9 = smov (!%p4582_p12), %s6235_s28  ;;  %s6259_s10 = smov (!%p4582_p12), 0  }
  0x2b   : > { %s6261_s11 = smov (!%p4582_p12), 0  }
  0x2e LB: >> { %v220_v0 = vld [vmem:[%s6045_s9] sm:$0xff]  ;;  %v222_v1 = vld [vmem:[%s6045_s9 + $0x8] sm:$0xff]  ;;  %v224_v2 = vld [vmem:[%s6045_s9 + $0x10] sm:$0xff]  ;;  %s372_s17 = sadd.s32 1, %s6049_s10  ;;  %s214_s11 = sadd.s32 1, %s6053_s11   ;;  %s6053_s11 = sphi %s6261_s11, %s214_s11   ;;  %s6049_s10 = sphi %s6259_s10, %s7978_s10   ;;  %s6045_s9 = sphi %s7975_s9, %s7977_s9   ;;  %s6041_s8 = sphi %s7974_s8, %s7976_s8  }
  0x2f   : >> { %221 = vst [vmem:[%s6041_s8] sm:$0xff] %v220_v0  ;;  %223 = vst [vmem:[%s6041_s8 + $0x8] sm:$0xff] %v222_v1  ;;  %v226_v3 = vld [vmem:[%s6045_s9 + $0x18] sm:$0xff]  ;;  %v228_v4 = vld [vmem:[%s6045_s9 + $0x12c] sm:$0xff]  ;;  %p373_p13 = scmp.ge.s32.totalorder %s372_s17, %s6250_s7  ;;  %p213_p0 = scmp.ge.s32.totalorder %s214_s11, %s6250_s7 }
  0x30   : >> { %225 = vst [vmem:[%s6041_s8 + $0x10] sm:$0xff] %v224_v2  ;;  %v230_v5 = vld [vmem:[%s6045_s9 + $0x134] sm:$0xff]  ;;  %227 = vst [vmem:[%s6041_s8 + $0x18] sm:$0xff] %v226_v3  ;;  %v232_v6 = vld [vmem:[%s6045_s9 + $0x13c] sm:$0xff] }
  0x31   : >> { %229 = vst [vmem:[%s6041_s8 + $0x98] sm:$0xff] %v228_v4  ;;  %231 = vst [vmem:[%s6041_s8 + $0xa0] sm:$0xff] %v230_v5  ;;  %v234_v7 = vld [vmem:[%s6045_s9 + $0x144] sm:$0xff]  ;;  %v236_v8 = vld [vmem:[%s6045_s9 + $0x258] sm:$0xff]  ;;  %s8008_s17 = smov (%p373_p13, %s372_s17), 0 }
  0x32   : >> { %233 = vst [vmem:[%s6041_s8 + $0xa8] sm:$0xff] %v232_v6  ;;  %235 = vst [vmem:[%s6041_s8 + $0xb0] sm:$0xff] %v234_v7  ;;  %v238_v9 = vld [vmem:[%s6045_s9 + $0x260] sm:$0xff]  ;;  %v240_v10 = vld [vmem:[%s6045_s9 + $0x268] sm:$0xff]  ;;  %s4583_s18 = sshll.u32 %s8008_s17, 5  ;;  %s7978_s10 = smov %s8008_s17 }
  0x33   : >> { %237 = vst [vmem:[%s6041_s8 + $0x130] sm:$0xff] %v236_v8  ;;  %v242_v11 = vld [vmem:[%s6045_s9 + $0x270] sm:$0xff]  ;;  %239 = vst [vmem:[%s6041_s8 + $0x138] sm:$0xff] %v238_v9  ;;  %v244_v12 = vld [vmem:[%s6045_s9 + $0x384] sm:$0xff]  ;;  %s6317_s21 = scalar_lea.vmem %s6235_s28, %s4583_s18   ;;  %s6320_s22 = scalar_lea.vmem %s6239_s4, %s4583_s18 [#allocation2]  }
  0x34   : >> { %241 = vst [vmem:[%s6041_s8 + $0x140] sm:$0xff] %v240_v10  ;;  %243 = vst [vmem:[%s6041_s8 + $0x148] sm:$0xff] %v242_v11  ;;  %v246_v13 = vld [vmem:[%s6045_s9 + $0x38c] sm:$0xff]  ;;  %v248_v14 = vld [vmem:[%s6045_s9 + $0x394] sm:$0xff] }
  0x35   : >> { %245 = vst [vmem:[%s6041_s8 + $0x1c8] sm:$0xff] %v244_v12  ;;  %247 = vst [vmem:[%s6041_s8 + $0x1d0] sm:$0xff] %v246_v13  ;;  %v250_v15 = vld [vmem:[%s6045_s9 + $0x39c] sm:$0xff]  ;;  %v252_v16 = vld [vmem:[%s6045_s9 + $0x4b0] sm:$0xff] }
  0x36   : >> { %249 = vst [vmem:[%s6041_s8 + $0x1d8] sm:$0xff] %v248_v14  ;;  %v254_v17 = vld [vmem:[%s6045_s9 + $0x4b8] sm:$0xff]  ;;  %251 = vst [vmem:[%s6041_s8 + $0x1e0] sm:$0xff] %v250_v15  ;;  %v256_v18 = vld [vmem:[%s6045_s9 + $0x4c0] sm:$0xff] }
  0x37   : >> { %253 = vst [vmem:[%s6041_s8 + $0x260] sm:$0xff] %v252_v16  ;;  %255 = vst [vmem:[%s6041_s8 + $0x268] sm:$0xff] %v254_v17  ;;  %v258_v19 = vld [vmem:[%s6045_s9 + $0x4c8] sm:$0xff]  ;;  %v260_v20 = vld [vmem:[%s6045_s9 + $0x5dc] sm:$0xff] }
  0x38   : >> { %257 = vst [vmem:[%s6041_s8 + $0x270] sm:$0xff] %v256_v18  ;;  %259 = vst [vmem:[%s6041_s8 + $0x278] sm:$0xff] %v258_v19  ;;  %v262_v21 = vld [vmem:[%s6045_s9 + $0x5e4] sm:$0xff]  ;;  %v264_v22 = vld [vmem:[%s6045_s9 + $0x5ec] sm:$0xff] }
  0x39   : >> { %261 = vst [vmem:[%s6041_s8 + $0x2f8] sm:$0xff] %v260_v20  ;;  %v266_v23 = vld [vmem:[%s6045_s9 + $0x5f4] sm:$0xff]  ;;  %263 = vst [vmem:[%s6041_s8 + $0x300] sm:$0xff] %v262_v21  ;;  %v268_v24 = vld [vmem:[%s6045_s9 + $0x708] sm:$0xff] }
  0x3a   : >> { %265 = vst [vmem:[%s6041_s8 + $0x308] sm:$0xff] %v264_v22  ;;  %267 = vst [vmem:[%s6041_s8 + $0x310] sm:$0xff] %v266_v23  ;;  %v270_v25 = vld [vmem:[%s6045_s9 + $0x710] sm:$0xff]  ;;  %v272_v26 = vld [vmem:[%s6045_s9 + $0x718] sm:$0xff] }
  0x3b   : >> { %269 = vst [vmem:[%s6041_s8 + $0x390] sm:$0xff] %v268_v24  ;;  %271 = vst [vmem:[%s6041_s8 + $0x398] sm:$0xff] %v270_v25  ;;  %v274_v27 = vld [vmem:[%s6045_s9 + $0x720] sm:$0xff]  ;;  %v276_v28 = vld [vmem:[%s6045_s9 + $0x834] sm:$0xff] }
  0x3c   : >> { %273 = vst [vmem:[%s6041_s8 + $0x3a0] sm:$0xff] %v272_v26  ;;  %v278_v29 = vld [vmem:[%s6045_s9 + $0x83c] sm:$0xff]  ;;  %275 = vst [vmem:[%s6041_s8 + $0x3a8] sm:$0xff] %v274_v27  ;;  %v280_v30 = vld [vmem:[%s6045_s9 + $0x844] sm:$0xff] }
  0x3d   : >> { %277 = vst [vmem:[%s6041_s8 + $0x428] sm:$0xff] %v276_v28  ;;  %279 = vst [vmem:[%s6041_s8 + $0x430] sm:$0xff] %v278_v29  ;;  %v282_v31 = vld [vmem:[%s6045_s9 + $0x84c] sm:$0xff]  ;;  %v284_v32 = vld [vmem:[%s6045_s9 + $0x960] sm:$0xff] }
  0x3e   : >> { %281 = vst [vmem:[%s6041_s8 + $0x438] sm:$0xff] %v280_v30  ;;  %283 = vst [vmem:[%s6041_s8 + $0x440] sm:$0xff] %v282_v31  ;;  %v286_v33 = vld [vmem:[%s6045_s9 + $0x968] sm:$0xff]  ;;  %v288_v34 = vld [vmem:[%s6045_s9 + $0x970] sm:$0xff] }
  0x3f   : >> { %285 = vst [vmem:[%s6041_s8 + $0x4c0] sm:$0xff] %v284_v32  ;;  %v290_v35 = vld [vmem:[%s6045_s9 + $0x978] sm:$0xff]  ;;  %287 = vst [vmem:[%s6041_s8 + $0x4c8] sm:$0xff] %v286_v33  ;;  %v292_v36 = vld [vmem:[%s6045_s9 + $0xa8c] sm:$0xff] }
  0x40   : >> { %289 = vst [vmem:[%s6041_s8 + $0x4d0] sm:$0xff] %v288_v34  ;;  %291 = vst [vmem:[%s6041_s8 + $0x4d8] sm:$0xff] %v290_v35  ;;  %v294_v37 = vld [vmem:[%s6045_s9 + $0xa94] sm:$0xff]  ;;  %v296_v38 = vld [vmem:[%s6045_s9 + $0xa9c] sm:$0xff] }
  0x41   : >> { %293 = vst [vmem:[%s6041_s8 + $0x558] sm:$0xff] %v292_v36  ;;  %295 = vst [vmem:[%s6041_s8 + $0x560] sm:$0xff] %v294_v37  ;;  %v298_v39 = vld [vmem:[%s6045_s9 + $0xaa4] sm:$0xff]  ;;  %v300_v40 = vld [vmem:[%s6045_s9 + $0xbb8] sm:$0xff] }
  0x42   : >> { %297 = vst [vmem:[%s6041_s8 + $0x568] sm:$0xff] %v296_v38  ;;  %v302_v41 = vld [vmem:[%s6045_s9 + $0xbc0] sm:$0xff]  ;;  %299 = vst [vmem:[%s6041_s8 + $0x570] sm:$0xff] %v298_v39  ;;  %v304_v42 = vld [vmem:[%s6045_s9 + $0xbc8] sm:$0xff] }
  0x43   : >> { %301 = vst [vmem:[%s6041_s8 + $0x5f0] sm:$0xff] %v300_v40  ;;  %303 = vst [vmem:[%s6041_s8 + $0x5f8] sm:$0xff] %v302_v41  ;;  %v306_v43 = vld [vmem:[%s6045_s9 + $0xbd0] sm:$0xff]  ;;  %v308_v44 = vld [vmem:[%s6045_s9 + $0xce4] sm:$0xff] }
  0x44   : >> { %305 = vst [vmem:[%s6041_s8 + $0x600] sm:$0xff] %v304_v42  ;;  %307 = vst [vmem:[%s6041_s8 + $0x608] sm:$0xff] %v306_v43  ;;  %v310_v45 = vld [vmem:[%s6045_s9 + $0xcec] sm:$0xff]  ;;  %v312_v46 = vld [vmem:[%s6045_s9 + $0xcf4] sm:$0xff] }
  0x45   : >> { %309 = vst [vmem:[%s6041_s8 + $0x688] sm:$0xff] %v308_v44  ;;  %v314_v47 = vld [vmem:[%s6045_s9 + $0xcfc] sm:$0xff]  ;;  %311 = vst [vmem:[%s6041_s8 + $0x690] sm:$0xff] %v310_v45  ;;  %v316_v48 = vld [vmem:[%s6045_s9 + $0xe10] sm:$0xff] }
  0x46   : >> { %313 = vst [vmem:[%s6041_s8 + $0x698] sm:$0xff] %v312_v46  ;;  %315 = vst [vmem:[%s6041_s8 + $0x6a0] sm:$0xff] %v314_v47  ;;  %v318_v49 = vld [vmem:[%s6045_s9 + $0xe18] sm:$0xff]  ;;  %v320_v50 = vld [vmem:[%s6045_s9 + $0xe20] sm:$0xff] }
  0x47   : >> { %317 = vst [vmem:[%s6041_s8 + $0x720] sm:$0xff] %v316_v48  ;;  %319 = vst [vmem:[%s6041_s8 + $0x728] sm:$0xff] %v318_v49  ;;  %v322_v51 = vld [vmem:[%s6045_s9 + $0xe28] sm:$0xff]  ;;  %v324_v52 = vld [vmem:[%s6045_s9 + $0xf3c] sm:$0xff] }
  0x48   : >> { %321 = vst [vmem:[%s6041_s8 + $0x730] sm:$0xff] %v320_v50  ;;  %v326_v53 = vld [vmem:[%s6045_s9 + $0xf44] sm:$0xff]  ;;  %323 = vst [vmem:[%s6041_s8 + $0x738] sm:$0xff] %v322_v51  ;;  %v328_v54 = vld [vmem:[%s6045_s9 + $0xf4c] sm:$0xff] }
  0x49   : >> { %325 = vst [vmem:[%s6041_s8 + $0x7b8] sm:$0xff] %v324_v52  ;;  %327 = vst [vmem:[%s6041_s8 + $0x7c0] sm:$0xff] %v326_v53  ;;  %v330_v55 = vld [vmem:[%s6045_s9 + $0xf54] sm:$0xff]  ;;  %v332_v56 = vld [vmem:[%s6045_s9 + $0x1068] sm:$0xff] }
  0x4a   : >> { %329 = vst [vmem:[%s6041_s8 + $0x7c8] sm:$0xff] %v328_v54  ;;  %331 = vst [vmem:[%s6041_s8 + $0x7d0] sm:$0xff] %v330_v55  ;;  %v334_v57 = vld [vmem:[%s6045_s9 + $0x1070] sm:$0xff]  ;;  %v336_v58 = vld [vmem:[%s6045_s9 + $0x1078] sm:$0xff] }
  0x4b   : >> { %333 = vst [vmem:[%s6041_s8 + $0x850] sm:$0xff] %v332_v56  ;;  %v338_v59 = vld [vmem:[%s6045_s9 + $0x1080] sm:$0xff]  ;;  %335 = vst [vmem:[%s6041_s8 + $0x858] sm:$0xff] %v334_v57  ;;  %v340_v60 = vld [vmem:[%s6045_s9 + $0x1194] sm:$0xff] }
  0x4c   : >> { %337 = vst [vmem:[%s6041_s8 + $0x860] sm:$0xff] %v336_v58  ;;  %339 = vst [vmem:[%s6041_s8 + $0x868] sm:$0xff] %v338_v59  ;;  %v342_v61 = vld [vmem:[%s6045_s9 + $0x119c] sm:$0xff]  ;;  %v344_v62 = vld [vmem:[%s6045_s9 + $0x11a4] sm:$0xff] }
  0x4d   : >> { %341 = vst [vmem:[%s6041_s8 + $0x8e8] sm:$0xff] %v340_v60  ;;  %343 = vst [vmem:[%s6041_s8 + $0x8f0] sm:$0xff] %v342_v61  ;;  %v346_v63 = vld [vmem:[%s6045_s9 + $0x11ac] sm:$0xff]  ;;  %v348_v0 = vld [vmem:[%s6045_s9 + $0x12c0] sm:$0xff] }
  0x4e   : >> { %345 = vst [vmem:[%s6041_s8 + $0x8f8] sm:$0xff] %v344_v62  ;;  %v350_v1 = vld [vmem:[%s6045_s9 + $0x12c8] sm:$0xff]  ;;  %347 = vst [vmem:[%s6041_s8 + $0x900] sm:$0xff] %v346_v63  ;;  %v352_v2 = vld [vmem:[%s6045_s9 + $0x12d0] sm:$0xff] }
  0x4f   : >> { %349 = vst [vmem:[%s6041_s8 + $0x980] sm:$0xff] %v348_v0  ;;  %351 = vst [vmem:[%s6041_s8 + $0x988] sm:$0xff] %v350_v1  ;;  %v354_v3 = vld [vmem:[%s6045_s9 + $0x12d8] sm:$0xff]  ;;  %v356_v4 = vld [vmem:[%s6045_s9 + $0x13ec] sm:$0xff] }
  0x50   : >> { %353 = vst [vmem:[%s6041_s8 + $0x990] sm:$0xff] %v352_v2  ;;  %355 = vst [vmem:[%s6041_s8 + $0x998] sm:$0xff] %v354_v3  ;;  %v358_v5 = vld [vmem:[%s6045_s9 + $0x13f4] sm:$0xff]  ;;  %v360_v6 = vld [vmem:[%s6045_s9 + $0x13fc] sm:$0xff]  ;;  %216 = sbr.rel (!%p213_p0) target bundleno = 46 (0x2e), region = 235 }
  0x51   : >> { %357 = vst [vmem:[%s6041_s8 + $0xa18] sm:$0xff] %v356_v4  ;;  %v362_v7 = vld [vmem:[%s6045_s9 + $0x1404] sm:$0xff]  ;;  %359 = vst [vmem:[%s6041_s8 + $0xa20] sm:$0xff] %v358_v5  ;;  %v364_v8 = vld [vmem:[%s6045_s9 + $0x1518] sm:$0xff] }
  0x52   : >> { %361 = vst [vmem:[%s6041_s8 + $0xa28] sm:$0xff] %v360_v6  ;;  %363 = vst [vmem:[%s6041_s8 + $0xa30] sm:$0xff] %v362_v7  ;;  %v366_v9 = vld [vmem:[%s6045_s9 + $0x1520] sm:$0xff]  ;;  %v368_v10 = vld [vmem:[%s6045_s9 + $0x1528] sm:$0xff] }
  0x53   : >> { %365 = vst [vmem:[%s6041_s8 + $0xab0] sm:$0xff] %v364_v8  ;;  %367 = vst [vmem:[%s6041_s8 + $0xab8] sm:$0xff] %v366_v9  ;;  %v370_v11 = vld [vmem:[%s6045_s9 + $0x1530] sm:$0xff]  ;;  %s7977_s9 = smov %s6317_s21 }
  0x54   : >> { %369 = vst [vmem:[%s6041_s8 + $0xac0] sm:$0xff] %v368_v10  ;;  %371 = vst [vmem:[%s6041_s8 + $0xac8] sm:$0xff] %v370_v11  ;;  %s7976_s8 = smov %s6320_s22 }
  0x55 PF: > { %s6450_s23 = sand.u32 3, %s207_s6   ;;  %s5035_s24 = sshll.u32 %s6250_s7, 9 }
  0x56   : > { %s383_s25 = sshra.s32 %s5035_s24, 4  ;;  %p4588_p1 = scmp.le.s32.totalorder %s6450_s23, 0 }
  0x57   : > { %s6454_s26 = scalar_lea.vmem %s6235_s28, %s383_s25   ;;  %s6457_s27 = scalar_lea.vmem %s6239_s4, %s383_s25 [#allocation2]  }
  0x58   : > { %4460 = sbr.rel (%p4588_p1) target bundleno = 104 (0x68), region = 240  ;;  %s7979_s29 = smov (!%p4588_p1), %s6457_s27 }
  0x59   : > { %s7980_s8 = smov (!%p4588_p1), %s6454_s26  ;;  %s6466_s9 = smov (!%p4588_p1), 0  }
  0x5a   : > { %s6468_s10 = smov (!%p4588_p1), 0  }
  0x5d LB: >> { %v399_v12 = vld [vmem:[%s6061_s8] sm:$0xff]  ;;  %v401_v13 = vld [vmem:[%s6061_s8 + $0x12c] sm:$0xff]  ;;  %v403_v14 = vld [vmem:[%s6061_s8 + $0x258] sm:$0xff]  ;;  %s437_s6 = sadd.s32 1, %s6065_s9  ;;  %s393_s10 = sadd.s32 1, %s6069_s10   ;;  %s6069_s10 = sphi %s6468_s10, %s393_s10   ;;  %s6065_s9 = sphi %s6466_s9, %s7982_s9   ;;  %s6061_s8 = sphi %s7980_s8, %s442_s8   ;;  %s6057_s29 = sphi %s7979_s29, %s7981_s29  }
  0x5e   : >> { %400 = vst [vmem:[%s6057_s29] sm:$0xff] %v399_v12  ;;  %402 = vst [vmem:[%s6057_s29 + $0x98] sm:$0xff] %v401_v13  ;;  %v405_v15 = vld [vmem:[%s6061_s8 + $0x384] sm:$0xff]  ;;  %v407_v16 = vld [vmem:[%s6061_s8 + $0x4b0] sm:$0xff]  ;;  %p438_p2 = scmp.ge.s32.totalorder %s437_s6, %s6450_s23  ;;  %p392_p3 = scmp.ge.s32.totalorder %s393_s10, %s6450_s23 }
  0x5f   : >> { %404 = vst [vmem:[%s6057_s29 + $0x130] sm:$0xff] %v403_v14  ;;  %v409_v17 = vld [vmem:[%s6061_s8 + $0x5dc] sm:$0xff]  ;;  %406 = vst [vmem:[%s6057_s29 + $0x1c8] sm:$0xff] %v405_v15  ;;  %v411_v18 = vld [vmem:[%s6061_s8 + $0x708] sm:$0xff] }
  0x60   : >> { %408 = vst [vmem:[%s6057_s29 + $0x260] sm:$0xff] %v407_v16  ;;  %410 = vst [vmem:[%s6057_s29 + $0x2f8] sm:$0xff] %v409_v17  ;;  %v413_v19 = vld [vmem:[%s6061_s8 + $0x834] sm:$0xff]  ;;  %v415_v20 = vld [vmem:[%s6061_s8 + $0x960] sm:$0xff]  ;;  %s8010_s6 = smov (%p438_p2, %s437_s6), 0 }
  0x61   : >> { %412 = vst [vmem:[%s6057_s29 + $0x390] sm:$0xff] %v411_v18  ;;  %414 = vst [vmem:[%s6057_s29 + $0x428] sm:$0xff] %v413_v19  ;;  %v417_v21 = vld [vmem:[%s6061_s8 + $0xa8c] sm:$0xff]  ;;  %v419_v22 = vld [vmem:[%s6061_s8 + $0xbb8] sm:$0xff]  ;;  %s4589_s7 = sshll.u32 %s8010_s6, 3  ;;  %s7982_s9 = smov %s8010_s6 }
  0x62   : >> { %416 = vst [vmem:[%s6057_s29 + $0x4c0] sm:$0xff] %v415_v20  ;;  %v421_v23 = vld [vmem:[%s6061_s8 + $0xce4] sm:$0xff]  ;;  %418 = vst [vmem:[%s6057_s29 + $0x558] sm:$0xff] %v417_v21  ;;  %v423_v24 = vld [vmem:[%s6061_s8 + $0xe10] sm:$0xff]  ;;  %s443_s11 = scalar_lea.vmem %s6457_s27, %s4589_s7 [#allocation2]  }
  0x63   : >> { %420 = vst [vmem:[%s6057_s29 + $0x5f0] sm:$0xff] %v419_v22  ;;  %422 = vst [vmem:[%s6057_s29 + $0x688] sm:$0xff] %v421_v23  ;;  %v425_v25 = vld [vmem:[%s6061_s8 + $0xf3c] sm:$0xff]  ;;  %v427_v26 = vld [vmem:[%s6061_s8 + $0x1068] sm:$0xff]  ;;  %395 = sbr.rel (!%p392_p3) target bundleno = 93 (0x5d), region = 246 }
  0x64   : >> { %424 = vst [vmem:[%s6057_s29 + $0x720] sm:$0xff] %v423_v24  ;;  %426 = vst [vmem:[%s6057_s29 + $0x7b8] sm:$0xff] %v425_v25  ;;  %v429_v27 = vld [vmem:[%s6061_s8 + $0x1194] sm:$0xff]  ;;  %v431_v28 = vld [vmem:[%s6061_s8 + $0x12c0] sm:$0xff] }
  0x65   : >> { %428 = vst [vmem:[%s6057_s29 + $0x850] sm:$0xff] %v427_v26  ;;  %v433_v29 = vld [vmem:[%s6061_s8 + $0x13ec] sm:$0xff]  ;;  %430 = vst [vmem:[%s6057_s29 + $0x8e8] sm:$0xff] %v429_v27  ;;  %v435_v30 = vld [vmem:[%s6061_s8 + $0x1518] sm:$0xff]  ;;  %s442_s8 = scalar_lea.vmem %s6454_s26, %s4589_s7  }
  0x66   : >> { %432 = vst [vmem:[%s6057_s29 + $0x980] sm:$0xff] %v431_v28  ;;  %434 = vst [vmem:[%s6057_s29 + $0xa18] sm:$0xff] %v433_v29 }
  0x67   : >> { %436 = vst [vmem:[%s6057_s29 + $0xab0] sm:$0xff] %v435_v30  ;;  %s7981_s29 = smov %s443_s11 }
  0x68 PF: > { %446 = sbr.rel (%p203_p10) target bundleno = 195 (0xc3), region = 69  ;;  %s448_s17 = ssub.s32 (!%p203_p10), %s6237_s30, %s6243_s5 }
  0x69   : > { %s452_s18 = sshrl.u32 (!%p203_p10), %s6237_s30, 3  ;;  %s6537_s21 = scalar_lea.vmem (!%p203_p10), %s6235_s28, %s448_s17 }
  0x6a   : > { %s6540_s22 = scalar_lea.vmem (!%p203_p10), %s6239_s4, %s448_s17 [#allocation2]  ;;  %s6544_s24 = sshrl.u32 (!%p203_p10), %s452_s18, 2 }
  0x6b   : > { %p4591_p4 = scmp.le.s32.totalorder (!%p203_p10), %s6544_s24, 0 }
  0x6d   : > { %4474 = sbr.rel (%p4591_p4) target bundleno = 153 (0x99), region = 251  ;;  %s7983_s23 = smov (!%p4591_p4), %s6239_s4 }
  0x6e   : > { %s7984_s25 = smov (!%p4591_p4), %s6235_s28  ;;  %s6553_s26 = smov (!%p4591_p4), 0  }
  0x6f   : > { %s6555_s27 = smov (!%p4591_p4), 0  }
  0x72 LB: >> { %v465_v31 = vld [vmem:[%s6077_s25] sm:$0xff]  ;;  %v467_v32 = vld [vmem:[%s6077_s25 + $0x8] sm:$0xff]  ;;  %v469_v33 = vld [vmem:[%s6077_s25 + $0x10] sm:$0xff]  ;;  %s617_s29 = sadd.s32 1, %s6081_s26  ;;  %s459_s27 = sadd.s32 1, %s6085_s27   ;;  %s6085_s27 = sphi %s6555_s27, %s459_s27   ;;  %s6081_s26 = sphi %s6553_s26, %s7987_s26   ;;  %s6077_s25 = sphi %s7984_s25, %s7986_s25   ;;  %s6073_s23 = sphi %s7983_s23, %s7985_s23  }
  0x73   : >> { %466 = vst [vmem:[%s6073_s23] sm:$0xff] %v465_v31  ;;  %468 = vst [vmem:[%s6073_s23 + $0x8] sm:$0xff] %v467_v32  ;;  %v471_v34 = vld [vmem:[%s6077_s25 + $0x18] sm:$0xff]  ;;  %v473_v35 = vld [vmem:[%s6077_s25 + $0x12c] sm:$0xff]  ;;  %p618_p6 = scmp.ge.s32.totalorder %s617_s29, %s6544_s24  ;;  %p458_p7 = scmp.ge.s32.totalorder %s459_s27, %s6544_s24 }
  0x74   : >> { %470 = vst [vmem:[%s6073_s23 + $0x10] sm:$0xff] %v469_v33  ;;  %v475_v36 = vld [vmem:[%s6077_s25 + $0x134] sm:$0xff]  ;;  %472 = vst [vmem:[%s6073_s23 + $0x18] sm:$0xff] %v471_v34  ;;  %v477_v37 = vld [vmem:[%s6077_s25 + $0x13c] sm:$0xff] }
  0x75   : >> { %474 = vst [vmem:[%s6073_s23 + $0x98] sm:$0xff] %v473_v35  ;;  %476 = vst [vmem:[%s6073_s23 + $0xa0] sm:$0xff] %v475_v36  ;;  %v479_v38 = vld [vmem:[%s6077_s25 + $0x144] sm:$0xff]  ;;  %v481_v39 = vld [vmem:[%s6077_s25 + $0x258] sm:$0xff]  ;;  %s8012_s29 = smov (%p618_p6, %s617_s29), 0 }
  0x76   : >> { %478 = vst [vmem:[%s6073_s23 + $0xa8] sm:$0xff] %v477_v37  ;;  %480 = vst [vmem:[%s6073_s23 + $0xb0] sm:$0xff] %v479_v38  ;;  %v483_v40 = vld [vmem:[%s6077_s25 + $0x260] sm:$0xff]  ;;  %v485_v41 = vld [vmem:[%s6077_s25 + $0x268] sm:$0xff]  ;;  %s4592_s8 = sshll.u32 %s8012_s29, 5  ;;  %s7987_s26 = smov %s8012_s29 }
  0x77   : >> { %482 = vst [vmem:[%s6073_s23 + $0x130] sm:$0xff] %v481_v39  ;;  %v487_v42 = vld [vmem:[%s6077_s25 + $0x270] sm:$0xff]  ;;  %484 = vst [vmem:[%s6073_s23 + $0x138] sm:$0xff] %v483_v40  ;;  %v489_v43 = vld [vmem:[%s6077_s25 + $0x384] sm:$0xff]  ;;  %s6611_s9 = scalar_lea.vmem %s6235_s28, %s4592_s8   ;;  %s6614_s10 = scalar_lea.vmem %s6239_s4, %s4592_s8 [#allocation2]  }
  0x78   : >> { %486 = vst [vmem:[%s6073_s23 + $0x140] sm:$0xff] %v485_v41  ;;  %488 = vst [vmem:[%s6073_s23 + $0x148] sm:$0xff] %v487_v42  ;;  %v491_v44 = vld [vmem:[%s6077_s25 + $0x38c] sm:$0xff]  ;;  %v493_v45 = vld [vmem:[%s6077_s25 + $0x394] sm:$0xff] }
  0x79   : >> { %490 = vst [vmem:[%s6073_s23 + $0x1c8] sm:$0xff] %v489_v43  ;;  %492 = vst [vmem:[%s6073_s23 + $0x1d0] sm:$0xff] %v491_v44  ;;  %v495_v46 = vld [vmem:[%s6077_s25 + $0x39c] sm:$0xff]  ;;  %v497_v47 = vld [vmem:[%s6077_s25 + $0x4b0] sm:$0xff] }
  0x7a   : >> { %494 = vst [vmem:[%s6073_s23 + $0x1d8] sm:$0xff] %v493_v45  ;;  %v499_v48 = vld [vmem:[%s6077_s25 + $0x4b8] sm:$0xff]  ;;  %496 = vst [vmem:[%s6073_s23 + $0x1e0] sm:$0xff] %v495_v46  ;;  %v501_v49 = vld [vmem:[%s6077_s25 + $0x4c0] sm:$0xff] }
  0x7b   : >> { %498 = vst [vmem:[%s6073_s23 + $0x260] sm:$0xff] %v497_v47  ;;  %500 = vst [vmem:[%s6073_s23 + $0x268] sm:$0xff] %v499_v48  ;;  %v503_v50 = vld [vmem:[%s6077_s25 + $0x4c8] sm:$0xff]  ;;  %v505_v51 = vld [vmem:[%s6077_s25 + $0x5dc] sm:$0xff] }
  0x7c   : >> { %502 = vst [vmem:[%s6073_s23 + $0x270] sm:$0xff] %v501_v49  ;;  %504 = vst [vmem:[%s6073_s23 + $0x278] sm:$0xff] %v503_v50  ;;  %v507_v52 = vld [vmem:[%s6077_s25 + $0x5e4] sm:$0xff]  ;;  %v509_v53 = vld [vmem:[%s6077_s25 + $0x5ec] sm:$0xff] }
  0x7d   : >> { %506 = vst [vmem:[%s6073_s23 + $0x2f8] sm:$0xff] %v505_v51  ;;  %v511_v54 = vld [vmem:[%s6077_s25 + $0x5f4] sm:$0xff]  ;;  %508 = vst [vmem:[%s6073_s23 + $0x300] sm:$0xff] %v507_v52  ;;  %v513_v55 = vld [vmem:[%s6077_s25 + $0x708] sm:$0xff] }
  0x7e   : >> { %510 = vst [vmem:[%s6073_s23 + $0x308] sm:$0xff] %v509_v53  ;;  %512 = vst [vmem:[%s6073_s23 + $0x310] sm:$0xff] %v511_v54  ;;  %v515_v56 = vld [vmem:[%s6077_s25 + $0x710] sm:$0xff]  ;;  %v517_v57 = vld [vmem:[%s6077_s25 + $0x718] sm:$0xff] }
  0x7f   : >> { %514 = vst [vmem:[%s6073_s23 + $0x390] sm:$0xff] %v513_v55  ;;  %516 = vst [vmem:[%s6073_s23 + $0x398] sm:$0xff] %v515_v56  ;;  %v519_v58 = vld [vmem:[%s6077_s25 + $0x720] sm:$0xff]  ;;  %v521_v59 = vld [vmem:[%s6077_s25 + $0x834] sm:$0xff] }
  0x80   : >> { %518 = vst [vmem:[%s6073_s23 + $0x3a0] sm:$0xff] %v517_v57  ;;  %v523_v60 = vld [vmem:[%s6077_s25 + $0x83c] sm:$0xff]  ;;  %520 = vst [vmem:[%s6073_s23 + $0x3a8] sm:$0xff] %v519_v58  ;;  %v525_v61 = vld [vmem:[%s6077_s25 + $0x844] sm:$0xff] }
  0x81   : >> { %522 = vst [vmem:[%s6073_s23 + $0x428] sm:$0xff] %v521_v59  ;;  %524 = vst [vmem:[%s6073_s23 + $0x430] sm:$0xff] %v523_v60  ;;  %v527_v62 = vld [vmem:[%s6077_s25 + $0x84c] sm:$0xff]  ;;  %v529_v63 = vld [vmem:[%s6077_s25 + $0x960] sm:$0xff] }
  0x82   : >> { %526 = vst [vmem:[%s6073_s23 + $0x438] sm:$0xff] %v525_v61  ;;  %528 = vst [vmem:[%s6073_s23 + $0x440] sm:$0xff] %v527_v62  ;;  %v531_v0 = vld [vmem:[%s6077_s25 + $0x968] sm:$0xff]  ;;  %v533_v1 = vld [vmem:[%s6077_s25 + $0x970] sm:$0xff] }
  0x83   : >> { %530 = vst [vmem:[%s6073_s23 + $0x4c0] sm:$0xff] %v529_v63  ;;  %v535_v2 = vld [vmem:[%s6077_s25 + $0x978] sm:$0xff]  ;;  %532 = vst [vmem:[%s6073_s23 + $0x4c8] sm:$0xff] %v531_v0  ;;  %v537_v3 = vld [vmem:[%s6077_s25 + $0xa8c] sm:$0xff] }
  0x84   : >> { %534 = vst [vmem:[%s6073_s23 + $0x4d0] sm:$0xff] %v533_v1  ;;  %536 = vst [vmem:[%s6073_s23 + $0x4d8] sm:$0xff] %v535_v2  ;;  %v539_v4 = vld [vmem:[%s6077_s25 + $0xa94] sm:$0xff]  ;;  %v541_v5 = vld [vmem:[%s6077_s25 + $0xa9c] sm:$0xff] }
  0x85   : >> { %538 = vst [vmem:[%s6073_s23 + $0x558] sm:$0xff] %v537_v3  ;;  %540 = vst [vmem:[%s6073_s23 + $0x560] sm:$0xff] %v539_v4  ;;  %v543_v6 = vld [vmem:[%s6077_s25 + $0xaa4] sm:$0xff]  ;;  %v545_v7 = vld [vmem:[%s6077_s25 + $0xbb8] sm:$0xff] }
  0x86   : >> { %542 = vst [vmem:[%s6073_s23 + $0x568] sm:$0xff] %v541_v5  ;;  %v547_v8 = vld [vmem:[%s6077_s25 + $0xbc0] sm:$0xff]  ;;  %544 = vst [vmem:[%s6073_s23 + $0x570] sm:$0xff] %v543_v6  ;;  %v549_v9 = vld [vmem:[%s6077_s25 + $0xbc8] sm:$0xff] }
  0x87   : >> { %546 = vst [vmem:[%s6073_s23 + $0x5f0] sm:$0xff] %v545_v7  ;;  %548 = vst [vmem:[%s6073_s23 + $0x5f8] sm:$0xff] %v547_v8  ;;  %v551_v10 = vld [vmem:[%s6077_s25 + $0xbd0] sm:$0xff]  ;;  %v553_v11 = vld [vmem:[%s6077_s25 + $0xce4] sm:$0xff] }
  0x88   : >> { %550 = vst [vmem:[%s6073_s23 + $0x600] sm:$0xff] %v549_v9  ;;  %552 = vst [vmem:[%s6073_s23 + $0x608] sm:$0xff] %v551_v10  ;;  %v555_v12 = vld [vmem:[%s6077_s25 + $0xcec] sm:$0xff]  ;;  %v557_v13 = vld [vmem:[%s6077_s25 + $0xcf4] sm:$0xff] }
  0x89   : >> { %554 = vst [vmem:[%s6073_s23 + $0x688] sm:$0xff] %v553_v11  ;;  %v559_v14 = vld [vmem:[%s6077_s25 + $0xcfc] sm:$0xff]  ;;  %556 = vst [vmem:[%s6073_s23 + $0x690] sm:$0xff] %v555_v12  ;;  %v561_v15 = vld [vmem:[%s6077_s25 + $0xe10] sm:$0xff] }
  0x8a   : >> { %558 = vst [vmem:[%s6073_s23 + $0x698] sm:$0xff] %v557_v13  ;;  %560 = vst [vmem:[%s6073_s23 + $0x6a0] sm:$0xff] %v559_v14  ;;  %v563_v16 = vld [vmem:[%s6077_s25 + $0xe18] sm:$0xff]  ;;  %v565_v17 = vld [vmem:[%s6077_s25 + $0xe20] sm:$0xff] }
  0x8b   : >> { %562 = vst [vmem:[%s6073_s23 + $0x720] sm:$0xff] %v561_v15  ;;  %564 = vst [vmem:[%s6073_s23 + $0x728] sm:$0xff] %v563_v16  ;;  %v567_v18 = vld [vmem:[%s6077_s25 + $0xe28] sm:$0xff]  ;;  %v569_v19 = vld [vmem:[%s6077_s25 + $0xf3c] sm:$0xff] }
  0x8c   : >> { %566 = vst [vmem:[%s6073_s23 + $0x730] sm:$0xff] %v565_v17  ;;  %v571_v20 = vld [vmem:[%s6077_s25 + $0xf44] sm:$0xff]  ;;  %568 = vst [vmem:[%s6073_s23 + $0x738] sm:$0xff] %v567_v18  ;;  %v573_v21 = vld [vmem:[%s6077_s25 + $0xf4c] sm:$0xff] }
  0x8d   : >> { %570 = vst [vmem:[%s6073_s23 + $0x7b8] sm:$0xff] %v569_v19  ;;  %572 = vst [vmem:[%s6073_s23 + $0x7c0] sm:$0xff] %v571_v20  ;;  %v575_v22 = vld [vmem:[%s6077_s25 + $0xf54] sm:$0xff]  ;;  %v577_v23 = vld [vmem:[%s6077_s25 + $0x1068] sm:$0xff] }
  0x8e   : >> { %574 = vst [vmem:[%s6073_s23 + $0x7c8] sm:$0xff] %v573_v21  ;;  %576 = vst [vmem:[%s6073_s23 + $0x7d0] sm:$0xff] %v575_v22  ;;  %v579_v24 = vld [vmem:[%s6077_s25 + $0x1070] sm:$0xff]  ;;  %v581_v25 = vld [vmem:[%s6077_s25 + $0x1078] sm:$0xff] }
  0x8f   : >> { %578 = vst [vmem:[%s6073_s23 + $0x850] sm:$0xff] %v577_v23  ;;  %v583_v26 = vld [vmem:[%s6077_s25 + $0x1080] sm:$0xff]  ;;  %580 = vst [vmem:[%s6073_s23 + $0x858] sm:$0xff] %v579_v24  ;;  %v585_v27 = vld [vmem:[%s6077_s25 + $0x1194] sm:$0xff] }
  0x90   : >> { %582 = vst [vmem:[%s6073_s23 + $0x860] sm:$0xff] %v581_v25  ;;  %584 = vst [vmem:[%s6073_s23 + $0x868] sm:$0xff] %v583_v26  ;;  %v587_v28 = vld [vmem:[%s6077_s25 + $0x119c] sm:$0xff]  ;;  %v589_v29 = vld [vmem:[%s6077_s25 + $0x11a4] sm:$0xff] }
  0x91   : >> { %586 = vst [vmem:[%s6073_s23 + $0x8e8] sm:$0xff] %v585_v27  ;;  %588 = vst [vmem:[%s6073_s23 + $0x8f0] sm:$0xff] %v587_v28  ;;  %v591_v30 = vld [vmem:[%s6077_s25 + $0x11ac] sm:$0xff]  ;;  %v593_v31 = vld [vmem:[%s6077_s25 + $0x12c0] sm:$0xff] }
  0x92   : >> { %590 = vst [vmem:[%s6073_s23 + $0x8f8] sm:$0xff] %v589_v29  ;;  %v595_v32 = vld [vmem:[%s6077_s25 + $0x12c8] sm:$0xff]  ;;  %592 = vst [vmem:[%s6073_s23 + $0x900] sm:$0xff] %v591_v30  ;;  %v597_v33 = vld [vmem:[%s6077_s25 + $0x12d0] sm:$0xff] }
  0x93   : >> { %594 = vst [vmem:[%s6073_s23 + $0x980] sm:$0xff] %v593_v31  ;;  %596 = vst [vmem:[%s6073_s23 + $0x988] sm:$0xff] %v595_v32  ;;  %v599_v34 = vld [vmem:[%s6077_s25 + $0x12d8] sm:$0xff]  ;;  %v601_v35 = vld [vmem:[%s6077_s25 + $0x13ec] sm:$0xff] }
  0x94   : >> { %598 = vst [vmem:[%s6073_s23 + $0x990] sm:$0xff] %v597_v33  ;;  %600 = vst [vmem:[%s6073_s23 + $0x998] sm:$0xff] %v599_v34  ;;  %v603_v36 = vld [vmem:[%s6077_s25 + $0x13f4] sm:$0xff]  ;;  %v605_v37 = vld [vmem:[%s6077_s25 + $0x13fc] sm:$0xff]  ;;  %461 = sbr.rel (!%p458_p7) target bundleno = 114 (0x72), region = 257 }
  0x95   : >> { %602 = vst [vmem:[%s6073_s23 + $0xa18] sm:$0xff] %v601_v35  ;;  %v607_v38 = vld [vmem:[%s6077_s25 + $0x1404] sm:$0xff]  ;;  %604 = vst [vmem:[%s6073_s23 + $0xa20] sm:$0xff] %v603_v36  ;;  %v609_v39 = vld [vmem:[%s6077_s25 + $0x1518] sm:$0xff] }
  0x96   : >> { %606 = vst [vmem:[%s6073_s23 + $0xa28] sm:$0xff] %v605_v37  ;;  %608 = vst [vmem:[%s6073_s23 + $0xa30] sm:$0xff] %v607_v38  ;;  %v611_v40 = vld [vmem:[%s6077_s25 + $0x1520] sm:$0xff]  ;;  %v613_v41 = vld [vmem:[%s6077_s25 + $0x1528] sm:$0xff] }
  0x97   : >> { %610 = vst [vmem:[%s6073_s23 + $0xab0] sm:$0xff] %v609_v39  ;;  %612 = vst [vmem:[%s6073_s23 + $0xab8] sm:$0xff] %v611_v40  ;;  %v615_v42 = vld [vmem:[%s6077_s25 + $0x1530] sm:$0xff]  ;;  %s7986_s25 = smov %s6611_s9 }
  0x98   : >> { %614 = vst [vmem:[%s6073_s23 + $0xac0] sm:$0xff] %v613_v41  ;;  %616 = vst [vmem:[%s6073_s23 + $0xac8] sm:$0xff] %v615_v42  ;;  %s7985_s23 = smov %s6614_s10 }
  0x99 PF: > { %s6744_s6 = sand.u32 3, %s452_s18   ;;  %s5037_s7 = sshll.u32 %s6544_s24, 9 }
  0x9a   : > { %s628_s11 = sshra.s32 %s5037_s7, 4  ;;  %p4597_p8 = scmp.le.s32.totalorder %s6744_s6, 0 }
  0x9b   : > { %s6748_s17 = scalar_lea.vmem %s6235_s28, %s628_s11   ;;  %s6751_s8 = scalar_lea.vmem %s6239_s4, %s628_s11 [#allocation2]  }
  0x9c   : > { %4488 = sbr.rel (%p4597_p8) target bundleno = 172 (0xac), region = 262  ;;  %s7988_s23 = smov (!%p4597_p8), %s6751_s8 }
  0x9d   : > { %s7989_s25 = smov (!%p4597_p8), %s6748_s17  ;;  %s6760_s26 = smov (!%p4597_p8), 0  }
  0x9e   : > { %s6762_s27 = smov (!%p4597_p8), 0  }
  0xa1 LB: >> { %v644_v43 = vld [vmem:[%s6093_s25] sm:$0xff]  ;;  %v646_v44 = vld [vmem:[%s6093_s25 + $0x12c] sm:$0xff]  ;;  %v648_v45 = vld [vmem:[%s6093_s25 + $0x258] sm:$0xff]  ;;  %s682_s18 = sadd.s32 1, %s6097_s26  ;;  %s638_s27 = sadd.s32 1, %s6101_s27   ;;  %s6101_s27 = sphi %s6762_s27, %s638_s27   ;;  %s6097_s26 = sphi %s6760_s26, %s7991_s26   ;;  %s6093_s25 = sphi %s7989_s25, %s687_s25   ;;  %s6089_s23 = sphi %s7988_s23, %s7990_s23  }
  0xa2   : >> { %645 = vst [vmem:[%s6089_s23] sm:$0xff] %v644_v43  ;;  %647 = vst [vmem:[%s6089_s23 + $0x98] sm:$0xff] %v646_v44  ;;  %v650_v46 = vld [vmem:[%s6093_s25 + $0x384] sm:$0xff]  ;;  %v652_v47 = vld [vmem:[%s6093_s25 + $0x4b0] sm:$0xff]  ;;  %p683_p9 = scmp.ge.s32.totalorder %s682_s18, %s6744_s6  ;;  %p637_p10 = scmp.ge.s32.totalorder %s638_s27, %s6744_s6 }
  0xa3   : >> { %649 = vst [vmem:[%s6089_s23 + $0x130] sm:$0xff] %v648_v45  ;;  %v654_v48 = vld [vmem:[%s6093_s25 + $0x5dc] sm:$0xff]  ;;  %651 = vst [vmem:[%s6089_s23 + $0x1c8] sm:$0xff] %v650_v46  ;;  %v656_v49 = vld [vmem:[%s6093_s25 + $0x708] sm:$0xff] }
  0xa4   : >> { %653 = vst [vmem:[%s6089_s23 + $0x260] sm:$0xff] %v652_v47  ;;  %655 = vst [vmem:[%s6089_s23 + $0x2f8] sm:$0xff] %v654_v48  ;;  %v658_v50 = vld [vmem:[%s6093_s25 + $0x834] sm:$0xff]  ;;  %v660_v51 = vld [vmem:[%s6093_s25 + $0x960] sm:$0xff]  ;;  %s8014_s18 = smov (%p683_p9, %s682_s18), 0 }
  0xa5   : >> { %657 = vst [vmem:[%s6089_s23 + $0x390] sm:$0xff] %v656_v49  ;;  %659 = vst [vmem:[%s6089_s23 + $0x428] sm:$0xff] %v658_v50  ;;  %v662_v52 = vld [vmem:[%s6093_s25 + $0xa8c] sm:$0xff]  ;;  %v664_v53 = vld [vmem:[%s6093_s25 + $0xbb8] sm:$0xff]  ;;  %s4598_s24 = sshll.u32 %s8014_s18, 3  ;;  %s7991_s26 = smov %s8014_s18 }
  0xa6   : >> { %661 = vst [vmem:[%s6089_s23 + $0x4c0] sm:$0xff] %v660_v51  ;;  %v666_v54 = vld [vmem:[%s6093_s25 + $0xce4] sm:$0xff]  ;;  %663 = vst [vmem:[%s6089_s23 + $0x558] sm:$0xff] %v662_v52  ;;  %v668_v55 = vld [vmem:[%s6093_s25 + $0xe10] sm:$0xff]  ;;  %s688_s29 = scalar_lea.vmem %s6751_s8, %s4598_s24 [#allocation2]  }
  0xa7   : >> { %665 = vst [vmem:[%s6089_s23 + $0x5f0] sm:$0xff] %v664_v53  ;;  %667 = vst [vmem:[%s6089_s23 + $0x688] sm:$0xff] %v666_v54  ;;  %v670_v56 = vld [vmem:[%s6093_s25 + $0xf3c] sm:$0xff]  ;;  %v672_v57 = vld [vmem:[%s6093_s25 + $0x1068] sm:$0xff]  ;;  %640 = sbr.rel (!%p637_p10) target bundleno = 161 (0xa1), region = 268 }
  0xa8   : >> { %669 = vst [vmem:[%s6089_s23 + $0x720] sm:$0xff] %v668_v55  ;;  %671 = vst [vmem:[%s6089_s23 + $0x7b8] sm:$0xff] %v670_v56  ;;  %v674_v58 = vld [vmem:[%s6093_s25 + $0x1194] sm:$0xff]  ;;  %v676_v59 = vld [vmem:[%s6093_s25 + $0x12c0] sm:$0xff] }
  0xa9   : >> { %673 = vst [vmem:[%s6089_s23 + $0x850] sm:$0xff] %v672_v57  ;;  %v678_v60 = vld [vmem:[%s6093_s25 + $0x13ec] sm:$0xff]  ;;  %675 = vst [vmem:[%s6089_s23 + $0x8e8] sm:$0xff] %v674_v58  ;;  %v680_v61 = vld [vmem:[%s6093_s25 + $0x1518] sm:$0xff]  ;;  %s687_s25 = scalar_lea.vmem %s6748_s17, %s4598_s24  }
  0xaa   : >> { %677 = vst [vmem:[%s6089_s23 + $0x980] sm:$0xff] %v676_v59  ;;  %679 = vst [vmem:[%s6089_s23 + $0xa18] sm:$0xff] %v678_v60 }
  0xab   : >> { %681 = vst [vmem:[%s6089_s23 + $0xab0] sm:$0xff] %v680_v61  ;;  %s7990_s23 = smov %s688_s29 }
  0xac PF: > { %s6167_s9 = smov 1  }
  0xad   : > { %s689_s10 = sshll.u32 %s6167_s9, %s6243_s5 }
  0xae   : > { %s6826_s7 = sadd.s32 4294967295, %s689_s10 }
  0xaf   : > { %v699_v62 = vld [vmem:[%s6537_s21] sm:%s6826_s7]  ;;  %v701_v63 = vld [vmem:[%s6537_s21 + $0x12c] sm:%s6826_s7] }
  0xb0   : > { %700 = vst [vmem:[%s6540_s22] sm:%s6826_s7] %v699_v62  ;;  %702 = vst [vmem:[%s6540_s22 + $0x98] sm:%s6826_s7] %v701_v63 }
  0xb1   : > { %v703_v0 = vld [vmem:[%s6537_s21 + $0x258] sm:%s6826_s7]  ;;  %v705_v1 = vld [vmem:[%s6537_s21 + $0x384] sm:%s6826_s7] }
  0xb2   : > { %704 = vst [vmem:[%s6540_s22 + $0x130] sm:%s6826_s7] %v703_v0  ;;  %706 = vst [vmem:[%s6540_s22 + $0x1c8] sm:%s6826_s7] %v705_v1 }
  0xb3   : > { %v707_v2 = vld [vmem:[%s6537_s21 + $0x4b0] sm:%s6826_s7]  ;;  %v709_v3 = vld [vmem:[%s6537_s21 + $0x5dc] sm:%s6826_s7] }
  0xb4   : > { %708 = vst [vmem:[%s6540_s22 + $0x260] sm:%s6826_s7] %v707_v2  ;;  %710 = vst [vmem:[%s6540_s22 + $0x2f8] sm:%s6826_s7] %v709_v3 }
  0xb5   : > { %v711_v4 = vld [vmem:[%s6537_s21 + $0x708] sm:%s6826_s7]  ;;  %v713_v5 = vld [vmem:[%s6537_s21 + $0x834] sm:%s6826_s7] }
  0xb6   : > { %712 = vst [vmem:[%s6540_s22 + $0x390] sm:%s6826_s7] %v711_v4  ;;  %714 = vst [vmem:[%s6540_s22 + $0x428] sm:%s6826_s7] %v713_v5 }
  0xb7   : > { %v715_v6 = vld [vmem:[%s6537_s21 + $0x960] sm:%s6826_s7]  ;;  %v717_v7 = vld [vmem:[%s6537_s21 + $0xa8c] sm:%s6826_s7] }
  0xb8   : > { %716 = vst [vmem:[%s6540_s22 + $0x4c0] sm:%s6826_s7] %v715_v6  ;;  %718 = vst [vmem:[%s6540_s22 + $0x558] sm:%s6826_s7] %v717_v7 }
  0xb9   : > { %v719_v8 = vld [vmem:[%s6537_s21 + $0xbb8] sm:%s6826_s7]  ;;  %v721_v9 = vld [vmem:[%s6537_s21 + $0xce4] sm:%s6826_s7] }
  0xba   : > { %720 = vst [vmem:[%s6540_s22 + $0x5f0] sm:%s6826_s7] %v719_v8  ;;  %722 = vst [vmem:[%s6540_s22 + $0x688] sm:%s6826_s7] %v721_v9 }
  0xbb   : > { %v723_v10 = vld [vmem:[%s6537_s21 + $0xe10] sm:%s6826_s7]  ;;  %v725_v11 = vld [vmem:[%s6537_s21 + $0xf3c] sm:%s6826_s7] }
  0xbc   : > { %724 = vst [vmem:[%s6540_s22 + $0x720] sm:%s6826_s7] %v723_v10  ;;  %726 = vst [vmem:[%s6540_s22 + $0x7b8] sm:%s6826_s7] %v725_v11 }
  0xbd   : > { %v727_v12 = vld [vmem:[%s6537_s21 + $0x1068] sm:%s6826_s7]  ;;  %v729_v13 = vld [vmem:[%s6537_s21 + $0x1194] sm:%s6826_s7] }
  0xbe   : > { %728 = vst [vmem:[%s6540_s22 + $0x850] sm:%s6826_s7] %v727_v12  ;;  %730 = vst [vmem:[%s6540_s22 + $0x8e8] sm:%s6826_s7] %v729_v13 }
  0xbf   : > { %v731_v14 = vld [vmem:[%s6537_s21 + $0x12c0] sm:%s6826_s7]  ;;  %v733_v15 = vld [vmem:[%s6537_s21 + $0x13ec] sm:%s6826_s7] }
  0xc0   : > { %732 = vst [vmem:[%s6540_s22 + $0x980] sm:%s6826_s7] %v731_v14  ;;  %734 = vst [vmem:[%s6540_s22 + $0xa18] sm:%s6826_s7] %v733_v15 }
  0xc1   : > { %v735_v16 = vld [vmem:[%s6537_s21 + $0x1518] sm:%s6826_s7] }
  0xc2   : > { %736 = vst [vmem:[%s6540_s22 + $0xab0] sm:%s6826_s7] %v735_v16 }
  0xc3 PF: > { %p4601_p11 = scmp.ge.u32.totalorder %s6237_s30, 8 }
  0xc4   : > { %s6168_s5 = smov (!%p4601_p11), 1  }
  0xc5   : > { %153 = sbr.rel (%p4601_p11) target bundleno = 222 (0xde), region = 40  ;;  %s154_s21 = sshll.u32 (!%p4601_p11), %s6168_s5, %s6237_s30 }
  0xc6   : > { %s6906_s22 = sadd.s32 (!%p4601_p11), 4294967295, %s154_s21 }
  0xca   : > { %v164_v17 = vld [vmem:[%s6235_s28] sm:%s6906_s22]  ;;  %v166_v18 = vld [vmem:[%s6235_s28 + $0x12c] sm:%s6906_s22] }
  0xcb   : > { %165 = vst [vmem:[%s6239_s4] sm:%s6906_s22] %v164_v17  ;;  %167 = vst [vmem:[%s6239_s4 + $0x98] sm:%s6906_s22] %v166_v18 }
  0xcc   : > { %v168_v19 = vld [vmem:[%s6235_s28 + $0x258] sm:%s6906_s22]  ;;  %v170_v20 = vld [vmem:[%s6235_s28 + $0x384] sm:%s6906_s22] }
  0xcd   : > { %169 = vst [vmem:[%s6239_s4 + $0x130] sm:%s6906_s22] %v168_v19  ;;  %171 = vst [vmem:[%s6239_s4 + $0x1c8] sm:%s6906_s22] %v170_v20 }
  0xce   : > { %v172_v21 = vld [vmem:[%s6235_s28 + $0x4b0] sm:%s6906_s22]  ;;  %v174_v22 = vld [vmem:[%s6235_s28 + $0x5dc] sm:%s6906_s22] }
  0xcf   : > { %173 = vst [vmem:[%s6239_s4 + $0x260] sm:%s6906_s22] %v172_v21  ;;  %175 = vst [vmem:[%s6239_s4 + $0x2f8] sm:%s6906_s22] %v174_v22 }
  0xd0   : > { %v176_v23 = vld [vmem:[%s6235_s28 + $0x708] sm:%s6906_s22]  ;;  %v178_v24 = vld [vmem:[%s6235_s28 + $0x834] sm:%s6906_s22] }
  0xd1   : > { %177 = vst [vmem:[%s6239_s4 + $0x390] sm:%s6906_s22] %v176_v23  ;;  %179 = vst [vmem:[%s6239_s4 + $0x428] sm:%s6906_s22] %v178_v24 }
  0xd2   : > { %v180_v25 = vld [vmem:[%s6235_s28 + $0x960] sm:%s6906_s22]  ;;  %v182_v26 = vld [vmem:[%s6235_s28 + $0xa8c] sm:%s6906_s22] }
  0xd3   : > { %181 = vst [vmem:[%s6239_s4 + $0x4c0] sm:%s6906_s22] %v180_v25  ;;  %183 = vst [vmem:[%s6239_s4 + $0x558] sm:%s6906_s22] %v182_v26 }
  0xd4   : > { %v184_v27 = vld [vmem:[%s6235_s28 + $0xbb8] sm:%s6906_s22]  ;;  %v186_v28 = vld [vmem:[%s6235_s28 + $0xce4] sm:%s6906_s22] }
  0xd5   : > { %185 = vst [vmem:[%s6239_s4 + $0x5f0] sm:%s6906_s22] %v184_v27  ;;  %187 = vst [vmem:[%s6239_s4 + $0x688] sm:%s6906_s22] %v186_v28 }
  0xd6   : > { %v188_v29 = vld [vmem:[%s6235_s28 + $0xe10] sm:%s6906_s22]  ;;  %v190_v30 = vld [vmem:[%s6235_s28 + $0xf3c] sm:%s6906_s22] }
  0xd7   : > { %189 = vst [vmem:[%s6239_s4 + $0x720] sm:%s6906_s22] %v188_v29  ;;  %191 = vst [vmem:[%s6239_s4 + $0x7b8] sm:%s6906_s22] %v190_v30 }
  0xd8   : > { %v192_v31 = vld [vmem:[%s6235_s28 + $0x1068] sm:%s6906_s22]  ;;  %v194_v32 = vld [vmem:[%s6235_s28 + $0x1194] sm:%s6906_s22] }
  0xd9   : > { %193 = vst [vmem:[%s6239_s4 + $0x850] sm:%s6906_s22] %v192_v31  ;;  %195 = vst [vmem:[%s6239_s4 + $0x8e8] sm:%s6906_s22] %v194_v32 }
  0xda   : > { %v196_v33 = vld [vmem:[%s6235_s28 + $0x12c0] sm:%s6906_s22]  ;;  %v198_v34 = vld [vmem:[%s6235_s28 + $0x13ec] sm:%s6906_s22] }
  0xdb   : > { %197 = vst [vmem:[%s6239_s4 + $0x980] sm:%s6906_s22] %v196_v33  ;;  %199 = vst [vmem:[%s6239_s4 + $0xa18] sm:%s6906_s22] %v198_v34 }
  0xdc   : > { %v200_v35 = vld [vmem:[%s6235_s28 + $0x1518] sm:%s6906_s22] }
  0xdd   : > { %201 = vst [vmem:[%s6239_s4 + $0xab0] sm:%s6906_s22] %v200_v35 }
  0xde PF: > { %p4603_p12 = scmp.ge.s32.totalorder %s6037_s14, 1  ;;  %p739_p13 = scmp.lt.s32.totalorder %s6037_s14, 3 }
  0xe0   : > { %p740_p0 = pnand %p4603_p12, %p739_p13 }
  0xe1   : > { %s746_s30 = sand.u32 (!%p740_p0), 1, %s6029_s12  }
  0xe2   : > { %743 = sbr.rel (%p740_p0) target bundleno = 978 (0x3d2), region = 94 }
  0xe3   : > { %s5045_s28 = smul.u32 (!%p740_p0), 2888, %s746_s30 }
  0xe4   : > { %s5046_s8 = smul.u32 (!%p740_p0), 304, %s746_s30 }
  0xe5   : > { %s7005_s14 = scalar_lea.vmem (!%p740_p0), [#allocation2], %s5045_s28 }
  0xe6   : > { %s7298_s12 = scalar_lea.vmem (!%p740_p0), [#allocation3], %s5046_s8  }
  0xe7   : > { %v6990_v36 = vld [vmem:[%s7969_s0] sm:$0xff]  ;;  %vm2958_vm0 = vcmask 154624   ;;  %v6169_v39 = vmov 0   ;;  %v5334_v40 = vld [vmem:[%s7005_s14 + $0x854] ss:$152 sps:$4 sm:$0xff]   ;;  %vm2962_vm1 = vcmask 1040384  }
  0xe8   : > { %v6996_v37 = vcombine.high %v6990_v36, %v6990_v36  ;;  %v1141_v38 = vld [vmem:[%s7971_s2] sm:$0xff]  ;;  %5333 = vset.pattern.permute.xlu0 %v6169_v39  ;;  %v5336_v41 = vld [vmem:[%s7005_s14 + $0x850] ss:$152 sps:$4 sm:$0xff]   ;;  %3080 = vmatprep.subr.bf16.mxu0 %v5334_v40  ;;  %v5340_v44 = vld [vmem:[%s7005_s14 + $0x5f4] ss:$152 sps:$4 sm:$0xff]   ;;  %vm2963_vm2 = vcmask 1041408   ;;  %v7049_v20 = vcombine.low %v6990_v36, %v6990_v36 }
  0xe9   : > { %1144 = vperm.xlu0 %5333, %v1141_v38   ;;  %v5337_v42 = vld [vmem:[%s7005_s14 + $0x724] ss:$152 sps:$4 sm:$0xff]   ;;  %3081 = vmatpush1.bf16.msra.mxu0 %v5336_v41  ;;  %v5339_v43 = vld [vmem:[%s7005_s14 + $0x720] ss:$152 sps:$4 sm:$0xff]   ;;  %v5342_v45 = vld [vmem:[%s7005_s14 + $0x5f0] ss:$152 sps:$4 sm:$0xff]  }
  0xea   : > { %4986 = vmatprep.mubr.msk.bf16.mxu0 %vm2958_vm0, %v6996_v37  ;;  %4987 = vmatprep.mubr.msk.bf16.mxu1 %vm2958_vm0, %v6996_v37  ;;  %v5343_v46 = vld [vmem:[%s7005_s14 + $0x4c4] ss:$152 sps:$4 sm:$0xff]   ;;  %v5345_v47 = vld [vmem:[%s7005_s14 + $0x4c0] ss:$152 sps:$4 sm:$0xff]   ;;  %v5346_v48 = vld [vmem:[%s7005_s14 + $0x394] ss:$152 sps:$4 sm:$0xff]  }
  0xeb   : > { %3082 = vmatprep.subr.bf16.mxu0 %v5337_v42  ;;  %v5360_v49 = vld [vmem:[%s7005_s14 + $0x85c] ss:$152 sps:$4 sm:$0xff]   ;;  %v5362_v50 = vld [vmem:[%s7005_s14 + $0x858] ss:$152 sps:$4 sm:$0xff]   ;;  %v5366_v51 = vld [vmem:[%s7005_s14 + $0x72c] ss:$152 sps:$4 sm:$0xff]  }
  0xec   : > { %3121 = vmatprep.subr.bf16.mxu1 %v5360_v49  ;;  %v5369_v52 = vld [vmem:[%s7005_s14 + $0x728] ss:$152 sps:$4 sm:$0xff]   ;;  %v5349_v54 = vld [vmem:[%s7005_s14 + $0x264] ss:$152 sps:$4 sm:$0xff]   ;;  %v5376_v57 = vld [vmem:[%s7005_s14 + $0x5f8] ss:$152 sps:$4 sm:$0xff]  }
  0xed   : > { %3083 = vmatpush1.bf16.msra.mxu0 %v5339_v43  ;;  %3122 = vmatpush1.bf16.msra.mxu1 %v5362_v50  ;;  %v5348_v53 = vld [vmem:[%s7005_s14 + $0x390] ss:$152 sps:$4 sm:$0xff]   ;;  %v5374_v55 = vld [vmem:[%s7005_s14 + $0x5fc] ss:$152 sps:$4 sm:$0xff]   ;;  %v5351_v56 = vld [vmem:[%s7005_s14 + $0x260] ss:$152 sps:$4 sm:$0xff]  }
  0xee   : > { %3084 = vmatprep.subr.bf16.mxu0 %v5340_v44  ;;  %3123 = vmatprep.subr.bf16.mxu1 %v5366_v51  ;;  %v5380_v58 = vld [vmem:[%s7005_s14 + $0x4cc] ss:$152 sps:$4 sm:$0xff]   ;;  %v1122_v60 = vld [vmem:[%s7005_s14 + $0xab0] sm:$0x33]  ;;  %v6170_v62 = vmov 65535   ;;  %s3942_s23 = smul.u32 (%p6224_p5), 38, %s6209_s15 }
  0xef   : > { %v5352_v59 = vld [vmem:[%s7005_s14 + $0x134] ss:$152 sps:$4 sm:$0xff]   ;;  %v5354_v61 = vld [vmem:[%s7005_s14 + $0x130] ss:$152 sps:$4 sm:$0xff]   ;;  %v2964_v63 = vsel %vm2962_vm1, 4294967295, %v6170_v62  ;;  %v4949_v3 = vcombine.high %v1122_v60, %v1122_v60  ;;  %v4948_v7 = vcombine.low %v1122_v60, %v1122_v60  ;;  %s5039_s25 = smul.u32 (%p6224_p5), 304, %s6209_s15 }
  0xf0   : > { %v5382_v0 = vld [vmem:[%s7005_s14 + $0x4c8] ss:$152 sps:$4 sm:$0xff]   ;;  %v5386_v1 = vld [vmem:[%s7005_s14 + $0x39c] ss:$152 sps:$4 sm:$0xff]   ;;  %v7032_v4 = vsel %vm2963_vm2, %v2964_v63, 0  ;;  %s3943_s26 = ssub.s32 (%p6224_p5), 75, %s3942_s23 }
  0xf1   : > { %3085 = vmatpush1.bf16.msra.mxu0 %v5342_v45  ;;  %3124 = vmatpush1.bf16.msra.mxu1 %v5369_v52  ;;  %v5355_v2 = vld [vmem:[%s7005_s14 + $0x4] ss:$152 sps:$4 sm:$0xff]   ;;  %v5357_v5 = vld [vmem:[%s7005_s14] ss:$152 sps:$4 sm:$0xff]   ;;  %v2970_v9 = vand.u32 %v4949_v3, %v7032_v4  ;;  %v2967_v11 = vand.u32 %v4948_v7, %v7032_v4  ;;  %v5379_v25 = vld [vmem:[%s7005_s14 + $0x734] ss:$152 sps:$4 sm:$0xff]   ;;  %s7554_s24 = scalar_lea.vmem (%p6224_p5), %s7972_s3, %s5039_s25  }
  0xf2   : > { %3086 = vmatprep.subr.bf16.mxu0 %v5343_v46  ;;  %3125 = vmatprep.subr.bf16.mxu1 %v5374_v55  ;;  %v5388_v6 = vld [vmem:[%s7005_s14 + $0x398] ss:$152 sps:$4 sm:$0xff]   ;;  %v5392_v8 = vld [vmem:[%s7005_s14 + $0x26c] ss:$152 sps:$4 sm:$0xff]   ;;  %v5394_v10 = vld [vmem:[%s7005_s14 + $0x268] ss:$152 sps:$4 sm:$0xff]  }
  0xf3   : > { %v5398_v12 = vld [vmem:[%s7005_s14 + $0x13c] ss:$152 sps:$4 sm:$0xff]   ;;  %v5400_v15 = vld [vmem:[%s7005_s14 + $0x138] ss:$152 sps:$4 sm:$0xff]   ;;  %v5404_v17 = vld [vmem:[%s7005_s14 + $0xc] ss:$152 sps:$4 sm:$0xff]  }
  0xf4   : > { %v5363_v13 = vld [vmem:[%s7005_s14 + $0x984] ss:$152 sps:$4 sm:$0xff]   ;;  %v5365_v16 = vld [vmem:[%s7005_s14 + $0x980] ss:$152 sps:$4 sm:$0xff]   ;;  %v5377_v27 = vld [vmem:[%s7005_s14 + $0x730] ss:$152 sps:$4 sm:$0xff]  }
  0xf5   : > { %3087 = vmatpush1.bf16.msra.mxu0 %v5345_v47  ;;  %3126 = vmatpush1.bf16.msra.mxu1 %v5376_v57  ;;  %v1123_v14 = vld [vmem:[%s7005_s14 + $0xab8] sm:$0x33]  ;;  %v5406_v21 = vld [vmem:[%s7005_s14 + $0x8] ss:$152 sps:$4 sm:$0xff]   ;;  %v5415_v28 = vld [vmem:[%s7005_s14 + $0x98c] ss:$152 sps:$4 sm:$0xff]  }
  0xf6   : > { %3088 = vmatprep.subr.bf16.mxu0 %v5346_v48  ;;  %3127 = vmatprep.subr.bf16.mxu1 %v5380_v58  ;;  %v4951_v18 = vcombine.high %v1123_v14, %v1123_v14  ;;  %v5373_v19 = vld [vmem:[%s7005_s14 + $0x864] ss:$152 sps:$4 sm:$0xff]   ;;  %v4950_v22 = vcombine.low %v1123_v14, %v1123_v14  ;;  %v5371_v23 = vld [vmem:[%s7005_s14 + $0x860] ss:$152 sps:$4 sm:$0xff]   ;;  %v5391_v33 = vld [vmem:[%s7005_s14 + $0x4d4] ss:$152 sps:$4 sm:$0xff]  }
  0xf7   : > { %v5385_v29 = vld [vmem:[%s7005_s14 + $0x604] ss:$152 sps:$4 sm:$0xff]   ;;  %v5417_v30 = vld [vmem:[%s7005_s14 + $0x988] ss:$152 sps:$4 sm:$0xff]   ;;  %v5426_v39 = vld [vmem:[%s7005_s14 + $0x738] ss:$152 sps:$4 sm:$0xff]  }
  0xf8   : > { %v2976_v24 = vand.u32 %v4951_v18, %v7032_v4  ;;  %v2973_v26 = vand.u32 %v4950_v22, %v7032_v4  ;;  %v5383_v31 = vld [vmem:[%s7005_s14 + $0x600] ss:$152 sps:$4 sm:$0xff]   ;;  %v5422_v32 = vld [vmem:[%s7005_s14 + $0x86c] ss:$152 sps:$4 sm:$0xff]   ;;  %v5389_v35 = vld [vmem:[%s7005_s14 + $0x4d0] ss:$152 sps:$4 sm:$0xff]  }
  0xf9   : > { %3089 = vmatpush1.bf16.msra.mxu0 %v5348_v53  ;;  %3128 = vmatpush1.bf16.msra.mxu1 %v5382_v0  ;;  %v5420_v34 = vld [vmem:[%s7005_s14 + $0x868] ss:$152 sps:$4 sm:$0xff]   ;;  %v5428_v36 = vld [vmem:[%s7005_s14 + $0x73c] ss:$152 sps:$4 sm:$0xff]   ;;  %v5434_v41 = vld [vmem:[%s7005_s14 + $0x60c] ss:$152 sps:$4 sm:$0xff]  }
  0xfa   : > { %3090 = vmatprep.subr.bf16.mxu0 %v5349_v54  ;;  %3129 = vmatprep.subr.bf16.mxu1 %v5386_v1  ;;  %v5397_v38 = vld [vmem:[%s7005_s14 + $0x3a4] ss:$152 sps:$4 sm:$0xff]   ;;  %v5395_v40 = vld [vmem:[%s7005_s14 + $0x3a0] ss:$152 sps:$4 sm:$0xff]   ;;  %v5403_v42 = vld [vmem:[%s7005_s14 + $0x274] ss:$152 sps:$4 sm:$0xff]  }
  0xfb   : > { %v5432_v43 = vld [vmem:[%s7005_s14 + $0x608] ss:$152 sps:$4 sm:$0xff]   ;;  %v5440_v45 = vld [vmem:[%s7005_s14 + $0x4dc] ss:$152 sps:$4 sm:$0xff]   ;;  %v5438_v49 = vld [vmem:[%s7005_s14 + $0x4d8] ss:$152 sps:$4 sm:$0xff]  }
  0xfc   : > { %v5401_v44 = vld [vmem:[%s7005_s14 + $0x270] ss:$152 sps:$4 sm:$0xff]   ;;  %v5409_v46 = vld [vmem:[%s7005_s14 + $0x144] ss:$152 sps:$4 sm:$0xff]   ;;  %v5407_v48 = vld [vmem:[%s7005_s14 + $0x140] ss:$152 sps:$4 sm:$0xff]  }
  0xfd   : > { %3091 = vmatpush1.bf16.msra.mxu0 %v5351_v56  ;;  %3130 = vmatpush1.bf16.msra.mxu1 %v5388_v6  ;;  %v1124_v47 = vld [vmem:[%s7005_s14 + $0xac0] sm:$0x33]  ;;  %v5414_v51 = vld [vmem:[%s7005_s14 + $0x14] ss:$152 sps:$4 sm:$0xff]   ;;  %v5412_v53 = vld [vmem:[%s7005_s14 + $0x10] ss:$152 sps:$4 sm:$0xff]  }
  0xfe   : > { %3092 = vmatprep.subr.bf16.mxu0 %v5352_v59  ;;  %3131 = vmatprep.subr.bf16.mxu1 %v5392_v8  ;;  %v5446_v50 = vld [vmem:[%s7005_s14 + $0x3ac] ss:$152 sps:$4 sm:$0xff]   ;;  %v4953_v52 = vcombine.high %v1124_v47, %v1124_v47  ;;  %v5444_v54 = vld [vmem:[%s7005_s14 + $0x3a8] ss:$152 sps:$4 sm:$0xff]   ;;  %v4952_v55 = vcombine.low %v1124_v47, %v1124_v47  ;;  %v5452_v56 = vld [vmem:[%s7005_s14 + $0x27c] ss:$152 sps:$4 sm:$0xff]  }
  0xff   : > { %v5425_v58 = vld [vmem:[%s7005_s14 + $0x994] ss:$152 sps:$4 sm:$0xff]   ;;  %v5450_v59 = vld [vmem:[%s7005_s14 + $0x278] ss:$152 sps:$4 sm:$0xff]   ;;  %v5456_v0 = vld [vmem:[%s7005_s14 + $0x148] ss:$152 sps:$4 sm:$0xff]  }
 0x100   : > { %v2982_v57 = vand.u32 %v4953_v52, %v7032_v4  ;;  %v2979_v60 = vand.u32 %v4952_v55, %v7032_v4  ;;  %v1125_v62 = vld [vmem:[%s7005_s14 + $0xac8] sm:$0x33]  ;;  %v5464_v1 = vld [vmem:[%s7005_s14 + $0x1c] ss:$152 sps:$4 sm:$0xff]   ;;  %v5473_v14 = vld [vmem:[%s7005_s14 + $0x998] ss:$152 sps:$4 sm:$0xff]  }
 0x101   : > { %3093 = vmatpush1.bf16.msra.mxu0 %v5354_v61  ;;  %3132 = vmatpush1.bf16.msra.mxu1 %v5394_v10  ;;  %v5458_v61 = vld [vmem:[%s7005_s14 + $0x14c] ss:$152 sps:$4 sm:$0xff]   ;;  %v5423_v63 = vld [vmem:[%s7005_s14 + $0x990] ss:$152 sps:$4 sm:$0xff]   ;;  %v4954_v6 = vcombine.low %v1125_v62, %v1125_v62  ;;  %v5435_v10 = vld [vmem:[%s7005_s14 + $0x740] ss:$152 sps:$4 sm:$0xff]  }
 0x102   : > { %3094 = vmatprep.subr.bf16.mxu0 %v5355_v2  ;;  %3133 = vmatprep.subr.bf16.mxu1 %v5398_v12  ;;  %v4955_v2 = vcombine.high %v1125_v62, %v1125_v62  ;;  %v5431_v3 = vld [vmem:[%s7005_s14 + $0x874] ss:$152 sps:$4 sm:$0xff]   ;;  %v5429_v7 = vld [vmem:[%s7005_s14 + $0x870] ss:$152 sps:$4 sm:$0xff]   ;;  %v1127_v47 = vld [vmem:[%s7005_s14 + $0xad8] sm:$0x33] }
 0x103   : > { %v5475_v12 = vld [vmem:[%s7005_s14 + $0x99c] ss:$152 sps:$4 sm:$0xff]   ;;  %v5478_v18 = vld [vmem:[%s7005_s14 + $0x878] ss:$152 sps:$4 sm:$0xff]   ;;  %p3944_p1 = scmp.lt.s32.totalorder (%p6224_p5), %s3943_s26, 38 }
 0x104   : > { %v2988_v8 = vand.u32 %v4955_v2, %v7032_v4  ;;  %v5455_v22 = vld [vmem:[%s7005_s14 + $0x3b4] ss:$152 sps:$4 sm:$0xff]   ;;  %v5489_v52 = vld [vmem:[%s7005_s14 + $0x884] ss:$152 sps:$4 sm:$0xff]   ;;  %v5487_v55 = vld [vmem:[%s7005_s14 + $0x880] ss:$152 sps:$4 sm:$0xff]  }
 0x105   : > { %3095 = vmatpush1.bf16.msra.mxu0 %v5357_v5  ;;  %3134 = vmatpush1.bf16.msra.mxu1 %v5400_v15  ;;  %v5462_v5 = vld [vmem:[%s7005_s14 + $0x18] ss:$152 sps:$4 sm:$0xff]  }
 0x106   : > { %3108 = vmatprep.subr.bf16.mxu0 %v2970_v9  ;;  %3135 = vmatprep.subr.bf16.mxu1 %v5404_v17  ;;  %v5437_v9 = vld [vmem:[%s7005_s14 + $0x744] ss:$152 sps:$4 sm:$0xff]   ;;  %v5441_v15 = vld [vmem:[%s7005_s14 + $0x610] ss:$152 sps:$4 sm:$0xff]   ;;  %v5499_v62 = vld [vmem:[%s7005_s14 + $0x620] ss:$152 sps:$4 sm:$0xff]  }
 0x107   : > { %v5449_v17 = vld [vmem:[%s7005_s14 + $0x4e4] ss:$152 sps:$4 sm:$0xff]   ;;  %v5505_v2 = vld [vmem:[%s7005_s14 + $0x4f0] ss:$152 sps:$4 sm:$0xff]  }
 0x109   : > { %3109 = vmatpush2.bf16.msra.mxu0 %v2967_v11  ;;  %3136 = vmatpush1.bf16.msra.mxu1 %v5406_v21  ;;  %v2985_v11 = vand.u32 %v4954_v6, %v7032_v4  ;;  %v5486_v21 = vld [vmem:[%s7005_s14 + $0x74c] ss:$152 sps:$4 sm:$0xff]  }
 0x10a   : > { %3110 = vmatprep.subr.bf16.mxu0 %v5363_v13  ;;  %3149 = vmatprep.subr.bf16.mxu1 %v2976_v24  ;;  %v5443_v13 = vld [vmem:[%s7005_s14 + $0x614] ss:$152 sps:$4 sm:$0xff]   ;;  %v5453_v24 = vld [vmem:[%s7005_s14 + $0x3b0] ss:$152 sps:$4 sm:$0xff]   ;;  %v5513_v6 = vld [vmem:[%s7005_s14 + $0x3c4] ss:$152 sps:$4 sm:$0xff]  }
 0x10d   : > { %3111 = vmatpush2.bf16.msra.mxu0 %v5365_v16  ;;  %3150 = vmatpush2.bf16.msra.mxu1 %v2973_v26  ;;  %v5480_v16 = vld [vmem:[%s7005_s14 + $0x87c] ss:$152 sps:$4 sm:$0xff]  }
 0x10e   : > { %3162 = vmatprep.subr.bf16.mxu0 %v5373_v19  ;;  %3151 = vmatprep.subr.bf16.mxu1 %v5415_v28  ;;  %v5447_v19 = vld [vmem:[%s7005_s14 + $0x4e0] ss:$152 sps:$4 sm:$0xff]   ;;  %v5461_v26 = vld [vmem:[%s7005_s14 + $0x284] ss:$152 sps:$4 sm:$0xff]  }
 0x10f   : > { %v5459_v28 = vld [vmem:[%s7005_s14 + $0x280] ss:$152 sps:$4 sm:$0xff]  }
 0x110   : > { %3113 = vmatmul.mubr.bf16.vlgmr.msra.gmra.mxu0 %v7049_v20 }
 0x111   : > { %3163 = vmatpush1.bf16.msra.mxu0 %v5371_v23  ;;  %4988 = vmatprep.mubr.msk.bf16.mxu0 %vm2958_vm0, %v6996_v37  ;;  %v5484_v23 = vld [vmem:[%s7005_s14 + $0x748] ss:$152 sps:$4 sm:$0xff]  }
 0x112   : > { %3164 = vmatprep.subr.bf16.mxu0 %v5379_v25  ;;  %3152 = vmatpush2.bf16.msra.mxu1 %v5417_v30  ;;  %v5492_v25 = vld [vmem:[%s7005_s14 + $0x61c] ss:$152 sps:$4 sm:$0xff]  }
 0x113   : > { %3203 = vmatprep.subr.bf16.mxu1 %v5422_v32  ;;  %v5467_v30 = vld [vmem:[%s7005_s14 + $0x154] ss:$152 sps:$4 sm:$0xff]   ;;  %v5496_v32 = vld [vmem:[%s7005_s14 + $0x4e8] ss:$152 sps:$4 sm:$0xff]  }
 0x115   : > { %3165 = vmatpush1.bf16.msra.mxu0 %v5377_v27  ;;  %3154 = vmatmul.mubr.bf16.vlgmr.msra.gmra.mxu1 %v7049_v20  ;;  %v5490_v27 = vld [vmem:[%s7005_s14 + $0x618] ss:$152 sps:$4 sm:$0xff]  }
 0x116   : > { %3166 = vmatprep.subr.bf16.mxu0 %v5385_v29  ;;  %3204 = vmatpush1.bf16.msra.mxu1 %v5420_v34  ;;  %v5498_v29 = vld [vmem:[%s7005_s14 + $0x4ec] ss:$152 sps:$4 sm:$0xff]   ;;  %v5504_v34 = vld [vmem:[%s7005_s14 + $0x3bc] ss:$152 sps:$4 sm:$0xff]  }
 0x117   : > { %4989 = vmatprep.mubr.msk.bf16.mxu1 %vm2958_vm0, %v6996_v37  ;;  %3205 = vmatprep.subr.bf16.mxu1 %v5428_v36 }
 0x119   : > { %3167 = vmatpush1.bf16.msra.mxu0 %v5383_v31  ;;  %v1126_v31 = vld [vmem:[%s7005_s14 + $0xad0] sm:$0x33] }
 0x11a   : > { %3168 = vmatprep.subr.bf16.mxu0 %v5391_v33  ;;  %3206 = vmatpush1.bf16.msra.mxu1 %v5426_v39  ;;  %v5465_v33 = vld [vmem:[%s7005_s14 + $0x150] ss:$152 sps:$4 sm:$0xff]   ;;  %v4957_v36 = vcombine.high %v1126_v31, %v1126_v31  ;;  %v5470_v39 = vld [vmem:[%s7005_s14 + $0x20] ss:$152 sps:$4 sm:$0xff]  }
 0x11b   : > { %3207 = vmatprep.subr.bf16.mxu1 %v5434_v41  ;;  %v5510_v41 = vld [vmem:[%s7005_s14 + $0x28c] ss:$152 sps:$4 sm:$0xff]  }
 0x11d   : > { %3169 = vmatpush1.bf16.msra.mxu0 %v5389_v35  ;;  %v5472_v35 = vld [vmem:[%s7005_s14 + $0x24] ss:$152 sps:$4 sm:$0xff]  }
 0x11e   : > { %3170 = vmatprep.subr.bf16.mxu0 %v5397_v38  ;;  %3208 = vmatpush1.bf16.msra.mxu1 %v5432_v43  ;;  %v5502_v38 = vld [vmem:[%s7005_s14 + $0x3b8] ss:$152 sps:$4 sm:$0xff]   ;;  %v5483_v43 = vld [vmem:[%s7005_s14 + $0x9a4] ss:$152 sps:$4 sm:$0xff]  }
 0x11f   : > { %3209 = vmatprep.subr.bf16.mxu1 %v5440_v45 }
 0x121   : > { %3171 = vmatpush1.bf16.msra.mxu0 %v5395_v40  ;;  %v4956_v40 = vcombine.low %v1126_v31, %v1126_v31  ;;  %v1129_v31 = vld [vmem:[%s7005_s14 + $0xae8] sm:$0x33] }
 0x122   : > { %3172 = vmatprep.subr.bf16.mxu0 %v5403_v42  ;;  %3210 = vmatpush1.bf16.msra.mxu1 %v5438_v49  ;;  %v2994_v42 = vand.u32 %v4957_v36, %v7032_v4  ;;  %v5514_v49 = vld [vmem:[%s7005_s14 + $0x158] ss:$152 sps:$4 sm:$0xff]   ;;  %v5547_v36 = vld [vmem:[%s7005_s14 + $0x894] ss:$152 sps:$4 sm:$0xff]  }
 0x123   : > { %3211 = vmatprep.subr.bf16.mxu1 %v5446_v50  ;;  %v2991_v45 = vand.u32 %v4956_v40, %v7032_v4  ;;  %v5522_v50 = vld [vmem:[%s7005_s14 + $0x2c] ss:$152 sps:$4 sm:$0xff]   ;;  %v5545_v40 = vld [vmem:[%s7005_s14 + $0x890] ss:$152 sps:$4 sm:$0xff]  }
 0x125   : > { %3173 = vmatpush1.bf16.msra.mxu0 %v5401_v44  ;;  %v5508_v44 = vld [vmem:[%s7005_s14 + $0x288] ss:$152 sps:$4 sm:$0xff]  }
 0x126   : > { %3174 = vmatprep.subr.bf16.mxu0 %v5409_v46  ;;  %3212 = vmatpush1.bf16.msra.mxu1 %v5444_v54  ;;  %v5516_v46 = vld [vmem:[%s7005_s14 + $0x15c] ss:$152 sps:$4 sm:$0xff]   ;;  %v4958_v54 = vcombine.low %v1127_v47, %v1127_v47 }
 0x127   : > { %3213 = vmatprep.subr.bf16.mxu1 %v5452_v56 }
 0x129   : > { %3175 = vmatpush1.bf16.msra.mxu0 %v5407_v48  ;;  %v5481_v48 = vld [vmem:[%s7005_s14 + $0x9a0] ss:$152 sps:$4 sm:$0xff]  }
 0x12a   : > { %3176 = vmatprep.subr.bf16.mxu0 %v5414_v51  ;;  %3214 = vmatpush1.bf16.msra.mxu1 %v5450_v59  ;;  %v4959_v51 = vcombine.high %v1127_v47, %v1127_v47  ;;  %v2997_v59 = vand.u32 %v4958_v54, %v7032_v4  ;;  %v5557_v47 = vld [vmem:[%s7005_s14 + $0x630] ss:$152 sps:$4 sm:$0xff]   ;;  %v5571_v54 = vld [vmem:[%s7005_s14 + $0x3d4] ss:$152 sps:$4 sm:$0xff]  }
 0x12b   : > { %3215 = vmatprep.subr.bf16.mxu1 %v5458_v61  ;;  %v5501_v61 = vld [vmem:[%s7005_s14 + $0x624] ss:$152 sps:$4 sm:$0xff]  }
 0x12c   : > { %v3000_v56 = vand.u32 %v4959_v51, %v7032_v4  ;;  %v5563_v51 = vld [vmem:[%s7005_s14 + $0x500] ss:$152 sps:$4 sm:$0xff]  }
 0x12d   : > { %3177 = vmatpush1.bf16.msra.mxu0 %v5412_v53  ;;  %v5520_v53 = vld [vmem:[%s7005_s14 + $0x28] ss:$152 sps:$4 sm:$0xff]  }
 0x12e   : > { %3190 = vmatprep.subr.bf16.mxu0 %v2982_v57  ;;  %3216 = vmatpush1.bf16.msra.mxu1 %v5456_v0  ;;  %v5495_v57 = vld [vmem:[%s7005_s14 + $0x754] ss:$152 sps:$4 sm:$0xff]  }
 0x12f   : > { %3217 = vmatprep.subr.bf16.mxu1 %v5464_v1  ;;  %v5538_v0 = vld [vmem:[%s7005_s14 + $0x88c] ss:$152 sps:$4 sm:$0xff]  }
 0x130   : > { %v5507_v1 = vld [vmem:[%s7005_s14 + $0x4f4] ss:$152 sps:$4 sm:$0xff]  }
 0x131   : > { %3191 = vmatpush2.bf16.msra.mxu0 %v2979_v60  ;;  %v5533_v60 = vld [vmem:[%s7005_s14 + $0x9ac] ss:$152 sps:$4 sm:$0xff]  }
 0x132   : > { %3192 = vmatprep.subr.bf16.mxu0 %v5425_v58  ;;  %3218 = vmatpush1.bf16.msra.mxu1 %v5462_v5  ;;  %v5493_v58 = vld [vmem:[%s7005_s14 + $0x750] ss:$152 sps:$4 sm:$0xff]   ;;  %v5544_v5 = vld [vmem:[%s7005_s14 + $0x75c] ss:$152 sps:$4 sm:$0xff]  }
 0x133   : > { %3231 = vmatprep.subr.bf16.mxu1 %v2988_v8  ;;  %v5511_v8 = vld [vmem:[%s7005_s14 + $0x3c0] ss:$152 sps:$4 sm:$0xff]  }
 0x135   : > { %3193 = vmatpush2.bf16.msra.mxu0 %v5423_v63  ;;  %v5531_v63 = vld [vmem:[%s7005_s14 + $0x9a8] ss:$152 sps:$4 sm:$0xff]  }
 0x136   : > { %3244 = vmatprep.subr.bf16.mxu0 %v5431_v3  ;;  %3232 = vmatpush2.bf16.msra.mxu1 %v2985_v11  ;;  %v5536_v3 = vld [vmem:[%s7005_s14 + $0x888] ss:$152 sps:$4 sm:$0xff]  }
 0x137   : > { %3233 = vmatprep.subr.bf16.mxu1 %v5475_v12  ;;  %v5548_v11 = vld [vmem:[%s7005_s14 + $0x628] ss:$152 sps:$4 sm:$0xff]  }
 0x138   : > { %3195 = vmatmul.mubr.bf16.vlgmr.msra.gmra.mxu0 %v7049_v20  ;;  %v5517_v12 = vld [vmem:[%s7005_s14 + $0x290] ss:$152 sps:$4 sm:$0xff]  }
 0x139   : > { %3245 = vmatpush1.bf16.msra.mxu0 %v5429_v7  ;;  %4990 = vmatprep.mubr.msk.bf16.mxu0 %vm2958_vm0, %v6996_v37  ;;  %v5542_v7 = vld [vmem:[%s7005_s14 + $0x758] ss:$152 sps:$4 sm:$0xff]  }
 0x13a   : > { %3246 = vmatprep.subr.bf16.mxu0 %v5437_v9  ;;  %3234 = vmatpush2.bf16.msra.mxu1 %v5473_v14  ;;  %v5550_v9 = vld [vmem:[%s7005_s14 + $0x62c] ss:$152 sps:$4 sm:$0xff]  }
 0x13b   : > { %3285 = vmatprep.subr.bf16.mxu1 %v5480_v16  ;;  %v5525_v14 = vld [vmem:[%s7005_s14 + $0x164] ss:$152 sps:$4 sm:$0xff]   ;;  %v5554_v16 = vld [vmem:[%s7005_s14 + $0x4f8] ss:$152 sps:$4 sm:$0xff]  }
 0x13d   : > { %3247 = vmatpush1.bf16.msra.mxu0 %v5435_v10  ;;  %3236 = vmatmul.mubr.bf16.vlgmr.msra.gmra.mxu1 %v7049_v20  ;;  %v5519_v10 = vld [vmem:[%s7005_s14 + $0x294] ss:$152 sps:$4 sm:$0xff]  }
 0x13e   : > { %3248 = vmatprep.subr.bf16.mxu0 %v5443_v13  ;;  %3286 = vmatpush1.bf16.msra.mxu1 %v5478_v18  ;;  %v5556_v13 = vld [vmem:[%s7005_s14 + $0x4fc] ss:$152 sps:$4 sm:$0xff]   ;;  %v5562_v18 = vld [vmem:[%s7005_s14 + $0x3cc] ss:$152 sps:$4 sm:$0xff]  }
 0x13f   : > { %4991 = vmatprep.mubr.msk.bf16.mxu1 %vm2958_vm0, %v6996_v37  ;;  %3287 = vmatprep.subr.bf16.mxu1 %v5486_v21 }
 0x141   : > { %3249 = vmatpush1.bf16.msra.mxu0 %v5441_v15  ;;  %v1128_v15 = vld [vmem:[%s7005_s14 + $0xae0] sm:$0x33] }
 0x142   : > { %3250 = vmatprep.subr.bf16.mxu0 %v5449_v17  ;;  %3288 = vmatpush1.bf16.msra.mxu1 %v5484_v23  ;;  %v5523_v17 = vld [vmem:[%s7005_s14 + $0x160] ss:$152 sps:$4 sm:$0xff]   ;;  %v4961_v21 = vcombine.high %v1128_v15, %v1128_v15  ;;  %v5528_v23 = vld [vmem:[%s7005_s14 + $0x30] ss:$152 sps:$4 sm:$0xff]  }
 0x143   : > { %3289 = vmatprep.subr.bf16.mxu1 %v5492_v25  ;;  %v5568_v25 = vld [vmem:[%s7005_s14 + $0x29c] ss:$152 sps:$4 sm:$0xff]  }
 0x145   : > { %3251 = vmatpush1.bf16.msra.mxu0 %v5447_v19  ;;  %v5530_v19 = vld [vmem:[%s7005_s14 + $0x34] ss:$152 sps:$4 sm:$0xff]  }
 0x146   : > { %3252 = vmatprep.subr.bf16.mxu0 %v5455_v22  ;;  %3290 = vmatpush1.bf16.msra.mxu1 %v5490_v27  ;;  %v5560_v22 = vld [vmem:[%s7005_s14 + $0x3c8] ss:$152 sps:$4 sm:$0xff]   ;;  %v5566_v27 = vld [vmem:[%s7005_s14 + $0x298] ss:$152 sps:$4 sm:$0xff]  }
 0x147   : > { %3291 = vmatprep.subr.bf16.mxu1 %v5498_v29  ;;  %v5574_v29 = vld [vmem:[%s7005_s14 + $0x16c] ss:$152 sps:$4 sm:$0xff]  }
 0x149   : > { %3253 = vmatpush1.bf16.msra.mxu0 %v5453_v24  ;;  %v4960_v24 = vcombine.low %v1128_v15, %v1128_v15  ;;  %v1131_v15 = vld [vmem:[%s7005_s14 + $0xaf8] sm:$0x33] }
 0x14a   : > { %3254 = vmatprep.subr.bf16.mxu0 %v5461_v26  ;;  %3292 = vmatpush1.bf16.msra.mxu1 %v5496_v32  ;;  %v3006_v26 = vand.u32 %v4961_v21, %v7032_v4  ;;  %v5572_v32 = vld [vmem:[%s7005_s14 + $0x168] ss:$152 sps:$4 sm:$0xff]   ;;  %v4967_v21 = vcombine.high %v1131_v15, %v1131_v15 }
 0x14b   : > { %3293 = vmatprep.subr.bf16.mxu1 %v5504_v34  ;;  %v5580_v34 = vld [vmem:[%s7005_s14 + $0x3c] ss:$152 sps:$4 sm:$0xff]  }
 0x14d   : > { %3255 = vmatpush1.bf16.msra.mxu0 %v5459_v28  ;;  %v3003_v28 = vand.u32 %v4960_v24, %v7032_v4  ;;  %v5603_v24 = vld [vmem:[%s7005_s14 + $0x8a0] ss:$152 sps:$4 sm:$0xff]  }
 0x14e   : > { %3256 = vmatprep.subr.bf16.mxu0 %v5467_v30  ;;  %3294 = vmatpush1.bf16.msra.mxu1 %v5502_v38  ;;  %v5541_v30 = vld [vmem:[%s7005_s14 + $0x9b4] ss:$152 sps:$4 sm:$0xff]   ;;  %v5578_v38 = vld [vmem:[%s7005_s14 + $0x38] ss:$152 sps:$4 sm:$0xff]  }
 0x14f   : > { %3295 = vmatprep.subr.bf16.mxu1 %v5510_v41 }
 0x151   : > { %3257 = vmatpush1.bf16.msra.mxu0 %v5465_v33  ;;  %v5539_v33 = vld [vmem:[%s7005_s14 + $0x9b0] ss:$152 sps:$4 sm:$0xff]  }
 0x152   : > { %3258 = vmatprep.subr.bf16.mxu0 %v5472_v35  ;;  %3296 = vmatpush1.bf16.msra.mxu1 %v5508_v44  ;;  %v4963_v35 = vcombine.high %v1129_v31, %v1129_v31 }
 0x153   : > { %3297 = vmatprep.subr.bf16.mxu1 %v5516_v46  ;;  %v5559_v46 = vld [vmem:[%s7005_s14 + $0x634] ss:$152 sps:$4 sm:$0xff]  }
 0x154   : > { %v3012_v41 = vand.u32 %v4963_v35, %v7032_v4  ;;  %v5652_v35 = vld [vmem:[%s7005_s14 + $0x8a8] ss:$152 sps:$4 sm:$0xff]  }
 0x155   : > { %3259 = vmatpush1.bf16.msra.mxu0 %v5470_v39  ;;  %v4962_v39 = vcombine.low %v1129_v31, %v1129_v31  ;;  %v5647_v31 = vld [vmem:[%s7005_s14 + $0x9c8] ss:$152 sps:$4 sm:$0xff]  }
 0x156   : > { %3272 = vmatprep.subr.bf16.mxu0 %v2994_v42  ;;  %3298 = vmatpush1.bf16.msra.mxu1 %v5514_v49  ;;  %v5553_v42 = vld [vmem:[%s7005_s14 + $0x764] ss:$152 sps:$4 sm:$0xff]  }
 0x157   : > { %3299 = vmatprep.subr.bf16.mxu1 %v5522_v50  ;;  %v3009_v44 = vand.u32 %v4962_v39, %v7032_v4  ;;  %v5596_v49 = vld [vmem:[%s7005_s14 + $0x89c] ss:$152 sps:$4 sm:$0xff]  }
 0x158   : > { %v5565_v50 = vld [vmem:[%s7005_s14 + $0x504] ss:$152 sps:$4 sm:$0xff]  }
 0x159   : > { %3273 = vmatpush2.bf16.msra.mxu0 %v2991_v45  ;;  %v5591_v45 = vld [vmem:[%s7005_s14 + $0x9bc] ss:$152 sps:$4 sm:$0xff]  }
 0x15a   : > { %3274 = vmatprep.subr.bf16.mxu0 %v5483_v43  ;;  %3300 = vmatpush1.bf16.msra.mxu1 %v5520_v53  ;;  %v5551_v43 = vld [vmem:[%s7005_s14 + $0x760] ss:$152 sps:$4 sm:$0xff]   ;;  %v5602_v53 = vld [vmem:[%s7005_s14 + $0x76c] ss:$152 sps:$4 sm:$0xff]   ;;  %v5660_v39 = vld [vmem:[%s7005_s14 + $0x77c] ss:$152 sps:$4 sm:$0xff]  }
 0x15b   : > { %3313 = vmatprep.subr.bf16.mxu1 %v3000_v56  ;;  %v5600_v56 = vld [vmem:[%s7005_s14 + $0x768] ss:$152 sps:$4 sm:$0xff]  }
 0x15d   : > { %3275 = vmatpush2.bf16.msra.mxu0 %v5481_v48  ;;  %v5589_v48 = vld [vmem:[%s7005_s14 + $0x9b8] ss:$152 sps:$4 sm:$0xff]  }
 0x15e   : > { %3326 = vmatprep.subr.bf16.mxu0 %v5489_v52  ;;  %3314 = vmatpush2.bf16.msra.mxu1 %v2997_v59  ;;  %v5594_v52 = vld [vmem:[%s7005_s14 + $0x898] ss:$152 sps:$4 sm:$0xff]  }
 0x15f   : > { %3315 = vmatprep.subr.bf16.mxu1 %v5533_v60  ;;  %v5575_v59 = vld [vmem:[%s7005_s14 + $0x2a0] ss:$152 sps:$4 sm:$0xff]  }
 0x160   : > { %3277 = vmatmul.mubr.bf16.vlgmr.msra.gmra.mxu0 %v7049_v20  ;;  %v5606_v60 = vld [vmem:[%s7005_s14 + $0x638] ss:$152 sps:$4 sm:$0xff]  }
 0x161   : > { %3327 = vmatpush1.bf16.msra.mxu0 %v5487_v55  ;;  %4992 = vmatprep.mubr.msk.bf16.mxu0 %vm2958_vm0, %v6996_v37  ;;  %v5569_v55 = vld [vmem:[%s7005_s14 + $0x3d0] ss:$152 sps:$4 sm:$0xff]  }
 0x162   : > { %3328 = vmatprep.subr.bf16.mxu0 %v5495_v57  ;;  %3316 = vmatpush2.bf16.msra.mxu1 %v5531_v63  ;;  %v5608_v57 = vld [vmem:[%s7005_s14 + $0x63c] ss:$152 sps:$4 sm:$0xff]   ;;  %v5581_v63 = vld [vmem:[%s7005_s14 + $0x170] ss:$152 sps:$4 sm:$0xff]  }
 0x163   : > { %3367 = vmatprep.subr.bf16.mxu1 %v5538_v0  ;;  %v1130_v0 = vld [vmem:[%s7005_s14 + $0xaf0] sm:$0x33] }
 0x165   : > { %3329 = vmatpush1.bf16.msra.mxu0 %v5493_v58  ;;  %3318 = vmatmul.mubr.bf16.vlgmr.msra.gmra.mxu1 %v7049_v20  ;;  %v5577_v58 = vld [vmem:[%s7005_s14 + $0x2a4] ss:$152 sps:$4 sm:$0xff]  }
 0x166   : > { %3330 = vmatprep.subr.bf16.mxu0 %v5501_v61  ;;  %3368 = vmatpush1.bf16.msra.mxu1 %v5536_v3  ;;  %v5614_v61 = vld [vmem:[%s7005_s14 + $0x50c] ss:$152 sps:$4 sm:$0xff]   ;;  %v5620_v3 = vld [vmem:[%s7005_s14 + $0x3dc] ss:$152 sps:$4 sm:$0xff]  }
 0x167   : > { %4993 = vmatprep.mubr.msk.bf16.mxu1 %vm2958_vm0, %v6996_v37  ;;  %3369 = vmatprep.subr.bf16.mxu1 %v5544_v5  ;;  %v4965_v5 = vcombine.high %v1130_v0, %v1130_v0 }
 0x169   : > { %3331 = vmatpush1.bf16.msra.mxu0 %v5499_v62  ;;  %v5583_v62 = vld [vmem:[%s7005_s14 + $0x174] ss:$152 sps:$4 sm:$0xff]  }
 0x16a   : > { %3332 = vmatprep.subr.bf16.mxu0 %v5507_v1  ;;  %3370 = vmatpush1.bf16.msra.mxu1 %v5542_v7  ;;  %v5612_v1 = vld [vmem:[%s7005_s14 + $0x508] ss:$152 sps:$4 sm:$0xff]   ;;  %v5618_v7 = vld [vmem:[%s7005_s14 + $0x3d8] ss:$152 sps:$4 sm:$0xff]  }
 0x16b   : > { %3371 = vmatprep.subr.bf16.mxu1 %v5550_v9  ;;  %v5626_v9 = vld [vmem:[%s7005_s14 + $0x2ac] ss:$152 sps:$4 sm:$0xff]  }
 0x16d   : > { %3333 = vmatpush1.bf16.msra.mxu0 %v5505_v2  ;;  %v5588_v2 = vld [vmem:[%s7005_s14 + $0x44] ss:$152 sps:$4 sm:$0xff]  }
 0x16e   : > { %3334 = vmatprep.subr.bf16.mxu0 %v5513_v6  ;;  %3372 = vmatpush1.bf16.msra.mxu1 %v5548_v11  ;;  %v5586_v6 = vld [vmem:[%s7005_s14 + $0x40] ss:$152 sps:$4 sm:$0xff]   ;;  %v5599_v11 = vld [vmem:[%s7005_s14 + $0x9c4] ss:$152 sps:$4 sm:$0xff]  }
 0x16f   : > { %3373 = vmatprep.subr.bf16.mxu1 %v5556_v13 }
 0x171   : > { %3335 = vmatpush1.bf16.msra.mxu0 %v5511_v8  ;;  %v4964_v8 = vcombine.low %v1130_v0, %v1130_v0  ;;  %v1133_v0 = vld [vmem:[%s7005_s14 + $0xb08] sm:$0x33] }
 0x172   : > { %3336 = vmatprep.subr.bf16.mxu0 %v5519_v10  ;;  %3374 = vmatpush1.bf16.msra.mxu1 %v5554_v16  ;;  %v3018_v10 = vand.u32 %v4965_v5, %v7032_v4  ;;  %v5630_v16 = vld [vmem:[%s7005_s14 + $0x178] ss:$152 sps:$4 sm:$0xff]  }
 0x173   : > { %3375 = vmatprep.subr.bf16.mxu1 %v5562_v18  ;;  %v3015_v13 = vand.u32 %v4964_v8, %v7032_v4  ;;  %v5605_v18 = vld [vmem:[%s7005_s14 + $0x8a4] ss:$152 sps:$4 sm:$0xff]   ;;  %v5655_v5 = vld [vmem:[%s7005_s14 + $0x9d0] ss:$152 sps:$4 sm:$0xff]  }
 0x175   : > { %3337 = vmatpush1.bf16.msra.mxu0 %v5517_v12  ;;  %v5624_v12 = vld [vmem:[%s7005_s14 + $0x2a8] ss:$152 sps:$4 sm:$0xff]  }
 0x176   : > { %3338 = vmatprep.subr.bf16.mxu0 %v5525_v14  ;;  %3376 = vmatpush1.bf16.msra.mxu1 %v5560_v22  ;;  %v5632_v14 = vld [vmem:[%s7005_s14 + $0x17c] ss:$152 sps:$4 sm:$0xff]   ;;  %v5636_v22 = vld [vmem:[%s7005_s14 + $0x48] ss:$152 sps:$4 sm:$0xff]  }
 0x177   : > { %3377 = vmatprep.subr.bf16.mxu1 %v5568_v25  ;;  %v5611_v25 = vld [vmem:[%s7005_s14 + $0x774] ss:$152 sps:$4 sm:$0xff]  }
 0x179   : > { %3339 = vmatpush1.bf16.msra.mxu0 %v5523_v17  ;;  %v5597_v17 = vld [vmem:[%s7005_s14 + $0x9c0] ss:$152 sps:$4 sm:$0xff]  }
 0x17a   : > { %3340 = vmatprep.subr.bf16.mxu0 %v5530_v19  ;;  %3378 = vmatpush1.bf16.msra.mxu1 %v5566_v27  ;;  %v5638_v19 = vld [vmem:[%s7005_s14 + $0x4c] ss:$152 sps:$4 sm:$0xff]  }
 0x17b   : > { %3379 = vmatprep.subr.bf16.mxu1 %v5574_v29  ;;  %v5617_v29 = vld [vmem:[%s7005_s14 + $0x644] ss:$152 sps:$4 sm:$0xff]  }
 0x17d   : > { %3341 = vmatpush1.bf16.msra.mxu0 %v5528_v23  ;;  %v4966_v23 = vcombine.low %v1131_v15, %v1131_v15 }
 0x17e   : > { %3354 = vmatprep.subr.bf16.mxu0 %v3006_v26  ;;  %3380 = vmatpush1.bf16.msra.mxu1 %v5572_v32  ;;  %v3024_v26 = vand.u32 %v4967_v21, %v7032_v4  ;;  %v5615_v32 = vld [vmem:[%s7005_s14 + $0x640] ss:$152 sps:$4 sm:$0xff]  }
 0x17f   : > { %3381 = vmatprep.subr.bf16.mxu1 %v5580_v34  ;;  %v3021_v27 = vand.u32 %v4966_v23, %v7032_v4  ;;  %v5654_v34 = vld [vmem:[%s7005_s14 + $0x8ac] ss:$152 sps:$4 sm:$0xff]   ;;  %v5707_v23 = vld [vmem:[%s7005_s14 + $0x9dc] ss:$152 sps:$4 sm:$0xff]  }
 0x181   : > { %3355 = vmatpush2.bf16.msra.mxu0 %v3003_v28  ;;  %v5609_v28 = vld [vmem:[%s7005_s14 + $0x770] ss:$152 sps:$4 sm:$0xff]  }
 0x182   : > { %3356 = vmatprep.subr.bf16.mxu0 %v5541_v30  ;;  %3382 = vmatpush1.bf16.msra.mxu1 %v5578_v38  ;;  %v5649_v30 = vld [vmem:[%s7005_s14 + $0x9cc] ss:$152 sps:$4 sm:$0xff]  }
 0x183   : > { %3395 = vmatprep.subr.bf16.mxu1 %v3012_v41  ;;  %v5629_v38 = vld [vmem:[%s7005_s14 + $0x3e4] ss:$152 sps:$4 sm:$0xff]   ;;  %v5627_v41 = vld [vmem:[%s7005_s14 + $0x3e0] ss:$152 sps:$4 sm:$0xff]  }
 0x185   : > { %3357 = vmatpush2.bf16.msra.mxu0 %v5539_v33  ;;  %v5623_v33 = vld [vmem:[%s7005_s14 + $0x514] ss:$152 sps:$4 sm:$0xff]  }
 0x186   : > { %3408 = vmatprep.subr.bf16.mxu0 %v5547_v36  ;;  %3396 = vmatpush2.bf16.msra.mxu1 %v3009_v44  ;;  %v5621_v36 = vld [vmem:[%s7005_s14 + $0x510] ss:$152 sps:$4 sm:$0xff]  }
 0x187   : > { %3397 = vmatprep.subr.bf16.mxu1 %v5591_v45  ;;  %v5664_v44 = vld [vmem:[%s7005_s14 + $0x648] ss:$152 sps:$4 sm:$0xff]  }
 0x188   : > { %3359 = vmatmul.mubr.bf16.vlgmr.msra.gmra.mxu0 %v7049_v20  ;;  %v5633_v45 = vld [vmem:[%s7005_s14 + $0x2b0] ss:$152 sps:$4 sm:$0xff]  }
 0x189   : > { %3409 = vmatpush1.bf16.msra.mxu0 %v5545_v40  ;;  %4994 = vmatprep.mubr.msk.bf16.mxu0 %vm2958_vm0, %v6996_v37  ;;  %v5658_v40 = vld [vmem:[%s7005_s14 + $0x778] ss:$152 sps:$4 sm:$0xff]  }
 0x18a   : > { %3410 = vmatprep.subr.bf16.mxu0 %v5553_v42  ;;  %3398 = vmatpush2.bf16.msra.mxu1 %v5589_v48  ;;  %v5635_v42 = vld [vmem:[%s7005_s14 + $0x2b4] ss:$152 sps:$4 sm:$0xff]   ;;  %v1132_v48 = vld [vmem:[%s7005_s14 + $0xb00] sm:$0x33] }
 0x18b   : > { %3449 = vmatprep.subr.bf16.mxu1 %v5596_v49  ;;  %v5670_v49 = vld [vmem:[%s7005_s14 + $0x518] ss:$152 sps:$4 sm:$0xff]  }
 0x18d   : > { %3411 = vmatpush1.bf16.msra.mxu0 %v5551_v43  ;;  %3400 = vmatmul.mubr.bf16.vlgmr.msra.gmra.mxu1 %v7049_v20  ;;  %v5666_v43 = vld [vmem:[%s7005_s14 + $0x64c] ss:$152 sps:$4 sm:$0xff]  }
 0x18e   : > { %3412 = vmatprep.subr.bf16.mxu0 %v5559_v46  ;;  %3450 = vmatpush1.bf16.msra.mxu1 %v5594_v52  ;;  %v5672_v46 = vld [vmem:[%s7005_s14 + $0x51c] ss:$152 sps:$4 sm:$0xff]  }
 0x18f   : > { %4995 = vmatprep.mubr.msk.bf16.mxu1 %vm2958_vm0, %v6996_v37  ;;  %3451 = vmatprep.subr.bf16.mxu1 %v5602_v53  ;;  %v5646_v52 = vld [vmem:[%s7005_s14 + $0x54] ss:$152 sps:$4 sm:$0xff]   ;;  %v4969_v53 = vcombine.high %v1132_v48, %v1132_v48 }
 0x191   : > { %3413 = vmatpush1.bf16.msra.mxu0 %v5557_v47  ;;  %v5641_v47 = vld [vmem:[%s7005_s14 + $0x184] ss:$152 sps:$4 sm:$0xff]  }
 0x192   : > { %3414 = vmatprep.subr.bf16.mxu0 %v5565_v50  ;;  %3452 = vmatpush1.bf16.msra.mxu1 %v5600_v56  ;;  %v5639_v50 = vld [vmem:[%s7005_s14 + $0x180] ss:$152 sps:$4 sm:$0xff]   ;;  %v4968_v56 = vcombine.low %v1132_v48, %v1132_v48  ;;  %v5730_v48 = vld [vmem:[%s7005_s14 + $0x52c] ss:$152 sps:$4 sm:$0xff]  }
 0x193   : > { %3453 = vmatprep.subr.bf16.mxu1 %v5608_v57  ;;  %v5684_v57 = vld [vmem:[%s7005_s14 + $0x2bc] ss:$152 sps:$4 sm:$0xff]  }
 0x195   : > { %3415 = vmatpush1.bf16.msra.mxu0 %v5563_v51  ;;  %v5678_v51 = vld [vmem:[%s7005_s14 + $0x3ec] ss:$152 sps:$4 sm:$0xff]  }
 0x196   : > { %3416 = vmatprep.subr.bf16.mxu0 %v5571_v54  ;;  %3454 = vmatpush1.bf16.msra.mxu1 %v5606_v60  ;;  %v5676_v54 = vld [vmem:[%s7005_s14 + $0x3e8] ss:$152 sps:$4 sm:$0xff]   ;;  %v3027_v60 = vand.u32 %v4968_v56, %v7032_v4  ;;  %v5734_v56 = vld [vmem:[%s7005_s14 + $0x3f8] ss:$152 sps:$4 sm:$0xff]  }
 0x197   : > { %3455 = vmatprep.subr.bf16.mxu1 %v5614_v61  ;;  %v5690_v61 = vld [vmem:[%s7005_s14 + $0x18c] ss:$152 sps:$4 sm:$0xff]  }
 0x199   : > { %3417 = vmatpush1.bf16.msra.mxu0 %v5569_v55  ;;  %v5644_v55 = vld [vmem:[%s7005_s14 + $0x50] ss:$152 sps:$4 sm:$0xff]  }
 0x19a   : > { %3418 = vmatprep.subr.bf16.mxu0 %v5577_v58  ;;  %3456 = vmatpush1.bf16.msra.mxu1 %v5612_v1  ;;  %v3030_v58 = vand.u32 %v4969_v53, %v7032_v4  ;;  %v5736_v53 = vld [vmem:[%s7005_s14 + $0x3fc] ss:$152 sps:$4 sm:$0xff]  }
 0x19b   : > { %3457 = vmatprep.subr.bf16.mxu1 %v5620_v3 }
 0x19d   : > { %3419 = vmatpush1.bf16.msra.mxu0 %v5575_v59  ;;  %v5682_v59 = vld [vmem:[%s7005_s14 + $0x2b8] ss:$152 sps:$4 sm:$0xff]  }
 0x19e   : > { %3420 = vmatprep.subr.bf16.mxu0 %v5583_v62  ;;  %3458 = vmatpush1.bf16.msra.mxu1 %v5618_v7  ;;  %v7285_v62 = vpop.permute.xlu0 %1144  ;;  %v4971_v7 = vcombine.high %v1133_v0, %v1133_v0 }
 0x19f   : > { %3459 = vmatprep.subr.bf16.mxu1 %v5626_v9  ;;  %v5663_v9 = vld [vmem:[%s7005_s14 + $0x8b4] ss:$152 sps:$4 sm:$0xff]  }
 0x1a1   : > { %3421 = vmatpush1.bf16.msra.mxu0 %v5581_v63  ;;  %v5657_v63 = vld [vmem:[%s7005_s14 + $0x9d4] ss:$152 sps:$4 sm:$0xff]  }
 0x1a2   : > { %3422 = vmatprep.subr.bf16.mxu0 %v5588_v2  ;;  %3460 = vmatpush1.bf16.msra.mxu1 %v5624_v12  ;;  %v5688_v2 = vld [vmem:[%s7005_s14 + $0x188] ss:$152 sps:$4 sm:$0xff]  }
 0x1a3   : > { %3461 = vmatprep.subr.bf16.mxu1 %v5632_v14  ;;  %v4970_v14 = vcombine.low %v1133_v0, %v1133_v0  ;;  %v5748_v0 = vld [vmem:[%s7005_s14 + $0x19c] ss:$152 sps:$4 sm:$0xff]  }
 0x1a5   : > { %3423 = vmatpush1.bf16.msra.mxu0 %v5586_v6  ;;  %v5696_v6 = vld [vmem:[%s7005_s14 + $0x5c] ss:$152 sps:$4 sm:$0xff]   ;;  %v3033_v21 = vand.u32 %v4970_v14, %v7032_v4 }
 0x1a6   : > { %3436 = vmatprep.subr.bf16.mxu0 %v3018_v10  ;;  %3462 = vmatpush1.bf16.msra.mxu1 %v5630_v16  ;;  %v5661_v16 = vld [vmem:[%s7005_s14 + $0x8b0] ss:$152 sps:$4 sm:$0xff]  }
 0x1a7   : > { %3463 = vmatprep.subr.bf16.mxu1 %v5638_v19  ;;  %v5669_v19 = vld [vmem:[%s7005_s14 + $0x784] ss:$152 sps:$4 sm:$0xff]  }
 0x1a9   : > { %3437 = vmatpush2.bf16.msra.mxu0 %v3015_v13  ;;  %v5694_v13 = vld [vmem:[%s7005_s14 + $0x58] ss:$152 sps:$4 sm:$0xff]  }
 0x1aa   : > { %3438 = vmatprep.subr.bf16.mxu0 %v5599_v11  ;;  %3464 = vmatpush1.bf16.msra.mxu1 %v5636_v22  ;;  %v5667_v22 = vld [vmem:[%s7005_s14 + $0x780] ss:$152 sps:$4 sm:$0xff]  }
 0x1ab   : > { %3477 = vmatprep.subr.bf16.mxu1 %v3024_v26 }
 0x1ad   : > { %3439 = vmatpush2.bf16.msra.mxu0 %v5597_v17  ;;  %v3036_v17 = vand.u32 %v4971_v7, %v7032_v4  ;;  %v5713_v7 = vld [vmem:[%s7005_s14 + $0x9e0] ss:$152 sps:$4 sm:$0xff]  }
 0x1ae   : > { %3490 = vmatprep.subr.bf16.mxu0 %v5605_v18  ;;  %3478 = vmatpush2.bf16.msra.mxu1 %v3021_v27  ;;  %v5705_v27 = vld [vmem:[%s7005_s14 + $0x9d8] ss:$152 sps:$4 sm:$0xff]  }
 0x1af   : > { %3479 = vmatprep.subr.bf16.mxu1 %v5649_v30  ;;  %v5712_v30 = vld [vmem:[%s7005_s14 + $0x8bc] ss:$152 sps:$4 sm:$0xff]  }
 0x1b0   : > { %3441 = vmatmul.mubr.bf16.vlgmr.msra.gmra.mxu0 %v7049_v20 }
 0x1b1   : > { %3491 = vmatpush1.bf16.msra.mxu0 %v5603_v24  ;;  %4996 = vmatprep.mubr.msk.bf16.mxu0 %vm2958_vm0, %v6996_v37  ;;  %v5675_v24 = vld [vmem:[%s7005_s14 + $0x654] ss:$152 sps:$4 sm:$0xff]  }
 0x1b2   : > { %3492 = vmatprep.subr.bf16.mxu0 %v5611_v25  ;;  %3480 = vmatpush2.bf16.msra.mxu1 %v5647_v31  ;;  %v5681_v31 = vld [vmem:[%s7005_s14 + $0x524] ss:$152 sps:$4 sm:$0xff]  }
 0x1b3   : > { %3531 = vmatprep.subr.bf16.mxu1 %v5654_v34 }
 0x1b5   : > { %3493 = vmatpush1.bf16.msra.mxu0 %v5609_v28  ;;  %3482 = vmatmul.mubr.bf16.vlgmr.msra.gmra.mxu1 %v7049_v20  ;;  %v5673_v28 = vld [vmem:[%s7005_s14 + $0x650] ss:$152 sps:$4 sm:$0xff]  }
 0x1b6   : > { %3494 = vmatprep.subr.bf16.mxu0 %v5617_v29  ;;  %3532 = vmatpush1.bf16.msra.mxu1 %v5652_v35 }
 0x1b7   : > { %4997 = vmatprep.mubr.msk.bf16.mxu1 %vm2958_vm0, %v6996_v37  ;;  %3533 = vmatprep.subr.bf16.mxu1 %v5660_v39 }
 0x1b9   : > { %3495 = vmatpush1.bf16.msra.mxu0 %v5615_v32 }
 0x1ba   : > { %3496 = vmatprep.subr.bf16.mxu0 %v5623_v33  ;;  %3534 = vmatpush1.bf16.msra.mxu1 %v5658_v40  ;;  %v5718_v40 = vld [vmem:[%s7005_s14 + $0x78c] ss:$152 sps:$4 sm:$0xff]  }
 0x1bb   : > { %3535 = vmatprep.subr.bf16.mxu1 %v5666_v43  ;;  %v5685_v43 = vld [vmem:[%s7005_s14 + $0x3f0] ss:$152 sps:$4 sm:$0xff]  }
 0x1bd   : > { %3497 = vmatpush1.bf16.msra.mxu0 %v5621_v36  ;;  %v5710_v36 = vld [vmem:[%s7005_s14 + $0x8b8] ss:$152 sps:$4 sm:$0xff]  }
 0x1be   : > { %3498 = vmatprep.subr.bf16.mxu0 %v5629_v38  ;;  %3536 = vmatpush1.bf16.msra.mxu1 %v5664_v44  ;;  %v5679_v38 = vld [vmem:[%s7005_s14 + $0x520] ss:$152 sps:$4 sm:$0xff]   ;;  %v5724_v44 = vld [vmem:[%s7005_s14 + $0x65c] ss:$152 sps:$4 sm:$0xff]  }
 0x1bf   : > { %3537 = vmatprep.subr.bf16.mxu1 %v5672_v46  ;;  %v5722_v46 = vld [vmem:[%s7005_s14 + $0x658] ss:$152 sps:$4 sm:$0xff]  }
 0x1c1   : > { %3499 = vmatpush1.bf16.msra.mxu0 %v5627_v41  ;;  %v5687_v41 = vld [vmem:[%s7005_s14 + $0x3f4] ss:$152 sps:$4 sm:$0xff]  }
 0x1c2   : > { %3500 = vmatprep.subr.bf16.mxu0 %v5635_v42  ;;  %3538 = vmatpush1.bf16.msra.mxu1 %v5670_v49  ;;  %v5716_v42 = vld [vmem:[%s7005_s14 + $0x788] ss:$152 sps:$4 sm:$0xff]   ;;  %v5699_v49 = vld [vmem:[%s7005_s14 + $0x194] ss:$152 sps:$4 sm:$0xff]  }
 0x1c3   : > { %3539 = vmatprep.subr.bf16.mxu1 %v5678_v51  ;;  %v5728_v51 = vld [vmem:[%s7005_s14 + $0x528] ss:$152 sps:$4 sm:$0xff]  }
 0x1c5   : > { %3501 = vmatpush1.bf16.msra.mxu0 %v5633_v45  ;;  %v5693_v45 = vld [vmem:[%s7005_s14 + $0x2c4] ss:$152 sps:$4 sm:$0xff]  }
 0x1c6   : > { %3502 = vmatprep.subr.bf16.mxu0 %v5641_v47  ;;  %3540 = vmatpush1.bf16.msra.mxu1 %v5676_v54  ;;  %v5691_v47 = vld [vmem:[%s7005_s14 + $0x2c0] ss:$152 sps:$4 sm:$0xff]   ;;  %v5704_v54 = vld [vmem:[%s7005_s14 + $0x64] ss:$152 sps:$4 sm:$0xff]  }
 0x1c7   : > { %3541 = vmatprep.subr.bf16.mxu1 %v5684_v57  ;;  %v5702_v57 = vld [vmem:[%s7005_s14 + $0x60] ss:$152 sps:$4 sm:$0xff]  }
 0x1c9   : > { %3503 = vmatpush1.bf16.msra.mxu0 %v5639_v50  ;;  %v1134_v50 = vld [vmem:[%s7005_s14 + $0xb10] sm:$0x33] }
 0x1ca   : > { %3504 = vmatprep.subr.bf16.mxu0 %v5646_v52  ;;  %3542 = vmatpush1.bf16.msra.mxu1 %v5682_v59  ;;  %v5697_v52 = vld [vmem:[%s7005_s14 + $0x190] ss:$152 sps:$4 sm:$0xff]   ;;  %v5742_v59 = vld [vmem:[%s7005_s14 + $0x2cc] ss:$152 sps:$4 sm:$0xff]  }
 0x1cb   : > { %3543 = vmatprep.subr.bf16.mxu1 %v5690_v61  ;;  %v5740_v61 = vld [vmem:[%s7005_s14 + $0x2c8] ss:$152 sps:$4 sm:$0xff]  }
 0x1cd   : > { %3505 = vmatpush1.bf16.msra.mxu0 %v5644_v55  ;;  %v4973_v55 = vcombine.high %v1134_v50, %v1134_v50 }
 0x1ce   : > { %3518 = vmatprep.subr.bf16.mxu0 %v3030_v58  ;;  %3544 = vmatpush1.bf16.msra.mxu1 %v5688_v2  ;;  %v4972_v58 = vcombine.low %v1134_v50, %v1134_v50  ;;  %v1135_v2 = vld [vmem:[%s7005_s14 + $0xb18] sm:$0x33] }
 0x1cf   : > { %3545 = vmatprep.subr.bf16.mxu1 %v5696_v6  ;;  %v5788_v50 = vld [vmem:[%s7005_s14 + $0x53c] ss:$152 sps:$4 sm:$0xff]  }
 0x1d0   : > { %v3114_v1 = vpop.f32.mrf.mxu0 }
 0x1d1   : > { %v3115_v3 = vadd.f32 %v3114_v1, %v7285_v62  ;;  %3519 = vmatpush2.bf16.msra.mxu0 %v3027_v60  ;;  %v3042_v60 = vand.u32 %v4973_v55, %v7032_v4  ;;  %v5715_v1 = vld [vmem:[%s7005_s14 + $0x9e4] ss:$152 sps:$4 sm:$0xff]  }
 0x1d2   : > { %v3116_v8 = vpop.f32.mrf.mxu0  ;;  %3520 = vmatprep.subr.bf16.mxu0 %v5657_v63  ;;  %3546 = vmatpush1.bf16.msra.mxu1 %v5694_v13  ;;  %v3039_v63 = vand.u32 %v4972_v58, %v7032_v4  ;;  %v5794_v55 = vld [vmem:[%s7005_s14 + $0x40c] ss:$152 sps:$4 sm:$0xff]   ;;  %v5792_v58 = vld [vmem:[%s7005_s14 + $0x408] ss:$152 sps:$4 sm:$0xff]  }
 0x1d3   : > { %v3859_v10 = vmax.f32 %v3115_v3, 0.0  ;;  %v3117_v11 = vadd.f32 %v3116_v8, %v7285_v62  ;;  %3559 = vmatprep.subr.bf16.mxu1 %v3036_v17  ;;  %v5754_v8 = vld [vmem:[%s7005_s14 + $0x6c] ss:$152 sps:$4 sm:$0xff]  }
 0x1d4   : > { %v3118_v12 = vpop.f32.mrf.mxu0 }
 0x1d5   : > { %3897 = vst [vmem:[%s7298_s12] sm:$0xff] %v3859_v10  ;;  %v3860_v15 = vmax.f32 %v3117_v11, 0.0  ;;  %3521 = vmatpush2.bf16.msra.mxu0 %v5655_v5  ;;  %v3155_v25 = vpop.f32.mrf.mxu1  ;;  %v5746_v5 = vld [vmem:[%s7005_s14 + $0x198] ss:$152 sps:$4 sm:$0xff]   ;;  %v5721_v11 = vld [vmem:[%s7005_s14 + $0x8c4] ss:$152 sps:$4 sm:$0xff]  }
 0x1d6   : > { %v3119_v18 = vpop.f32.mrf.mxu0  ;;  %3572 = vmatprep.subr.bf16.mxu0 %v5663_v9  ;;  %v3156_v26 = vadd.f32 %v3155_v25, %v7285_v62  ;;  %3560 = vmatpush2.bf16.msra.mxu1 %v3033_v21  ;;  %v4975_v9 = vcombine.high %v1135_v2, %v1135_v2  ;;  %v5765_v25 = vld [vmem:[%s7005_s14 + $0x9ec] ss:$152 sps:$4 sm:$0xff]  }
 0x1d7   : > { %3898 = vst [vmem:[%s7298_s12 + $0x8] sm:$0xff] %v3860_v15  ;;  %v3157_v29 = vpop.f32.mrf.mxu1  ;;  %3561 = vmatprep.subr.bf16.mxu1 %v5707_v23  ;;  %v5752_v15 = vld [vmem:[%s7005_s14 + $0x68] ss:$152 sps:$4 sm:$0xff]  }
 0x1d8   : > { %3523 = vmatmul.mubr.bf16.vlgmr.msra.gmra.mxu0 %v7049_v20  ;;  %v3861_v32 = vmax.f32 %v3156_v26, 0.0  ;;  %v3158_v33 = vadd.f32 %v3157_v29, %v7285_v62  ;;  %v5719_v18 = vld [vmem:[%s7005_s14 + $0x8c0] ss:$152 sps:$4 sm:$0xff]   ;;  %v5733_v26 = vld [vmem:[%s7005_s14 + $0x664] ss:$152 sps:$4 sm:$0xff]  }
 0x1d9   : > { %3573 = vmatpush1.bf16.msra.mxu0 %v5661_v16  ;;  %4998 = vmatprep.mubr.msk.bf16.mxu0 %vm2958_vm0, %v6996_v37  ;;  %v3159_v34 = vpop.f32.mrf.mxu1  ;;  %v4974_v16 = vcombine.low %v1135_v2, %v1135_v2  ;;  %v5763_v29 = vld [vmem:[%s7005_s14 + $0x9e8] ss:$152 sps:$4 sm:$0xff]   ;;  %v5806_v2 = vld [vmem:[%s7005_s14 + $0x1ac] ss:$152 sps:$4 sm:$0xff]  }
 0x1da   : > { %3574 = vmatprep.subr.bf16.mxu0 %v5669_v19  ;;  %3899 = vst [vmem:[%s7298_s12 + $0x10] sm:$0xff] %v3861_v32  ;;  %v3862_v35 = vmax.f32 %v3158_v33, 0.0  ;;  %3562 = vmatpush2.bf16.msra.mxu1 %v5705_v27  ;;  %v3048_v19 = vand.u32 %v4975_v9, %v7032_v4  ;;  %v5770_v32 = vld [vmem:[%s7005_s14 + $0x8cc] ss:$152 sps:$4 sm:$0xff]   ;;  %v5771_v9 = vld [vmem:[%s7005_s14 + $0x9f0] ss:$152 sps:$4 sm:$0xff]  }
 0x1db   : > { %v3160_v39 = vpop.f32.mrf.mxu1  ;;  %3613 = vmatprep.subr.bf16.mxu1 %v5712_v30  ;;  %v3045_v23 = vand.u32 %v4974_v16, %v7032_v4  ;;  %v5731_v30 = vld [vmem:[%s7005_s14 + $0x660] ss:$152 sps:$4 sm:$0xff]   ;;  %v5739_v33 = vld [vmem:[%s7005_s14 + $0x534] ss:$152 sps:$4 sm:$0xff]  }
 0x1dc   : > { %3900 = vst [vmem:[%s7298_s12 + $0x18] sm:$0xff] %v3862_v35  ;;  %v5768_v39 = vld [vmem:[%s7005_s14 + $0x8c8] ss:$152 sps:$4 sm:$0xff]  }
 0x1dd   : > { %3575 = vmatpush1.bf16.msra.mxu0 %v5667_v22  ;;  %3564 = vmatmul.mubr.bf16.vlgmr.msra.gmra.mxu1 %v7049_v20  ;;  %v5727_v22 = vld [vmem:[%s7005_s14 + $0x794] ss:$152 sps:$4 sm:$0xff]  }
 0x1de   : > { %3576 = vmatprep.subr.bf16.mxu0 %v5675_v24  ;;  %3614 = vmatpush1.bf16.msra.mxu1 %v5710_v36  ;;  %v5725_v24 = vld [vmem:[%s7005_s14 + $0x790] ss:$152 sps:$4 sm:$0xff]  }
 0x1df   : > { %4999 = vmatprep.mubr.msk.bf16.mxu1 %vm2958_vm0, %v6996_v37  ;;  %3615 = vmatprep.subr.bf16.mxu1 %v5718_v40  ;;  %v5737_v40 = vld [vmem:[%s7005_s14 + $0x530] ss:$152 sps:$4 sm:$0xff]  }
 0x1e1   : > { %3577 = vmatpush1.bf16.msra.mxu0 %v5673_v28 }
 0x1e2   : > { %3578 = vmatprep.subr.bf16.mxu0 %v5681_v31  ;;  %3616 = vmatpush1.bf16.msra.mxu1 %v5716_v42  ;;  %v5776_v42 = vld [vmem:[%s7005_s14 + $0x79c] ss:$152 sps:$4 sm:$0xff]  }
 0x1e3   : > { %3617 = vmatprep.subr.bf16.mxu1 %v5724_v44  ;;  %v5774_v44 = vld [vmem:[%s7005_s14 + $0x798] ss:$152 sps:$4 sm:$0xff]  }
 0x1e5   : > { %3579 = vmatpush1.bf16.msra.mxu0 %v5679_v38 }
 0x1e6   : > { %3580 = vmatprep.subr.bf16.mxu0 %v5687_v41  ;;  %3618 = vmatpush1.bf16.msra.mxu1 %v5722_v46  ;;  %v5782_v46 = vld [vmem:[%s7005_s14 + $0x66c] ss:$152 sps:$4 sm:$0xff]  }
 0x1e7   : > { %3619 = vmatprep.subr.bf16.mxu1 %v5730_v48  ;;  %v5780_v48 = vld [vmem:[%s7005_s14 + $0x668] ss:$152 sps:$4 sm:$0xff]  }
 0x1e9   : > { %3581 = vmatpush1.bf16.msra.mxu0 %v5685_v43  ;;  %v5745_v43 = vld [vmem:[%s7005_s14 + $0x404] ss:$152 sps:$4 sm:$0xff]  }
 0x1ea   : > { %3582 = vmatprep.subr.bf16.mxu0 %v5693_v45  ;;  %3620 = vmatpush1.bf16.msra.mxu1 %v5728_v51  ;;  %v5743_v45 = vld [vmem:[%s7005_s14 + $0x400] ss:$152 sps:$4 sm:$0xff]   ;;  %v5757_v51 = vld [vmem:[%s7005_s14 + $0x1a4] ss:$152 sps:$4 sm:$0xff]  }
 0x1eb   : > { %3621 = vmatprep.subr.bf16.mxu1 %v5736_v53  ;;  %v5786_v53 = vld [vmem:[%s7005_s14 + $0x538] ss:$152 sps:$4 sm:$0xff]  }
 0x1ed   : > { %3583 = vmatpush1.bf16.msra.mxu0 %v5691_v47  ;;  %v5751_v47 = vld [vmem:[%s7005_s14 + $0x2d4] ss:$152 sps:$4 sm:$0xff]  }
 0x1ee   : > { %3584 = vmatprep.subr.bf16.mxu0 %v5699_v49  ;;  %3622 = vmatpush1.bf16.msra.mxu1 %v5734_v56  ;;  %v5749_v49 = vld [vmem:[%s7005_s14 + $0x2d0] ss:$152 sps:$4 sm:$0xff]   ;;  %v5762_v56 = vld [vmem:[%s7005_s14 + $0x74] ss:$152 sps:$4 sm:$0xff]  }
 0x1ef   : > { %3623 = vmatprep.subr.bf16.mxu1 %v5742_v59  ;;  %v5760_v59 = vld [vmem:[%s7005_s14 + $0x70] ss:$152 sps:$4 sm:$0xff]  }
 0x1f1   : > { %3585 = vmatpush1.bf16.msra.mxu0 %v5697_v52  ;;  %v1136_v52 = vld [vmem:[%s7005_s14 + $0xb20] sm:$0x33] }
 0x1f2   : > { %3586 = vmatprep.subr.bf16.mxu0 %v5704_v54  ;;  %3624 = vmatpush1.bf16.msra.mxu1 %v5740_v61  ;;  %v5755_v54 = vld [vmem:[%s7005_s14 + $0x1a0] ss:$152 sps:$4 sm:$0xff]   ;;  %v5800_v61 = vld [vmem:[%s7005_s14 + $0x2dc] ss:$152 sps:$4 sm:$0xff]  }
 0x1f3   : > { %3625 = vmatprep.subr.bf16.mxu1 %v5748_v0  ;;  %v5798_v0 = vld [vmem:[%s7005_s14 + $0x2d8] ss:$152 sps:$4 sm:$0xff]  }
 0x1f5   : > { %3587 = vmatpush1.bf16.msra.mxu0 %v5702_v57  ;;  %v4977_v57 = vcombine.high %v1136_v52, %v1136_v52 }
 0x1f6   : > { %3600 = vmatprep.subr.bf16.mxu0 %v3042_v60  ;;  %3626 = vmatpush1.bf16.msra.mxu1 %v5746_v5  ;;  %v4976_v60 = vcombine.low %v1136_v52, %v1136_v52  ;;  %v1137_v5 = vld [vmem:[%s7005_s14 + $0xb28] sm:$0x33] }
 0x1f7   : > { %3627 = vmatprep.subr.bf16.mxu1 %v5754_v8  ;;  %v5846_v52 = vld [vmem:[%s7005_s14 + $0x54c] ss:$152 sps:$4 sm:$0xff]  }
 0x1f8   : > { %v3196_v3 = vpop.f32.mrf.mxu0 }
 0x1f9   : > { %v3197_v6 = vadd.f32 %v3196_v3, %v7285_v62  ;;  %3601 = vmatpush2.bf16.msra.mxu0 %v3039_v63  ;;  %v3054_v63 = vand.u32 %v4977_v57, %v7032_v4  ;;  %v5773_v3 = vld [vmem:[%s7005_s14 + $0x9f4] ss:$152 sps:$4 sm:$0xff]  }
 0x1fa   : > { %v3198_v10 = vpop.f32.mrf.mxu0  ;;  %3602 = vmatprep.subr.bf16.mxu0 %v5715_v1  ;;  %3628 = vmatpush1.bf16.msra.mxu1 %v5752_v15  ;;  %v3051_v1 = vand.u32 %v4976_v60, %v7032_v4  ;;  %v5852_v57 = vld [vmem:[%s7005_s14 + $0x41c] ss:$152 sps:$4 sm:$0xff]   ;;  %v5850_v60 = vld [vmem:[%s7005_s14 + $0x418] ss:$152 sps:$4 sm:$0xff]  }
 0x1fb   : > { %v3863_v12 = vmax.f32 %v3197_v6, 0.0  ;;  %v3199_v13 = vadd.f32 %v3198_v10, %v7285_v62  ;;  %3641 = vmatprep.subr.bf16.mxu1 %v3048_v19  ;;  %v5812_v10 = vld [vmem:[%s7005_s14 + $0x7c] ss:$152 sps:$4 sm:$0xff]  }
 0x1fc   : > { %v3200_v14 = vpop.f32.mrf.mxu0 }
 0x1fd   : > { %3901 = vst [vmem:[%s7298_s12 + $0x20] sm:$0xff] %v3863_v12  ;;  %v3864_v17 = vmax.f32 %v3199_v13, 0.0  ;;  %3603 = vmatpush2.bf16.msra.mxu0 %v5713_v7  ;;  %v3237_v27 = vpop.f32.mrf.mxu1  ;;  %v5804_v7 = vld [vmem:[%s7005_s14 + $0x1a8] ss:$152 sps:$4 sm:$0xff]   ;;  %v5779_v13 = vld [vmem:[%s7005_s14 + $0x8d4] ss:$152 sps:$4 sm:$0xff]  }
 0x1fe   : > { %v3201_v21 = vpop.f32.mrf.mxu0  ;;  %3654 = vmatprep.subr.bf16.mxu0 %v5721_v11  ;;  %v3238_v28 = vadd.f32 %v3237_v27, %v7285_v62  ;;  %3642 = vmatpush2.bf16.msra.mxu1 %v3045_v23  ;;  %v4979_v11 = vcombine.high %v1137_v5, %v1137_v5  ;;  %v5823_v27 = vld [vmem:[%s7005_s14 + $0x9fc] ss:$152 sps:$4 sm:$0xff]  }
 0x1ff   : > { %3902 = vst [vmem:[%s7298_s12 + $0x28] sm:$0xff] %v3864_v17  ;;  %v3239_v31 = vpop.f32.mrf.mxu1  ;;  %3643 = vmatprep.subr.bf16.mxu1 %v5765_v25  ;;  %v5810_v17 = vld [vmem:[%s7005_s14 + $0x78] ss:$152 sps:$4 sm:$0xff]  }
 0x200   : > { %3605 = vmatmul.mubr.bf16.vlgmr.msra.gmra.mxu0 %v7049_v20  ;;  %v3865_v34 = vmax.f32 %v3238_v28, 0.0  ;;  %v3240_v35 = vadd.f32 %v3239_v31, %v7285_v62  ;;  %v5777_v21 = vld [vmem:[%s7005_s14 + $0x8d0] ss:$152 sps:$4 sm:$0xff]   ;;  %v5791_v28 = vld [vmem:[%s7005_s14 + $0x674] ss:$152 sps:$4 sm:$0xff]  }
 0x201   : > { %3655 = vmatpush1.bf16.msra.mxu0 %v5719_v18  ;;  %5000 = vmatprep.mubr.msk.bf16.mxu0 %vm2958_vm0, %v6996_v37  ;;  %v3241_v36 = vpop.f32.mrf.mxu1  ;;  %v4978_v18 = vcombine.low %v1137_v5, %v1137_v5  ;;  %v5821_v31 = vld [vmem:[%s7005_s14 + $0x9f8] ss:$152 sps:$4 sm:$0xff]   ;;  %v5864_v5 = vld [vmem:[%s7005_s14 + $0x1bc] ss:$152 sps:$4 sm:$0xff]  }
 0x202   : > { %3656 = vmatprep.subr.bf16.mxu0 %v5727_v22  ;;  %3903 = vst [vmem:[%s7298_s12 + $0x30] sm:$0xff] %v3865_v34  ;;  %v3866_v38 = vmax.f32 %v3240_v35, 0.0  ;;  %3644 = vmatpush2.bf16.msra.mxu1 %v5763_v29  ;;  %v3060_v22 = vand.u32 %v4979_v11, %v7032_v4  ;;  %v5828_v34 = vld [vmem:[%s7005_s14 + $0x8dc] ss:$152 sps:$4 sm:$0xff]   ;;  %v5829_v11 = vld [vmem:[%s7005_s14 + $0xa00] ss:$152 sps:$4 sm:$0xff]  }
 0x203   : > { %v3242_v41 = vpop.f32.mrf.mxu1  ;;  %3695 = vmatprep.subr.bf16.mxu1 %v5770_v32  ;;  %v3057_v25 = vand.u32 %v4978_v18, %v7032_v4  ;;  %v5789_v32 = vld [vmem:[%s7005_s14 + $0x670] ss:$152 sps:$4 sm:$0xff]   ;;  %v5797_v35 = vld [vmem:[%s7005_s14 + $0x544] ss:$152 sps:$4 sm:$0xff]  }
 0x204   : > { %3904 = vst [vmem:[%s7298_s12 + $0x38] sm:$0xff] %v3866_v38  ;;  %v5826_v41 = vld [vmem:[%s7005_s14 + $0x8d8] ss:$152 sps:$4 sm:$0xff]  }
 0x205   : > { %3657 = vmatpush1.bf16.msra.mxu0 %v5725_v24  ;;  %3646 = vmatmul.mubr.bf16.vlgmr.msra.gmra.mxu1 %v7049_v20  ;;  %v5785_v24 = vld [vmem:[%s7005_s14 + $0x7a4] ss:$152 sps:$4 sm:$0xff]  }
 0x206   : > { %3658 = vmatprep.subr.bf16.mxu0 %v5733_v26  ;;  %3696 = vmatpush1.bf16.msra.mxu1 %v5768_v39  ;;  %v5783_v26 = vld [vmem:[%s7005_s14 + $0x7a0] ss:$152 sps:$4 sm:$0xff]  }
 0x207   : > { %5001 = vmatprep.mubr.msk.bf16.mxu1 %vm2958_vm0, %v6996_v37  ;;  %3697 = vmatprep.subr.bf16.mxu1 %v5776_v42  ;;  %v5795_v42 = vld [vmem:[%s7005_s14 + $0x540] ss:$152 sps:$4 sm:$0xff]  }
 0x209   : > { %3659 = vmatpush1.bf16.msra.mxu0 %v5731_v30 }
 0x20a   : > { %3660 = vmatprep.subr.bf16.mxu0 %v5739_v33  ;;  %3698 = vmatpush1.bf16.msra.mxu1 %v5774_v44  ;;  %v5834_v44 = vld [vmem:[%s7005_s14 + $0x7ac] ss:$152 sps:$4 sm:$0xff]  }
 0x20b   : > { %3699 = vmatprep.subr.bf16.mxu1 %v5782_v46  ;;  %v5832_v46 = vld [vmem:[%s7005_s14 + $0x7a8] ss:$152 sps:$4 sm:$0xff]  }
 0x20d   : > { %3661 = vmatpush1.bf16.msra.mxu0 %v5737_v40 }
 0x20e   : > { %3662 = vmatprep.subr.bf16.mxu0 %v5745_v43  ;;  %3700 = vmatpush1.bf16.msra.mxu1 %v5780_v48  ;;  %v5840_v48 = vld [vmem:[%s7005_s14 + $0x67c] ss:$152 sps:$4 sm:$0xff]  }
 0x20f   : > { %3701 = vmatprep.subr.bf16.mxu1 %v5788_v50  ;;  %v5838_v50 = vld [vmem:[%s7005_s14 + $0x678] ss:$152 sps:$4 sm:$0xff]  }
 0x211   : > { %3663 = vmatpush1.bf16.msra.mxu0 %v5743_v45  ;;  %v5803_v45 = vld [vmem:[%s7005_s14 + $0x414] ss:$152 sps:$4 sm:$0xff]  }
 0x212   : > { %3664 = vmatprep.subr.bf16.mxu0 %v5751_v47  ;;  %3702 = vmatpush1.bf16.msra.mxu1 %v5786_v53  ;;  %v5801_v47 = vld [vmem:[%s7005_s14 + $0x410] ss:$152 sps:$4 sm:$0xff]   ;;  %v5815_v53 = vld [vmem:[%s7005_s14 + $0x1b4] ss:$152 sps:$4 sm:$0xff]  }
 0x213   : > { %3703 = vmatprep.subr.bf16.mxu1 %v5794_v55  ;;  %v5844_v55 = vld [vmem:[%s7005_s14 + $0x548] ss:$152 sps:$4 sm:$0xff]  }
 0x215   : > { %3665 = vmatpush1.bf16.msra.mxu0 %v5749_v49  ;;  %v5809_v49 = vld [vmem:[%s7005_s14 + $0x2e4] ss:$152 sps:$4 sm:$0xff]  }
 0x216   : > { %3666 = vmatprep.subr.bf16.mxu0 %v5757_v51  ;;  %3704 = vmatpush1.bf16.msra.mxu1 %v5792_v58  ;;  %v5807_v51 = vld [vmem:[%s7005_s14 + $0x2e0] ss:$152 sps:$4 sm:$0xff]   ;;  %v5820_v58 = vld [vmem:[%s7005_s14 + $0x84] ss:$152 sps:$4 sm:$0xff]  }
 0x217   : > { %3705 = vmatprep.subr.bf16.mxu1 %v5800_v61  ;;  %v5818_v61 = vld [vmem:[%s7005_s14 + $0x80] ss:$152 sps:$4 sm:$0xff]  }
 0x219   : > { %3667 = vmatpush1.bf16.msra.mxu0 %v5755_v54  ;;  %v1138_v54 = vld [vmem:[%s7005_s14 + $0xb30] sm:$0x33] }
 0x21a   : > { %3668 = vmatprep.subr.bf16.mxu0 %v5762_v56  ;;  %3706 = vmatpush1.bf16.msra.mxu1 %v5798_v0  ;;  %v5813_v56 = vld [vmem:[%s7005_s14 + $0x1b0] ss:$152 sps:$4 sm:$0xff]   ;;  %v5858_v0 = vld [vmem:[%s7005_s14 + $0x2ec] ss:$152 sps:$4 sm:$0xff]  }
 0x21b   : > { %3707 = vmatprep.subr.bf16.mxu1 %v5806_v2  ;;  %v5856_v2 = vld [vmem:[%s7005_s14 + $0x2e8] ss:$152 sps:$4 sm:$0xff]  }
 0x21d   : > { %3669 = vmatpush1.bf16.msra.mxu0 %v5760_v59  ;;  %v4981_v59 = vcombine.high %v1138_v54, %v1138_v54 }
 0x21e   : > { %3682 = vmatprep.subr.bf16.mxu0 %v3054_v63  ;;  %3708 = vmatpush1.bf16.msra.mxu1 %v5804_v7  ;;  %v4980_v63 = vcombine.low %v1138_v54, %v1138_v54  ;;  %v1139_v7 = vld [vmem:[%s7005_s14 + $0xb38] sm:$0x33] }
 0x21f   : > { %3709 = vmatprep.subr.bf16.mxu1 %v5812_v10 }
 0x220   : > { %v3278_v6 = vpop.f32.mrf.mxu0 }
 0x221   : > { %v3279_v8 = vadd.f32 %v3278_v6, %v7285_v62  ;;  %3683 = vmatpush2.bf16.msra.mxu0 %v3051_v1  ;;  %v3066_v1 = vand.u32 %v4981_v59, %v7032_v4  ;;  %v5831_v6 = vld [vmem:[%s7005_s14 + $0xa04] ss:$152 sps:$4 sm:$0xff]   ;;  %v5884_v59 = vld [vmem:[%s7005_s14 + $0xa10] ss:$152 sps:$4 sm:$0xff]  }
 0x222   : > { %v3280_v12 = vpop.f32.mrf.mxu0  ;;  %3684 = vmatprep.subr.bf16.mxu0 %v5773_v3  ;;  %3710 = vmatpush1.bf16.msra.mxu1 %v5810_v17  ;;  %v3063_v3 = vand.u32 %v4980_v63, %v7032_v4 }
 0x223   : > { %v3867_v14 = vmax.f32 %v3279_v8, 0.0  ;;  %v3281_v15 = vadd.f32 %v3280_v12, %v7285_v62  ;;  %3723 = vmatprep.subr.bf16.mxu1 %v3060_v22  ;;  %v5870_v12 = vld [vmem:[%s7005_s14 + $0x8c] ss:$152 sps:$4 sm:$0xff]  }
 0x224   : > { %v3282_v16 = vpop.f32.mrf.mxu0 }
 0x225   : > { %3905 = vst [vmem:[%s7298_s12 + $0x40] sm:$0xff] %v3867_v14  ;;  %v3868_v19 = vmax.f32 %v3281_v15, 0.0  ;;  %3685 = vmatpush2.bf16.msra.mxu0 %v5771_v9  ;;  %v3319_v29 = vpop.f32.mrf.mxu1  ;;  %v5862_v9 = vld [vmem:[%s7005_s14 + $0x1b8] ss:$152 sps:$4 sm:$0xff]   ;;  %v5837_v15 = vld [vmem:[%s7005_s14 + $0x8e4] ss:$152 sps:$4 sm:$0xff]  }
 0x226   : > { %v3283_v23 = vpop.f32.mrf.mxu0  ;;  %3736 = vmatprep.subr.bf16.mxu0 %v5779_v13  ;;  %v3320_v30 = vadd.f32 %v3319_v29, %v7285_v62  ;;  %3724 = vmatpush2.bf16.msra.mxu1 %v3057_v25  ;;  %v4983_v13 = vcombine.high %v1139_v7, %v1139_v7  ;;  %v5881_v29 = vld [vmem:[%s7005_s14 + $0xa0c] ss:$152 sps:$4 sm:$0xff]  }
 0x227   : > { %3906 = vst [vmem:[%s7298_s12 + $0x48] sm:$0xff] %v3868_v19  ;;  %v3321_v33 = vpop.f32.mrf.mxu1  ;;  %3725 = vmatprep.subr.bf16.mxu1 %v5823_v27  ;;  %v5868_v19 = vld [vmem:[%s7005_s14 + $0x88] ss:$152 sps:$4 sm:$0xff]  }
 0x228   : > { %3687 = vmatmul.mubr.bf16.vlgmr.msra.gmra.mxu0 %v7049_v20  ;;  %v3869_v36 = vmax.f32 %v3320_v30, 0.0  ;;  %v3322_v38 = vadd.f32 %v3321_v33, %v7285_v62  ;;  %v5835_v23 = vld [vmem:[%s7005_s14 + $0x8e0] ss:$152 sps:$4 sm:$0xff]   ;;  %v5849_v30 = vld [vmem:[%s7005_s14 + $0x684] ss:$152 sps:$4 sm:$0xff]  }
 0x229   : > { %3737 = vmatpush1.bf16.msra.mxu0 %v5777_v21  ;;  %5002 = vmatprep.mubr.msk.bf16.mxu0 %vm2958_vm0, %v6996_v37  ;;  %v3323_v39 = vpop.f32.mrf.mxu1  ;;  %v4982_v21 = vcombine.low %v1139_v7, %v1139_v7  ;;  %v5879_v33 = vld [vmem:[%s7005_s14 + $0xa08] ss:$152 sps:$4 sm:$0xff]  }
 0x22a   : > { %3738 = vmatprep.subr.bf16.mxu0 %v5785_v24  ;;  %3907 = vst [vmem:[%s7298_s12 + $0x50] sm:$0xff] %v3869_v36  ;;  %v3870_v40 = vmax.f32 %v3322_v38, 0.0  ;;  %3726 = vmatpush2.bf16.msra.mxu1 %v5821_v31  ;;  %v3072_v24 = vand.u32 %v4983_v13, %v7032_v4  ;;  %v5855_v36 = vld [vmem:[%s7005_s14 + $0x554] ss:$152 sps:$4 sm:$0xff]  }
 0x22b   : > { %v3324_v43 = vpop.f32.mrf.mxu1  ;;  %3777 = vmatprep.subr.bf16.mxu1 %v5828_v34  ;;  %v3069_v27 = vand.u32 %v4982_v21, %v7032_v4  ;;  %v5847_v34 = vld [vmem:[%s7005_s14 + $0x680] ss:$152 sps:$4 sm:$0xff]  }
 0x22c   : > { %3908 = vst [vmem:[%s7298_s12 + $0x58] sm:$0xff] %v3870_v40  ;;  %v5861_v43 = vld [vmem:[%s7005_s14 + $0x424] ss:$152 sps:$4 sm:$0xff]  }
 0x22d   : > { %3739 = vmatpush1.bf16.msra.mxu0 %v5783_v26  ;;  %3728 = vmatmul.mubr.bf16.vlgmr.msra.gmra.mxu1 %v7049_v20  ;;  %v5843_v26 = vld [vmem:[%s7005_s14 + $0x7b4] ss:$152 sps:$4 sm:$0xff]  }
 0x22e   : > { %3740 = vmatprep.subr.bf16.mxu0 %v5791_v28  ;;  %3778 = vmatpush1.bf16.msra.mxu1 %v5826_v41  ;;  %v5841_v28 = vld [vmem:[%s7005_s14 + $0x7b0] ss:$152 sps:$4 sm:$0xff]  }
 0x22f   : > { %5003 = vmatprep.mubr.msk.bf16.mxu1 %vm2958_vm0, %v6996_v37  ;;  %3779 = vmatprep.subr.bf16.mxu1 %v5834_v44  ;;  %v5853_v41 = vld [vmem:[%s7005_s14 + $0x550] ss:$152 sps:$4 sm:$0xff]   ;;  %v5859_v44 = vld [vmem:[%s7005_s14 + $0x420] ss:$152 sps:$4 sm:$0xff]  }
 0x231   : > { %3741 = vmatpush1.bf16.msra.mxu0 %v5789_v32 }
 0x232   : > { %3742 = vmatprep.subr.bf16.mxu0 %v5797_v35  ;;  %3780 = vmatpush1.bf16.msra.mxu1 %v5832_v46  ;;  %v5865_v46 = vld [vmem:[%s7005_s14 + $0x2f0] ss:$152 sps:$4 sm:$0xff]  }
 0x233   : > { %3781 = vmatprep.subr.bf16.mxu1 %v5840_v48  ;;  %v1140_v48 = vld [vmem:[%s7005_s14 + $0xb40] sm:$0x33] }
 0x235   : > { %3743 = vmatpush1.bf16.msra.mxu0 %v5795_v42 }
 0x236   : > { %3744 = vmatprep.subr.bf16.mxu0 %v5803_v45  ;;  %3782 = vmatpush1.bf16.msra.mxu1 %v5838_v50  ;;  %v5867_v45 = vld [vmem:[%s7005_s14 + $0x2f4] ss:$152 sps:$4 sm:$0xff]  }
 0x237   : > { %3783 = vmatprep.subr.bf16.mxu1 %v5846_v52  ;;  %v5878_v50 = vld [vmem:[%s7005_s14 + $0x94] ss:$152 sps:$4 sm:$0xff]   ;;  %v5876_v52 = vld [vmem:[%s7005_s14 + $0x90] ss:$152 sps:$4 sm:$0xff]  }
 0x239   : > { %3745 = vmatpush1.bf16.msra.mxu0 %v5801_v47  ;;  %v5873_v47 = vld [vmem:[%s7005_s14 + $0x1c4] ss:$152 sps:$4 sm:$0xff]  }
 0x23a   : > { %3746 = vmatprep.subr.bf16.mxu0 %v5809_v49  ;;  %3784 = vmatpush1.bf16.msra.mxu1 %v5844_v55  ;;  %v5871_v49 = vld [vmem:[%s7005_s14 + $0x1c0] ss:$152 sps:$4 sm:$0xff]  }
 0x23b   : > { %3785 = vmatprep.subr.bf16.mxu1 %v5852_v57 }
 0x23d   : > { %3747 = vmatpush1.bf16.msra.mxu0 %v5807_v51  ;;  %v4985_v51 = vcombine.high %v1140_v48, %v1140_v48 }
 0x23e   : > { %3748 = vmatprep.subr.bf16.mxu0 %v5815_v53  ;;  %3786 = vmatpush1.bf16.msra.mxu1 %v5850_v60  ;;  %v4984_v53 = vcombine.low %v1140_v48, %v1140_v48 }
 0x23f   : > { %3787 = vmatprep.subr.bf16.mxu1 %v5858_v0  ;;  %v3078_v54 = vand.u32 %v4985_v51, %v7032_v4 }
 0x240   : > { %v3075_v55 = vand.u32 %v4984_v53, %v7032_v4 }
 0x241   : > { %3749 = vmatpush1.bf16.msra.mxu0 %v5813_v56  ;;  %v5886_v56 = vld [vmem:[%s7005_s14 + $0xa14] ss:$152 sps:$4 sm:$0xff]  }
 0x242   : > { %3750 = vmatprep.subr.bf16.mxu0 %v5820_v58  ;;  %3788 = vmatpush1.bf16.msra.mxu1 %v5856_v2 }
 0x243   : > { %3789 = vmatprep.subr.bf16.mxu1 %v5864_v5 }
 0x245   : > { %3751 = vmatpush1.bf16.msra.mxu0 %v5818_v61 }
 0x246   : > { %3764 = vmatprep.subr.bf16.mxu0 %v3066_v1  ;;  %3790 = vmatpush1.bf16.msra.mxu1 %v5862_v9 }
 0x247   : > { %3791 = vmatprep.subr.bf16.mxu1 %v5870_v12 }
 0x248   : > { %v3360_v8 = vpop.f32.mrf.mxu0 }
 0x249   : > { %v3361_v10 = vadd.f32 %v3360_v8, %v7285_v62  ;;  %3765 = vmatpush2.bf16.msra.mxu0 %v3063_v3 }
 0x24a   : > { %v3362_v14 = vpop.f32.mrf.mxu0  ;;  %3766 = vmatprep.subr.bf16.mxu0 %v5831_v6  ;;  %3792 = vmatpush1.bf16.msra.mxu1 %v5868_v19 }
 0x24b   : > { %v3871_v16 = vmax.f32 %v3361_v10, 0.0  ;;  %v3363_v17 = vadd.f32 %v3362_v14, %v7285_v62  ;;  %3805 = vmatprep.subr.bf16.mxu1 %v3072_v24 }
 0x24c   : > { %v3364_v18 = vpop.f32.mrf.mxu0 }
 0x24d   : > { %3909 = vst [vmem:[%s7298_s12 + $0x60] sm:$0xff] %v3871_v16  ;;  %v3872_v22 = vmax.f32 %v3363_v17, 0.0  ;;  %3767 = vmatpush2.bf16.msra.mxu0 %v5829_v11  ;;  %v3401_v31 = vpop.f32.mrf.mxu1 }
 0x24e   : > { %v3365_v25 = vpop.f32.mrf.mxu0  ;;  %3818 = vmatprep.subr.bf16.mxu0 %v5837_v15  ;;  %v3402_v32 = vadd.f32 %v3401_v31, %v7285_v62  ;;  %3806 = vmatpush2.bf16.msra.mxu1 %v3069_v27 }
 0x24f   : > { %3910 = vst [vmem:[%s7298_s12 + $0x68] sm:$0xff] %v3872_v22  ;;  %v3403_v35 = vpop.f32.mrf.mxu1  ;;  %3807 = vmatprep.subr.bf16.mxu1 %v5881_v29 }
 0x250   : > { %3769 = vmatmul.mubr.bf16.vlgmr.msra.gmra.mxu0 %v7049_v20  ;;  %v3873_v38 = vmax.f32 %v3402_v32, 0.0  ;;  %v3404_v39 = vadd.f32 %v3403_v35, %v7285_v62 }
 0x251   : > { %3819 = vmatpush1.bf16.msra.mxu0 %v5835_v23  ;;  %5004 = vmatprep.mubr.msk.bf16.mxu0 %vm2958_vm0, %v6996_v37  ;;  %v3405_v37 = vpop.f32.mrf.mxu1 }
 0x252   : > { %3820 = vmatprep.subr.bf16.mxu0 %v5843_v26  ;;  %3911 = vst [vmem:[%s7298_s12 + $0x70] sm:$0xff] %v3873_v38  ;;  %v3874_v40 = vmax.f32 %v3404_v39, 0.0  ;;  %3808 = vmatpush2.bf16.msra.mxu1 %v5879_v33 }
 0x253   : > { %v3406_v42 = vpop.f32.mrf.mxu1 }
 0x254   : > { %3912 = vst [vmem:[%s7298_s12 + $0x78] sm:$0xff] %v3874_v40 }
 0x255   : > { %3821 = vmatpush1.bf16.msra.mxu0 %v5841_v28  ;;  %3810 = vmatmul.mubr.bf16.vlgmr.msra.gmra.mxu1 %v7049_v20 }
 0x256   : > { %3822 = vmatprep.subr.bf16.mxu0 %v5849_v30 }
 0x259   : > { %3823 = vmatpush1.bf16.msra.mxu0 %v5847_v34 }
 0x25a   : > { %3824 = vmatprep.subr.bf16.mxu0 %v5855_v36 }
 0x25d   : > { %3825 = vmatpush1.bf16.msra.mxu0 %v5853_v41 }
 0x25e   : > { %3826 = vmatprep.subr.bf16.mxu0 %v5861_v43 }
 0x261   : > { %3827 = vmatpush1.bf16.msra.mxu0 %v5859_v44 }
 0x262   : > { %3828 = vmatprep.subr.bf16.mxu0 %v5867_v45 }
 0x265   : > { %3829 = vmatpush1.bf16.msra.mxu0 %v5865_v46 }
 0x266   : > { %3830 = vmatprep.subr.bf16.mxu0 %v5873_v47 }
 0x269   : > { %3831 = vmatpush1.bf16.msra.mxu0 %v5871_v49 }
 0x26a   : > { %3832 = vmatprep.subr.bf16.mxu0 %v5878_v50 }
 0x26d   : > { %3833 = vmatpush1.bf16.msra.mxu0 %v5876_v52 }
 0x26e   : > { %3846 = vmatprep.subr.bf16.mxu0 %v3078_v54 }
 0x270   : > { %v3442_v57 = vpop.f32.mrf.mxu0 }
 0x271   : > { %v3443_v58 = vadd.f32 %v3442_v57, %v7285_v62  ;;  %3847 = vmatpush2.bf16.msra.mxu0 %v3075_v55 }
 0x272   : > { %v3444_v60 = vpop.f32.mrf.mxu0  ;;  %3848 = vmatprep.subr.bf16.mxu0 %v5886_v56 }
 0x273   : > { %v3875_v61 = vmax.f32 %v3443_v58, 0.0  ;;  %v3445_v63 = vadd.f32 %v3444_v60, %v7285_v62 }
 0x274   : > { %v3446_v0 = vpop.f32.mrf.mxu0 }
 0x275   : > { %3913 = vst [vmem:[%s7298_s12 + $0x80] sm:$0xff] %v3875_v61  ;;  %v3876_v1 = vmax.f32 %v3445_v63, 0.0  ;;  %3849 = vmatpush2.bf16.msra.mxu0 %v5884_v59  ;;  %v3483_v2 = vpop.f32.mrf.mxu1 }
 0x276   : > { %v3447_v4 = vpop.f32.mrf.mxu0  ;;  %v3484_v3 = vadd.f32 %v3483_v2, %v7285_v62 }
 0x277   : > { %3914 = vst [vmem:[%s7298_s12 + $0x88] sm:$0xff] %v3876_v1  ;;  %v3485_v5 = vpop.f32.mrf.mxu1 }
 0x278   : > { %3851 = vmatmul.mubr.bf16.vlgmr.msra.gmra.mxu0 %v7049_v20  ;;  %v3877_v6 = vmax.f32 %v3484_v3, 0.0  ;;  %v3486_v7 = vadd.f32 %v3485_v5, %v7285_v62 }
 0x279   : > { %v3487_v8 = vpop.f32.mrf.mxu1 }
 0x27a   : > { %3915 = vst [vmem:[%s7298_s12 + $0x90] sm:$0xff] %v3877_v6  ;;  %v3878_v9 = vmax.f32 %v3486_v7, 0.0 }
 0x27b   : > { %v3488_v10 = vpop.f32.mrf.mxu1 }
 0x27c   : > { %3916 = vst [vmem:[%s7298_s12 + $0x98] sm:$0xff] %v3878_v9 }
 0x298   : > { %v3524_v11 = vpop.f32.mrf.mxu0 }
 0x299   : > { %v3525_v12 = vadd.f32 %v3524_v11, %v7285_v62 }
 0x29a   : > { %v3526_v13 = vpop.f32.mrf.mxu0 }
 0x29b   : > { %v3879_v20 = vmax.f32 %v3525_v12, 0.0  ;;  %v3527_v14 = vadd.f32 %v3526_v13, %v7285_v62 }
 0x29c   : > { %v3528_v15 = vpop.f32.mrf.mxu0 }
 0x29d   : > { %3917 = vst [vmem:[%s7298_s12 + $0xa0] sm:$0xff] %v3879_v20  ;;  %v3880_v16 = vmax.f32 %v3527_v14, 0.0  ;;  %v3565_v18 = vpop.f32.mrf.mxu1 }
 0x29e   : > { %v3529_v17 = vpop.f32.mrf.mxu0  ;;  %v3566_v19 = vadd.f32 %v3565_v18, %v7285_v62 }
 0x29f   : > { %3918 = vst [vmem:[%s7298_s12 + $0xa8] sm:$0xff] %v3880_v16  ;;  %v3567_v21 = vpop.f32.mrf.mxu1 }
 0x2a0   : > { %v3881_v22 = vmax.f32 %v3566_v19, 0.0  ;;  %v3568_v23 = vadd.f32 %v3567_v21, %v7285_v62 }
 0x2a1   : > { %v3569_v24 = vpop.f32.mrf.mxu1 }
 0x2a2   : > { %3919 = vst [vmem:[%s7298_s12 + $0xb0] sm:$0xff] %v3881_v22  ;;  %v3882_v25 = vmax.f32 %v3568_v23, 0.0 }
 0x2a3   : > { %v3570_v26 = vpop.f32.mrf.mxu1 }
 0x2a4   : > { %3920 = vst [vmem:[%s7298_s12 + $0xb8] sm:$0xff] %v3882_v25 }
 0x2c0   : > { %v3606_v27 = vpop.f32.mrf.mxu0 }
 0x2c1   : > { %v3607_v28 = vadd.f32 %v3606_v27, %v7285_v62 }
 0x2c2   : > { %v3608_v29 = vpop.f32.mrf.mxu0 }
 0x2c3   : > { %v3883_v30 = vmax.f32 %v3607_v28, 0.0  ;;  %v3609_v31 = vadd.f32 %v3608_v29, %v7285_v62 }
 0x2c4   : > { %v3610_v32 = vpop.f32.mrf.mxu0 }
 0x2c5   : > { %3921 = vst [vmem:[%s7298_s12 + $0xc0] sm:$0xff] %v3883_v30  ;;  %v3884_v33 = vmax.f32 %v3609_v31, 0.0  ;;  %v3647_v35 = vpop.f32.mrf.mxu1 }
 0x2c6   : > { %v3611_v34 = vpop.f32.mrf.mxu0  ;;  %v3648_v36 = vadd.f32 %v3647_v35, %v7285_v62 }
 0x2c7   : > { %3922 = vst [vmem:[%s7298_s12 + $0xc8] sm:$0xff] %v3884_v33  ;;  %v3649_v38 = vpop.f32.mrf.mxu1 }
 0x2c8   : > { %v3885_v39 = vmax.f32 %v3648_v36, 0.0  ;;  %v3650_v37 = vadd.f32 %v3649_v38, %v7285_v62 }
 0x2c9   : > { %v3651_v40 = vpop.f32.mrf.mxu1 }
 0x2ca   : > { %3923 = vst [vmem:[%s7298_s12 + $0xd0] sm:$0xff] %v3885_v39  ;;  %v3886_v41 = vmax.f32 %v3650_v37, 0.0 }
 0x2cb   : > { %v3652_v42 = vpop.f32.mrf.mxu1 }
 0x2cc   : > { %3924 = vst [vmem:[%s7298_s12 + $0xd8] sm:$0xff] %v3886_v41 }
 0x2e8   : > { %v3688_v43 = vpop.f32.mrf.mxu0 }
 0x2e9   : > { %v3689_v44 = vadd.f32 %v3688_v43, %v7285_v62 }
 0x2ea   : > { %v3690_v45 = vpop.f32.mrf.mxu0 }
 0x2eb   : > { %v3887_v46 = vmax.f32 %v3689_v44, 0.0  ;;  %v3691_v47 = vadd.f32 %v3690_v45, %v7285_v62 }
 0x2ec   : > { %v3692_v48 = vpop.f32.mrf.mxu0 }
 0x2ed   : > { %3925 = vst [vmem:[%s7298_s12 + $0xe0] sm:$0xff] %v3887_v46  ;;  %v3888_v49 = vmax.f32 %v3691_v47, 0.0  ;;  %v3729_v51 = vpop.f32.mrf.mxu1 }
 0x2ee   : > { %v3693_v50 = vpop.f32.mrf.mxu0  ;;  %v3730_v52 = vadd.f32 %v3729_v51, %v7285_v62 }
 0x2ef   : > { %3926 = vst [vmem:[%s7298_s12 + $0xe8] sm:$0xff] %v3888_v49  ;;  %v3731_v53 = vpop.f32.mrf.mxu1 }
 0x2f0   : > { %v3889_v54 = vmax.f32 %v3730_v52, 0.0  ;;  %v3732_v55 = vadd.f32 %v3731_v53, %v7285_v62 }
 0x2f1   : > { %v3733_v56 = vpop.f32.mrf.mxu1 }
 0x2f2   : > { %3927 = vst [vmem:[%s7298_s12 + $0xf0] sm:$0xff] %v3889_v54  ;;  %v3890_v57 = vmax.f32 %v3732_v55, 0.0 }
 0x2f3   : > { %v3734_v58 = vpop.f32.mrf.mxu1 }
 0x2f4   : > { %3928 = vst [vmem:[%s7298_s12 + $0xf8] sm:$0xff] %v3890_v57 }
 0x310   : > { %v3770_v59 = vpop.f32.mrf.mxu0 }
 0x311   : > { %v3771_v60 = vadd.f32 %v3770_v59, %v7285_v62 }
 0x312   : > { %v3772_v61 = vpop.f32.mrf.mxu0 }
 0x313   : > { %v3891_v63 = vmax.f32 %v3771_v60, 0.0  ;;  %v3773_v0 = vadd.f32 %v3772_v61, %v7285_v62 }
 0x314   : > { %v3774_v1 = vpop.f32.mrf.mxu0 }
 0x315   : > { %3929 = vst [vmem:[%s7298_s12 + $0x100] sm:$0xff] %v3891_v63  ;;  %v3892_v4 = vmax.f32 %v3773_v0, 0.0  ;;  %v3811_v3 = vpop.f32.mrf.mxu1 }
 0x316   : > { %v3775_v2 = vpop.f32.mrf.mxu0  ;;  %v3812_v5 = vadd.f32 %v3811_v3, %v7285_v62 }
 0x317   : > { %3930 = vst [vmem:[%s7298_s12 + $0x108] sm:$0xff] %v3892_v4  ;;  %v3813_v6 = vpop.f32.mrf.mxu1 }
 0x318   : > { %v3893_v7 = vmax.f32 %v3812_v5, 0.0  ;;  %v3814_v8 = vadd.f32 %v3813_v6, %v7285_v62 }
 0x319   : > { %v3815_v9 = vpop.f32.mrf.mxu1 }
 0x31a   : > { %3931 = vst [vmem:[%s7298_s12 + $0x110] sm:$0xff] %v3893_v7  ;;  %v3894_v10 = vmax.f32 %v3814_v8, 0.0 }
 0x31b   : > { %v3816_v11 = vpop.f32.mrf.mxu1 }
 0x31c   : > { %3932 = vst [vmem:[%s7298_s12 + $0x118] sm:$0xff] %v3894_v10 }
 0x338   : > { %v3852_v12 = vpop.f32.mrf.mxu0 }
 0x339   : > { %v3853_v13 = vadd.f32 %v3852_v12, %v7285_v62 }
 0x33a   : > { %v3854_v20 = vpop.f32.mrf.mxu0 }
 0x33b   : > { %v3895_v14 = vmax.f32 %v3853_v13, 0.0  ;;  %v3855_v15 = vadd.f32 %v3854_v20, %v7285_v62  ;;  %3941 = sbr.rel (!%p6224_p5) target bundleno = 978 (0x3d2), region = 102 }
 0x33c   : > { %v3856_v16 = vpop.f32.mrf.mxu0 }
 0x33d   : > { %3933 = vst [vmem:[%s7298_s12 + $0x120] sm:$0xff] %v3895_v14  ;;  %v3896_v17 = vmax.f32 %v3855_v15, 0.0 }
 0x33e   : > { %v3857_v18 = vpop.f32.mrf.mxu0 }
 0x33f   : > { %3934 = vst [vmem:[%s7298_s12 + $0x128] sm:$0xff] %v3896_v17 }
 0x340   : > { %s8016_s26 = smov (!%p3944_p1, %s3943_s26), 38 }
 0x341   : > { %s5005_s29 = sshll.u32 %s8016_s26, 7  ;;  %s7556_s9 = sshll.u32 %s8016_s26, 3 }
 0x342   : > { %p5009_p2 = scmp.eq.s32.totalorder %s5005_s29, 0 }
 0x343   : > { %p3954_p3 = scmp.lt.u32.totalorder (!%p5009_p2), %s7556_s9, 8 }
 0x344   : > { %3953 = sbr.rel (%p5009_p2) target bundleno = 978 (0x3d2), region = 106 }
 0x349   : > { %3957 = sbr.rel (%p3954_p3) target bundleno = 969 (0x3c9), region = 110  ;;  %s7560_s20 = sand.u32 (!%p3954_p3), 7, %s7556_s9  }
 0x34a   : > { %p3974_p5 = scmp.eq.s32.totalorder (!%p3954_p3), %s7560_s20, 0  ;;  %p5010_p4 = scmp.ne.s32.totalorder (!%p3954_p3), %s7560_s20, 0 }
 0x34e   : > { %3977 = sbr.rel (%p5010_p4) target bundleno = 905 (0x389), region = 125  ;;  %s3978_s15 = sshrl.u32 (!%p5010_p4), %s7556_s9, 3 }
 0x34f   : > { %s7567_s10 = sshrl.u32 (!%p5010_p4), %s3978_s15, 6 }
 0x350   : > { %p5011_p6 = scmp.le.s32.totalorder (!%p5010_p4), %s7567_s10, 0 }
 0x353   : > { %4502 = sbr.rel (%p5011_p6) target bundleno = 889 (0x379), region = 273  ;;  %s7992_s7 = smov (!%p5011_p6), %s7554_s24 }
 0x354   : > { %s7993_s5 = smov (!%p5011_p6), %s7298_s12  ;;  %s7576_s21 = smov (!%p5011_p6), 0  }
 0x355   : > { %s7578_s22 = smov (!%p5011_p6), 0  }
 0x358 LB: >> { %v3991_v62 = vld [vmem:[%s6109_s5] sm:$0xff]  ;;  %v3993_v19 = vld [vmem:[%s6109_s5 + $0x8] sm:$0xff]  ;;  %v3995_v21 = vld [vmem:[%s6109_s5 + $0x10] sm:$0xff]  ;;  %s4119_s30 = sadd.s32 1, %s6113_s21  ;;  %s3985_s22 = sadd.s32 1, %s6117_s22   ;;  %s6117_s22 = sphi %s7578_s22, %s3985_s22   ;;  %s6113_s21 = sphi %s7576_s21, %s7996_s21   ;;  %s6109_s5 = sphi %s7993_s5, %s7995_s5   ;;  %s6105_s7 = sphi %s7992_s7, %s7994_s7  }
 0x359   : >> { %3992 = vst [vmem:[%s6105_s7] sm:$0xff] %v3991_v62  ;;  %3994 = vst [vmem:[%s6105_s7 + $0x8] sm:$0xff] %v3993_v19  ;;  %v3997_v22 = vld [vmem:[%s6109_s5 + $0x18] sm:$0xff]  ;;  %v3999_v23 = vld [vmem:[%s6109_s5 + $0x20] sm:$0xff]  ;;  %p4120_p7 = scmp.ge.s32.totalorder %s4119_s30, %s7567_s10  ;;  %p3984_p8 = scmp.ge.s32.totalorder %s3985_s22, %s7567_s10 }
 0x35a   : >> { %3996 = vst [vmem:[%s6105_s7 + $0x10] sm:$0xff] %v3995_v21  ;;  %v4001_v24 = vld [vmem:[%s6109_s5 + $0x28] sm:$0xff]  ;;  %3998 = vst [vmem:[%s6105_s7 + $0x18] sm:$0xff] %v3997_v22  ;;  %v4003_v25 = vld [vmem:[%s6109_s5 + $0x30] sm:$0xff] }
 0x35b   : >> { %4000 = vst [vmem:[%s6105_s7 + $0x20] sm:$0xff] %v3999_v23  ;;  %4002 = vst [vmem:[%s6105_s7 + $0x28] sm:$0xff] %v4001_v24  ;;  %v4005_v26 = vld [vmem:[%s6109_s5 + $0x38] sm:$0xff]  ;;  %v4007_v27 = vld [vmem:[%s6109_s5 + $0x40] sm:$0xff]  ;;  %s8018_s30 = smov (%p4120_p7, %s4119_s30), 0 }
 0x35c   : >> { %4004 = vst [vmem:[%s6105_s7 + $0x30] sm:$0xff] %v4003_v25  ;;  %4006 = vst [vmem:[%s6105_s7 + $0x38] sm:$0xff] %v4005_v26  ;;  %v4009_v28 = vld [vmem:[%s6109_s5 + $0x48] sm:$0xff]  ;;  %v4011_v29 = vld [vmem:[%s6109_s5 + $0x50] sm:$0xff]  ;;  %s5012_s6 = sshll.u32 %s8018_s30, 9  ;;  %s7996_s21 = smov %s8018_s30 }
 0x35d   : >> { %4008 = vst [vmem:[%s6105_s7 + $0x40] sm:$0xff] %v4007_v27  ;;  %v4013_v30 = vld [vmem:[%s6109_s5 + $0x58] sm:$0xff]  ;;  %4010 = vst [vmem:[%s6105_s7 + $0x48] sm:$0xff] %v4009_v28  ;;  %v4015_v31 = vld [vmem:[%s6109_s5 + $0x60] sm:$0xff]  ;;  %s7634_s11 = scalar_lea.vmem %s7298_s12, %s5012_s6 [#allocation3]   ;;  %s7637_s28 = scalar_lea.vmem %s7554_s24, %s5012_s6  }
 0x35e   : >> { %4012 = vst [vmem:[%s6105_s7 + $0x50] sm:$0xff] %v4011_v29  ;;  %4014 = vst [vmem:[%s6105_s7 + $0x58] sm:$0xff] %v4013_v30  ;;  %v4017_v32 = vld [vmem:[%s6109_s5 + $0x68] sm:$0xff]  ;;  %v4019_v33 = vld [vmem:[%s6109_s5 + $0x70] sm:$0xff] }
 0x35f   : >> { %4016 = vst [vmem:[%s6105_s7 + $0x60] sm:$0xff] %v4015_v31  ;;  %4018 = vst [vmem:[%s6105_s7 + $0x68] sm:$0xff] %v4017_v32  ;;  %v4021_v34 = vld [vmem:[%s6109_s5 + $0x78] sm:$0xff]  ;;  %v4023_v35 = vld [vmem:[%s6109_s5 + $0x80] sm:$0xff] }
 0x360   : >> { %4020 = vst [vmem:[%s6105_s7 + $0x70] sm:$0xff] %v4019_v33  ;;  %v4025_v36 = vld [vmem:[%s6109_s5 + $0x88] sm:$0xff]  ;;  %4022 = vst [vmem:[%s6105_s7 + $0x78] sm:$0xff] %v4021_v34  ;;  %v4027_v38 = vld [vmem:[%s6109_s5 + $0x90] sm:$0xff] }
 0x361   : >> { %4024 = vst [vmem:[%s6105_s7 + $0x80] sm:$0xff] %v4023_v35  ;;  %4026 = vst [vmem:[%s6105_s7 + $0x88] sm:$0xff] %v4025_v36  ;;  %v4029_v39 = vld [vmem:[%s6109_s5 + $0x98] sm:$0xff]  ;;  %v4031_v37 = vld [vmem:[%s6109_s5 + $0xa0] sm:$0xff] }
 0x362   : >> { %4028 = vst [vmem:[%s6105_s7 + $0x90] sm:$0xff] %v4027_v38  ;;  %4030 = vst [vmem:[%s6105_s7 + $0x98] sm:$0xff] %v4029_v39  ;;  %v4033_v40 = vld [vmem:[%s6109_s5 + $0xa8] sm:$0xff]  ;;  %v4035_v41 = vld [vmem:[%s6109_s5 + $0xb0] sm:$0xff] }
 0x363   : >> { %4032 = vst [vmem:[%s6105_s7 + $0xa0] sm:$0xff] %v4031_v37  ;;  %v4037_v42 = vld [vmem:[%s6109_s5 + $0xb8] sm:$0xff]  ;;  %4034 = vst [vmem:[%s6105_s7 + $0xa8] sm:$0xff] %v4033_v40  ;;  %v4039_v43 = vld [vmem:[%s6109_s5 + $0xc0] sm:$0xff] }
 0x364   : >> { %4036 = vst [vmem:[%s6105_s7 + $0xb0] sm:$0xff] %v4035_v41  ;;  %4038 = vst [vmem:[%s6105_s7 + $0xb8] sm:$0xff] %v4037_v42  ;;  %v4041_v44 = vld [vmem:[%s6109_s5 + $0xc8] sm:$0xff]  ;;  %v4043_v45 = vld [vmem:[%s6109_s5 + $0xd0] sm:$0xff] }
 0x365   : >> { %4040 = vst [vmem:[%s6105_s7 + $0xc0] sm:$0xff] %v4039_v43  ;;  %4042 = vst [vmem:[%s6105_s7 + $0xc8] sm:$0xff] %v4041_v44  ;;  %v4045_v46 = vld [vmem:[%s6109_s5 + $0xd8] sm:$0xff]  ;;  %v4047_v47 = vld [vmem:[%s6109_s5 + $0xe0] sm:$0xff] }
 0x366   : >> { %4044 = vst [vmem:[%s6105_s7 + $0xd0] sm:$0xff] %v4043_v45  ;;  %v4049_v48 = vld [vmem:[%s6109_s5 + $0xe8] sm:$0xff]  ;;  %4046 = vst [vmem:[%s6105_s7 + $0xd8] sm:$0xff] %v4045_v46  ;;  %v4051_v49 = vld [vmem:[%s6109_s5 + $0xf0] sm:$0xff] }
 0x367   : >> { %4048 = vst [vmem:[%s6105_s7 + $0xe0] sm:$0xff] %v4047_v47  ;;  %4050 = vst [vmem:[%s6105_s7 + $0xe8] sm:$0xff] %v4049_v48  ;;  %v4053_v50 = vld [vmem:[%s6109_s5 + $0xf8] sm:$0xff]  ;;  %v4055_v51 = vld [vmem:[%s6109_s5 + $0x100] sm:$0xff] }
 0x368   : >> { %4052 = vst [vmem:[%s6105_s7 + $0xf0] sm:$0xff] %v4051_v49  ;;  %4054 = vst [vmem:[%s6105_s7 + $0xf8] sm:$0xff] %v4053_v50  ;;  %v4057_v52 = vld [vmem:[%s6109_s5 + $0x108] sm:$0xff]  ;;  %v4059_v53 = vld [vmem:[%s6109_s5 + $0x110] sm:$0xff] }
 0x369   : >> { %4056 = vst [vmem:[%s6105_s7 + $0x100] sm:$0xff] %v4055_v51  ;;  %v4061_v54 = vld [vmem:[%s6109_s5 + $0x118] sm:$0xff]  ;;  %4058 = vst [vmem:[%s6105_s7 + $0x108] sm:$0xff] %v4057_v52  ;;  %v4063_v55 = vld [vmem:[%s6109_s5 + $0x120] sm:$0xff] }
 0x36a   : >> { %4060 = vst [vmem:[%s6105_s7 + $0x110] sm:$0xff] %v4059_v53  ;;  %4062 = vst [vmem:[%s6105_s7 + $0x118] sm:$0xff] %v4061_v54  ;;  %v4065_v56 = vld [vmem:[%s6109_s5 + $0x128] sm:$0xff]  ;;  %v4067_v57 = vld [vmem:[%s6109_s5 + $0x130] sm:$0xff] }
 0x36b   : >> { %4064 = vst [vmem:[%s6105_s7 + $0x120] sm:$0xff] %v4063_v55  ;;  %4066 = vst [vmem:[%s6105_s7 + $0x128] sm:$0xff] %v4065_v56  ;;  %v4069_v58 = vld [vmem:[%s6109_s5 + $0x138] sm:$0xff]  ;;  %v4071_v59 = vld [vmem:[%s6109_s5 + $0x140] sm:$0xff] }
 0x36c   : >> { %4068 = vst [vmem:[%s6105_s7 + $0x130] sm:$0xff] %v4067_v57  ;;  %v4073_v60 = vld [vmem:[%s6109_s5 + $0x148] sm:$0xff]  ;;  %4070 = vst [vmem:[%s6105_s7 + $0x138] sm:$0xff] %v4069_v58  ;;  %v4075_v61 = vld [vmem:[%s6109_s5 + $0x150] sm:$0xff] }
 0x36d   : >> { %4072 = vst [vmem:[%s6105_s7 + $0x140] sm:$0xff] %v4071_v59  ;;  %4074 = vst [vmem:[%s6105_s7 + $0x148] sm:$0xff] %v4073_v60  ;;  %v4077_v63 = vld [vmem:[%s6109_s5 + $0x158] sm:$0xff]  ;;  %v4079_v0 = vld [vmem:[%s6109_s5 + $0x160] sm:$0xff] }
 0x36e   : >> { %4076 = vst [vmem:[%s6105_s7 + $0x150] sm:$0xff] %v4075_v61  ;;  %4078 = vst [vmem:[%s6105_s7 + $0x158] sm:$0xff] %v4077_v63  ;;  %v4081_v1 = vld [vmem:[%s6109_s5 + $0x168] sm:$0xff]  ;;  %v4083_v4 = vld [vmem:[%s6109_s5 + $0x170] sm:$0xff] }
 0x36f   : >> { %4080 = vst [vmem:[%s6105_s7 + $0x160] sm:$0xff] %v4079_v0  ;;  %v4085_v2 = vld [vmem:[%s6109_s5 + $0x178] sm:$0xff]  ;;  %4082 = vst [vmem:[%s6105_s7 + $0x168] sm:$0xff] %v4081_v1  ;;  %v4087_v3 = vld [vmem:[%s6109_s5 + $0x180] sm:$0xff] }
 0x370   : >> { %4084 = vst [vmem:[%s6105_s7 + $0x170] sm:$0xff] %v4083_v4  ;;  %4086 = vst [vmem:[%s6105_s7 + $0x178] sm:$0xff] %v4085_v2  ;;  %v4089_v5 = vld [vmem:[%s6109_s5 + $0x188] sm:$0xff]  ;;  %v4091_v6 = vld [vmem:[%s6109_s5 + $0x190] sm:$0xff] }
 0x371   : >> { %4088 = vst [vmem:[%s6105_s7 + $0x180] sm:$0xff] %v4087_v3  ;;  %4090 = vst [vmem:[%s6105_s7 + $0x188] sm:$0xff] %v4089_v5  ;;  %v4093_v7 = vld [vmem:[%s6109_s5 + $0x198] sm:$0xff]  ;;  %v4095_v8 = vld [vmem:[%s6109_s5 + $0x1a0] sm:$0xff] }
 0x372   : >> { %4092 = vst [vmem:[%s6105_s7 + $0x190] sm:$0xff] %v4091_v6  ;;  %v4097_v9 = vld [vmem:[%s6109_s5 + $0x1a8] sm:$0xff]  ;;  %4094 = vst [vmem:[%s6105_s7 + $0x198] sm:$0xff] %v4093_v7  ;;  %v4099_v10 = vld [vmem:[%s6109_s5 + $0x1b0] sm:$0xff] }
 0x373   : >> { %4096 = vst [vmem:[%s6105_s7 + $0x1a0] sm:$0xff] %v4095_v8  ;;  %4098 = vst [vmem:[%s6105_s7 + $0x1a8] sm:$0xff] %v4097_v9  ;;  %v4101_v11 = vld [vmem:[%s6109_s5 + $0x1b8] sm:$0xff]  ;;  %v4103_v12 = vld [vmem:[%s6109_s5 + $0x1c0] sm:$0xff] }
 0x374   : >> { %4100 = vst [vmem:[%s6105_s7 + $0x1b0] sm:$0xff] %v4099_v10  ;;  %4102 = vst [vmem:[%s6105_s7 + $0x1b8] sm:$0xff] %v4101_v11  ;;  %v4105_v13 = vld [vmem:[%s6109_s5 + $0x1c8] sm:$0xff]  ;;  %v4107_v20 = vld [vmem:[%s6109_s5 + $0x1d0] sm:$0xff]  ;;  %3987 = sbr.rel (!%p3984_p8) target bundleno = 856 (0x358), region = 279 }
 0x375   : >> { %4104 = vst [vmem:[%s6105_s7 + $0x1c0] sm:$0xff] %v4103_v12  ;;  %v4109_v14 = vld [vmem:[%s6109_s5 + $0x1d8] sm:$0xff]  ;;  %4106 = vst [vmem:[%s6105_s7 + $0x1c8] sm:$0xff] %v4105_v13  ;;  %v4111_v15 = vld [vmem:[%s6109_s5 + $0x1e0] sm:$0xff] }
 0x376   : >> { %4108 = vst [vmem:[%s6105_s7 + $0x1d0] sm:$0xff] %v4107_v20  ;;  %4110 = vst [vmem:[%s6105_s7 + $0x1d8] sm:$0xff] %v4109_v14  ;;  %v4113_v16 = vld [vmem:[%s6109_s5 + $0x1e8] sm:$0xff]  ;;  %v4115_v17 = vld [vmem:[%s6109_s5 + $0x1f0] sm:$0xff] }
 0x377   : >> { %4112 = vst [vmem:[%s6105_s7 + $0x1e0] sm:$0xff] %v4111_v15  ;;  %4114 = vst [vmem:[%s6105_s7 + $0x1e8] sm:$0xff] %v4113_v16  ;;  %v4117_v18 = vld [vmem:[%s6109_s5 + $0x1f8] sm:$0xff]  ;;  %s7995_s5 = smov %s7634_s11 }
 0x378   : >> { %4116 = vst [vmem:[%s6105_s7 + $0x1f0] sm:$0xff] %v4115_v17  ;;  %4118 = vst [vmem:[%s6105_s7 + $0x1f8] sm:$0xff] %v4117_v18  ;;  %s7994_s7 = smov %s7637_s28 }
 0x379 PF: > { %s7743_s4 = sand.u32 63, %s3978_s15   ;;  %s5040_s17 = sshll.u32 %s7567_s10, 13 }
 0x37a   : > { %s4130_s14 = sshra.s32 %s5040_s17, 4  ;;  %p5017_p9 = scmp.le.s32.totalorder %s7743_s4, 0 }
 0x37b   : > { %s4131_s8 = scalar_lea.vmem %s7298_s12, %s4130_s14 [#allocation3]   ;;  %s4134_s23 = scalar_lea.vmem %s7554_s24, %s4130_s14  }
 0x37c   : > { %4516 = sbr.rel (%p5017_p9) target bundleno = 905 (0x389), region = 284  ;;  %s6119_s25 = smov (!%p5017_p9), %s4134_s23  }
 0x37d   : > { %s6123_s26 = smov (!%p5017_p9), %s4131_s8   ;;  %s6127_s27 = smov (!%p5017_p9), 0  }
 0x37e   : > { %s6131_s18 = smov (!%p5017_p9), 0  }
 0x381 LB: >> { %v4146_v62 = vld [vmem:[%s6125_s26] sm:$0xff]  ;;  %s4148_s29 = sadd.s32 1, %s6129_s27  ;;  %s4140_s18 = sadd.s32 1, %s6133_s18   ;;  %s6133_s18 = sphi %s6131_s18, %s4140_s18   ;;  %s6129_s27 = sphi %s6127_s27, %s6128_s27   ;;  %s6125_s26 = sphi %s6123_s26, %s4153_s26   ;;  %s6121_s25 = sphi %s6119_s25, %s4154_s25  }
 0x382   : >> { %4147 = vst [vmem:[%s6121_s25] sm:$0xff] %v4146_v62  ;;  %p4149_p10 = scmp.ge.s32.totalorder %s4148_s29, %s7743_s4  ;;  %p4139_p11 = scmp.ge.s32.totalorder %s4140_s18, %s7743_s4 }
 0x384   : >> { %s8020_s29 = smov (%p4149_p10, %s4148_s29), 0  ;;  %4142 = sbr.rel (!%p4139_p11) target bundleno = 897 (0x381), region = 290 }
 0x385   : >> { %s5018_s15 = sshll.u32 %s8020_s29, 3  ;;  %s6128_s27 = smov %s8020_s29  }
 0x386   : >> { %s4153_s26 = scalar_lea.vmem %s4131_s8, %s5018_s15 [#allocation3]   ;;  %s4154_s25 = scalar_lea.vmem %s4134_s23, %s5018_s15  }
 0x389 PF: > { %4157 = sbr.rel (%p3974_p5) target bundleno = 969 (0x3c9), region = 143  ;;  %s7755_s10 = ssub.s32 (!%p3974_p5), %s7556_s9, %s7560_s20 }
 0x38a   : > { %s4163_s7 = sshrl.u32 (!%p3974_p5), %s7556_s9, 3  ;;  %s4160_s5 = scalar_lea.vmem (!%p3974_p5), %s7298_s12, %s7755_s10 [#allocation3] }
 0x38b   : > { %s4162_s21 = scalar_lea.vmem (!%p3974_p5), %s7554_s24, %s7755_s10  ;;  %s7764_s22 = sshrl.u32 (!%p3974_p5), %s4163_s7, 6 }
 0x38c   : > { %p5020_p12 = scmp.le.s32.totalorder (!%p3974_p5), %s7764_s22, 0 }
 0x38e   : > { %4530 = sbr.rel (%p5020_p12) target bundleno = 948 (0x3b4), region = 295  ;;  %s7997_s30 = smov (!%p5020_p12), %s7554_s24 }
 0x38f   : > { %s7998_s6 = smov (!%p5020_p12), %s7298_s12  ;;  %s7773_s11 = smov (!%p5020_p12), 0  }
 0x390   : > { %s7775_s28 = smov (!%p5020_p12), 0  }
 0x393 LB: >> { %v4176_v19 = vld [vmem:[%s6141_s6] sm:$0xff]  ;;  %v4178_v21 = vld [vmem:[%s6141_s6 + $0x8] sm:$0xff]  ;;  %v4180_v22 = vld [vmem:[%s6141_s6 + $0x10] sm:$0xff]  ;;  %s4304_s4 = sadd.s32 1, %s6145_s11  ;;  %s4170_s28 = sadd.s32 1, %s6149_s28   ;;  %s6149_s28 = sphi %s7775_s28, %s4170_s28   ;;  %s6145_s11 = sphi %s7773_s11, %s8001_s11   ;;  %s6141_s6 = sphi %s7998_s6, %s8000_s6   ;;  %s6137_s30 = sphi %s7997_s30, %s7999_s30  }
 0x394   : >> { %4177 = vst [vmem:[%s6137_s30] sm:$0xff] %v4176_v19  ;;  %4179 = vst [vmem:[%s6137_s30 + $0x8] sm:$0xff] %v4178_v21  ;;  %v4182_v23 = vld [vmem:[%s6141_s6 + $0x18] sm:$0xff]  ;;  %v4184_v24 = vld [vmem:[%s6141_s6 + $0x20] sm:$0xff]  ;;  %p4305_p13 = scmp.ge.s32.totalorder %s4304_s4, %s7764_s22  ;;  %p4169_p0 = scmp.ge.s32.totalorder %s4170_s28, %s7764_s22 }
 0x395   : >> { %4181 = vst [vmem:[%s6137_s30 + $0x10] sm:$0xff] %v4180_v22  ;;  %v4186_v25 = vld [vmem:[%s6141_s6 + $0x28] sm:$0xff]  ;;  %4183 = vst [vmem:[%s6137_s30 + $0x18] sm:$0xff] %v4182_v23  ;;  %v4188_v26 = vld [vmem:[%s6141_s6 + $0x30] sm:$0xff] }
 0x396   : >> { %4185 = vst [vmem:[%s6137_s30 + $0x20] sm:$0xff] %v4184_v24  ;;  %4187 = vst [vmem:[%s6137_s30 + $0x28] sm:$0xff] %v4186_v25  ;;  %v4190_v27 = vld [vmem:[%s6141_s6 + $0x38] sm:$0xff]  ;;  %v4192_v28 = vld [vmem:[%s6141_s6 + $0x40] sm:$0xff]  ;;  %s8022_s4 = smov (%p4305_p13, %s4304_s4), 0 }
 0x397   : >> { %4189 = vst [vmem:[%s6137_s30 + $0x30] sm:$0xff] %v4188_v26  ;;  %4191 = vst [vmem:[%s6137_s30 + $0x38] sm:$0xff] %v4190_v27  ;;  %v4194_v29 = vld [vmem:[%s6141_s6 + $0x48] sm:$0xff]  ;;  %v4196_v30 = vld [vmem:[%s6141_s6 + $0x50] sm:$0xff]  ;;  %s5021_s17 = sshll.u32 %s8022_s4, 9  ;;  %s8001_s11 = smov %s8022_s4 }
 0x398   : >> { %4193 = vst [vmem:[%s6137_s30 + $0x40] sm:$0xff] %v4192_v28  ;;  %v4198_v31 = vld [vmem:[%s6141_s6 + $0x58] sm:$0xff]  ;;  %4195 = vst [vmem:[%s6137_s30 + $0x48] sm:$0xff] %v4194_v29  ;;  %v4200_v32 = vld [vmem:[%s6141_s6 + $0x60] sm:$0xff]  ;;  %s7831_s14 = scalar_lea.vmem %s7298_s12, %s5021_s17 [#allocation3]   ;;  %s7834_s8 = scalar_lea.vmem %s7554_s24, %s5021_s17  }
 0x399   : >> { %4197 = vst [vmem:[%s6137_s30 + $0x50] sm:$0xff] %v4196_v30  ;;  %4199 = vst [vmem:[%s6137_s30 + $0x58] sm:$0xff] %v4198_v31  ;;  %v4202_v33 = vld [vmem:[%s6141_s6 + $0x68] sm:$0xff]  ;;  %v4204_v34 = vld [vmem:[%s6141_s6 + $0x70] sm:$0xff] }
 0x39a   : >> { %4201 = vst [vmem:[%s6137_s30 + $0x60] sm:$0xff] %v4200_v32  ;;  %4203 = vst [vmem:[%s6137_s30 + $0x68] sm:$0xff] %v4202_v33  ;;  %v4206_v35 = vld [vmem:[%s6141_s6 + $0x78] sm:$0xff]  ;;  %v4208_v36 = vld [vmem:[%s6141_s6 + $0x80] sm:$0xff] }
 0x39b   : >> { %4205 = vst [vmem:[%s6137_s30 + $0x70] sm:$0xff] %v4204_v34  ;;  %v4210_v38 = vld [vmem:[%s6141_s6 + $0x88] sm:$0xff]  ;;  %4207 = vst [vmem:[%s6137_s30 + $0x78] sm:$0xff] %v4206_v35  ;;  %v4212_v39 = vld [vmem:[%s6141_s6 + $0x90] sm:$0xff] }
 0x39c   : >> { %4209 = vst [vmem:[%s6137_s30 + $0x80] sm:$0xff] %v4208_v36  ;;  %4211 = vst [vmem:[%s6137_s30 + $0x88] sm:$0xff] %v4210_v38  ;;  %v4214_v37 = vld [vmem:[%s6141_s6 + $0x98] sm:$0xff]  ;;  %v4216_v40 = vld [vmem:[%s6141_s6 + $0xa0] sm:$0xff] }
 0x39d   : >> { %4213 = vst [vmem:[%s6137_s30 + $0x90] sm:$0xff] %v4212_v39  ;;  %4215 = vst [vmem:[%s6137_s30 + $0x98] sm:$0xff] %v4214_v37  ;;  %v4218_v41 = vld [vmem:[%s6141_s6 + $0xa8] sm:$0xff]  ;;  %v4220_v42 = vld [vmem:[%s6141_s6 + $0xb0] sm:$0xff] }
 0x39e   : >> { %4217 = vst [vmem:[%s6137_s30 + $0xa0] sm:$0xff] %v4216_v40  ;;  %v4222_v43 = vld [vmem:[%s6141_s6 + $0xb8] sm:$0xff]  ;;  %4219 = vst [vmem:[%s6137_s30 + $0xa8] sm:$0xff] %v4218_v41  ;;  %v4224_v44 = vld [vmem:[%s6141_s6 + $0xc0] sm:$0xff] }
 0x39f   : >> { %4221 = vst [vmem:[%s6137_s30 + $0xb0] sm:$0xff] %v4220_v42  ;;  %4223 = vst [vmem:[%s6137_s30 + $0xb8] sm:$0xff] %v4222_v43  ;;  %v4226_v45 = vld [vmem:[%s6141_s6 + $0xc8] sm:$0xff]  ;;  %v4228_v46 = vld [vmem:[%s6141_s6 + $0xd0] sm:$0xff] }
 0x3a0   : >> { %4225 = vst [vmem:[%s6137_s30 + $0xc0] sm:$0xff] %v4224_v44  ;;  %4227 = vst [vmem:[%s6137_s30 + $0xc8] sm:$0xff] %v4226_v45  ;;  %v4230_v47 = vld [vmem:[%s6141_s6 + $0xd8] sm:$0xff]  ;;  %v4232_v48 = vld [vmem:[%s6141_s6 + $0xe0] sm:$0xff] }
 0x3a1   : >> { %4229 = vst [vmem:[%s6137_s30 + $0xd0] sm:$0xff] %v4228_v46  ;;  %v4234_v49 = vld [vmem:[%s6141_s6 + $0xe8] sm:$0xff]  ;;  %4231 = vst [vmem:[%s6137_s30 + $0xd8] sm:$0xff] %v4230_v47  ;;  %v4236_v50 = vld [vmem:[%s6141_s6 + $0xf0] sm:$0xff] }
 0x3a2   : >> { %4233 = vst [vmem:[%s6137_s30 + $0xe0] sm:$0xff] %v4232_v48  ;;  %4235 = vst [vmem:[%s6137_s30 + $0xe8] sm:$0xff] %v4234_v49  ;;  %v4238_v51 = vld [vmem:[%s6141_s6 + $0xf8] sm:$0xff]  ;;  %v4240_v52 = vld [vmem:[%s6141_s6 + $0x100] sm:$0xff] }
 0x3a3   : >> { %4237 = vst [vmem:[%s6137_s30 + $0xf0] sm:$0xff] %v4236_v50  ;;  %4239 = vst [vmem:[%s6137_s30 + $0xf8] sm:$0xff] %v4238_v51  ;;  %v4242_v53 = vld [vmem:[%s6141_s6 + $0x108] sm:$0xff]  ;;  %v4244_v54 = vld [vmem:[%s6141_s6 + $0x110] sm:$0xff] }
 0x3a4   : >> { %4241 = vst [vmem:[%s6137_s30 + $0x100] sm:$0xff] %v4240_v52  ;;  %v4246_v55 = vld [vmem:[%s6141_s6 + $0x118] sm:$0xff]  ;;  %4243 = vst [vmem:[%s6137_s30 + $0x108] sm:$0xff] %v4242_v53  ;;  %v4248_v56 = vld [vmem:[%s6141_s6 + $0x120] sm:$0xff] }
 0x3a5   : >> { %4245 = vst [vmem:[%s6137_s30 + $0x110] sm:$0xff] %v4244_v54  ;;  %4247 = vst [vmem:[%s6137_s30 + $0x118] sm:$0xff] %v4246_v55  ;;  %v4250_v57 = vld [vmem:[%s6141_s6 + $0x128] sm:$0xff]  ;;  %v4252_v58 = vld [vmem:[%s6141_s6 + $0x130] sm:$0xff] }
 0x3a6   : >> { %4249 = vst [vmem:[%s6137_s30 + $0x120] sm:$0xff] %v4248_v56  ;;  %4251 = vst [vmem:[%s6137_s30 + $0x128] sm:$0xff] %v4250_v57  ;;  %v4254_v59 = vld [vmem:[%s6141_s6 + $0x138] sm:$0xff]  ;;  %v4256_v60 = vld [vmem:[%s6141_s6 + $0x140] sm:$0xff] }
 0x3a7   : >> { %4253 = vst [vmem:[%s6137_s30 + $0x130] sm:$0xff] %v4252_v58  ;;  %v4258_v61 = vld [vmem:[%s6141_s6 + $0x148] sm:$0xff]  ;;  %4255 = vst [vmem:[%s6137_s30 + $0x138] sm:$0xff] %v4254_v59  ;;  %v4260_v63 = vld [vmem:[%s6141_s6 + $0x150] sm:$0xff] }
 0x3a8   : >> { %4257 = vst [vmem:[%s6137_s30 + $0x140] sm:$0xff] %v4256_v60  ;;  %4259 = vst [vmem:[%s6137_s30 + $0x148] sm:$0xff] %v4258_v61  ;;  %v4262_v0 = vld [vmem:[%s6141_s6 + $0x158] sm:$0xff]  ;;  %v4264_v1 = vld [vmem:[%s6141_s6 + $0x160] sm:$0xff] }
 0x3a9   : >> { %4261 = vst [vmem:[%s6137_s30 + $0x150] sm:$0xff] %v4260_v63  ;;  %4263 = vst [vmem:[%s6137_s30 + $0x158] sm:$0xff] %v4262_v0  ;;  %v4266_v4 = vld [vmem:[%s6141_s6 + $0x168] sm:$0xff]  ;;  %v4268_v2 = vld [vmem:[%s6141_s6 + $0x170] sm:$0xff] }
 0x3aa   : >> { %4265 = vst [vmem:[%s6137_s30 + $0x160] sm:$0xff] %v4264_v1  ;;  %v4270_v3 = vld [vmem:[%s6141_s6 + $0x178] sm:$0xff]  ;;  %4267 = vst [vmem:[%s6137_s30 + $0x168] sm:$0xff] %v4266_v4  ;;  %v4272_v5 = vld [vmem:[%s6141_s6 + $0x180] sm:$0xff] }
 0x3ab   : >> { %4269 = vst [vmem:[%s6137_s30 + $0x170] sm:$0xff] %v4268_v2  ;;  %4271 = vst [vmem:[%s6137_s30 + $0x178] sm:$0xff] %v4270_v3  ;;  %v4274_v6 = vld [vmem:[%s6141_s6 + $0x188] sm:$0xff]  ;;  %v4276_v7 = vld [vmem:[%s6141_s6 + $0x190] sm:$0xff] }
 0x3ac   : >> { %4273 = vst [vmem:[%s6137_s30 + $0x180] sm:$0xff] %v4272_v5  ;;  %4275 = vst [vmem:[%s6137_s30 + $0x188] sm:$0xff] %v4274_v6  ;;  %v4278_v8 = vld [vmem:[%s6141_s6 + $0x198] sm:$0xff]  ;;  %v4280_v9 = vld [vmem:[%s6141_s6 + $0x1a0] sm:$0xff] }
 0x3ad   : >> { %4277 = vst [vmem:[%s6137_s30 + $0x190] sm:$0xff] %v4276_v7  ;;  %v4282_v10 = vld [vmem:[%s6141_s6 + $0x1a8] sm:$0xff]  ;;  %4279 = vst [vmem:[%s6137_s30 + $0x198] sm:$0xff] %v4278_v8  ;;  %v4284_v11 = vld [vmem:[%s6141_s6 + $0x1b0] sm:$0xff] }
 0x3ae   : >> { %4281 = vst [vmem:[%s6137_s30 + $0x1a0] sm:$0xff] %v4280_v9  ;;  %4283 = vst [vmem:[%s6137_s30 + $0x1a8] sm:$0xff] %v4282_v10  ;;  %v4286_v12 = vld [vmem:[%s6141_s6 + $0x1b8] sm:$0xff]  ;;  %v4288_v13 = vld [vmem:[%s6141_s6 + $0x1c0] sm:$0xff] }
 0x3af   : >> { %4285 = vst [vmem:[%s6137_s30 + $0x1b0] sm:$0xff] %v4284_v11  ;;  %4287 = vst [vmem:[%s6137_s30 + $0x1b8] sm:$0xff] %v4286_v12  ;;  %v4290_v20 = vld [vmem:[%s6141_s6 + $0x1c8] sm:$0xff]  ;;  %v4292_v14 = vld [vmem:[%s6141_s6 + $0x1d0] sm:$0xff]  ;;  %4172 = sbr.rel (!%p4169_p0) target bundleno = 915 (0x393), region = 301 }
 0x3b0   : >> { %4289 = vst [vmem:[%s6137_s30 + $0x1c0] sm:$0xff] %v4288_v13  ;;  %v4294_v15 = vld [vmem:[%s6141_s6 + $0x1d8] sm:$0xff]  ;;  %4291 = vst [vmem:[%s6137_s30 + $0x1c8] sm:$0xff] %v4290_v20  ;;  %v4296_v16 = vld [vmem:[%s6141_s6 + $0x1e0] sm:$0xff] }
 0x3b1   : >> { %4293 = vst [vmem:[%s6137_s30 + $0x1d0] sm:$0xff] %v4292_v14  ;;  %4295 = vst [vmem:[%s6137_s30 + $0x1d8] sm:$0xff] %v4294_v15  ;;  %v4298_v17 = vld [vmem:[%s6141_s6 + $0x1e8] sm:$0xff]  ;;  %v4300_v18 = vld [vmem:[%s6141_s6 + $0x1f0] sm:$0xff] }
 0x3b2   : >> { %4297 = vst [vmem:[%s6137_s30 + $0x1e0] sm:$0xff] %v4296_v16  ;;  %4299 = vst [vmem:[%s6137_s30 + $0x1e8] sm:$0xff] %v4298_v17  ;;  %v4302_v62 = vld [vmem:[%s6141_s6 + $0x1f8] sm:$0xff]  ;;  %s8000_s6 = smov %s7831_s14 }
 0x3b3   : >> { %4301 = vst [vmem:[%s6137_s30 + $0x1f0] sm:$0xff] %v4300_v18  ;;  %4303 = vst [vmem:[%s6137_s30 + $0x1f8] sm:$0xff] %v4302_v62  ;;  %s7999_s30 = smov %s7834_s8 }
 0x3b4 PF: > { %s7940_s23 = sand.u32 63, %s4163_s7   ;;  %s5042_s25 = sshll.u32 %s7764_s22, 13 }
 0x3b5   : > { %s4315_s26 = sshra.s32 %s5042_s25, 4  ;;  %p5026_p1 = scmp.le.s32.totalorder %s7940_s23, 0 }
 0x3b6   : > { %s4316_s27 = scalar_lea.vmem %s7298_s12, %s4315_s26 [#allocation3]   ;;  %s4319_s18 = scalar_lea.vmem %s7554_s24, %s4315_s26  }
 0x3b7   : > { %4544 = sbr.rel (%p5026_p1) target bundleno = 964 (0x3c4), region = 306  ;;  %s6151_s29 = smov (!%p5026_p1), %s4319_s18  }
 0x3b8   : > { %s6155_s15 = smov (!%p5026_p1), %s4316_s27   ;;  %s6159_s4 = smov (!%p5026_p1), 0  }
 0x3b9   : > { %s6163_s28 = smov (!%p5026_p1), 0  }
 0x3bc LB: >> { %v4331_v19 = vld [vmem:[%s6157_s15] sm:$0xff]  ;;  %s4333_s7 = sadd.s32 1, %s6161_s4  ;;  %s4325_s28 = sadd.s32 1, %s6165_s28   ;;  %s6165_s28 = sphi %s6163_s28, %s4325_s28   ;;  %s6161_s4 = sphi %s6159_s4, %s6160_s4   ;;  %s6157_s15 = sphi %s6155_s15, %s4338_s15   ;;  %s6153_s29 = sphi %s6151_s29, %s4339_s29  }
 0x3bd   : >> { %4332 = vst [vmem:[%s6153_s29] sm:$0xff] %v4331_v19  ;;  %p4334_p2 = scmp.ge.s32.totalorder %s4333_s7, %s7940_s23  ;;  %p4324_p3 = scmp.ge.s32.totalorder %s4325_s28, %s7940_s23 }
 0x3bf   : >> { %s8024_s7 = smov (%p4334_p2, %s4333_s7), 0  ;;  %4327 = sbr.rel (!%p4324_p3) target bundleno = 956 (0x3bc), region = 312 }
 0x3c0   : >> { %s5027_s22 = sshll.u32 %s8024_s7, 3  ;;  %s6160_s4 = smov %s8024_s7  }
 0x3c1   : >> { %s4338_s15 = scalar_lea.vmem %s4316_s27, %s5027_s22 [#allocation3]   ;;  %s4339_s29 = scalar_lea.vmem %s4319_s18, %s5027_s22  }
 0x3c4 PF: > { %s6171_s30 = smov 1  }
 0x3c5   : > { %s4340_s6 = sshll.u32 %s6171_s30, %s7560_s20 }
 0x3c6   : > { %s5029_s11 = sadd.s32 4294967295, %s4340_s6 }
 0x3c7   : > { %v4350_v21 = vld [vmem:[%s4160_s5] sm:%s5029_s11] }
 0x3c8   : > { %4351 = vst [vmem:[%s4162_s21] sm:%s5029_s11] %v4350_v21 }
 0x3c9 PF: > { %p5030_p5 = scmp.ge.u32.totalorder %s7556_s9, 8 }
 0x3ca   : > { %s6172_s17 = smov (!%p5030_p5), 1  }
 0x3cb   : > { %3960 = sbr.rel (%p5030_p5) target bundleno = 978 (0x3d2), region = 114  ;;  %s3961_s14 = sshll.u32 (!%p5030_p5), %s6172_s17, %s7556_s9 }
 0x3cc   : > { %s5031_s8 = sadd.s32 (!%p5030_p5), 4294967295, %s3961_s14 }
 0x3d0   : > { %v3971_v22 = vld [vmem:[%s7298_s12] sm:%s5031_s8] }
 0x3d1   : > { %3972 = vst [vmem:[%s7554_s24] sm:%s5031_s8] %v3971_v22 }
 0x3d2 PF: > { %p10_p4 = scmp.ge.s32.totalorder %s6212_s16, 4   ;;  %s8002_s12 = smov %s6033_s13 }
 0x3d3   : > { %s8003_s13 = smov %s6222_s19  ;;  %s8004_s14 = smov %s6212_s16 }
 0x3d4   :  { %12 = sbr.rel (!%p10_p4) target bundleno = 2 (0x2), region = 323 }

// kernel: detr_forward.7
= control target key start
LH: loop header
LB: loop body
LE: loop exit
PB: predicated region body
PF: predicated region fallthrough
CT: control target
= control target key end

     0   :  { %s927_s30 = smov 0   ;;  %s1100_s0 = inlined_call_operand.vmem [shape: f32[8,2450], index: 0, kind: input, shape index: {}]   ;;  %s1101_s1 = inlined_call_operand.vmem [shape: f32[8,2450], index: 1, kind: input, shape index: {}]   ;;  %s1102_s2 = inlined_call_operand.vmem [shape: f32[8,2450], index: 2, kind: input, shape index: {}]   ;;  %s1103_s3 = inlined_call_operand.vmem [shape: f32[8,2450], index: 3, kind: input, shape index: {}]   ;;  %s1104_s4 = inlined_call_operand.vmem [shape: f32[8,2450], index: 4, kind: input, shape index: {}]   ;;  %s1105_s5 = inlined_call_operand.vmem [shape: f32[8,2450], index: 5, kind: input, shape index: {}]   ;;  %s1106_s6 = inlined_call_operand.vmem [shape: f32[8,2450], index: 6, kind: input, shape index: {}]   ;;  %s1107_s7 = inlined_call_operand.vmem [shape: f32[8,2450], index: 7, kind: input, shape index: {}]   ;;  %s1108_s8 = inlined_call_operand.vmem [shape: f32[8,2450], index: 8, kind: input, shape index: {}]   ;;  %s1109_s9 = inlined_call_operand.vmem [shape: f32[8,2450], index: 9, kind: output, shape index: {}]  }
   0x1 LB: > { %s844_s10 = sadd.s32 4294967295, %s875_s30   ;;  %p848_p0 = scmp.ge.s32.totalorder %s875_s30, 1  ;;  %s875_s30 = sphi %s927_s30, %s19_s30  }
   0x2   : > { %p376_p1 = scmp.lt.s32.totalorder %s875_s30, 3 }
   0x4   : > { %p377_p2 = pnand %p848_p0, %p376_p1 }
   0x5   : > { %s452_s11 = smul.u32 (!%p377_p2), 10, %s844_s10 }
   0x6   : > { %380 = sbr.rel (%p377_p2) target bundleno = 57 (0x39), region = 56 }
   0x7   : > { %p453_p3 = scmp.lt.s32.totalorder (!%p377_p2), %s452_s11, 19 }
   0xb   : > { %s1111_s11 = smov (!%p453_p3, %s452_s11), 19 }
   0xc   : > { %s935_s12 = sshll.u32 %s1111_s11, 3 }
   0xd   : > { %s941_s15 = scalar_lea.vmem %s1100_s0, %s935_s12  ;;  %s947_s18 = scalar_lea.vmem %s1101_s1, %s935_s12 }
   0xe   : > { %s953_s21 = scalar_lea.vmem %s1102_s2, %s935_s12  ;;  %s959_s24 = scalar_lea.vmem %s1103_s3, %s935_s12  ;;  %v512_v0 = vld [vmem:[%s941_s15] sm:$0xff]  ;;  %v513_v2 = vld [vmem:[%s941_s15 + $0x8] sm:$0xff]  ;;  %v514_v17 = vld [vmem:[%s941_s15 + $0x10] sm:$0xff] }
   0xf   : > { %v522_v1 = vld [vmem:[%s947_s18] sm:$0xff]  ;;  %s968_s27 = scalar_lea.vmem %s1104_s4, %s935_s12  ;;  %v523_v5 = vld [vmem:[%s947_s18 + $0x8] sm:$0xff]  ;;  %s976_s10 = scalar_lea.vmem %s1105_s5, %s935_s12  ;;  %v524_v18 = vld [vmem:[%s947_s18 + $0x10] sm:$0xff] }
  0x10   : > { %v532_v3 = vmax.f32 %v512_v0, %v522_v1  ;;  %v542_v4 = vld [vmem:[%s953_s21] sm:$0xff]  ;;  %v533_v7 = vmax.f32 %v513_v2, %v523_v5  ;;  %v543_v8 = vld [vmem:[%s953_s21 + $0x8] sm:$0xff]  ;;  %s986_s14 = scalar_lea.vmem %s1106_s6, %s935_s12  ;;  %v544_v19 = vld [vmem:[%s953_s21 + $0x10] sm:$0xff]  ;;  %s997_s19 = scalar_lea.vmem %s1107_s7, %s935_s12  ;;  %v534_v22 = vmax.f32 %v514_v17, %v524_v18 }
  0x11   : > { %v562_v6 = vld [vmem:[%s959_s24] sm:$0xff]  ;;  %v563_v10 = vld [vmem:[%s959_s24 + $0x8] sm:$0xff]  ;;  %s1003_s23 = scalar_lea.vmem %s1108_s8, %s935_s12  ;;  %v564_v26 = vld [vmem:[%s959_s24 + $0x10] sm:$0xff]  ;;  %s1027_s28 = scalar_lea.vmem %s1109_s9, %s935_s12 }
  0x12   : > { %v552_v9 = vmax.f32 %v532_v3, %v542_v4  ;;  %v582_v11 = vld [vmem:[%s968_s27] sm:$0xff]  ;;  %v553_v12 = vmax.f32 %v533_v7, %v543_v8  ;;  %v583_v15 = vld [vmem:[%s968_s27 + $0x8] sm:$0xff]  ;;  %v554_v28 = vmax.f32 %v534_v22, %v544_v19  ;;  %v515_v29 = vld [vmem:[%s941_s15 + $0x18] sm:$0xff] }
  0x13   : > { %v602_v14 = vld [vmem:[%s976_s10] sm:$0xff]  ;;  %v603_v21 = vld [vmem:[%s976_s10 + $0x8] sm:$0xff]  ;;  %v525_v30 = vld [vmem:[%s947_s18 + $0x18] sm:$0xff] }
  0x14   : > { %v572_v13 = vmax.f32 %v552_v9, %v562_v6  ;;  %v573_v16 = vmax.f32 %v553_v12, %v563_v10  ;;  %v622_v23 = vld [vmem:[%s986_s14] sm:$0xff]  ;;  %v623_v25 = vld [vmem:[%s986_s14 + $0x8] sm:$0xff]  ;;  %v545_v31 = vld [vmem:[%s953_s21 + $0x18] sm:$0xff]  ;;  %v535_v36 = vmax.f32 %v515_v29, %v525_v30  ;;  %v574_v39 = vmax.f32 %v554_v28, %v564_v26 }
  0x15   : > { %v642_v32 = vld [vmem:[%s997_s19] sm:$0xff]  ;;  %v584_v35 = vld [vmem:[%s968_s27 + $0x10] sm:$0xff]  ;;  %v643_v38 = vld [vmem:[%s997_s19 + $0x8] sm:$0xff] }
  0x16   : > { %v592_v20 = vmax.f32 %v572_v13, %v582_v11  ;;  %v593_v24 = vmax.f32 %v573_v16, %v583_v15  ;;  %v662_v33 = vld [vmem:[%s1003_s23] sm:$0xff]  ;;  %v604_v40 = vld [vmem:[%s976_s10 + $0x10] sm:$0xff]  ;;  %v565_v41 = vld [vmem:[%s959_s24 + $0x18] sm:$0xff]  ;;  %v555_v43 = vmax.f32 %v535_v36, %v545_v31  ;;  %v594_v49 = vmax.f32 %v574_v39, %v584_v35 }
  0x17   : > { %v516_v44 = vld [vmem:[%s941_s15 + $0x20] sm:$0xff]  ;;  %v663_v48 = vld [vmem:[%s1003_s23 + $0x8] sm:$0xff]  ;;  %v585_v50 = vld [vmem:[%s968_s27 + $0x18] sm:$0xff] }
  0x18   : > { %v612_v27 = vmax.f32 %v592_v20, %v602_v14  ;;  %v613_v34 = vmax.f32 %v593_v24, %v603_v21  ;;  %v526_v45 = vld [vmem:[%s947_s18 + $0x20] sm:$0xff]  ;;  %v624_v53 = vld [vmem:[%s986_s14 + $0x10] sm:$0xff]  ;;  %v575_v54 = vmax.f32 %v555_v43, %v565_v41  ;;  %v605_v55 = vld [vmem:[%s976_s10 + $0x18] sm:$0xff]  ;;  %v614_v58 = vmax.f32 %v594_v49, %v604_v40 }
  0x19   : > { %v546_v46 = vld [vmem:[%s953_s21 + $0x20] sm:$0xff]  ;;  %v536_v51 = vmax.f32 %v516_v44, %v526_v45  ;;  %v517_v60 = vld [vmem:[%s941_s15 + $0x28] sm:$0xff]  ;;  %v644_v0 = vld [vmem:[%s997_s19 + $0x10] sm:$0xff] }
  0x1a   : > { %v632_v37 = vmax.f32 %v612_v27, %v622_v23  ;;  %v633_v42 = vmax.f32 %v613_v34, %v623_v25  ;;  %v566_v56 = vld [vmem:[%s959_s24 + $0x20] sm:$0xff]  ;;  %v527_v61 = vld [vmem:[%s947_s18 + $0x28] sm:$0xff]  ;;  %v664_v1 = vld [vmem:[%s1003_s23 + $0x10] sm:$0xff]  ;;  %v595_v2 = vmax.f32 %v575_v54, %v585_v50  ;;  %v634_v5 = vmax.f32 %v614_v58, %v624_v53 }
  0x1b   : > { %v556_v59 = vmax.f32 %v536_v51, %v546_v46  ;;  %v547_v62 = vld [vmem:[%s953_s21 + $0x28] sm:$0xff]  ;;  %v586_v3 = vld [vmem:[%s968_s27 + $0x20] sm:$0xff]  ;;  %v537_v4 = vmax.f32 %v517_v60, %v527_v61  ;;  %v625_v6 = vld [vmem:[%s986_s14 + $0x18] sm:$0xff] }
  0x1c   : > { %v652_v47 = vmax.f32 %v632_v37, %v642_v32  ;;  %v653_v52 = vmax.f32 %v633_v42, %v643_v38  ;;  %v606_v8 = vld [vmem:[%s976_s10 + $0x20] sm:$0xff]  ;;  %v567_v9 = vld [vmem:[%s959_s24 + $0x28] sm:$0xff]  ;;  %v615_v10 = vmax.f32 %v595_v2, %v605_v55  ;;  %v518_v12 = vld [vmem:[%s941_s15 + $0x30] sm:$0xff]  ;;  %v654_v15 = vmax.f32 %v634_v5, %v644_v0 }
  0x1d   : > { %v576_v7 = vmax.f32 %v556_v59, %v566_v56  ;;  %v557_v11 = vmax.f32 %v537_v4, %v547_v62  ;;  %v528_v13 = vld [vmem:[%s947_s18 + $0x30] sm:$0xff]  ;;  %v645_v16 = vld [vmem:[%s997_s19 + $0x18] sm:$0xff]  ;;  %v587_v19 = vld [vmem:[%s968_s27 + $0x28] sm:$0xff] }
  0x1e   : > { %v672_v57 = vmax.f32 %v652_v47, %v662_v33  ;;  %v673_v63 = vmax.f32 %v653_v52, %v663_v48  ;;  %v548_v14 = vld [vmem:[%s953_s21 + $0x30] sm:$0xff]  ;;  %v665_v17 = vld [vmem:[%s1003_s23 + $0x18] sm:$0xff]  ;;  %v538_v20 = vmax.f32 %v518_v12, %v528_v13  ;;  %v635_v21 = vmax.f32 %v615_v10, %v625_v6  ;;  %v626_v22 = vld [vmem:[%s986_s14 + $0x20] sm:$0xff] }
  0x1f   : > { %v596_v18 = vmax.f32 %v576_v7, %v586_v3  ;;  %v577_v23 = vmax.f32 %v557_v11, %v567_v9  ;;  %v607_v24 = vld [vmem:[%s976_s10 + $0x28] sm:$0xff]  ;;  %v568_v25 = vld [vmem:[%s959_s24 + $0x30] sm:$0xff]  ;;  %v674_v26 = vmax.f32 %v654_v15, %v664_v1  ;;  %v519_v29 = vld [vmem:[%s941_s15 + $0x38] sm:$0xff] }
  0x20   : > { %682 = vst [vmem:[%s1027_s28] sm:$0xff] %v672_v57  ;;  %683 = vst [vmem:[%s1027_s28 + $0x8] sm:$0xff] %v673_v63  ;;  %v558_v28 = vmax.f32 %v538_v20, %v548_v14  ;;  %v529_v30 = vld [vmem:[%s947_s18 + $0x38] sm:$0xff]  ;;  %v655_v32 = vmax.f32 %v635_v21, %v645_v16  ;;  %v646_v33 = vld [vmem:[%s997_s19 + $0x20] sm:$0xff] }
  0x21   : > { %v616_v27 = vmax.f32 %v596_v18, %v606_v8  ;;  %v549_v31 = vld [vmem:[%s953_s21 + $0x38] sm:$0xff]  ;;  %v666_v34 = vld [vmem:[%s1003_s23 + $0x20] sm:$0xff]  ;;  %v597_v35 = vmax.f32 %v577_v23, %v587_v19  ;;  %v588_v36 = vld [vmem:[%s968_s27 + $0x30] sm:$0xff]  ;;  %v539_v37 = vmax.f32 %v519_v29, %v529_v30  ;;  %684 = vst [vmem:[%s1027_s28 + $0x10] sm:$0xff] %v674_v26 }
  0x22   : > { %v627_v39 = vld [vmem:[%s986_s14 + $0x28] sm:$0xff]  ;;  %v578_v40 = vmax.f32 %v558_v28, %v568_v25  ;;  %v608_v41 = vld [vmem:[%s976_s10 + $0x30] sm:$0xff]  ;;  %v569_v42 = vld [vmem:[%s959_s24 + $0x38] sm:$0xff]  ;;  %v675_v43 = vmax.f32 %v655_v32, %v665_v17 }
  0x23   : > { %v636_v38 = vmax.f32 %v616_v27, %v626_v22  ;;  %v617_v44 = vmax.f32 %v597_v35, %v607_v24  ;;  %v559_v45 = vmax.f32 %v539_v37, %v549_v31  ;;  %v520_v46 = vld [vmem:[%s941_s15 + $0x40] sm:$0xff]  ;;  %v647_v50 = vld [vmem:[%s997_s19 + $0x28] sm:$0xff]  ;;  %v589_v53 = vld [vmem:[%s968_s27 + $0x38] sm:$0xff] }
  0x24   : > { %v530_v47 = vld [vmem:[%s947_s18 + $0x40] sm:$0xff]  ;;  %v667_v51 = vld [vmem:[%s1003_s23 + $0x28] sm:$0xff]  ;;  %v598_v52 = vmax.f32 %v578_v40, %v588_v36  ;;  %685 = vst [vmem:[%s1027_s28 + $0x18] sm:$0xff] %v675_v43  ;;  %v628_v56 = vld [vmem:[%s986_s14 + $0x30] sm:$0xff] }
  0x25   : > { %v550_v48 = vld [vmem:[%s953_s21 + $0x40] sm:$0xff]  ;;  %v656_v49 = vmax.f32 %v636_v38, %v646_v33  ;;  %v540_v54 = vmax.f32 %v520_v46, %v530_v47  ;;  %v637_v55 = vmax.f32 %v617_v44, %v627_v39  ;;  %v579_v57 = vmax.f32 %v559_v45, %v569_v42  ;;  %v609_v58 = vld [vmem:[%s976_s10 + $0x38] sm:$0xff]  ;;  %v521_v63 = vld [vmem:[%s941_s15 + $0x48] sm:$0xff] }
  0x26   : > { %v570_v59 = vld [vmem:[%s959_s24 + $0x40] sm:$0xff]  ;;  %v618_v61 = vmax.f32 %v598_v52, %v608_v41  ;;  %v531_v0 = vld [vmem:[%s947_s18 + $0x48] sm:$0xff]  ;;  %v648_v3 = vld [vmem:[%s997_s19 + $0x30] sm:$0xff] }
  0x27   : > { %v676_v60 = vmax.f32 %v656_v49, %v666_v34  ;;  %v560_v62 = vmax.f32 %v540_v54, %v550_v48  ;;  %v551_v1 = vld [vmem:[%s953_s21 + $0x48] sm:$0xff]  ;;  %v657_v2 = vmax.f32 %v637_v55, %v647_v50  ;;  %v599_v4 = vmax.f32 %v579_v57, %v589_v53  ;;  %v590_v5 = vld [vmem:[%s968_s27 + $0x40] sm:$0xff]  ;;  %v629_v8 = vld [vmem:[%s986_s14 + $0x38] sm:$0xff] }
  0x28   : > { %v541_v6 = vmax.f32 %v521_v63, %v531_v0  ;;  %v638_v7 = vmax.f32 %v618_v61, %v628_v56  ;;  %v571_v10 = vld [vmem:[%s959_s24 + $0x48] sm:$0xff]  ;;  %v668_v12 = vld [vmem:[%s1003_s23 + $0x30] sm:$0xff]  ;;  %v610_v14 = vld [vmem:[%s976_s10 + $0x40] sm:$0xff] }
  0x29   : > { %686 = vst [vmem:[%s1027_s28 + $0x20] sm:$0xff] %v676_v60  ;;  %v580_v9 = vmax.f32 %v560_v62, %v570_v59  ;;  %v677_v11 = vmax.f32 %v657_v2, %v667_v51  ;;  %v619_v13 = vmax.f32 %v599_v4, %v609_v58  ;;  %v649_v17 = vld [vmem:[%s997_s19 + $0x38] sm:$0xff]  ;;  %v591_v19 = vld [vmem:[%s968_s27 + $0x48] sm:$0xff]  ;;  %v630_v21 = vld [vmem:[%s986_s14 + $0x40] sm:$0xff] }
  0x2a   : > { %v561_v15 = vmax.f32 %v541_v6, %v551_v1  ;;  %v658_v16 = vmax.f32 %v638_v7, %v648_v3  ;;  %v669_v24 = vld [vmem:[%s1003_s23 + $0x38] sm:$0xff]  ;;  %v611_v26 = vld [vmem:[%s976_s10 + $0x48] sm:$0xff]  ;;  %v650_v28 = vld [vmem:[%s997_s19 + $0x40] sm:$0xff] }
  0x2b   : > { %v600_v18 = vmax.f32 %v580_v9, %v590_v5  ;;  %687 = vst [vmem:[%s1027_s28 + $0x28] sm:$0xff] %v677_v11  ;;  %v639_v20 = vmax.f32 %v619_v13, %v629_v8  ;;  %v631_v31 = vld [vmem:[%s986_s14 + $0x48] sm:$0xff]  ;;  %v670_v33 = vld [vmem:[%s1003_s23 + $0x40] sm:$0xff] }
  0x2c   : > { %v581_v22 = vmax.f32 %v561_v15, %v571_v10  ;;  %v678_v23 = vmax.f32 %v658_v16, %v668_v12  ;;  %v651_v36 = vld [vmem:[%s997_s19 + $0x48] sm:$0xff] }
  0x2d   : > { %v620_v25 = vmax.f32 %v600_v18, %v610_v14  ;;  %v659_v27 = vmax.f32 %v639_v20, %v649_v17  ;;  %v671_v39 = vld [vmem:[%s1003_s23 + $0x48] sm:$0xff] }
  0x2e   : > { %v601_v29 = vmax.f32 %v581_v22, %v591_v19  ;;  %688 = vst [vmem:[%s1027_s28 + $0x30] sm:$0xff] %v678_v23 }
  0x2f   : > { %v640_v30 = vmax.f32 %v620_v25, %v630_v21  ;;  %v679_v32 = vmax.f32 %v659_v27, %v669_v24 }
  0x30   : > { %v621_v34 = vmax.f32 %v601_v29, %v611_v26 }
  0x31   : > { %v660_v35 = vmax.f32 %v640_v30, %v650_v28  ;;  %689 = vst [vmem:[%s1027_s28 + $0x38] sm:$0xff] %v679_v32 }
  0x32   : > { %v641_v37 = vmax.f32 %v621_v34, %v631_v31 }
  0x33   : > { %v680_v38 = vmax.f32 %v660_v35, %v670_v33 }
  0x34   : > { %v661_v40 = vmax.f32 %v641_v37, %v651_v36 }
  0x35   : > { %690 = vst [vmem:[%s1027_s28 + $0x40] sm:$0xff] %v680_v38 }
  0x36   : > { %v681_v41 = vmax.f32 %v661_v40, %v671_v39 }
  0x38   : > { %691 = vst [vmem:[%s1027_s28 + $0x48] sm:$0xff] %v681_v41 }
  0x39 PF: > { %s19_s30 = sadd.s32 1, %s875_s30  }
  0x3a   : > { %p16_p4 = scmp.ge.s32.totalorder %s19_s30, 4  }
  0x3c   :  { %18 = sbr.rel (!%p16_p4) target bundleno = 1 (0x1), region = 110 }

// kernel: detr_forward.8
= control target key start
LH: loop header
LB: loop body
LE: loop exit
PB: predicated region body
PF: predicated region fallthrough
CT: control target
= control target key end

     0   :  { %v1470_v1 = vmov 0   ;;  %vm834_vm0 = vcmask 64512   ;;  %vm838_vm1 = vcmask 1043456   ;;  %vm1122_vm2 = vcmask 539648   ;;  %s1946_s1 = inlined_call_operand.vmem [shape: bf16[392,578], index: 1, kind: input, shape index: {}]   ;;  %s1947_s0 = inlined_call_operand.vmem [shape: bf16[16,392], index: 0, kind: input, shape index: {}]   ;;  %s1948_s2 = inlined_call_operand.vmem [shape: f32[16,1], index: 2, kind: input, shape index: {}]   ;;  %s1949_s3 = inlined_call_operand.vmem [shape: f32[16,578], index: 3, kind: output, shape index: {}]  }
   0x1   :  { %v1291_v0 = vld [vmem:[%s1946_s1 + $0x11c] ss:$20 sps:$4 sm:$0xff]   ;;  %1290 = vset.pattern.permute.xlu0 %v1470_v1  ;;  %v1295_v3 = vld [vmem:[%s1946_s1 + $0x118] ss:$20 sps:$4 sm:$0xff]   ;;  %v1297_v5 = vld [vmem:[%s1946_s1 + $0xf4] ss:$20 sps:$4 sm:$0xff]  }
   0x2   :  { %v1293_v2 = vld [vmem:[%s1946_s1 + $0x39c] ss:$20 sps:$4 sm:$0xff]   ;;  %854 = vmatprep.subr.bf16.mxu0 %v1291_v0  ;;  %v1296_v4 = vld [vmem:[%s1946_s1 + $0x398] ss:$20 sps:$4 sm:$0xff]   ;;  %v1299_v6 = vld [vmem:[%s1946_s1 + $0x374] ss:$20 sps:$4 sm:$0xff]  }
   0x3   :  { %897 = vmatprep.subr.bf16.mxu1 %v1293_v2  ;;  %855 = vmatpush1.bf16.msra.mxu0 %v1295_v3  ;;  %v1301_v7 = vld [vmem:[%s1946_s1 + $0xf0] ss:$20 sps:$4 sm:$0xff]   ;;  %v1303_v9 = vld [vmem:[%s1946_s1 + $0xcc] ss:$20 sps:$4 sm:$0xff]   ;;  %v1307_v11 = vld [vmem:[%s1946_s1 + $0xc8] ss:$20 sps:$4 sm:$0xff]  }
   0x4   :  { %898 = vmatpush1.bf16.msra.mxu1 %v1296_v4  ;;  %856 = vmatprep.subr.bf16.mxu0 %v1297_v5  ;;  %v1302_v8 = vld [vmem:[%s1946_s1 + $0x370] ss:$20 sps:$4 sm:$0xff]   ;;  %v1305_v10 = vld [vmem:[%s1946_s1 + $0x34c] ss:$20 sps:$4 sm:$0xff]   ;;  %v1308_v12 = vld [vmem:[%s1946_s1 + $0x348] ss:$20 sps:$4 sm:$0xff]  }
   0x5   :  { %899 = vmatprep.subr.bf16.mxu1 %v1299_v6  ;;  %v1309_v13 = vld [vmem:[%s1946_s1 + $0xa4] ss:$20 sps:$4 sm:$0xff]   ;;  %v1313_v15 = vld [vmem:[%s1946_s1 + $0xa0] ss:$20 sps:$4 sm:$0xff]   ;;  %v1315_v17 = vld [vmem:[%s1946_s1 + $0x7c] ss:$20 sps:$4 sm:$0xff]  }
   0x6   :  { %v1311_v14 = vld [vmem:[%s1946_s1 + $0x324] ss:$20 sps:$4 sm:$0xff]   ;;  %v1314_v16 = vld [vmem:[%s1946_s1 + $0x320] ss:$20 sps:$4 sm:$0xff]   ;;  %v1317_v18 = vld [vmem:[%s1946_s1 + $0x2fc] ss:$20 sps:$4 sm:$0xff]  }
   0x7   :  { %857 = vmatpush1.bf16.msra.mxu0 %v1301_v7  ;;  %v1319_v19 = vld [vmem:[%s1946_s1 + $0x78] ss:$20 sps:$4 sm:$0xff]   ;;  %v1321_v21 = vld [vmem:[%s1946_s1 + $0x54] ss:$20 sps:$4 sm:$0xff]   ;;  %v1325_v23 = vld [vmem:[%s1946_s1 + $0x50] ss:$20 sps:$4 sm:$0xff]  }
   0x8   :  { %900 = vmatpush1.bf16.msra.mxu1 %v1302_v8  ;;  %858 = vmatprep.subr.bf16.mxu0 %v1303_v9  ;;  %v1320_v20 = vld [vmem:[%s1946_s1 + $0x2f8] ss:$20 sps:$4 sm:$0xff]   ;;  %v1323_v22 = vld [vmem:[%s1946_s1 + $0x2d4] ss:$20 sps:$4 sm:$0xff]   ;;  %v1326_v24 = vld [vmem:[%s1946_s1 + $0x2d0] ss:$20 sps:$4 sm:$0xff]  }
   0x9   :  { %901 = vmatprep.subr.bf16.mxu1 %v1305_v10  ;;  %v1327_v25 = vld [vmem:[%s1946_s1 + $0x2c] ss:$20 sps:$4 sm:$0xff]   ;;  %v1331_v27 = vld [vmem:[%s1946_s1 + $0x28] ss:$20 sps:$4 sm:$0xff]   ;;  %v1333_v30 = vld [vmem:[%s1946_s1 + $0x4] ss:$20 sps:$4 sm:$0xff]  }
   0xa   :  { %v1329_v26 = vld [vmem:[%s1946_s1 + $0x2ac] ss:$20 sps:$4 sm:$0xff]   ;;  %v1332_v28 = vld [vmem:[%s1946_s1 + $0x2a8] ss:$20 sps:$4 sm:$0xff]   ;;  %v1335_v31 = vld [vmem:[%s1946_s1 + $0x284] ss:$20 sps:$4 sm:$0xff]  }
   0xb   :  { %859 = vmatpush1.bf16.msra.mxu0 %v1307_v11  ;;  %v1579_v29 = vld [vmem:[%s1947_s0 + $0xc] ss:$16 sps:$4 sm:$0xff]   ;;  %v163_v32 = vld [vmem:[%s1946_s1 + $0x3c0] sm:$0xff]  ;;  %v1346_v39 = vld [vmem:[%s1946_s1 + $0x234] ss:$20 sps:$4 sm:$0xff]  }
   0xc   :  { %902 = vmatpush1.bf16.msra.mxu1 %v1308_v12  ;;  %860 = vmatprep.subr.bf16.mxu0 %v1309_v13  ;;  %v1337_v33 = vld [vmem:[%s1946_s1] ss:$20 sps:$4 sm:$0xff]   ;;  %v1339_v35 = vld [vmem:[%s1946_s1 + $0x25c] ss:$20 sps:$4 sm:$0xff]   ;;  %v1258_v36 = vcombine.high %v163_v32, %v163_v32  ;;  %v1257_v37 = vcombine.low %v163_v32, %v163_v32  ;;  %v1342_v38 = vld [vmem:[%s1946_s1 + $0x258] ss:$20 sps:$4 sm:$0xff]  }
   0xd   :  { %903 = vmatprep.subr.bf16.mxu1 %v1311_v14  ;;  %1263 = vmatprep.mubr.msk.bf16.mxu1 %vm834_vm0, %v1579_v29  ;;  %v1338_v34 = vld [vmem:[%s1946_s1 + $0x280] ss:$20 sps:$4 sm:$0xff]   ;;  %v1351_v41 = vld [vmem:[%s1946_s1 + $0x124] ss:$20 sps:$4 sm:$0xff]   ;;  %v1357_v46 = vld [vmem:[%s1946_s1 + $0xfc] ss:$20 sps:$4 sm:$0xff]  }
   0xe   :  { %v840_v40 = vsel %vm838_vm1, %v1257_v37, 0  ;;  %v1615_v42 = vld [vmem:[%s1947_s0 + $0x8] ss:$16 sps:$4 sm:$0xff]   ;;  %v1349_v43 = vld [vmem:[%s1946_s1 + $0x120] ss:$20 sps:$4 sm:$0xff]  }
   0xf   :  { %861 = vmatpush1.bf16.msra.mxu0 %v1313_v15  ;;  %v1352_v44 = vld [vmem:[%s1946_s1 + $0x230] ss:$20 sps:$4 sm:$0xff]   ;;  %v1353_v45 = vld [vmem:[%s1946_s1 + $0x20c] ss:$20 sps:$4 sm:$0xff]   ;;  %v1358_v48 = vld [vmem:[%s1946_s1 + $0x208] ss:$20 sps:$4 sm:$0xff]  }
  0x10   :  { %904 = vmatpush1.bf16.msra.mxu1 %v1314_v16  ;;  %862 = vmatprep.subr.bf16.mxu0 %v1315_v17  ;;  %v1355_v47 = vld [vmem:[%s1946_s1 + $0xf8] ss:$20 sps:$4 sm:$0xff]   ;;  %v1363_v50 = vld [vmem:[%s1946_s1 + $0xd4] ss:$20 sps:$4 sm:$0xff]   ;;  %v1361_v51 = vld [vmem:[%s1946_s1 + $0xd0] ss:$20 sps:$4 sm:$0xff]  }
  0x11   :  { %905 = vmatprep.subr.bf16.mxu1 %v1317_v18  ;;  %v1359_v49 = vld [vmem:[%s1946_s1 + $0x1e4] ss:$20 sps:$4 sm:$0xff]   ;;  %v1364_v53 = vld [vmem:[%s1946_s1 + $0x1e0] ss:$20 sps:$4 sm:$0xff]   ;;  %v1365_v54 = vld [vmem:[%s1946_s1 + $0x1bc] ss:$20 sps:$4 sm:$0xff]  }
  0x12   :  { %v1648_v52 = vld [vmem:[%s1947_s0 + $0x4] ss:$16 sps:$4 sm:$0xff]   ;;  %v1369_v55 = vld [vmem:[%s1946_s1 + $0xac] ss:$20 sps:$4 sm:$0xff]   ;;  %v1367_v56 = vld [vmem:[%s1946_s1 + $0xa8] ss:$20 sps:$4 sm:$0xff]  }
  0x13   :  { %863 = vmatpush1.bf16.msra.mxu0 %v1319_v19  ;;  %886 = vmatprep.mubr.bf16.mxu0 %v1648_v52  ;;  %v1370_v57 = vld [vmem:[%s1946_s1 + $0x1b8] ss:$20 sps:$4 sm:$0xff]   ;;  %v1371_v58 = vld [vmem:[%s1946_s1 + $0x194] ss:$20 sps:$4 sm:$0xff]   ;;  %v1376_v61 = vld [vmem:[%s1946_s1 + $0x190] ss:$20 sps:$4 sm:$0xff]  }
  0x14   :  { %906 = vmatpush1.bf16.msra.mxu1 %v1320_v20  ;;  %864 = vmatprep.subr.bf16.mxu0 %v1321_v21  ;;  %v1375_v59 = vld [vmem:[%s1946_s1 + $0x84] ss:$20 sps:$4 sm:$0xff]   ;;  %v1373_v60 = vld [vmem:[%s1946_s1 + $0x80] ss:$20 sps:$4 sm:$0xff]   ;;  %v1381_v63 = vld [vmem:[%s1946_s1 + $0x5c] ss:$20 sps:$4 sm:$0xff]  }
  0x15   :  { %907 = vmatprep.subr.bf16.mxu1 %v1323_v22  ;;  %v1377_v62 = vld [vmem:[%s1946_s1 + $0x16c] ss:$20 sps:$4 sm:$0xff]   ;;  %v1382_v2 = vld [vmem:[%s1946_s1 + $0x168] ss:$20 sps:$4 sm:$0xff]   ;;  %v1383_v3 = vld [vmem:[%s1946_s1 + $0x144] ss:$20 sps:$4 sm:$0xff]  }
  0x16   :  { %v1379_v0 = vld [vmem:[%s1946_s1 + $0x58] ss:$20 sps:$4 sm:$0xff]   ;;  %v1387_v4 = vld [vmem:[%s1946_s1 + $0x34] ss:$20 sps:$4 sm:$0xff]   ;;  %v1385_v5 = vld [vmem:[%s1946_s1 + $0x30] ss:$20 sps:$4 sm:$0xff]  }
  0x17   :  { %865 = vmatpush1.bf16.msra.mxu0 %v1325_v23  ;;  %v1388_v6 = vld [vmem:[%s1946_s1 + $0x140] ss:$20 sps:$4 sm:$0xff]   ;;  %v1397_v8 = vld [vmem:[%s1946_s1 + $0x3a4] ss:$20 sps:$4 sm:$0xff]   ;;  %v1392_v10 = vld [vmem:[%s1946_s1 + $0x8] ss:$20 sps:$4 sm:$0xff]  }
  0x18   :  { %908 = vmatpush1.bf16.msra.mxu1 %v1326_v24  ;;  %866 = vmatprep.subr.bf16.mxu0 %v1327_v25  ;;  %v1394_v7 = vld [vmem:[%s1946_s1 + $0xc] ss:$20 sps:$4 sm:$0xff]   ;;  %v1400_v12 = vld [vmem:[%s1946_s1 + $0x264] ss:$20 sps:$4 sm:$0xff]   ;;  %v1403_v13 = vld [vmem:[%s1946_s1 + $0x37c] ss:$20 sps:$4 sm:$0xff]  }
  0x19   :  { %909 = vmatprep.subr.bf16.mxu1 %v1329_v26  ;;  %v1712_v9 = vld [vmem:[%s1947_s0] ss:$16 sps:$4 sm:$0xff]   ;;  %v1401_v15 = vld [vmem:[%s1946_s1 + $0x378] ss:$20 sps:$4 sm:$0xff]   ;;  %v1409_v17 = vld [vmem:[%s1946_s1 + $0x354] ss:$20 sps:$4 sm:$0xff]  }
  0x1a   :  { %v1395_v11 = vld [vmem:[%s1946_s1 + $0x3a0] ss:$20 sps:$4 sm:$0xff]   ;;  %v1406_v16 = vld [vmem:[%s1946_s1 + $0x23c] ss:$20 sps:$4 sm:$0xff]   ;;  %v1404_v18 = vld [vmem:[%s1946_s1 + $0x238] ss:$20 sps:$4 sm:$0xff]  }
  0x1b   :  { %867 = vmatpush1.bf16.msra.mxu0 %v1331_v27  ;;  %v1398_v14 = vld [vmem:[%s1946_s1 + $0x260] ss:$20 sps:$4 sm:$0xff]   ;;  %v1407_v20 = vld [vmem:[%s1946_s1 + $0x350] ss:$20 sps:$4 sm:$0xff]   ;;  %v1413_v24 = vld [vmem:[%s1946_s1 + $0x328] ss:$20 sps:$4 sm:$0xff]  }
  0x1c   :  { %910 = vmatpush1.bf16.msra.mxu1 %v1332_v28  ;;  %868 = vmatprep.subr.bf16.mxu0 %v1333_v30  ;;  %v166_v19 = vld [vmem:[%s1948_s2] sm:$0xff]  ;;  %v1412_v21 = vld [vmem:[%s1946_s1 + $0x214] ss:$20 sps:$4 sm:$0xff]  }
  0x1d   :  { %911 = vmatprep.subr.bf16.mxu1 %v1335_v31  ;;  %170 = vperm.xlu0 %1290, %v166_v19   ;;  %v1415_v22 = vld [vmem:[%s1946_s1 + $0x32c] ss:$20 sps:$4 sm:$0xff]   ;;  %v1410_v23 = vld [vmem:[%s1946_s1 + $0x210] ss:$20 sps:$4 sm:$0xff]   ;;  %v1416_v27 = vld [vmem:[%s1946_s1 + $0x1e8] ss:$20 sps:$4 sm:$0xff]  }
  0x1e   :  { %v1418_v25 = vld [vmem:[%s1946_s1 + $0x1ec] ss:$20 sps:$4 sm:$0xff]   ;;  %v1421_v26 = vld [vmem:[%s1946_s1 + $0x304] ss:$20 sps:$4 sm:$0xff]   ;;  %v1427_v31 = vld [vmem:[%s1946_s1 + $0x2dc] ss:$20 sps:$4 sm:$0xff]  }
  0x1f   :  { %869 = vmatpush1.bf16.msra.mxu0 %v1337_v33  ;;  %v1419_v28 = vld [vmem:[%s1946_s1 + $0x300] ss:$20 sps:$4 sm:$0xff]   ;;  %v1424_v30 = vld [vmem:[%s1946_s1 + $0x1c4] ss:$20 sps:$4 sm:$0xff]  }
  0x20   :  { %912 = vmatpush1.bf16.msra.mxu1 %v1338_v34  ;;  %870 = vmatprep.subr.bf16.mxu0 %v1339_v35  ;;  %v1422_v32 = vld [vmem:[%s1946_s1 + $0x1c0] ss:$20 sps:$4 sm:$0xff]   ;;  %v1425_v33 = vld [vmem:[%s1946_s1 + $0x2d8] ss:$20 sps:$4 sm:$0xff]   ;;  %v1430_v34 = vld [vmem:[%s1946_s1 + $0x19c] ss:$20 sps:$4 sm:$0xff]  }
  0x21   :  { %1262 = vmatprep.subr.msk.bf16.mxu1 %vm838_vm1, %v1258_v36  ;;  %v1433_v35 = vld [vmem:[%s1946_s1 + $0x2b4] ss:$20 sps:$4 sm:$0xff]   ;;  %v1428_v36 = vld [vmem:[%s1946_s1 + $0x198] ss:$20 sps:$4 sm:$0xff]   ;;  %v1431_v37 = vld [vmem:[%s1946_s1 + $0x2b0] ss:$20 sps:$4 sm:$0xff]  }
  0x23   :  { %871 = vmatpush2.bf16.msra.mxu0 %v1342_v38  ;;  %v1436_v38 = vld [vmem:[%s1946_s1 + $0x174] ss:$20 sps:$4 sm:$0xff]  }
  0x24   :  { %928 = vmatpush2.bf16.msra.mxu1 %v840_v40  ;;  %872 = vmatprep.subr.bf16.mxu0 %v1346_v39  ;;  %v1439_v39 = vld [vmem:[%s1946_s1 + $0x28c] ss:$20 sps:$4 sm:$0xff]  }
  0x25   :  { %940 = vmatprep.subr.bf16.mxu1 %v1351_v41  ;;  %v164_v40 = vld [vmem:[%s1946_s1 + $0x3c8] sm:$0xff]  ;;  %v1434_v41 = vld [vmem:[%s1946_s1 + $0x170] ss:$20 sps:$4 sm:$0xff]  }
  0x27   :  { %930 = vmatmul.mubr.bf16.vlgmr.msra.gmra.mxu1 %v1615_v42  ;;  %873 = vmatpush2.bf16.msra.mxu0 %v1352_v44  ;;  %v167_v44 = vld [vmem:[%s1948_s2 + $0x8] sm:$0xff] }
  0x28   :  { %941 = vmatpush1.bf16.msra.mxu1 %v1349_v43  ;;  %874 = vmatprep.subr.bf16.mxu0 %v1353_v45  ;;  %v1437_v43 = vld [vmem:[%s1946_s1 + $0x288] ss:$20 sps:$4 sm:$0xff]   ;;  %v1442_v45 = vld [vmem:[%s1946_s1 + $0x14c] ss:$20 sps:$4 sm:$0xff]  }
  0x29   :  { %942 = vmatprep.subr.bf16.mxu1 %v1357_v46  ;;  %972 = vmatprep.mubr.bf16.mxu1 %v1648_v52  ;;  %v1260_v46 = vcombine.high %v164_v40, %v164_v40 }
  0x2a   :  { %175 = vperm.xlu0 %1290, %v167_v44  }
  0x2b   :  { %875 = vmatpush2.bf16.msra.mxu0 %v1358_v48  ;;  %v1440_v48 = vld [vmem:[%s1946_s1 + $0x148] ss:$20 sps:$4 sm:$0xff]  }
  0x2c   :  { %943 = vmatpush1.bf16.msra.mxu1 %v1355_v47  ;;  %876 = vmatprep.subr.bf16.mxu0 %v1359_v49  ;;  %v1259_v47 = vcombine.low %v164_v40, %v164_v40 }
  0x2d   :  { %944 = vmatprep.subr.bf16.mxu1 %v1363_v50  ;;  %v1445_v50 = vld [vmem:[%s1946_s1 + $0x268] ss:$20 sps:$4 sm:$0xff]  }
  0x2e   :  { %v846_v49 = vsel %vm838_vm1, %v1259_v47, 0 }
  0x2f   :  { %877 = vmatpush2.bf16.msra.mxu0 %v1364_v53  ;;  %v1447_v53 = vld [vmem:[%s1946_s1 + $0x3a8] ss:$20 sps:$4 sm:$0xff]  }
  0x30   :  { %945 = vmatpush1.bf16.msra.mxu1 %v1361_v51  ;;  %878 = vmatprep.subr.bf16.mxu0 %v1365_v54  ;;  %v1446_v51 = vld [vmem:[%s1946_s1 + $0x128] ss:$20 sps:$4 sm:$0xff]   ;;  %v1448_v54 = vld [vmem:[%s1946_s1 + $0x240] ss:$20 sps:$4 sm:$0xff]  }
  0x31   :  { %946 = vmatprep.subr.bf16.mxu1 %v1369_v55  ;;  %v1449_v55 = vld [vmem:[%s1946_s1 + $0x100] ss:$20 sps:$4 sm:$0xff]  }
  0x33   :  { %879 = vmatpush2.bf16.msra.mxu0 %v1370_v57  ;;  %v1451_v57 = vld [vmem:[%s1946_s1 + $0x218] ss:$20 sps:$4 sm:$0xff]  }
  0x34   :  { %947 = vmatpush1.bf16.msra.mxu1 %v1367_v56  ;;  %880 = vmatprep.subr.bf16.mxu0 %v1371_v58  ;;  %v1450_v56 = vld [vmem:[%s1946_s1 + $0x380] ss:$20 sps:$4 sm:$0xff]   ;;  %v1452_v58 = vld [vmem:[%s1946_s1 + $0xd8] ss:$20 sps:$4 sm:$0xff]  }
  0x35   :  { %948 = vmatprep.subr.bf16.mxu1 %v1375_v59  ;;  %v1453_v59 = vld [vmem:[%s1946_s1 + $0x358] ss:$20 sps:$4 sm:$0xff]  }
  0x37   :  { %881 = vmatpush2.bf16.msra.mxu0 %v1376_v61  ;;  %v1457_v61 = vld [vmem:[%s1946_s1 + $0x1c8] ss:$20 sps:$4 sm:$0xff]  }
  0x38   :  { %949 = vmatpush1.bf16.msra.mxu1 %v1373_v60  ;;  %882 = vmatprep.subr.bf16.mxu0 %v1377_v62  ;;  %v1456_v60 = vld [vmem:[%s1946_s1 + $0x330] ss:$20 sps:$4 sm:$0xff]   ;;  %v1458_v62 = vld [vmem:[%s1946_s1 + $0x88] ss:$20 sps:$4 sm:$0xff]  }
  0x39   :  { %950 = vmatprep.subr.bf16.mxu1 %v1381_v63  ;;  %v1459_v63 = vld [vmem:[%s1946_s1 + $0x308] ss:$20 sps:$4 sm:$0xff]  }
  0x3b   :  { %883 = vmatpush2.bf16.msra.mxu0 %v1382_v2  ;;  %v1461_v2 = vld [vmem:[%s1946_s1 + $0x60] ss:$20 sps:$4 sm:$0xff]  }
  0x3c   :  { %951 = vmatpush1.bf16.msra.mxu1 %v1379_v0  ;;  %884 = vmatprep.subr.bf16.mxu0 %v1383_v3  ;;  %v1460_v0 = vld [vmem:[%s1946_s1 + $0x1a0] ss:$20 sps:$4 sm:$0xff]  }
  0x3d   :  { %952 = vmatprep.subr.bf16.mxu1 %v1387_v4  ;;  %v1462_v3 = vld [vmem:[%s1946_s1 + $0x2e0] ss:$20 sps:$4 sm:$0xff]   ;;  %v1463_v4 = vld [vmem:[%s1946_s1 + $0x178] ss:$20 sps:$4 sm:$0xff]  }
  0x3f   :  { %885 = vmatpush2.bf16.msra.mxu0 %v1388_v6  ;;  %v1465_v6 = vld [vmem:[%s1946_s1 + $0x2b8] ss:$20 sps:$4 sm:$0xff]  }
  0x40   :  { %953 = vmatpush1.bf16.msra.mxu1 %v1385_v5  ;;  %983 = vmatprep.subr.bf16.mxu0 %v1397_v8  ;;  %v1464_v5 = vld [vmem:[%s1946_s1 + $0x38] ss:$20 sps:$4 sm:$0xff]   ;;  %v1467_v8 = vld [vmem:[%s1946_s1 + $0x10] ss:$20 sps:$4 sm:$0xff]  }
  0x41   :  { %954 = vmatprep.subr.bf16.mxu1 %v1394_v7  ;;  %v1466_v7 = vld [vmem:[%s1946_s1 + $0x150] ss:$20 sps:$4 sm:$0xff]  }
  0x42   :  { %887 = vmatmul.mubr.bf16.vlgmr.msra.gmra.mxu0 %v1712_v9 }
  0x43   :  { %984 = vmatpush1.bf16.msra.mxu0 %v1395_v11  ;;  %1265 = vmatprep.mubr.msk.bf16.mxu0 %vm834_vm0, %v1579_v29  ;;  %v1469_v11 = vld [vmem:[%s1946_s1 + $0x3d0] ss:$0 sps:$4 sm:$0xff]  }
  0x44   :  { %955 = vmatpush1.bf16.msra.mxu1 %v1392_v10  ;;  %985 = vmatprep.subr.bf16.mxu0 %v1403_v13  ;;  %v1468_v10 = vld [vmem:[%s1946_s1 + $0x290] ss:$20 sps:$4 sm:$0xff]  }
  0x45   :  { %956 = vmatprep.subr.bf16.mxu1 %v1400_v12  ;;  %v852_v12 = vsel %vm838_vm1, %v1469_v11, 0 }
  0x47   :  { %986 = vmatpush1.bf16.msra.mxu0 %v1401_v15 }
  0x48   :  { %957 = vmatpush2.bf16.msra.mxu1 %v1398_v14  ;;  %987 = vmatprep.subr.bf16.mxu0 %v1409_v17 }
  0x49   :  { %958 = vmatprep.subr.bf16.mxu1 %v1406_v16 }
  0x4b   :  { %988 = vmatpush1.bf16.msra.mxu0 %v1407_v20 }
  0x4c   :  { %959 = vmatpush2.bf16.msra.mxu1 %v1404_v18  ;;  %989 = vmatprep.subr.bf16.mxu0 %v1415_v22 }
  0x4d   :  { %960 = vmatprep.subr.bf16.mxu1 %v1412_v21 }
  0x4f   :  { %990 = vmatpush1.bf16.msra.mxu0 %v1413_v24 }
  0x50   :  { %961 = vmatpush2.bf16.msra.mxu1 %v1410_v23  ;;  %991 = vmatprep.subr.bf16.mxu0 %v1421_v26 }
  0x51   :  { %962 = vmatprep.subr.bf16.mxu1 %v1418_v25 }
  0x53   :  { %992 = vmatpush1.bf16.msra.mxu0 %v1419_v28 }
  0x54   :  { %963 = vmatpush2.bf16.msra.mxu1 %v1416_v27  ;;  %993 = vmatprep.subr.bf16.mxu0 %v1427_v31 }
  0x55   :  { %964 = vmatprep.subr.bf16.mxu1 %v1424_v30 }
  0x57   :  { %994 = vmatpush1.bf16.msra.mxu0 %v1425_v33 }
  0x58   :  { %965 = vmatpush2.bf16.msra.mxu1 %v1422_v32  ;;  %995 = vmatprep.subr.bf16.mxu0 %v1433_v35 }
  0x59   :  { %966 = vmatprep.subr.bf16.mxu1 %v1430_v34 }
  0x5b   :  { %996 = vmatpush1.bf16.msra.mxu0 %v1431_v37 }
  0x5c   :  { %967 = vmatpush2.bf16.msra.mxu1 %v1428_v36  ;;  %997 = vmatprep.subr.bf16.mxu0 %v1439_v39 }
  0x5d   :  { %968 = vmatprep.subr.bf16.mxu1 %v1436_v38 }
  0x5f   :  { %998 = vmatpush1.bf16.msra.mxu0 %v1437_v43 }
  0x60   :  { %969 = vmatpush2.bf16.msra.mxu1 %v1434_v41  ;;  %1264 = vmatprep.subr.msk.bf16.mxu0 %vm838_vm1, %v1260_v46 }
  0x61   :  { %970 = vmatprep.subr.bf16.mxu1 %v1442_v45 }
  0x63   :  { %1014 = vmatpush2.bf16.msra.mxu0 %v846_v49 }
  0x64   :  { %971 = vmatpush2.bf16.msra.mxu1 %v1440_v48  ;;  %1267 = vmatprep.subr.bf16.mxu0 %v1445_v50 }
  0x65   :  { %1067 = vmatprep.subr.bf16.mxu1 %v1470_v1 }
  0x66   :  { %1016 = vmatmul.mubr.bf16.vlgmr.msra.gmra.mxu0 %v1615_v42 }
  0x67   :  { %973 = vmatmul.mubr.bf16.vlgmr.msra.gmra.mxu1 %v1712_v9  ;;  %1268 = vmatpush3.bf16.msra.mxu0 %v1446_v51 }
  0x68   :  { %1068 = vmatpush1.bf16.msra.mxu1 %v1447_v53  ;;  %1269 = vmatprep.subr.bf16.mxu0 %v1448_v54 }
  0x69   :  { %1069 = vmatprep.subr.bf16.mxu1 %v1470_v1  ;;  %1058 = vmatprep.mubr.bf16.mxu0 %v1648_v52  ;;  %v1454_v52 = vld [vmem:[%s1946_s1 + $0x1f0] ss:$20 sps:$4 sm:$0xff]  }
  0x6a   :  { %1266 = vmatprep.mubr.msk.bf16.mxu1 %vm834_vm0, %v1579_v29  ;;  %v1455_v29 = vld [vmem:[%s1946_s1 + $0xb0] ss:$20 sps:$4 sm:$0xff]  }
  0x6b   :  { %1270 = vmatpush3.bf16.msra.mxu0 %v1449_v55 }
  0x6c   :  { %1070 = vmatpush1.bf16.msra.mxu1 %v1450_v56  ;;  %1271 = vmatprep.subr.bf16.mxu0 %v1451_v57 }
  0x6d   :  { %1071 = vmatprep.subr.bf16.mxu1 %v1470_v1 }
  0x6f   :  { %1272 = vmatpush3.bf16.msra.mxu0 %v1452_v58 }
  0x70   :  { %1072 = vmatpush1.bf16.msra.mxu1 %v1453_v59  ;;  %1273 = vmatprep.subr.bf16.mxu0 %v1454_v52 }
  0x71   :  { %1073 = vmatprep.subr.bf16.mxu1 %v1470_v1 }
  0x73   :  { %1274 = vmatpush3.bf16.msra.mxu0 %v1455_v29 }
  0x74   :  { %1074 = vmatpush1.bf16.msra.mxu1 %v1456_v60  ;;  %1275 = vmatprep.subr.bf16.mxu0 %v1457_v61 }
  0x75   :  { %1075 = vmatprep.subr.bf16.mxu1 %v1470_v1 }
  0x77   :  { %1276 = vmatpush3.bf16.msra.mxu0 %v1458_v62 }
  0x78   :  { %1076 = vmatpush1.bf16.msra.mxu1 %v1459_v63  ;;  %1277 = vmatprep.subr.bf16.mxu0 %v1460_v0 }
  0x79   :  { %1077 = vmatprep.subr.bf16.mxu1 %v1470_v1 }
  0x7b   :  { %1278 = vmatpush3.bf16.msra.mxu0 %v1461_v2 }
  0x7c   :  { %1078 = vmatpush1.bf16.msra.mxu1 %v1462_v3  ;;  %1279 = vmatprep.subr.bf16.mxu0 %v1463_v4 }
  0x7d   :  { %1079 = vmatprep.subr.bf16.mxu1 %v1470_v1 }
  0x7f   :  { %1280 = vmatpush3.bf16.msra.mxu0 %v1464_v5 }
  0x80   :  { %1080 = vmatpush1.bf16.msra.mxu1 %v1465_v6  ;;  %1281 = vmatprep.subr.bf16.mxu0 %v1466_v7 }
  0x81   :  { %1081 = vmatprep.subr.bf16.mxu1 %v1470_v1 }
  0x83   :  { %1282 = vmatpush3.bf16.msra.mxu0 %v1467_v8 }
  0x84   :  { %1082 = vmatpush1.bf16.msra.mxu1 %v1468_v10 }
  0x85   :  { %1097 = vmatprep.subr.bf16.mxu1 %v1470_v1 }
  0x86   :  { %1059 = vmatmul.mubr.bf16.vlgmr.msra.gmra.mxu0 %v1712_v9 }
  0x88   :  { %1098 = vmatpush2.bf16.msra.mxu1 %v852_v12 }
  0x8b   :  { %1100 = vmatmul.mubr.bf16.vlgmr.msra.gmra.mxu1 %v1615_v42 }
  0x98   :  { %v171_v14 = vpop.permute.xlu0 %170 }
  0xa5   :  { %v176_v19 = vpop.permute.xlu0 %175 }
  0xe7   :  { %v931_v13 = vpop.f32.mrf.mxu1 }
  0xe9   :  { %v933_v15 = vpop.f32.mrf.mxu1 }
  0xeb   :  { %v935_v22 = vpop.f32.mrf.mxu1 }
  0xed   :  { %v937_v28 = vpop.f32.mrf.mxu1 }
 0x102   :  { %v888_v16 = vpop.f32.mrf.mxu0 }
 0x103   :  { %v889_v17 = vadd.f32 %v888_v16, %v171_v14 }
 0x104   :  { %v890_v18 = vpop.f32.mrf.mxu0 }
 0x105   :  { %v932_v20 = vadd.f32 %v931_v13, %v889_v17  ;;  %v891_v21 = vadd.f32 %v890_v18, %v171_v14 }
 0x106   :  { %v892_v23 = vpop.f32.mrf.mxu0 }
 0x107   :  { %v1108_v24 = vmax.f32 %v932_v20, 0.0  ;;  %v934_v1 = vadd.f32 %v933_v15, %v891_v21  ;;  %v893_v25 = vadd.f32 %v892_v23, %v176_v19 }
 0x108   :  { %v894_v26 = vpop.f32.mrf.mxu0 }
 0x109   :  { %1118 = vst [vmem:[%s1949_s3] sm:$0xff] %v1108_v24  ;;  %v1109_v42 = vmax.f32 %v934_v1, 0.0  ;;  %v936_v9 = vadd.f32 %v935_v22, %v893_v25  ;;  %v895_v27 = vadd.f32 %v894_v26, %v176_v19 }
 0x10b   :  { %1119 = vst [vmem:[%s1949_s3 + $0x8] sm:$0xff] %v1109_v42  ;;  %v1113_v30 = vmax.f32 %v936_v9, 0.0  ;;  %v938_v31 = vadd.f32 %v937_v28, %v895_v27 }
 0x10d   :  { %1124 = vst [vmem:[%s1949_s3 + $0x28] sm:$0xff] %v1113_v30  ;;  %v1114_v32 = vmax.f32 %v938_v31, 0.0 }
 0x10f   :  { %1125 = vst [vmem:[%s1949_s3 + $0x30] sm:$0xff] %v1114_v32 }
 0x126   :  { %v1017_v34 = vpop.f32.mrf.mxu0 }
 0x127   :  { %v974_v33 = vpop.f32.mrf.mxu1 }
 0x128   :  { %v975_v35 = vadd.f32 %v974_v33, %v171_v14  ;;  %v1019_v37 = vpop.f32.mrf.mxu0 }
 0x129   :  { %v976_v36 = vpop.f32.mrf.mxu1 }
 0x12a   :  { %v1018_v38 = vadd.f32 %v1017_v34, %v975_v35  ;;  %v977_v39 = vadd.f32 %v976_v36, %v171_v14  ;;  %v1021_v41 = vpop.f32.mrf.mxu0 }
 0x12b   :  { %v978_v40 = vpop.f32.mrf.mxu1 }
 0x12c   :  { %v1110_v43 = vmax.f32 %v1018_v38, 0.0  ;;  %v1020_v44 = vadd.f32 %v1019_v37, %v977_v39  ;;  %v979_v45 = vadd.f32 %v978_v40, %v176_v19  ;;  %v1023_v50 = vpop.f32.mrf.mxu0 }
 0x12d   :  { %v980_v46 = vpop.f32.mrf.mxu1 }
 0x12e   :  { %1120 = vst [vmem:[%s1949_s3 + $0x10] sm:$0xff] %v1110_v43  ;;  %v1111_v47 = vmax.f32 %v1020_v44, 0.0  ;;  %v1022_v48 = vadd.f32 %v1021_v41, %v979_v45  ;;  %v981_v49 = vadd.f32 %v980_v46, %v176_v19 }
 0x130   :  { %1121 = vst [vmem:[%s1949_s3 + $0x18] sm:$0xff] %v1111_v47  ;;  %v1115_v51 = vmax.f32 %v1022_v48, 0.0  ;;  %v1024_v53 = vadd.f32 %v1023_v50, %v981_v49 }
 0x132   :  { %1126 = vst [vmem:[%s1949_s3 + $0x38] sm:$0xff] %v1115_v51  ;;  %v1116_v54 = vmax.f32 %v1024_v53, 0.0 }
 0x134   :  { %1127 = vst [vmem:[%s1949_s3 + $0x40] sm:$0xff] %v1116_v54 }
 0x146   :  { %v1283_v55 = vpop.f32.mrf.mxu0 }
 0x148   :  { %v1284_v56 = vpop.f32.mrf.mxu0 }
 0x149   :  { %v1285_v57 = vadd.f32 %v1284_v56, %v1283_v55 }
 0x14a   :  { %v1286_v58 = vpop.f32.mrf.mxu0 }
 0x14b   :  { %v1101_v59 = vpop.f32.mrf.mxu1  ;;  %v1061_v52 = vadd.f32 %v1285_v57, %v171_v14 }
 0x14c   :  { %v1287_v29 = vpop.f32.mrf.mxu0 }
 0x14d   :  { %v1103_v60 = vpop.f32.mrf.mxu1  ;;  %v1102_v61 = vadd.f32 %v1101_v59, %v1061_v52  ;;  %v1288_v62 = vadd.f32 %v1287_v29, %v1286_v58 }
 0x14f   :  { %v1104_v63 = vpop.f32.mrf.mxu1  ;;  %v1112_v0 = vmax.f32 %v1102_v61, 0.0  ;;  %v1064_v2 = vadd.f32 %v1288_v62, %v176_v19 }
 0x151   :  { %v1106_v3 = vpop.f32.mrf.mxu1  ;;  %1123 = vst.msk [vmem:[%s1949_s3 + $0x20] sm:$0xff] %vm1122_vm2, %v1112_v0  ;;  %v1105_v4 = vadd.f32 %v1104_v63, %v1064_v2 }
 0x153   :  { %v1117_v5 = vmax.f32 %v1105_v4, 0.0 }
 0x155   :  { %1128 = vst.msk [vmem:[%s1949_s3 + $0x48] sm:$0xff] %vm1122_vm2, %v1117_v5 }

// kernel: detr_forward.9
= control target key start
LH: loop header
LB: loop body
LE: loop exit
PB: predicated region body
PF: predicated region fallthrough
CT: control target
= control target key end

     0   :  { %vm101_vm0 = vcmask 277504   ;;  %s279_s0 = inlined_call_operand.vmem [shape: f32[16,162], index: 0, kind: input, shape index: {}]   ;;  %s280_s1 = inlined_call_operand.vmem [shape: f32[16,162], index: 1, kind: input, shape index: {}]   ;;  %s281_s2 = inlined_call_operand.vmem [shape: f32[16,162], index: 2, kind: input, shape index: {}]   ;;  %s282_s3 = inlined_call_operand.vmem [shape: f32[16,162], index: 3, kind: input, shape index: {}]   ;;  %s283_s4 = inlined_call_operand.vmem [shape: f32[16,162], index: 4, kind: input, shape index: {}]   ;;  %s284_s5 = inlined_call_operand.vmem [shape: f32[16,162], index: 5, kind: input, shape index: {}]   ;;  %s285_s6 = inlined_call_operand.vmem [shape: f32[16,162], index: 6, kind: input, shape index: {}]   ;;  %s286_s7 = inlined_call_operand.vmem [shape: f32[16,162], index: 7, kind: input, shape index: {}]   ;;  %s287_s8 = inlined_call_operand.vmem [shape: f32[16,162], index: 8, kind: input, shape index: {}]   ;;  %s288_s9 = inlined_call_operand.vmem [shape: f32[16,162], index: 9, kind: output, shape index: {}]  }
   0x1   :  { %v32_v0 = vld [vmem:[%s279_s0] sm:$0xff]  ;;  %v33_v6 = vld [vmem:[%s279_s0 + $0x8] sm:$0xff]  ;;  %v34_v15 = vld [vmem:[%s279_s0 + $0x10] sm:$0xff] }
   0x2   :  { %v36_v1 = vld [vmem:[%s280_s1] sm:$0xff]  ;;  %v37_v7 = vld [vmem:[%s280_s1 + $0x8] sm:$0xff]  ;;  %v38_v16 = vld [vmem:[%s280_s1 + $0x10] sm:$0xff] }
   0x3   :  { %v44_v2 = vld [vmem:[%s281_s2] sm:$0xff]  ;;  %v40_v3 = vmax.f32 %v32_v0, %v36_v1  ;;  %v45_v8 = vld [vmem:[%s281_s2 + $0x8] sm:$0xff]  ;;  %v41_v10 = vmax.f32 %v33_v6, %v37_v7  ;;  %v46_v17 = vld [vmem:[%s281_s2 + $0x10] sm:$0xff]  ;;  %v42_v20 = vmax.f32 %v34_v15, %v38_v16 }
   0x4   :  { %v52_v4 = vld [vmem:[%s282_s3] sm:$0xff]  ;;  %v53_v13 = vld [vmem:[%s282_s3 + $0x8] sm:$0xff]  ;;  %v54_v24 = vld [vmem:[%s282_s3 + $0x10] sm:$0xff] }
   0x5   :  { %v48_v5 = vmax.f32 %v40_v3, %v44_v2  ;;  %v60_v9 = vld [vmem:[%s283_s4] sm:$0xff]  ;;  %v49_v14 = vmax.f32 %v41_v10, %v45_v8  ;;  %v61_v19 = vld [vmem:[%s283_s4 + $0x8] sm:$0xff]  ;;  %v50_v26 = vmax.f32 %v42_v20, %v46_v17  ;;  %v35_v27 = vld [vmem:[%s279_s0 + $0x18] sm:$0xff] }
   0x6   :  { %v68_v12 = vld [vmem:[%s284_s5] sm:$0xff]  ;;  %v69_v23 = vld [vmem:[%s284_s5 + $0x8] sm:$0xff]  ;;  %v39_v28 = vld [vmem:[%s280_s1 + $0x18] sm:$0xff] }
   0x7   :  { %v56_v11 = vmax.f32 %v48_v5, %v52_v4  ;;  %v76_v21 = vld [vmem:[%s285_s6] sm:$0xff]  ;;  %v57_v22 = vmax.f32 %v49_v14, %v53_v13  ;;  %v47_v29 = vld [vmem:[%s281_s2 + $0x18] sm:$0xff]  ;;  %v62_v32 = vld [vmem:[%s283_s4 + $0x10] sm:$0xff]  ;;  %v43_v33 = vmax.f32 %v35_v27, %v39_v28  ;;  %v58_v36 = vmax.f32 %v50_v26, %v54_v24 }
   0x8   :  { %v84_v30 = vld [vmem:[%s286_s7] sm:$0xff]  ;;  %v77_v35 = vld [vmem:[%s285_s6 + $0x8] sm:$0xff]  ;;  %v55_v37 = vld [vmem:[%s282_s3 + $0x18] sm:$0xff] }
   0x9   :  { %v64_v18 = vmax.f32 %v56_v11, %v60_v9  ;;  %v65_v31 = vmax.f32 %v57_v22, %v61_v19  ;;  %v92_v38 = vld [vmem:[%s287_s8] sm:$0xff]  ;;  %v70_v40 = vld [vmem:[%s284_s5 + $0x10] sm:$0xff]  ;;  %v51_v41 = vmax.f32 %v43_v33, %v47_v29  ;;  %v85_v43 = vld [vmem:[%s286_s7 + $0x8] sm:$0xff]  ;;  %v66_v44 = vmax.f32 %v58_v36, %v62_v32 }
   0xa   :  { %v63_v45 = vld [vmem:[%s283_s4 + $0x18] sm:$0xff]  ;;  %v78_v47 = vld [vmem:[%s285_s6 + $0x10] sm:$0xff]  ;;  %v93_v50 = vld [vmem:[%s287_s8 + $0x8] sm:$0xff] }
   0xb   :  { %v72_v25 = vmax.f32 %v64_v18, %v68_v12  ;;  %v73_v39 = vmax.f32 %v65_v31, %v69_v23  ;;  %v59_v48 = vmax.f32 %v51_v41, %v55_v37  ;;  %v74_v51 = vmax.f32 %v66_v44, %v70_v40  ;;  %v71_v52 = vld [vmem:[%s284_s5 + $0x18] sm:$0xff]  ;;  %v86_v54 = vld [vmem:[%s286_s7 + $0x10] sm:$0xff] }
   0xc   :  { %v79_v57 = vld [vmem:[%s285_s6 + $0x18] sm:$0xff]  ;;  %v94_v59 = vld [vmem:[%s287_s8 + $0x10] sm:$0xff] }
   0xd   :  { %v80_v34 = vmax.f32 %v72_v25, %v76_v21  ;;  %v81_v46 = vmax.f32 %v73_v39, %v77_v35  ;;  %v67_v55 = vmax.f32 %v59_v48, %v63_v45  ;;  %v82_v56 = vmax.f32 %v74_v51, %v78_v47  ;;  %v87_v62 = vld [vmem:[%s286_s7 + $0x18] sm:$0xff] }
   0xe   :  { %v95_v1 = vld [vmem:[%s287_s8 + $0x18] sm:$0xff] }
   0xf   :  { %v88_v42 = vmax.f32 %v80_v34, %v84_v30  ;;  %v89_v53 = vmax.f32 %v81_v46, %v85_v43  ;;  %v75_v60 = vmax.f32 %v67_v55, %v71_v52  ;;  %v90_v61 = vmax.f32 %v82_v56, %v86_v54 }
  0x11   :  { %v96_v49 = vmax.f32 %v88_v42, %v92_v38  ;;  %v97_v58 = vmax.f32 %v89_v53, %v93_v50  ;;  %v83_v63 = vmax.f32 %v75_v60, %v79_v57  ;;  %v98_v0 = vmax.f32 %v90_v61, %v94_v59 }
  0x13   :  { %100 = vst [vmem:[%s288_s9] sm:$0xff] %v96_v49  ;;  %102 = vst.msk [vmem:[%s288_s9 + $0x8] sm:$0xff] %vm101_vm0, %v97_v58  ;;  %v91_v2 = vmax.f32 %v83_v63, %v87_v62 }
  0x14   :  { %103 = vst [vmem:[%s288_s9 + $0x10] sm:$0xff] %v98_v0 }
  0x15   :  { %v99_v3 = vmax.f32 %v91_v2, %v95_v1 }
  0x17   :  { %104 = vst.msk [vmem:[%s288_s9 + $0x18] sm:$0xff] %vm101_vm0, %v99_v3 }

// kernel: detr_forward.10
= control target key start
LH: loop header
LB: loop body
LE: loop exit
PB: predicated region body
PF: predicated region fallthrough
CT: control target
= control target key end

     0   :  { %v1065_v1 = vmov 0   ;;  %vm523_vm0 = vcmask 130048   ;;  %vm1067_vm1 = vmmov 0   ;;  %vm737_vm2 = vcmask 261120   ;;  %s1313_s1 = inlined_call_operand.vmem [shape: bf16[784,32], index: 1, kind: input, shape index: {}]   ;;  %s1314_s0 = inlined_call_operand.vmem [shape: bf16[32,784], index: 0, kind: input, shape index: {}]   ;;  %s1315_s2 = inlined_call_operand.vmem [shape: f32[32,1], index: 2, kind: input, shape index: {}]   ;;  %s1316_s4 = inlined_call_operand.vmem [shape: f32[8,1], index: 4, kind: input, shape index: {}]   ;;  %s1317_s3 = inlined_call_operand.vmem [shape: f32[8,32], index: 3, kind: input, shape index: {}]   ;;  %s1318_s5 = inlined_call_operand.vmem [shape: f32[8,32], index: 5, kind: output, shape index: {}]  }
   0x1   :  { %v996_v0 = vld [vmem:[%s1313_s1 + $0x78] sm:$0xff]   ;;  %995 = vset.pattern.permute.xlu1 %v1065_v1  ;;  %994 = vset.pattern.permute.xlu0 %v1065_v1  ;;  %v1000_v5 = vld [vmem:[%s1313_s1 + $0x70] sm:$0xff]   ;;  %v1004_v9 = vld [vmem:[%s1313_s1 + $0x68] sm:$0xff]  }
   0x2   :  { %v997_v2 = vld [vmem:[%s1313_s1 + $0x38] sm:$0xff]   ;;  %882 = vmatprep.subr.bf16.mxu0 %v996_v0  ;;  %v1001_v6 = vld [vmem:[%s1313_s1 + $0x30] sm:$0xff]   ;;  %v1005_v10 = vld [vmem:[%s1313_s1 + $0x28] sm:$0xff]  }
   0x3   :  { %v998_v3 = vld [vmem:[%s1313_s1 + $0xf8] sm:$0xff]   ;;  %883 = vmatpush3.bf16.msra.mxu0 %v997_v2  ;;  %v1002_v7 = vld [vmem:[%s1313_s1 + $0xf0] sm:$0xff]   ;;  %v1006_v11 = vld [vmem:[%s1313_s1 + $0xe8] sm:$0xff]  }
   0x4   :  { %v999_v4 = vld [vmem:[%s1313_s1 + $0xb8] sm:$0xff]   ;;  %910 = vmatprep.subr.bf16.mxu1 %v998_v3  ;;  %884 = vmatprep.subr.bf16.mxu0 %v1000_v5  ;;  %v1003_v8 = vld [vmem:[%s1313_s1 + $0xb0] sm:$0xff]   ;;  %v1007_v12 = vld [vmem:[%s1313_s1 + $0xa8] sm:$0xff]   ;;  %v1066_v5 = vmov 0.0  }
   0x5   :  { %911 = vmatpush3.bf16.msra.mxu1 %v999_v4  ;;  %v1008_v13 = vld [vmem:[%s1313_s1 + $0x60] sm:$0xff]   ;;  %v1012_v17 = vld [vmem:[%s1313_s1 + $0x58] sm:$0xff]   ;;  %v1016_v21 = vld [vmem:[%s1313_s1 + $0x50] sm:$0xff]  }
   0x6   :  { %912 = vmatprep.subr.bf16.mxu1 %v1002_v7  ;;  %v1009_v14 = vld [vmem:[%s1313_s1 + $0x20] sm:$0xff]   ;;  %v1013_v18 = vld [vmem:[%s1313_s1 + $0x18] sm:$0xff]   ;;  %v1017_v22 = vld [vmem:[%s1313_s1 + $0x10] sm:$0xff]  }
   0x7   :  { %885 = vmatpush3.bf16.msra.mxu0 %v1001_v6  ;;  %v1010_v15 = vld [vmem:[%s1313_s1 + $0xe0] sm:$0xff]   ;;  %v1014_v19 = vld [vmem:[%s1313_s1 + $0xd8] sm:$0xff]   ;;  %v1018_v23 = vld [vmem:[%s1313_s1 + $0xd0] sm:$0xff]  }
   0x8   :  { %886 = vmatprep.subr.bf16.mxu0 %v1004_v9  ;;  %v1011_v16 = vld [vmem:[%s1313_s1 + $0xa0] sm:$0xff]   ;;  %v1015_v20 = vld [vmem:[%s1313_s1 + $0x98] sm:$0xff]   ;;  %v1019_v24 = vld [vmem:[%s1313_s1 + $0x90] sm:$0xff]  }
   0x9   :  { %913 = vmatpush3.bf16.msra.mxu1 %v1003_v8  ;;  %v1020_v25 = vld [vmem:[%s1313_s1 + $0x48] sm:$0xff]   ;;  %v1024_v29 = vld [vmem:[%s1313_s1 + $0x40] sm:$0xff]   ;;  %v1031_v35 = vld [vmem:[%s1313_s1 + $0x178] sm:$0xff]  }
   0xa   :  { %914 = vmatprep.subr.bf16.mxu1 %v1006_v11  ;;  %v1021_v26 = vld [vmem:[%s1313_s1 + $0x8] sm:$0xff]   ;;  %v1025_v30 = vld [vmem:[%s1313_s1] sm:$0xff]   ;;  %v1035_v38 = vld [vmem:[%s1313_s1 + $0x138] sm:$0xff]  }
   0xb   :  { %887 = vmatpush3.bf16.msra.mxu0 %v1005_v10  ;;  %v1022_v27 = vld [vmem:[%s1313_s1 + $0xc8] sm:$0xff]   ;;  %v1026_v31 = vld [vmem:[%s1313_s1 + $0xc0] sm:$0xff]   ;;  %v1036_v39 = vld [vmem:[%s1313_s1 + $0x170] sm:$0xff]  }
   0xc   :  { %888 = vmatprep.subr.bf16.mxu0 %v1008_v13  ;;  %v1023_v28 = vld [vmem:[%s1313_s1 + $0x88] sm:$0xff]   ;;  %v1027_v32 = vld [vmem:[%s1314_s0] ss:$28 sps:$4 sm:$0xff]   ;;  %v1037_v40 = vld [vmem:[%s1313_s1 + $0x130] sm:$0xff]  }
   0xd   :  { %915 = vmatpush3.bf16.msra.mxu1 %v1007_v12  ;;  %v1029_v33 = vld [vmem:[%s1314_s0 + $0x4] ss:$28 sps:$4 sm:$0xff]   ;;  %v1034_v37 = vld [vmem:[%s1314_s0 + $0xc] ss:$28 sps:$4 sm:$0xff]   ;;  %v1043_v45 = vld [vmem:[%s1314_s0 + $0x3c] ss:$28 sps:$4 sm:$0xff]  }
   0xe   :  { %916 = vmatprep.subr.bf16.mxu1 %v1010_v15  ;;  %v1030_v34 = vld [vmem:[%s1313_s1 + $0x80] sm:$0xff]   ;;  %562 = vmatprep.mubr.bf16.mxu0 %v1029_v33  ;;  %v1038_v41 = vld [vmem:[%s1313_s1 + $0x168] sm:$0xff]   ;;  %v1042_v46 = vld [vmem:[%s1313_s1 + $0x158] sm:$0xff]  }
   0xf   :  { %889 = vmatpush3.bf16.msra.mxu0 %v1009_v14  ;;  %v1032_v36 = vld [vmem:[%s1314_s0 + $0x8] ss:$28 sps:$4 sm:$0xff]   ;;  %611 = vmatprep.mubr.bf16.mxu1 %v1034_v37  ;;  %v1046_v47 = vld [vmem:[%s1314_s0 + $0x38] ss:$28 sps:$4 sm:$0xff]   ;;  %v1049_v49 = vld [vmem:[%s1314_s0 + $0x40] ss:$28 sps:$4 sm:$0xff]  }
  0x10   :  { %890 = vmatprep.subr.bf16.mxu0 %v1012_v17  ;;  %v1039_v42 = vld [vmem:[%s1313_s1 + $0x128] sm:$0xff]   ;;  %v1040_v43 = vld [vmem:[%s1313_s1 + $0x160] sm:$0xff]   ;;  %v1045_v50 = vld [vmem:[%s1313_s1 + $0x118] sm:$0xff]  }
  0x11   :  { %917 = vmatpush3.bf16.msra.mxu1 %v1011_v16  ;;  %v1041_v44 = vld [vmem:[%s1313_s1 + $0x120] sm:$0xff]   ;;  %v1050_v51 = vld [vmem:[%s1313_s1 + $0x150] sm:$0xff]   ;;  %v1052_v54 = vld [vmem:[%s1313_s1 + $0x148] sm:$0xff]  }
  0x12   :  { %918 = vmatprep.subr.bf16.mxu1 %v1014_v19  ;;  %v1047_v48 = vld [vmem:[%s1314_s0 + $0x44] ss:$28 sps:$4 sm:$0xff]   ;;  %v1051_v52 = vld [vmem:[%s1313_s1 + $0x110] sm:$0xff]   ;;  %v1053_v58 = vld [vmem:[%s1313_s1 + $0x108] sm:$0xff]  }
  0x13   :  { %891 = vmatpush3.bf16.msra.mxu0 %v1013_v18  ;;  %v1056_v53 = vld [vmem:[%s1313_s1 + $0x180] sm:$0xff]   ;;  %v1059_v55 = vld [vmem:[%s1314_s0 + $0x14] ss:$28 sps:$4 sm:$0xff]   ;;  %v136_v60 = vld [vmem:[%s1315_s2 + $0x8] sm:$0xff] }
  0x14   :  { %892 = vmatprep.subr.bf16.mxu0 %v1016_v21  ;;  %v1060_v56 = vld [vmem:[%s1314_s0 + $0x18] ss:$28 sps:$4 sm:$0xff]   ;;  %v1061_v57 = vld [vmem:[%s1314_s0 + $0x50] ss:$28 sps:$4 sm:$0xff]   ;;  %v1054_v59 = vld [vmem:[%s1313_s1 + $0x140] sm:$0xff]   ;;  %146 = vperm.xlu1 %995, %v136_v60  }
  0x15   :  { %919 = vmatpush3.bf16.msra.mxu1 %v1015_v20  ;;  %v138_v61 = vld [vmem:[%s1315_s2 + $0x18] sm:$0xff]  ;;  %v135_v62 = vld [vmem:[%s1315_s2] sm:$0xff]  ;;  %v137_v0 = vld [vmem:[%s1315_s2 + $0x10] sm:$0xff] }
  0x16   :  { %920 = vmatprep.subr.bf16.mxu1 %v1018_v23  ;;  %156 = vperm.xlu0 %994, %v138_v61   ;;  %v1055_v63 = vld [vmem:[%s1313_s1 + $0x100] sm:$0xff]   ;;  %v1057_v1 = vld [vmem:[%s1314_s0 + $0x10] ss:$28 sps:$4 sm:$0xff]  }
  0x17   :  { %893 = vmatpush3.bf16.msra.mxu0 %v1017_v22  ;;  %v1062_v2 = vld [vmem:[%s1314_s0 + $0x4c] ss:$28 sps:$4 sm:$0xff]   ;;  %v731_v3 = vld [vmem:[%s1316_s4] sm:$0xff] }
  0x18   :  { %894 = vmatprep.subr.bf16.mxu0 %v1020_v25  ;;  %141 = vperm.xlu1 %995, %v135_v62   ;;  %v1064_v4 = vld [vmem:[%s1314_s0 + $0x48] ss:$28 sps:$4 sm:$0xff]  }
  0x19   :  { %921 = vmatpush3.bf16.msra.mxu1 %v1019_v24 }
  0x1a   :  { %922 = vmatprep.subr.bf16.mxu1 %v1022_v27  ;;  %151 = vperm.xlu0 %994, %v137_v0  }
  0x1b   :  { %895 = vmatpush3.bf16.msra.mxu0 %v1021_v26 }
  0x1c   :  { %896 = vmatprep.subr.bf16.mxu0 %v1024_v29 }
  0x1d   :  { %923 = vmatpush3.bf16.msra.mxu1 %v1023_v28 }
  0x1e   :  { %924 = vmatprep.subr.bf16.mxu1 %v1026_v31  ;;  %734 = vperm.xlu0 %994, %v731_v3  }
  0x1f   :  { %897 = vmatpush3.bf16.msra.mxu0 %v1025_v30 }
  0x20   :  { %938 = vmatprep.subr.bf16.mxu0 %v1031_v35 }
  0x21   :  { %925 = vmatpush3.bf16.msra.mxu1 %v1030_v34 }
  0x22   :  { %563 = vmatmul.mubr.bf16.vlgmr.msra.gmra.mxu0 %v1027_v32  ;;  %974 = vmatprep.subr.bf16.mxu1 %v1056_v53 }
  0x23   :  { %939 = vmatpush3.bf16.msra.mxu0 %v1035_v38  ;;  %570 = vmatprep.mubr.bf16.mxu0 %v1043_v45 }
  0x24   :  { %612 = vmatmul.mubr.bf16.vlgmr.msra.gmra.mxu1 %v1032_v36  ;;  %940 = vmatprep.subr.bf16.mxu0 %v1036_v39 }
  0x25   :  { %619 = vmatprep.mubr.bf16.mxu1 %v1047_v48  ;;  %975 = vmatpush3.bf16.msra.mxu1 %v1056_v53 }
  0x26   :  { %980 = vmatprep.subr.mxu1 %v1066_v5 }
  0x27   :  { %941 = vmatpush3.bf16.msra.mxu0 %v1037_v40 }
  0x28   :  { %942 = vmatprep.subr.bf16.mxu0 %v1038_v41 }
  0x2a   :  { %571 = vmatmul.mubr.bf16.gmra.mxu0 %v1046_v47 }
  0x2b   :  { %943 = vmatpush3.bf16.msra.mxu0 %v1039_v42  ;;  %660 = vmatprep.mubr.bf16.mxu0 %v1059_v55 }
  0x2c   :  { %944 = vmatprep.subr.bf16.mxu0 %v1040_v43  ;;  %620 = vmatmul.mubr.bf16.gmra.mxu1 %v1049_v49 }
  0x2d   :  { %976 = vmatprep.mubr.msk.bf16.mxu1 %vm523_vm0, %v1060_v56 }
  0x2f   :  { %945 = vmatpush3.bf16.msra.mxu0 %v1041_v44 }
  0x30   :  { %946 = vmatprep.subr.bf16.mxu0 %v1042_v46 }
  0x33   :  { %947 = vmatpush3.bf16.msra.mxu0 %v1045_v50 }
  0x34   :  { %948 = vmatprep.subr.bf16.mxu0 %v1050_v51  ;;  %977 = vmatmul.mubr.msk.bf16.vlgmr.msra.gmra.mxu1 %vm523_vm0, %v1061_v57 }
  0x35   :  { %988 = vmatprep.mubr.msk.f32.mxu1 %vm1067_vm1, %v1066_v5 }
  0x37   :  { %949 = vmatpush3.bf16.msra.mxu0 %v1051_v52 }
  0x38   :  { %950 = vmatprep.subr.bf16.mxu0 %v1052_v54 }
  0x3b   :  { %951 = vmatpush3.bf16.msra.mxu0 %v1053_v58 }
  0x3c   :  { %952 = vmatprep.subr.bf16.mxu0 %v1054_v59 }
  0x3f   :  { %953 = vmatpush3.bf16.msra.mxu0 %v1055_v63 }
  0x42   :  { %661 = vmatmul.mubr.bf16.vlgmr.msra.gmra.mxu0 %v1057_v1 }
  0x43   :  { %668 = vmatprep.mubr.bf16.mxu0 %v1062_v2 }
  0x4a   :  { %669 = vmatmul.mubr.bf16.gmra.mxu0 %v1064_v4 }
  0x8f   :  { %v147_v24 = vpop.permute.xlu1 %146 }
  0x91   :  { %v157_v20 = vpop.permute.xlu0 %156 }
  0x93   :  { %v142_v35 = vpop.permute.xlu1 %141 }
  0x95   :  { %v152_v28 = vpop.permute.xlu0 %151 }
  0xe2   :  { %v898_v6 = vpop.f32.mrf.mxu0 }
  0xe4   :  { %v899_v7 = vpop.f32.mrf.mxu0  ;;  %v926_v8 = vpop.f32.mrf.mxu1 }
  0xe5   :  { %v900_v34 = vadd.f32 %v899_v7, %v898_v6  ;;  %v730_v7 = vld [vmem:[%s1317_s3] sm:$0xff] }
  0xe6   :  { %v901_v9 = vpop.f32.mrf.mxu0  ;;  %v927_v10 = vpop.f32.mrf.mxu1 }
  0xe7   :  { %v565_v46 = vadd.f32 %v900_v34, %v142_v35  ;;  %v928_v47 = vadd.f32 %v927_v10, %v926_v8  ;;  %v735_v8 = vpop.permute.xlu0 %734 }
  0xe8   :  { %v902_v11 = vpop.f32.mrf.mxu0  ;;  %v929_v12 = vpop.f32.mrf.mxu1 }
  0xe9   :  { %v903_v29 = vadd.f32 %v902_v11, %v901_v9  ;;  %v614_v57 = vadd.f32 %v928_v47, %v565_v46 }
  0xea   :  { %v904_v13 = vpop.f32.mrf.mxu0  ;;  %v930_v14 = vpop.f32.mrf.mxu1 }
  0xeb   :  { %v568_v38 = vadd.f32 %v903_v29, %v147_v24  ;;  %v931_v39 = vadd.f32 %v930_v14, %v929_v12 }
  0xec   :  { %v905_v15 = vpop.f32.mrf.mxu0  ;;  %v932_v16 = vpop.f32.mrf.mxu1 }
  0xed   :  { %v906_v27 = vadd.f32 %v905_v15, %v904_v13  ;;  %v617_v50 = vadd.f32 %v931_v39, %v568_v38 }
  0xee   :  { %v907_v17 = vpop.f32.mrf.mxu0  ;;  %v933_v18 = vpop.f32.mrf.mxu1 }
  0xef   :  { %v934_v36 = vadd.f32 %v933_v18, %v932_v16  ;;  %v573_v37 = vadd.f32 %v906_v27, %v152_v28 }
  0xf0   :  { %v908_v19 = vpop.f32.mrf.mxu0  ;;  %v935_v21 = vpop.f32.mrf.mxu1 }
  0xf1   :  { %v909_v32 = vadd.f32 %v908_v19, %v907_v17  ;;  %v622_v48 = vadd.f32 %v934_v36, %v573_v37 }
  0xf2   :  { %v936_v25 = vpop.f32.mrf.mxu1 }
  0xf3   :  { %v576_v42 = vadd.f32 %v909_v32, %v157_v20  ;;  %v937_v43 = vadd.f32 %v936_v25, %v935_v21 }
  0xf4   :  { %v978_v30 = vpop.f32.mrf.mxu1 }
  0xf5   :  { %v625_v53 = vadd.f32 %v937_v43, %v576_v42 }
  0xf6   :  { %v711_v40 = vpop.f32.mrf.mxu1 }
  0xf8   :  { %v979_v51 = vpop.f32.mrf.mxu1 }
  0xfa   :  { %v714_v60 = vpop.f32.mrf.mxu1 }
 0x102   :  { %v954_v22 = vpop.f32.mrf.mxu0 }
 0x104   :  { %v955_v23 = vpop.f32.mrf.mxu0 }
 0x105   :  { %v956_v54 = vadd.f32 %v955_v23, %v954_v22 }
 0x106   :  { %v957_v26 = vpop.f32.mrf.mxu0 }
 0x107   :  { %v663_v61 = vadd.f32 %v956_v54, %v614_v57 }
 0x108   :  { %v958_v31 = vpop.f32.mrf.mxu0 }
 0x109   :  { %v959_v49 = vadd.f32 %v958_v31, %v957_v26  ;;  %v712_v2 = vadd.f32 %v711_v40, %v663_v61 }
 0x10a   :  { %v960_v33 = vpop.f32.mrf.mxu0 }
 0x10b   :  { %v666_v58 = vadd.f32 %v959_v49, %v617_v50  ;;  %v726_v6 = vmax.f32 %v712_v2, 0.0 }
 0x10c   :  { %v961_v41 = vpop.f32.mrf.mxu0 }
 0x10d   :  { %v962_v44 = vadd.f32 %v961_v41, %v960_v33  ;;  %v715_v0 = vadd.f32 %v714_v60, %v666_v58 }
 0x10e   :  { %v963_v45 = vpop.f32.mrf.mxu0 }
 0x10f   :  { %v671_v55 = vadd.f32 %v962_v44, %v622_v48  ;;  %v727_v4 = vmax.f32 %v715_v0, 0.0 }
 0x110   :  { %v964_v52 = vpop.f32.mrf.mxu0 }
 0x111   :  { %v965_v56 = vadd.f32 %v964_v52, %v963_v45  ;;  %v720_v62 = vadd.f32 %v978_v30, %v671_v55 }
 0x113   :  { %v674_v59 = vadd.f32 %v965_v56, %v625_v53  ;;  %v728_v3 = vmax.f32 %v720_v62, 0.0 }
 0x115   :  { %v723_v63 = vadd.f32 %v979_v51, %v674_v59 }
 0x117   :  { %v729_v1 = vmax.f32 %v723_v63, 0.0 }
 0x119   :  { %981 = vmatpush3.msra.mxu1 %v729_v1 }
 0x11a   :  { %982 = vmatprep.subr.mxu1 %v1066_v5 }
 0x11b   :  { %983 = vmatpush3.msra.mxu1 %v728_v3 }
 0x11c   :  { %984 = vmatprep.subr.mxu1 %v1066_v5 }
 0x11d   :  { %985 = vmatpush3.msra.mxu1 %v727_v4 }
 0x11e   :  { %986 = vmatprep.subr.mxu1 %v1066_v5 }
 0x11f   :  { %987 = vmatpush3.msra.mxu1 %v726_v6 }
 0x120   :  { %989 = vmatmul.mubr.msk.f32.vlgmr.msra.gmra.mxu1 %vm737_vm2, %v730_v7 }
 0x1e0   :  { %v807_v9 = vpop.f32.mrf.mxu1 }
 0x1e1   :  { %v808_v10 = vadd.f32 %v807_v9, %v735_v8 }
 0x1e2   :  { %v990_v11 = vpop.f32.mrf.mxu1 }
 0x1e3   :  { %811 = vst.msk [vmem:[%s1318_s5] sm:$0xff] %vm737_vm2, %v808_v10 }

// kernel: detr_forward.11
= control target key start
LH: loop header
LB: loop body
LE: loop exit
PB: predicated region body
PF: predicated region fallthrough
CT: control target
= control target key end

     0   :  { %s7301_s6 = smov 1   ;;  %s7302_s10 = smov 2   ;;  %s8418_s0 = inlined_call_operand.smem [shape: u32[45], index: -1, kind: input, shape index: {}] }
   0x1   :  { %s7376_s5 = sld [smem:[%s8418_s0]]   ;;  %s7303_s14 = smov 3  }
   0x2   :  { %s7381_s9 = sld [smem:[%s8418_s0 + %s7301_s6]]   ;;  %s7304_s18 = smov 4  }
   0x3   :  { %s7386_s13 = sld [smem:[%s8418_s0 + %s7302_s10]]   ;;  %s7305_s22 = smov 5  }
   0x4   :  { %s7391_s17 = sld [smem:[%s8418_s0 + %s7303_s14]]   ;;  %s7306_s26 = smov 6  }
   0x5   :  { %s7396_s21 = sld [smem:[%s8418_s0 + %s7304_s18]]   ;;  %s7307_s30 = smov 7  }
   0x6   :  { %s7401_s25 = sld [smem:[%s8418_s0 + %s7305_s22]]   ;;  %s7308_s4 = smov 8  }
   0x7   :  { %s7406_s29 = sld [smem:[%s8418_s0 + %s7306_s26]]   ;;  %s7309_s10 = smov 9  }
   0x8   :  { %s7411_s3 = sld [smem:[%s8418_s0 + %s7307_s30]]   ;;  %s7310_s15 = smov 10  }
   0x9   :  { %s7416_s8 = sld [smem:[%s8418_s0 + %s7308_s4]]   ;;  %s7311_s20 = smov 11  }
   0xa   :  { %s7421_s14 = sld [smem:[%s8418_s0 + %s7309_s10]]   ;;  %s7312_s26 = smov 12  }
   0xb   :  { %s7426_s19 = sld [smem:[%s8418_s0 + %s7310_s15]]   ;;  %s7313_s1 = smov 13  }
   0xc   :  { %s7431_s24 = sld [smem:[%s8418_s0 + %s7311_s20]]   ;;  %s7314_s7 = smov 14  }
   0xd   :  { %8433 = sst [smem:[#allocation16_spill]] %s7406_s29  ;;  %s7315_s15 = smov 15  }
   0xe   :  { %8434 = sst [smem:[#allocation17_spill]] %s7411_s3  ;;  %s7316_s22 = smov 16  }
   0xf   :  { %8435 = sst [smem:[#allocation18_spill]] %s7416_s8  ;;  %s7317_s28 = smov 17  }
  0x10   :  { %8436 = sst [smem:[#allocation19_spill]] %s7421_s14 }
  0x11   :  { %8437 = sst [smem:[#allocation20_spill]] %s7426_s19 }
  0x12   :  { %8438 = sst [smem:[#allocation21_spill]] %s7431_s24 }
  0x13   :  { %s7436_s30 = sld [smem:[%s8418_s0 + %s7312_s26]]  }
  0x14   :  { %s7441_s6 = sld [smem:[%s8418_s0 + %s7313_s1]]  }
  0x15   :  { %s7446_s12 = sld [smem:[%s8418_s0 + %s7314_s7]]   ;;  %s7318_s7 = smov 18  }
  0x16   :  { %s7451_s20 = sld [smem:[%s8418_s0 + %s7315_s15]]   ;;  %s7319_s15 = smov 19  }
  0x17   :  { %s7456_s27 = sld [smem:[%s8418_s0 + %s7316_s22]]   ;;  %s7320_s22 = smov 20  }
  0x18   :  { %s7461_s4 = sld [smem:[%s8418_s0 + %s7317_s28]]   ;;  %s7321_s28 = smov 21  }
  0x19   :  { %8439 = sst [smem:[#allocation22_spill]] %s7436_s30 }
  0x1a   :  { %s7466_s30 = sld [smem:[%s8418_s0 + %s7318_s7]]   ;;  %s7322_s7 = smov 22  }
  0x1b   :  { %s7471_s24 = sld [smem:[%s8418_s0 + %s7319_s15]]   ;;  %s7323_s15 = smov 23  }
  0x1c   :  { %s7476_s19 = sld [smem:[%s8418_s0 + %s7320_s22]]   ;;  %s7324_s22 = smov 24  }
  0x1d   :  { %8440 = sst [smem:[#allocation23_spill]] %s7456_s27 }
  0x1e   :  { %8441 = sst [smem:[#allocation24_spill]] %s7461_s4 }
  0x1f   :  { %s7481_s4 = sld [smem:[%s8418_s0 + %s7321_s28]]   ;;  %s7325_s28 = smov 25  }
  0x20   :  { %8442 = sst [smem:[#allocation25_spill]] %s7466_s30 }
  0x21   :  { %8443 = sst [smem:[#allocation26_spill]] %s7471_s24 }
  0x22   :  { %8444 = sst [smem:[#allocation27_spill]] %s7476_s19 }
  0x23   :  { %s7486_s30 = sld [smem:[%s8418_s0 + %s7322_s7]]   ;;  %s7326_s7 = smov 26  }
  0x24   :  { %s7491_s24 = sld [smem:[%s8418_s0 + %s7323_s15]]   ;;  %s7327_s15 = smov 27  }
  0x25   :  { %8445 = sst [smem:[#allocation28_spill]] %s7481_s4 }
  0x26   :  { %s7496_s19 = sld [smem:[%s8418_s0 + %s7324_s22]]   ;;  %s7328_s22 = smov 28  }
  0x27   :  { %s7501_s4 = sld [smem:[%s8418_s0 + %s7325_s28]]   ;;  %s7329_s28 = smov 29  }
  0x29   :  { %8446 = sst [smem:[#allocation29_spill]] %s7486_s30 }
  0x2a   :  { %8447 = sst [smem:[#allocation30_spill]] %s7491_s24 }
  0x2b   :  { %s7506_s30 = sld [smem:[%s8418_s0 + %s7326_s7]]   ;;  %s7330_s7 = smov 30  }
  0x2c   :  { %8448 = sst [smem:[#allocation31_spill]] %s7496_s19 }
  0x2d   :  { %8449 = sst [smem:[#allocation32_spill]] %s7501_s4 }
  0x2e   :  { %s7511_s24 = sld [smem:[%s8418_s0 + %s7327_s15]]   ;;  %s7331_s15 = smov 31  }
  0x2f   :  { %s7516_s19 = sld [smem:[%s8418_s0 + %s7328_s22]]   ;;  %s7332_s22 = smov 32  }
  0x30   :  { %s7521_s4 = sld [smem:[%s8418_s0 + %s7329_s28]]   ;;  %s7333_s28 = smov 33  }
  0x31   :  { %8450 = sst [smem:[#allocation33_spill]] %s7506_s30 }
  0x32   :  { %s7526_s30 = sld [smem:[%s8418_s0 + %s7330_s7]]   ;;  %s7334_s7 = smov 34  }
  0x34   :  { %8451 = sst [smem:[#allocation34_spill]] %s7511_s24 }
  0x35   :  { %8452 = sst [smem:[#allocation35_spill]] %s7516_s19 }
  0x36   :  { %8453 = sst [smem:[#allocation36_spill]] %s7521_s4 }
  0x37   :  { %s7531_s24 = sld [smem:[%s8418_s0 + %s7331_s15]]   ;;  %s7335_s15 = smov 35  }
  0x38   :  { %8454 = sst [smem:[#allocation37_spill]] %s7526_s30 }
  0x39   :  { %s7536_s19 = sld [smem:[%s8418_s0 + %s7332_s22]]   ;;  %s7336_s22 = smov 36  }
  0x3a   :  { %s7541_s4 = sld [smem:[%s8418_s0 + %s7333_s28]]   ;;  %s7337_s28 = smov 37  }
  0x3b   :  { %s7546_s30 = sld [smem:[%s8418_s0 + %s7334_s7]]   ;;  %s7338_s7 = smov 38  }
  0x3c   :  { %s7556_s8 = sld [smem:[%s8418_s0 + %s7336_s22]]   ;;  %s7340_s22 = smov 40  }
  0x3d   :  { %8455 = sst [smem:[#allocation38_spill]] %s7531_s24 }
  0x3e   :  { %s7551_s24 = sld [smem:[%s8418_s0 + %s7335_s15]]   ;;  %s7339_s15 = smov 39  }
  0x3f   :  { %s7566_s29 = sld [smem:[%s8418_s0 + %s7338_s7]]   ;;  %s7342_s7 = smov 42  }
  0x40   :  { %8456 = sst [smem:[#allocation39_spill]] %s7541_s4 }
  0x41   :  { %s7561_s4 = sld [smem:[%s8418_s0 + %s7337_s28]]   ;;  %s7341_s28 = smov 41  }
  0x42   :  { %s7576_s14 = sld [smem:[%s8418_s0 + %s7340_s22]]   ;;  %s7344_s22 = smov 44  }
  0x43   :  { %s7586_s3 = sld [smem:[%s8418_s0 + %s7342_s7]]  }
  0x44   :  { %8457 = sst [smem:[#allocation40_spill]] %s7551_s24 }
  0x45   :  { %s7571_s24 = sld [smem:[%s8418_s0 + %s7339_s15]]   ;;  %s7343_s15 = smov 43  }
  0x46   :  { %s7596_s27 = sld [smem:[%s8418_s0 + %s7344_s22]]  }
  0x47   :  { %8458 = sst [smem:[#allocation41_spill]] %s7561_s4 }
  0x48   :  { %s7581_s4 = sld [smem:[%s8418_s0 + %s7341_s28]]  }
  0x4b   :  { %8459 = sst [smem:[#allocation42_spill]] %s7571_s24 }
  0x4c   :  { %s7591_s24 = sld [smem:[%s8418_s0 + %s7343_s15]]  }
  0x4d   :  { %95 = vsyncpa [#allocation3], 0 }
  0x4e   :  { %96 = vsyncpa [#allocation5], 0 }
  0x4f   :  { %97 = vsyncpa [#allocation8], 0 }
  0x50   :  { %98 = vsyncpa [#allocation11], 0  ;;  %s7345_s28 = smov [#allocation4]   ;;  %s7346_s2 = smov [#allocation7]  }
  0x51   :  { %s181_s1 = sshll.u32 %s7345_s28, 4  ;;  %s205_s7 = sshll.u32 %s7346_s2, 4  ;;  %s182_s1 = int_to_ptr.vmem [resolvable:$true] %s181_s1  ;;  %s206_s7 = int_to_ptr.vmem [resolvable:$true] %s205_s7 }
  0x52   :  { %s7181_s10 = scalar_lea.vmem %s182_s1, 16  ;;  %s7185_s11 = scalar_lea.vmem %s182_s1, 32 }
  0x53   :  { %p7182_p0 = scmp.ne.s32.totalorder %s182_s1, %s7181_s10  ;;  %p7186_p1 = scmp.lt.s32.totalorder %s182_s1, %s182_s1 }
  0x54   :  { %p7187_p2 = scmp.lt.s32.totalorder %s7185_s11, %s7181_s10 }
  0x56   :  { %p7188_p3 = por %p7187_p2, %p7186_p1 }
  0x58   :  { %p7189_p4 = pnand %p7188_p3, %p7182_p0 }
  0x5a   :  { %7192 = shalt.err (!%p7189_p4)
}
  0x5b   :  { %184 = dma.hbm_to_vmem [thread:$0]  %s7546_s30, 16, %s182_s1, [#allocation5]  }
  0x5c   :  { %s7201_s0 = scalar_lea.vmem %s206_s7, 16  ;;  %s7205_s15 = scalar_lea.vmem %s206_s7, 32 }
  0x5d   :  { %p7202_p5 = scmp.ne.s32.totalorder %s206_s7, %s7201_s0  ;;  %p7206_p6 = scmp.lt.s32.totalorder %s206_s7, %s206_s7 }
  0x5e   :  { %p7207_p7 = scmp.lt.s32.totalorder %s7205_s15, %s7201_s0 }
  0x60   :  { %p7208_p8 = por %p7207_p7, %p7206_p6 }
  0x62   :  { %p7209_p9 = pnand %p7208_p8, %p7202_p5 }
  0x64   :  { %7212 = shalt.err (!%p7209_p9)
}
  0x65   :  { %208 = dma.hbm_to_vmem [thread:$0]  %s7566_s29, 16, %s206_s7, [#allocation8]  }
  0x66   :  { %s7347_s16 = smov [#allocation2]   ;;  %s7348_s22 = smov [#allocation6]  }
  0x67   :  { %s169_s18 = sshll.u32 %s7347_s16, 4  ;;  %s193_s23 = sshll.u32 %s7348_s22, 4  ;;  %s170_s18 = int_to_ptr.vmem [resolvable:$true] %s169_s18  ;;  %s194_s23 = int_to_ptr.vmem [resolvable:$true] %s193_s23 }
  0x68   :  { %s7221_s26 = scalar_lea.vmem %s170_s18, 16  ;;  %s7225_s28 = scalar_lea.vmem %s170_s18, 32 }
  0x69   :  { %p7222_p10 = scmp.ne.s32.totalorder %s170_s18, %s7221_s26  ;;  %p7226_p11 = scmp.lt.s32.totalorder %s170_s18, %s170_s18 }
  0x6a   :  { %p7227_p12 = scmp.lt.s32.totalorder %s7225_s28, %s7221_s26 }
  0x6c   :  { %p7228_p13 = por %p7227_p12, %p7226_p11 }
  0x6e   :  { %p7229_p0 = pnand %p7228_p13, %p7222_p10 }
  0x70   :  { %7232 = shalt.err (!%p7229_p0)
}
  0x71   :  { %172 = dma.hbm_to_vmem [thread:$0]  %s7536_s19, 16, %s170_s18, [#allocation3]  }
  0x72   :  { %s7241_s30 = scalar_lea.vmem %s194_s23, 16  ;;  %s7245_s1 = scalar_lea.vmem %s194_s23, 32 }
  0x73   :  { %p7242_p1 = scmp.ne.s32.totalorder %s194_s23, %s7241_s30  ;;  %p7246_p2 = scmp.lt.s32.totalorder %s194_s23, %s194_s23 }
  0x74   :  { %p7247_p3 = scmp.lt.s32.totalorder %s7245_s1, %s7241_s30 }
  0x76   :  { %p7248_p4 = por %p7247_p3, %p7246_p2 }
  0x78   :  { %p7249_p5 = pnand %p7248_p4, %p7242_p1 }
  0x7a   :  { %7252 = shalt.err (!%p7249_p5)
}
  0x7b   :  { %196 = dma.hbm_to_vmem [thread:$0]  %s7556_s8, 16, %s194_s23, [#allocation5]  }
  0x7c   :  { %s7349_s29 = smov [#allocation9]   ;;  %s7350_s7 = smov [#allocation10]  }
  0x7d   :  { %s217_s2 = sshll.u32 %s7349_s29, 4  ;;  %s229_s10 = sshll.u32 %s7350_s7, 4  ;;  %s218_s2 = int_to_ptr.vmem [resolvable:$true] %s217_s2  ;;  %s230_s10 = int_to_ptr.vmem [resolvable:$true] %s229_s10 }
  0x7e   :  { %s7261_s11 = scalar_lea.vmem %s218_s2, 16  ;;  %s7265_s0 = scalar_lea.vmem %s218_s2, 32 }
  0x7f   :  { %p7262_p6 = scmp.ne.s32.totalorder %s218_s2, %s7261_s11  ;;  %p7266_p7 = scmp.lt.s32.totalorder %s218_s2, %s218_s2 }
  0x80   :  { %p7267_p8 = scmp.lt.s32.totalorder %s7265_s0, %s7261_s11 }
  0x82   :  { %p7268_p9 = por %p7267_p8, %p7266_p7 }
  0x84   :  { %p7269_p10 = pnand %p7268_p9, %p7262_p6 }
  0x86   :  { %7272 = shalt.err (!%p7269_p10)
}
  0x87   :  { %220 = dma.hbm_to_vmem [thread:$0]  %s7576_s14, 16, %s218_s2, [#allocation8]  }
  0x88   :  { %s7281_s19 = scalar_lea.vmem %s230_s10, 16  ;;  %s7285_s15 = scalar_lea.vmem %s230_s10, 32 }
  0x89   :  { %p7282_p11 = scmp.ne.s32.totalorder %s230_s10, %s7281_s19  ;;  %p7286_p12 = scmp.lt.s32.totalorder %s230_s10, %s230_s10 }
  0x8a   :  { %p7287_p13 = scmp.lt.s32.totalorder %s7285_s15, %s7281_s19 }
  0x8c   :  { %p7288_p0 = por %p7287_p13, %p7286_p12 }
  0x8e   :  { %p7289_p1 = pnand %p7288_p0, %p7282_p11 }
  0x90   :  { %7292 = shalt.err (!%p7289_p1)
}
  0x91   :  { %232 = dma.hbm_to_vmem [thread:$0]  %s7586_s3, 16, %s230_s10, [#allocation11]  }
  0x92   :  { %7293 = dma.done.wait [#allocation3], 16  }
  0x93   :  { %7294 = vsyncadd [#allocation3], 4294967280 }
  0x94   :  { %7295 = dma.done.wait [#allocation5], 32  }
  0x95   :  { %7296 = vsyncadd [#allocation5], 4294967264 }
  0x96   :  { %7297 = dma.done.wait [#allocation8], 32  }
  0x97   :  { %7298 = vsyncadd [#allocation8], 4294967264 }
  0x98   :  { %7299 = dma.done.wait [#allocation11], 16  }
  0x99   :  { %7300 = vsyncadd [#allocation11], 4294967280  ;;  %v7351_v0 = vmov 0.0   ;;  %vm7352_vm0 = vmmov 0   ;;  %v254_v1 = vld [vmem:[%s7441_s6 + $0x8] sm:$0xff]  ;;  %v253_v2 = vld [vmem:[%s7441_s6] sm:$0xff] }
  0x9a   :  { %6551 = vmatprep.subr.mxu0 %v7351_v0  ;;  %6555 = vmatprep.mubr.msk.f32.mxu0 %vm7352_vm0, %v7351_v0  ;;  %v7613_v3 = vld [vmem:[%s7386_s13] sm:$0xff]  ;;  %vm265_vm1 = vcmask 130048   ;;  %vm342_vm2 = vcmask 31744   ;;  %s7353_s13 = smov 108   ;;  %s7354_s3 = smov 112   ;;  %vm418_vm3 = vcmask 64512  }
  0x9b   :  { %6558 = vmatprep.subr.mxu1 %v7351_v0  ;;  %6560 = vmatprep.mubr.msk.f32.mxu1 %vm7352_vm0, %v7351_v0  ;;  %v6215_v4 = vld [vmem:[%s7446_s12] ss:$0 sm:$0xff]  ;;  %s7355_s8 = smov 120   ;;  %s7356_s14 = smov 124   ;;  %vm1018_vm4 = vcmask 97280   ;;  %vm2074_vm5 = vcmask 523264  }
  0x9c   :  { %6552 = vmatpush3.msra.mxu0 %v254_v1  ;;  %s7357_s6 = smov 116   ;;  %s7358_s12 = smov 104   ;;  %vm5768_vm6 = vcmask 1043456   ;;  %vm5847_vm7 = vcmask 15360   ;;  %vm6156_vm8 = vcmask 39936  }
  0x9d   :  { %6553 = vmatprep.subr.mxu0 %v7351_v0  ;;  %s7359_s16 = smov 100   ;;  %s7360_s18 = smov 92  }
  0x9e   :  { %6554 = vmatpush3.msra.mxu0 %v253_v2  ;;  %s7361_s22 = smov 96   ;;  %s7362_s23 = smov 88  }
  0x9f   :  { %6556 = vmatmul.mubr.msk.f32.vlgmr.msra.gmra.mxu0 %vm265_vm1, %v7613_v3  ;;  %6563 = vmatprep.subr.mxu0 %v7351_v0  ;;  %s7363_s26 = smov 84   ;;  %s7366_s28 = smov 12  }
  0xa0   :  { %6565 = vmatprep.mubr.msk.f32.mxu0 %vm7352_vm0, %v7351_v0  ;;  %s8463_s30 = sld [smem:[#allocation16_spill]] }
  0xa1   :  { %s8464_s1 = sld [smem:[#allocation18_spill]] }
  0xa2   :  { %s8465_s29 = sld [smem:[#allocation20_spill]] }
  0xa3   :  { %s8466_s2 = sld [smem:[#allocation24_spill]] }
  0xa4   :  { %s8467_s7 = sld [smem:[#allocation21_spill]] }
  0xa5   :  { %s8468_s10 = sld [smem:[#allocation22_spill]] }
  0xa6   :  { %s8469_s11 = sld [smem:[#allocation34_spill]] }
  0xa7   :  { %s8470_s0 = sld [smem:[#allocation26_spill]] }
  0xa8   :  { %s8471_s19 = sld [smem:[#allocation35_spill]] }
  0xa9   :  { %s8472_s15 = sld [smem:[#allocation25_spill]] }
 0x15f   :  { %v335_v5 = vpop.f32.mrf.mxu0 }
 0x160   :  { %v7622_v6 = vadd.f32 %v6215_v4, %v335_v5  ;;  %v7688_v4 = vld [vmem:[%s7381_s9] sm:$0xff]  ;;  %s7364_s9 = smov 4  }
 0x161   :  { %v6557_v7 = vpop.f32.mrf.mxu0  ;;  %v1131_v5 = vld [vmem:[%s7376_s5] sm:$0xff] }
 0x162   :  { %506 = vrot.lane.b32.xlu1 %v7622_v6, %s7353_s13  ;;  %340 = vrot.lane.b32.xlu0 %v7622_v6, %s7354_s3  ;;  %v7693_v7 = vld [vmem:[%s7391_s17 + $0x8] sm:$0xff] }
 0x163   :  { %6559 = vmatpush3.xpose.msk.msra.mxu1 %vm342_vm2, %v7622_v6 }
 0x164   :  { %6568 = vmatprep.subr.mxu1 %v7351_v0 }
 0x166   :  { %674 = vrot.lane.b32.xlu1 %v7622_v6, %s7355_s8  ;;  %508 = vrot.lane.b32.xlu0 %v7622_v6, %s7356_s14 }
 0x16a   :  { %840 = vrot.lane.b32.xlu1 %v7622_v6, %s7357_s6  ;;  %672 = vrot.lane.b32.xlu0 %v7622_v6, %s7358_s12 }
 0x16e   :  { %838 = vrot.lane.b32.xlu0 %v7622_v6, %s7359_s16 }
 0x1d4   :  { %v507_v8 = vpop.permute.xlu1 %506  ;;  %v341_v9 = vpop.permute.xlu0 %340 }
 0x1d5   :  { %6561 = vmatmul.mubr.msk.f32.vlgmr.msra.gmra.mxu1 %vm342_vm2, %v341_v9  ;;  %v7700_v9 = vadd.f32 %v1131_v5, %v7688_v4 }
 0x1d6   :  { %6570 = vmatprep.mubr.msk.f32.mxu1 %vm7352_vm0, %v7351_v0 }
 0x1d8   :  { %v509_v10 = vpop.permute.xlu0 %508  ;;  %v675_v11 = vpop.permute.xlu1 %674 }
 0x1d9   :  { %6569 = vmatpush3.xpose.msk.msra.mxu1 %vm342_vm2, %v509_v10 }
 0x1da   :  { %6578 = vmatprep.subr.mxu1 %v7351_v0 }
 0x1dc   :  { %6571 = vmatmul.mubr.msk.f32.vlgmr.msra.gmra.mxu1 %vm342_vm2, %v507_v8  ;;  %v673_v12 = vpop.permute.xlu0 %672  ;;  %v841_v13 = vpop.permute.xlu1 %840  ;;  %v7697_v8 = vld [vmem:[%s7391_s17] sm:$0xff]  ;;  %s7365_s17 = smov 8  }
 0x1dd   :  { %6579 = vmatpush3.xpose.msk.msra.mxu1 %vm342_vm2, %v675_v11  ;;  %6580 = vmatprep.mubr.msk.f32.mxu1 %vm7352_vm0, %v7351_v0 }
 0x1de   :  { %6588 = vmatprep.subr.mxu1 %v7351_v0 }
 0x1e0   :  { %6581 = vmatmul.mubr.msk.f32.vlgmr.msra.gmra.mxu1 %vm342_vm2, %v673_v12  ;;  %v839_v14 = vpop.permute.xlu0 %838 }
 0x1e1   :  { %6589 = vmatpush3.xpose.msk.msra.mxu1 %vm342_vm2, %v841_v13  ;;  %6590 = vmatprep.mubr.msk.f32.mxu1 %vm7352_vm0, %v7351_v0 }
 0x1e2   :  { %6598 = vmatprep.subr.mxu1 %v7351_v0 }
 0x1e4   :  { %6591 = vmatmul.mubr.msk.f32.vlgmr.msra.gmra.mxu1 %vm342_vm2, %v839_v14  ;;  %v257_v14 = vld [vmem:[%s7451_s20 + $0x8] sm:$0xff] }
 0x1e5   :  { %6602 = vmatprep.mubr.msk.f32.mxu1 %vm7352_vm0, %v7351_v0  ;;  %6599 = vmatpush3.msra.mxu1 %v257_v14 }
 0x1e6   :  { %6600 = vmatprep.subr.mxu1 %v7351_v0 }
 0x295   :  { %v413_v15 = vpop.f32.mrf.mxu1 }
 0x296   :  { %v417_v16 = vmul.f32 0.5, %v413_v15  ;;  %v256_v15 = vld [vmem:[%s7451_s20] sm:$0xff]  ;;  %s8461_s20 = sld [smem:[#allocation17_spill]] }
 0x297   :  { %v6562_v17 = vpop.f32.mrf.mxu1  ;;  %6601 = vmatpush3.msra.mxu1 %v256_v15 }
 0x298   :  { %v419_v18 = vsel %vm418_vm3, %v417_v16, -inf  ;;  %6612 = vmatprep.subr.mxu1 %v7351_v0 }
 0x299   :  { %420 = vmax.xlane.f32.xlu1 %v419_v18 }
 0x29c   :  { %v580_v19 = vpop.f32.mrf.mxu1 }
 0x29d   :  { %v584_v20 = vmul.f32 0.5, %v580_v19 }
 0x29e   :  { %v6572_v21 = vpop.f32.mrf.mxu1 }
 0x29f   :  { %v585_v22 = vsel %vm418_vm3, %v584_v20, -inf }
 0x2a0   :  { %586 = vmax.xlane.f32.xlu0 %v585_v22  ;;  %v746_v23 = vpop.f32.mrf.mxu1 }
 0x2a1   :  { %v750_v24 = vmul.f32 0.5, %v746_v23 }
 0x2a2   :  { %v6582_v25 = vpop.f32.mrf.mxu1 }
 0x2a3   :  { %v751_v26 = vsel %vm418_vm3, %v750_v24, -inf }
 0x2a4   :  { %752 = vmax.xlane.f32.xlu0 %v751_v26  ;;  %v912_v27 = vpop.f32.mrf.mxu1 }
 0x2a5   :  { %v916_v28 = vmul.f32 0.5, %v912_v27 }
 0x2a6   :  { %v6592_v29 = vpop.f32.mrf.mxu1 }
 0x2a7   :  { %v917_v30 = vsel %vm418_vm3, %v916_v28, -inf }
 0x2a8   :  { %918 = vmax.xlane.f32.xlu1 %v917_v30 }
 0x2b9   :  { %596 = vrot.lane.b32.xlu1 %v7622_v6, %s7360_s18 }
 0x322   :  { %v421_v31 = vpop.xlane.xlu1 %420 }
 0x323   :  { %v422_v32 = vsub.f32 %v417_v16, %v421_v31 }
 0x325   :  { %v423_v33 = vmul.f32 1.442695, %v422_v32 }
 0x327   :  { %7075 = vpow2.f32 %v423_v33 }
 0x329   :  { %v587_v34 = vpop.xlane.xlu0 %586 }
 0x32a   :  { %v588_v35 = vsub.f32 %v584_v20, %v587_v34  ;;  %v7720_v20 = vld [vmem:[%s7396_s21] ss:$0 sm:$0xff]  ;;  %s8460_s21 = sld [smem:[#allocation23_spill]] }
 0x32c   :  { %v589_v36 = vmul.f32 1.442695, %v588_v35 }
 0x32d   :  { %v753_v46 = vpop.xlane.xlu0 %752 }
 0x32e   :  { %7077 = vpow2.f32 %v589_v36  ;;  %v754_v47 = vsub.f32 %v750_v24, %v753_v46 }
 0x330   :  { %v755_v48 = vmul.f32 1.442695, %v754_v47 }
 0x331   :  { %v919_v37 = vpop.xlane.xlu1 %918 }
 0x332   :  { %v920_v38 = vsub.f32 %v916_v28, %v919_v37 }
 0x334   :  { %v7076_v39 = vpop.eup %7075  ;;  %v921_v40 = vmul.f32 1.442695, %v920_v38 }
 0x335   :  { %v425_v41 = vsel %vm418_vm3, %v7076_v39, 0.0  ;;  %v597_v52 = vpop.permute.xlu1 %596 }
 0x336   :  { %7079 = vpow2.f32 %v921_v40  ;;  %426 = vadd.xlane.f32.xlu0 %v425_v41 }
 0x337   :  { %7081 = vpow2.f32 %v755_v48 }
 0x33b   :  { %v7078_v42 = vpop.eup %7077 }
 0x33c   :  { %v591_v43 = vsel %vm418_vm3, %v7078_v42, 0.0 }
 0x33d   :  { %592 = vadd.xlane.f32.xlu1 %v591_v43 }
 0x343   :  { %v7080_v44 = vpop.eup %7079 }
 0x344   :  { %v923_v45 = vsel %vm418_vm3, %v7080_v44, 0.0  ;;  %v7082_v49 = vpop.eup %7081 }
 0x345   :  { %924 = vadd.xlane.f32.xlu1 %v923_v45  ;;  %v757_v50 = vsel %vm418_vm3, %v7082_v49, 0.0 }
 0x34c   :  { %430 = vrot.lane.b32.xlu0 %v7622_v6, %s7361_s22 }
 0x356   :  { %762 = vrot.lane.b32.xlu1 %v7622_v6, %s7362_s23 }
 0x36b   :  { %758 = vadd.xlane.f32.xlu0 %v757_v50 }
 0x381   :  { %928 = vrot.lane.b32.xlu0 %v7622_v6, %s7363_s26 }
 0x3bf   :  { %v427_v51 = vpop.xlane.xlu0 %426 }
 0x3c0   :  { %7083 = vrcp.f32 %v427_v51 }
 0x3c3   :  { %v431_v53 = vpop.permute.xlu0 %430 }
 0x3c4   :  { %6564 = vmatpush3.msra.mxu0 %v431_v53 }
 0x3c5   :  { %6573 = vmatprep.subr.mxu0 %v7351_v0 }
 0x3c6   :  { %v593_v54 = vpop.xlane.xlu1 %592 }
 0x3c7   :  { %7085 = vrcp.f32 %v593_v54 }
 0x3cd   :  { %v7084_v55 = vpop.eup %7083 }
 0x3ce   :  { %v429_v56 = vmul.f32 %v7084_v55, %v7076_v39  ;;  %v925_v57 = vpop.xlane.xlu1 %924 }
 0x3d0   :  { %6566 = vmatmul.mubr.msk.f32.vlgmr.msra.gmra.mxu0 %vm418_vm3, %v429_v56 }
 0x3d1   :  { %6574 = vmatpush3.msra.mxu0 %v597_v52  ;;  %6575 = vmatprep.mubr.msk.f32.mxu0 %vm7352_vm0, %v7351_v0 }
 0x3d2   :  { %6583 = vmatprep.subr.mxu0 %v7351_v0  ;;  %v763_v60 = vpop.permute.xlu1 %762 }
 0x3d4   :  { %v7086_v58 = vpop.eup %7085 }
 0x3d5   :  { %v595_v59 = vmul.f32 %v7086_v58, %v7078_v42 }
 0x3d7   :  { %6576 = vmatmul.mubr.msk.f32.vlgmr.msra.gmra.mxu0 %vm418_vm3, %v595_v59 }
 0x3d8   :  { %6584 = vmatpush3.msra.mxu0 %v763_v60  ;;  %6585 = vmatprep.mubr.msk.f32.mxu0 %vm7352_vm0, %v7351_v0 }
 0x3d9   :  { %6593 = vmatprep.subr.mxu0 %v7351_v0 }
 0x3f4   :  { %v759_v61 = vpop.xlane.xlu0 %758 }
 0x3f5   :  { %7087 = vrcp.f32 %v759_v61 }
 0x3f6   :  { %7089 = vrcp.f32 %v925_v57 }
 0x3f8   :  { %v929_v2 = vpop.permute.xlu0 %928 }
 0x402   :  { %v7088_v62 = vpop.eup %7087 }
 0x403   :  { %v761_v63 = vmul.f32 %v7088_v62, %v7082_v49  ;;  %v7090_v1 = vpop.eup %7089 }
 0x404   :  { %v927_v6 = vmul.f32 %v7090_v1, %v7080_v44 }
 0x405   :  { %6586 = vmatmul.mubr.msk.f32.vlgmr.msra.gmra.mxu0 %vm418_vm3, %v761_v63 }
 0x406   :  { %6594 = vmatpush3.msra.mxu0 %v929_v2  ;;  %6595 = vmatprep.mubr.msk.f32.mxu0 %vm7352_vm0, %v7351_v0 }
 0x407   :  { %6605 = vmatprep.subr.mxu0 %v7351_v0 }
 0x409   :  { %6596 = vmatmul.mubr.msk.f32.vlgmr.msra.gmra.mxu0 %vm418_vm3, %v927_v6 }
 0x40a   :  { %6606 = vmatpush3.msra.mxu0 %v7693_v7  ;;  %6609 = vmatprep.mubr.msk.f32.mxu0 %vm7352_vm0, %v7351_v0 }
 0x40b   :  { %6607 = vmatprep.subr.mxu0 %v7351_v0 }
 0x40c   :  { %6608 = vmatpush3.msra.mxu0 %v7697_v8 }
 0x40d   :  { %6610 = vmatmul.mubr.msk.f32.vlgmr.msra.gmra.mxu0 %vm265_vm1, %v7700_v9  ;;  %6617 = vmatprep.subr.mxu0 %v7351_v0 }
 0x40e   :  { %6619 = vmatprep.mubr.msk.f32.mxu0 %vm7352_vm0, %v7351_v0 }
 0x490   :  { %v502_v10 = vpop.f32.mrf.mxu0 }
 0x492   :  { %v6567_v11 = vpop.f32.mrf.mxu0 }
 0x497   :  { %v668_v12 = vpop.f32.mrf.mxu0 }
 0x498   :  { %1005 = vrot.lane.b32.xlu1 %v668_v12, %s7364_s9 }
 0x499   :  { %v6577_v13 = vpop.f32.mrf.mxu0 }
 0x4c5   :  { %v834_v16 = vpop.f32.mrf.mxu0 }
 0x4c6   :  { %1009 = vrot.lane.b32.xlu0 %v834_v16, %s7365_s17 }
 0x4c7   :  { %v6587_v17 = vpop.f32.mrf.mxu0 }
 0x4c9   :  { %v1000_v18 = vpop.f32.mrf.mxu0 }
 0x4ca   :  { %1013 = vrot.lane.b32.xlu1 %v1000_v18, %s7366_s28 }
 0x4cb   :  { %v6597_v19 = vpop.f32.mrf.mxu0 }
 0x4cd   :  { %v1214_v21 = vpop.f32.mrf.mxu0 }
 0x4ce   :  { %v7723_v22 = vadd.f32 %v7720_v20, %v1214_v21 }
 0x4cf   :  { %v6611_v23 = vpop.f32.mrf.mxu0 }
 0x4d0   :  { %1385 = vrot.lane.b32.xlu1 %v7723_v22, %s7356_s14  ;;  %1219 = vrot.lane.b32.xlu0 %v7723_v22, %s7354_s3 }
 0x4d4   :  { %1551 = vrot.lane.b32.xlu1 %v7723_v22, %s7355_s8  ;;  %1383 = vrot.lane.b32.xlu0 %v7723_v22, %s7353_s13 }
 0x4d8   :  { %1717 = vrot.lane.b32.xlu1 %v7723_v22, %s7357_s6  ;;  %1549 = vrot.lane.b32.xlu0 %v7723_v22, %s7358_s12 }
 0x4dc   :  { %1715 = vrot.lane.b32.xlu0 %v7723_v22, %s7359_s16 }
 0x50a   :  { %v1006_v24 = vpop.permute.xlu1 %1005 }
 0x50b   :  { %v1016_v26 = vsel %vm342_vm2, %v502_v10, %v1006_v24 }
 0x538   :  { %v1010_v25 = vpop.permute.xlu0 %1009 }
 0x539   :  { %v1017_v27 = vsel %vm418_vm3, %v1016_v26, %v1010_v25 }
 0x53c   :  { %v1014_v28 = vpop.permute.xlu1 %1013 }
 0x53d   :  { %v1019_v29 = vsel %vm1018_vm4, %v1017_v27, %v1014_v28 }
 0x53e   :  { %6603 = vmatmul.mubr.msk.f32.vlgmr.msra.gmra.mxu1 %vm265_vm1, %v1019_v29 }
 0x53f   :  { %6613 = vmatpush3.xpose.msk.msra.mxu1 %vm342_vm2, %v7723_v22  ;;  %6614 = vmatprep.mubr.msk.f32.mxu1 %vm7352_vm0, %v7351_v0 }
 0x540   :  { %6622 = vmatprep.subr.mxu1 %v7351_v0 }
 0x542   :  { %v1386_v30 = vpop.permute.xlu1 %1385  ;;  %v1220_v31 = vpop.permute.xlu0 %1219 }
 0x543   :  { %6615 = vmatmul.mubr.msk.f32.vlgmr.msra.gmra.mxu1 %vm342_vm2, %v1220_v31 }
 0x544   :  { %6623 = vmatpush3.xpose.msk.msra.mxu1 %vm342_vm2, %v1386_v30  ;;  %6624 = vmatprep.mubr.msk.f32.mxu1 %vm7352_vm0, %v7351_v0 }
 0x545   :  { %6632 = vmatprep.subr.mxu1 %v7351_v0 }
 0x546   :  { %v1552_v32 = vpop.permute.xlu1 %1551  ;;  %v1384_v33 = vpop.permute.xlu0 %1383 }
 0x547   :  { %6625 = vmatmul.mubr.msk.f32.vlgmr.msra.gmra.mxu1 %vm342_vm2, %v1384_v33 }
 0x548   :  { %6633 = vmatpush3.xpose.msk.msra.mxu1 %vm342_vm2, %v1552_v32  ;;  %6634 = vmatprep.mubr.msk.f32.mxu1 %vm7352_vm0, %v7351_v0 }
 0x549   :  { %6642 = vmatprep.subr.mxu1 %v7351_v0 }
 0x54a   :  { %v1718_v34 = vpop.permute.xlu1 %1717  ;;  %v1550_v35 = vpop.permute.xlu0 %1549 }
 0x54b   :  { %6635 = vmatmul.mubr.msk.f32.vlgmr.msra.gmra.mxu1 %vm342_vm2, %v1550_v35 }
 0x54c   :  { %6643 = vmatpush3.xpose.msk.msra.mxu1 %vm342_vm2, %v1718_v34  ;;  %6644 = vmatprep.mubr.msk.f32.mxu1 %vm7352_vm0, %v7351_v0 }
 0x54d   :  { %6652 = vmatprep.subr.mxu1 %v7351_v0 }
 0x54e   :  { %v1716_v36 = vpop.permute.xlu0 %1715 }
 0x54f   :  { %6645 = vmatmul.mubr.msk.f32.vlgmr.msra.gmra.mxu1 %vm342_vm2, %v1716_v36 }
 0x550   :  { %6656 = vmatprep.mubr.msk.f32.mxu1 %vm7352_vm0, %v7351_v0 }
 0x5fe   :  { %v7766_v37 = vpop.f32.mrf.mxu1 }
 0x600   :  { %v6604_v38 = vpop.f32.mrf.mxu1 }
 0x603   :  { %v1291_v39 = vpop.f32.mrf.mxu1 }
 0x604   :  { %v1295_v40 = vmul.f32 0.5, %v1291_v39  ;;  %v7802_v39 = vld [vmem:[%s7401_s25 + $0x8] sm:$0xff] }
 0x605   :  { %v6616_v41 = vpop.f32.mrf.mxu1  ;;  %6653 = vmatpush3.msra.mxu1 %v7802_v39 }
 0x606   :  { %v1296_v42 = vsel %vm418_vm3, %v1295_v40, -inf  ;;  %6654 = vmatprep.subr.mxu1 %v7351_v0 }
 0x607   :  { %1297 = vmax.xlane.f32.xlu1 %v1296_v42  ;;  %v1457_v43 = vpop.f32.mrf.mxu1 }
 0x608   :  { %v1461_v44 = vmul.f32 0.5, %v1457_v43 }
 0x609   :  { %v6626_v45 = vpop.f32.mrf.mxu1 }
 0x60a   :  { %v1462_v46 = vsel %vm418_vm3, %v1461_v44, -inf  ;;  %v6229_v45 = vld [vmem:[%s8460_s21] ss:$0 sm:$0xff]  ;;  %s8473_s21 = sld [smem:[#allocation27_spill]] }
 0x60b   :  { %1463 = vmax.xlane.f32.xlu0 %v1462_v46  ;;  %v1623_v47 = vpop.f32.mrf.mxu1  ;;  %v1096_v46 = vadd.f32 %v6229_v45, %v7766_v37  ;;  %v7831_v37 = vld [vmem:[%s8461_s20] sm:$0xff] }
 0x60c   :  { %v1627_v48 = vmul.f32 0.5, %v1623_v47  ;;  %v7913_v45 = vld [vmem:[%s8468_s10] ss:$0 sm:$0xff] }
 0x60d   :  { %v6636_v49 = vpop.f32.mrf.mxu1  ;;  %v7816_v47 = vadd.f32 %v1096_v46, %v7613_v3  ;;  %v7827_v3 = vld [vmem:[%s8461_s20 + $0x8] sm:$0xff]  ;;  %s8474_s20 = sld [smem:[#allocation28_spill]] }
 0x60e   :  { %v1628_v50 = vsel %vm418_vm3, %v1627_v48, -inf }
 0x60f   :  { %1629 = vmax.xlane.f32.xlu0 %v1628_v50  ;;  %v1789_v51 = vpop.f32.mrf.mxu1 }
 0x610   :  { %v1793_v52 = vmul.f32 0.5, %v1789_v51 }
 0x611   :  { %v6646_v53 = vpop.f32.mrf.mxu1 }
 0x612   :  { %v1794_v54 = vsel %vm418_vm3, %v1793_v52, -inf }
 0x613   :  { %1795 = vmax.xlane.f32.xlu1 %v1794_v54 }
 0x624   :  { %1473 = vrot.lane.b32.xlu1 %v7723_v22, %s7360_s18 }
 0x690   :  { %v1298_v55 = vpop.xlane.xlu1 %1297 }
 0x691   :  { %v1299_v56 = vsub.f32 %v1295_v40, %v1298_v55  ;;  %v7807_v40 = vld [vmem:[%s7401_s25] sm:$0xff]  ;;  %s8462_s25 = sld [smem:[#allocation19_spill]] }
 0x692   :  { %6655 = vmatpush3.msra.mxu1 %v7807_v40 }
 0x693   :  { %v1300_v57 = vmul.f32 1.442695, %v1299_v56  ;;  %6666 = vmatprep.subr.mxu1 %v7351_v0 }
 0x694   :  { %v1464_v58 = vpop.xlane.xlu0 %1463 }
 0x695   :  { %7091 = vpow2.f32 %v1300_v57  ;;  %v1465_v59 = vsub.f32 %v1461_v44, %v1464_v58 }
 0x697   :  { %v1466_v60 = vmul.f32 1.442695, %v1465_v59  ;;  %v7836_v55 = vld [vmem:[%s8462_s25 + $0x38] sm:$0xff]  ;;  %v7839_v56 = vld [vmem:[%s8462_s25 + $0x30] sm:$0xff]  ;;  %v7845_v57 = vld [vmem:[%s8462_s25 + $0x28] sm:$0xff] }
 0x698   :  { %v1630_v12 = vpop.xlane.xlu0 %1629  ;;  %v7850_v58 = vld [vmem:[%s8462_s25 + $0x20] sm:$0xff]  ;;  %v7855_v59 = vld [vmem:[%s8462_s25 + $0x18] sm:$0xff] }
 0x699   :  { %7093 = vpow2.f32 %v1466_v60  ;;  %v1631_v13 = vsub.f32 %v1627_v48, %v1630_v12  ;;  %v1102_v48 = vsel %vm265_vm1, %v7816_v47, 0.0  ;;  %v7862_v60 = vld [vmem:[%s8463_s30] ss:$0 sm:$0xff]  ;;  %s8476_s30 = sld [smem:[#allocation30_spill]] }
 0x69b   :  { %v1632_v14 = vmul.f32 1.442695, %v1631_v13 }
 0x69c   :  { %v1796_v61 = vpop.xlane.xlu1 %1795 }
 0x69d   :  { %v1797_v62 = vsub.f32 %v1793_v52, %v1796_v61 }
 0x69f   :  { %v1798_v63 = vmul.f32 1.442695, %v1797_v62 }
 0x6a0   :  { %v1474_v17 = vpop.permute.xlu1 %1473 }
 0x6a1   :  { %7095 = vpow2.f32 %v1798_v63 }
 0x6a2   :  { %v7092_v1 = vpop.eup %7091  ;;  %7097 = vpow2.f32 %v1632_v14  ;;  %v7892_v14 = vld [vmem:[%s8465_s29] ss:$0 sm:$0xff]  ;;  %s8478_s29 = sld [smem:[#allocation31_spill]] }
 0x6a3   :  { %v1302_v2 = vsel %vm418_vm3, %v7092_v1, 0.0 }
 0x6a4   :  { %1303 = vadd.xlane.f32.xlu0 %v1302_v2  ;;  %v7870_v2 = vld [vmem:[%s8462_s25 + $0x10] sm:$0xff] }
 0x6a6   :  { %v7094_v5 = vpop.eup %7093 }
 0x6a7   :  { %v1468_v6 = vsel %vm418_vm3, %v7094_v5, 0.0 }
 0x6a8   :  { %1469 = vadd.xlane.f32.xlu1 %v1468_v6  ;;  %v7879_v6 = vld [vmem:[%s8462_s25] sm:$0xff] }
 0x6ae   :  { %v7096_v10 = vpop.eup %7095 }
 0x6af   :  { %v1800_v11 = vsel %vm418_vm3, %v7096_v10, 0.0  ;;  %v7098_v15 = vpop.eup %7097 }
 0x6b0   :  { %1801 = vadd.xlane.f32.xlu1 %v1800_v11  ;;  %v1634_v16 = vsel %vm418_vm3, %v7098_v15, 0.0 }
 0x6ba   :  { %1307 = vrot.lane.b32.xlu0 %v7723_v22, %s7361_s22 }
 0x6c1   :  { %1639 = vrot.lane.b32.xlu1 %v7723_v22, %s7362_s23 }
 0x6d9   :  { %1635 = vadd.xlane.f32.xlu0 %v1634_v16 }
 0x6ef   :  { %1805 = vrot.lane.b32.xlu0 %v7723_v22, %s7363_s26 }
 0x72d   :  { %v1304_v18 = vpop.xlane.xlu0 %1303 }
 0x72e   :  { %7099 = vrcp.f32 %v1304_v18 }
 0x731   :  { %v1308_v19 = vpop.permute.xlu0 %1307  ;;  %v1470_v21 = vpop.xlane.xlu1 %1469 }
 0x732   :  { %7101 = vrcp.f32 %v1470_v21  ;;  %6618 = vmatpush3.msra.mxu0 %v1308_v19 }
 0x733   :  { %6627 = vmatprep.subr.mxu0 %v7351_v0 }
 0x739   :  { %v1802_v24 = vpop.xlane.xlu1 %1801 }
 0x73b   :  { %v7100_v23 = vpop.eup %7099 }
 0x73c   :  { %v1306_v25 = vmul.f32 %v7100_v23, %v7092_v1 }
 0x73d   :  { %v1640_v27 = vpop.permute.xlu1 %1639 }
 0x73e   :  { %6620 = vmatmul.mubr.msk.f32.vlgmr.msra.gmra.mxu0 %vm418_vm3, %v1306_v25 }
 0x73f   :  { %v7102_v26 = vpop.eup %7101  ;;  %6628 = vmatpush3.msra.mxu0 %v1474_v17  ;;  %6629 = vmatprep.mubr.msk.f32.mxu0 %vm7352_vm0, %v7351_v0 }
 0x740   :  { %6637 = vmatprep.subr.mxu0 %v7351_v0  ;;  %v1472_v22 = vmul.f32 %v7102_v26, %v7094_v5  ;;  %v7875_v5 = vld [vmem:[%s8462_s25 + $0x8] sm:$0xff]  ;;  %s8475_s25 = sld [smem:[#allocation29_spill]] }
 0x742   :  { %6630 = vmatmul.mubr.msk.f32.vlgmr.msra.gmra.mxu0 %vm418_vm3, %v1472_v22 }
 0x743   :  { %6638 = vmatpush3.msra.mxu0 %v1640_v27  ;;  %6639 = vmatprep.mubr.msk.f32.mxu0 %vm7352_vm0, %v7351_v0 }
 0x744   :  { %6647 = vmatprep.subr.mxu0 %v7351_v0 }
 0x762   :  { %v1636_v28 = vpop.xlane.xlu0 %1635 }
 0x763   :  { %7103 = vrcp.f32 %v1636_v28 }
 0x764   :  { %7105 = vrcp.f32 %v1802_v24 }
 0x766   :  { %v1806_v32 = vpop.permute.xlu0 %1805 }
 0x770   :  { %v7104_v29 = vpop.eup %7103 }
 0x771   :  { %v1638_v30 = vmul.f32 %v7104_v29, %v7098_v15  ;;  %v7106_v31 = vpop.eup %7105 }
 0x772   :  { %v1804_v33 = vmul.f32 %v7106_v31, %v7096_v10  ;;  %v7900_v31 = vld [vmem:[%s8466_s2 + $0x8] sm:$0xff] }
 0x773   :  { %6640 = vmatmul.mubr.msk.f32.vlgmr.msra.gmra.mxu0 %vm418_vm3, %v1638_v30 }
 0x774   :  { %6648 = vmatpush3.msra.mxu0 %v1806_v32  ;;  %6649 = vmatprep.mubr.msk.f32.mxu0 %vm7352_vm0, %v7351_v0  ;;  %v7904_v32 = vld [vmem:[%s8466_s2] sm:$0xff] }
 0x775   :  { %6659 = vmatprep.subr.mxu0 %v7351_v0 }
 0x777   :  { %6650 = vmatmul.mubr.msk.f32.vlgmr.msra.gmra.mxu0 %vm418_vm3, %v1804_v33 }
 0x778   :  { %6663 = vmatprep.mubr.msk.f32.mxu0 %vm7352_vm0, %v7351_v0  ;;  %6660 = vmatpush3.msra.mxu0 %v7827_v3 }
 0x779   :  { %6661 = vmatprep.subr.mxu0 %v7351_v0 }
 0x77a   :  { %6662 = vmatpush3.msra.mxu0 %v7831_v37 }
 0x77b   :  { %6685 = vmatprep.subr.mxu0 %v7351_v0 }
 0x7fe   :  { %v1379_v34 = vpop.f32.mrf.mxu0 }
 0x800   :  { %v6621_v35 = vpop.f32.mrf.mxu0 }
 0x802   :  { %v1545_v36 = vpop.f32.mrf.mxu0 }
 0x803   :  { %1882 = vrot.lane.b32.xlu1 %v1545_v36, %s7364_s9 }
 0x804   :  { %v6631_v38 = vpop.f32.mrf.mxu0 }
 0x833   :  { %v1711_v41 = vpop.f32.mrf.mxu0 }
 0x834   :  { %1886 = vrot.lane.b32.xlu0 %v1711_v41, %s7365_s17 }
 0x835   :  { %v6641_v42 = vpop.f32.mrf.mxu0 }
 0x837   :  { %v1877_v43 = vpop.f32.mrf.mxu0 }
 0x838   :  { %1890 = vrot.lane.b32.xlu1 %v1877_v43, %s7366_s28  ;;  %v7910_v43 = vld [vmem:[%s8467_s7] ss:$0 sm:$0xff] }
 0x839   :  { %v6651_v44 = vpop.f32.mrf.mxu0 }
 0x85c   :  { %1103 = vadd.xlane.f32.xlu1 %v1102_v48  ;;  %v7917_v48 = vld [vmem:[%s8469_s11] ss:$0 sm:$0xff] }
 0x875   :  { %v1883_v49 = vpop.permute.xlu1 %1882 }
 0x876   :  { %v1893_v51 = vsel %vm342_vm2, %v1379_v34, %v1883_v49 }
 0x8a6   :  { %v1887_v50 = vpop.permute.xlu0 %1886 }
 0x8a7   :  { %v1894_v52 = vsel %vm418_vm3, %v1893_v51, %v1887_v50  ;;  %v7921_v51 = vld [vmem:[%s8470_s0 + $0x8] sm:$0xff] }
 0x8aa   :  { %v1891_v53 = vpop.permute.xlu1 %1890 }
 0x8ab   :  { %v1895_v54 = vsel %vm1018_vm4, %v1894_v52, %v1891_v53  ;;  %v7924_v52 = vld [vmem:[%s8471_s19] ss:$0 sm:$0xff] }
 0x8ac   :  { %6657 = vmatmul.mubr.msk.f32.vlgmr.msra.gmra.mxu1 %vm265_vm1, %v1895_v54  ;;  %v7928_v53 = vld [vmem:[%s8470_s0] sm:$0xff] }
 0x8ad   :  { %6682 = vmatprep.mubr.msk.f32.mxu1 %vm7352_vm0, %v7351_v0  ;;  %6667 = vmatpush3.msra.mxu1 %v7836_v55 }
 0x8ae   :  { %6668 = vmatprep.subr.mxu1 %v7351_v0 }
 0x8af   :  { %6669 = vmatpush3.msra.mxu1 %v7839_v56 }
 0x8b0   :  { %6670 = vmatprep.subr.mxu1 %v7351_v0 }
 0x8b1   :  { %6671 = vmatpush3.msra.mxu1 %v7845_v57 }
 0x8b2   :  { %6672 = vmatprep.subr.mxu1 %v7351_v0 }
 0x8b3   :  { %6673 = vmatpush3.msra.mxu1 %v7850_v58 }
 0x8b4   :  { %6674 = vmatprep.subr.mxu1 %v7351_v0 }
 0x8b5   :  { %6675 = vmatpush3.msra.mxu1 %v7855_v59 }
 0x8b6   :  { %6676 = vmatprep.subr.mxu1 %v7351_v0 }
 0x8b7   :  { %6677 = vmatpush3.msra.mxu1 %v7870_v2 }
 0x8b8   :  { %6678 = vmatprep.subr.mxu1 %v7351_v0 }
 0x8b9   :  { %6679 = vmatpush3.msra.mxu1 %v7875_v5 }
 0x8ba   :  { %6680 = vmatprep.subr.mxu1 %v7351_v0 }
 0x8bb   :  { %6681 = vmatpush3.msra.mxu1 %v7879_v6 }
 0x8bc   :  { %6709 = vmatprep.subr.mxu1 %v7351_v0 }
 0x8e5   :  { %v1104_v21 = vpop.xlane.xlu1 %1103 }
 0x8e6   :  { %v1106_v23 = vmul.f32 0.0625, %v1104_v21 }
 0x8e8   :  { %v1107_v26 = vsub.f32 %v7816_v47, %v1106_v23 }
 0x8ea   :  { %v1108_v29 = vmul.f32 %v1107_v26, %v1107_v26 }
 0x8ec   :  { %v1109_v30 = vsel %vm265_vm1, %v1108_v29, 0.0 }
 0x96c   :  { %v1971_v61 = vpop.f32.mrf.mxu1 }
 0x96d   :  { %v1972_v62 = vadd.f32 %v7862_v60, %v1971_v61 }
 0x96e   :  { %v6658_v63 = vpop.f32.mrf.mxu1 }
 0x96f   :  { %v1975_v1 = vadd.f32 %v1972_v62, %v7700_v9  ;;  %v7885_v9 = vld [vmem:[%s8464_s1] ss:$0 sm:$0xff]  ;;  %s8477_s1 = sld [smem:[#allocation32_spill]] }
 0x970   :  { %v7945_v62 = vld [vmem:[%s8472_s15] ss:$0 sm:$0xff] }
 0x971   :  { %6664 = vmatmul.mubr.msk.f32.vlgmr.msra.gmra.mxu0 %vm265_vm1, %v1975_v1 }
 0x972   :  { %6689 = vmatprep.mubr.msk.f32.mxu0 %vm7352_vm0, %v7351_v0  ;;  %6686 = vmatpush3.msra.mxu0 %v7900_v31 }
 0x973   :  { %6687 = vmatprep.subr.mxu0 %v7351_v0 }
 0x974   :  { %6688 = vmatpush3.msra.mxu0 %v7904_v32 }
 0x975   :  { %6692 = vmatprep.subr.mxu0 %v7351_v0 }
 0xa31   :  { %v2063_v10 = vpop.f32.mrf.mxu0 }
 0xa32   :  { %v2064_v11 = vadd.f32 %v7885_v9, %v2063_v10 }
 0xa33   :  { %v6665_v12 = vpop.f32.mrf.mxu0 }
 0xa34   :  { %v2067_v13 = vmax.f32 %v2064_v11, 0.0  ;;  %v7951_v11 = vld [vmem:[%s8473_s21] ss:$0 sm:$0xff] }
 0xa36   :  { %6683 = vmatmul.mubr.msk.f32.vlgmr.msra.gmra.mxu1 %vm2074_vm5, %v2067_v13 }
 0xa37   :  { %6711 = vmatprep.mubr.msk.f32.mxu1 %vm7352_vm0, %v7351_v0 }
 0xaf6   :  { %v2144_v15 = vpop.f32.mrf.mxu1 }
 0xaf7   :  { %v2145_v16 = vadd.f32 %v7892_v14, %v2144_v15 }
 0xaf8   :  { %v6684_v17 = vpop.f32.mrf.mxu1 }
 0xaf9   :  { %v2148_v18 = vadd.f32 %v2145_v16, %v1975_v1 }
 0xafb   :  { %v2151_v19 = vsel %vm265_vm1, %v2148_v18, 0.0 }
 0xafc   :  { %2152 = vadd.xlane.f32.xlu0 %v2151_v19 }
 0xb85   :  { %v2153_v24 = vpop.xlane.xlu0 %2152 }
 0xb86   :  { %v2154_v25 = vmul.f32 0.0625, %v2153_v24 }
 0xb88   :  { %v2155_v22 = vsub.f32 %v2148_v18, %v2154_v25 }
 0xb8a   :  { %v2156_v27 = vmul.f32 %v2155_v22, %v2155_v22 }
 0xb8c   :  { %v2157_v28 = vsel %vm265_vm1, %v2156_v27, 0.0 }
 0xb8d   :  { %2158 = vadd.xlane.f32.xlu0 %v2157_v28 }
 0xb91   :  { %1110 = vadd.xlane.f32.xlu0 %v1109_v30 }
 0xc16   :  { %v2159_v33 = vpop.xlane.xlu0 %2158 }
 0xc17   :  { %v2160_v34 = vmul.f32 0.06666667, %v2159_v33 }
 0xc19   :  { %v2161_v35 = vadd.f32 1e-05, %v2160_v34 }
 0xc1a   :  { %v1111_v36 = vpop.xlane.xlu0 %1110 }
 0xc1b   :  { %7107 = vrsqrt.f32 %v2161_v35  ;;  %v1113_v38 = vmul.f32 0.06666667, %v1111_v36 }
 0xc1d   :  { %v1114_v41 = vadd.f32 1e-05, %v1113_v38 }
 0xc1f   :  { %7109 = vrsqrt.f32 %v1114_v41 }
 0xc28   :  { %v7108_v42 = vpop.eup %7107 }
 0xc29   :  { %v2163_v44 = vmul.f32 %v7108_v42, %v2155_v22 }
 0xc2b   :  { %v2170_v46 = vmul.f32 %v7910_v43, %v2163_v44 }
 0xc2c   :  { %v7110_v47 = vpop.eup %7109 }
 0xc2d   :  { %v1116_v49 = vmul.f32 %v7110_v47, %v1107_v26  ;;  %v2177_v50 = vadd.f32 %v7913_v45, %v2170_v46 }
 0xc2f   :  { %6690 = vmatmul.mubr.msk.f32.vlgmr.msra.gmra.mxu0 %vm265_vm1, %v2177_v50  ;;  %v1123_v54 = vmul.f32 %v7917_v48, %v1116_v49 }
 0xc30   :  { %6693 = vmatpush3.msra.mxu0 %v7921_v51  ;;  %6696 = vmatprep.mubr.msk.f32.mxu0 %vm7352_vm0, %v7351_v0 }
 0xc31   :  { %6694 = vmatprep.subr.mxu0 %v7351_v0  ;;  %v7936_v61 = vadd.f32 %v7924_v52, %v1123_v54 }
 0xc32   :  { %6695 = vmatpush3.msra.mxu0 %v7928_v53 }
 0xc33   :  { %6697 = vmatmul.mubr.msk.f32.vlgmr.msra.gmra.mxu0 %vm265_vm1, %v7936_v61  ;;  %6699 = vmatprep.subr.mxu0 %v7351_v0 }
 0xc34   :  { %6701 = vmatprep.mubr.msk.f32.mxu0 %vm7352_vm0, %v7351_v0 }
 0xcef   :  { %v2262_v63 = vpop.f32.mrf.mxu0 }
 0xcf0   :  { %v7948_v1 = vadd.f32 %v7945_v62, %v2262_v63 }
 0xcf1   :  { %v6691_v10 = vpop.f32.mrf.mxu0 }
 0xcf2   :  { %2511 = vrot.lane.b32.xlu1 %v7948_v1, %s7356_s14  ;;  %6700 = vmatpush3.xpose.msk.msra.mxu0 %vm342_vm2, %v7948_v1 }
 0xcf3   :  { %v2341_v12 = vpop.f32.mrf.mxu0  ;;  %6704 = vmatprep.subr.mxu0 %v7351_v0 }
 0xcf4   :  { %v2342_v13 = vadd.f32 %v7951_v11, %v2341_v12 }
 0xcf5   :  { %v6698_v15 = vpop.f32.mrf.mxu0 }
 0xcf6   :  { %2677 = vrot.lane.b32.xlu1 %v7948_v1, %s7355_s8  ;;  %2509 = vrot.lane.b32.xlu0 %v2342_v13, %s7356_s14 }
 0xcf7   :  { %6702 = vmatmul.mubr.msk.f32.vlgmr.msra.gmra.mxu0 %vm342_vm2, %v2342_v13 }
 0xcf8   :  { %6706 = vmatprep.mubr.msk.f32.mxu0 %vm7352_vm0, %v7351_v0 }
 0xcfa   :  { %2675 = vrot.lane.b32.xlu1 %v2342_v13, %s7355_s8  ;;  %2843 = vrot.lane.b32.xlu0 %v7948_v1, %s7357_s6 }
 0xcfe   :  { %2841 = vrot.lane.b32.xlu1 %v2342_v13, %s7357_s6 }
 0xd64   :  { %v2512_v16 = vpop.permute.xlu1 %2511 }
 0xd65   :  { %6710 = vmatpush3.xpose.msk.msra.mxu1 %vm342_vm2, %v2512_v16 }
 0xd66   :  { %6719 = vmatprep.subr.mxu1 %v7351_v0 }
 0xd68   :  { %v2678_v17 = vpop.permute.xlu1 %2677  ;;  %v2510_v18 = vpop.permute.xlu0 %2509 }
 0xd69   :  { %6712 = vmatmul.mubr.msk.f32.vlgmr.msra.gmra.mxu1 %vm342_vm2, %v2510_v18 }
 0xd6a   :  { %6720 = vmatpush3.xpose.msk.msra.mxu1 %vm342_vm2, %v2678_v17  ;;  %6721 = vmatprep.mubr.msk.f32.mxu1 %vm7352_vm0, %v7351_v0 }
 0xd6b   :  { %6729 = vmatprep.subr.mxu1 %v7351_v0 }
 0xd6c   :  { %v2676_v19 = vpop.permute.xlu1 %2675  ;;  %v2844_v21 = vpop.permute.xlu0 %2843 }
 0xd6d   :  { %6722 = vmatmul.mubr.msk.f32.vlgmr.msra.gmra.mxu1 %vm342_vm2, %v2676_v19 }
 0xd6e   :  { %6730 = vmatpush3.xpose.msk.msra.mxu1 %vm342_vm2, %v2844_v21  ;;  %6731 = vmatprep.mubr.msk.f32.mxu1 %vm7352_vm0, %v7351_v0 }
 0xd6f   :  { %6739 = vmatprep.subr.mxu1 %v7351_v0 }
 0xd70   :  { %v2842_v23 = vpop.permute.xlu1 %2841 }
 0xd71   :  { %6732 = vmatmul.mubr.msk.f32.vlgmr.msra.gmra.mxu1 %vm342_vm2, %v2842_v23 }
 0xd72   :  { %6743 = vmatprep.mubr.msk.f32.mxu1 %vm7352_vm0, %v7351_v0 }
 0xdb7   :  { %v2417_v24 = vpop.f32.mrf.mxu0 }
 0xdb8   :  { %v2421_v25 = vmul.f32 0.5, %v2417_v24 }
 0xdb9   :  { %v6703_v26 = vpop.f32.mrf.mxu0 }
 0xdba   :  { %v2422_v22 = vsel %vm418_vm3, %v2421_v25, -inf }
 0xdbb   :  { %2423 = vmax.xlane.f32.xlu0 %v2422_v22 }
 0xe29   :  { %v2583_v27 = vpop.f32.mrf.mxu1 }
 0xe2a   :  { %v2587_v28 = vmul.f32 0.5, %v2583_v27 }
 0xe2b   :  { %v6713_v29 = vpop.f32.mrf.mxu1 }
 0xe2c   :  { %v2588_v30 = vsel %vm418_vm3, %v2587_v28, -inf }
 0xe2d   :  { %2589 = vmax.xlane.f32.xlu1 %v2588_v30  ;;  %v2749_v33 = vpop.f32.mrf.mxu1 }
 0xe2e   :  { %v2753_v34 = vmul.f32 0.5, %v2749_v33 }
 0xe2f   :  { %v6723_v35 = vpop.f32.mrf.mxu1 }
 0xe30   :  { %v2754_v36 = vsel %vm418_vm3, %v2753_v34, -inf }
 0xe31   :  { %v2915_v38 = vpop.f32.mrf.mxu1  ;;  %2755 = vmax.xlane.f32.xlu0 %v2754_v36 }
 0xe32   :  { %v2919_v41 = vmul.f32 0.5, %v2915_v38 }
 0xe33   :  { %v6733_v42 = vpop.f32.mrf.mxu1 }
 0xe34   :  { %v2920_v44 = vsel %vm418_vm3, %v2919_v41, -inf }
 0xe35   :  { %2921 = vmax.xlane.f32.xlu0 %v2920_v44 }
 0xe3e   :  { %2433 = vrot.lane.b32.xlu1 %v7948_v1, %s7354_s3 }
 0xe44   :  { %v2424_v46 = vpop.xlane.xlu0 %2423 }
 0xe45   :  { %v2425_v47 = vsub.f32 %v2421_v25, %v2424_v46 }
 0xe47   :  { %v2426_v49 = vmul.f32 1.442695, %v2425_v47 }
 0xe49   :  { %7111 = vpow2.f32 %v2426_v49 }
 0xe56   :  { %v7112_v50 = vpop.eup %7111 }
 0xe57   :  { %v2428_v54 = vsel %vm418_vm3, %v7112_v50, 0.0 }
 0xe62   :  { %2429 = vadd.xlane.f32.xlu1 %v2428_v54 }
 0xeb6   :  { %v2590_v63 = vpop.xlane.xlu1 %2589 }
 0xeb7   :  { %v2591_v10 = vsub.f32 %v2587_v28, %v2590_v63  ;;  %v8017_v63 = vld [vmem:[%s8474_s20 + $0x8] sm:$0xff] }
 0xeb8   :  { %6740 = vmatpush3.msra.mxu1 %v8017_v63 }
 0xeb9   :  { %v2592_v12 = vmul.f32 1.442695, %v2591_v10  ;;  %6741 = vmatprep.subr.mxu1 %v7351_v0  ;;  %v8022_v10 = vld [vmem:[%s8474_s20] sm:$0xff] }
 0xeba   :  { %v2434_v13 = vpop.permute.xlu1 %2433  ;;  %v2756_v15 = vpop.xlane.xlu0 %2755  ;;  %6742 = vmatpush3.msra.mxu1 %v8022_v10 }
 0xebb   :  { %7113 = vpow2.f32 %v2592_v12  ;;  %v2757_v16 = vsub.f32 %v2753_v34, %v2756_v15  ;;  %6705 = vmatpush3.msra.mxu0 %v2434_v13  ;;  %6753 = vmatprep.subr.mxu1 %v7351_v0 }
 0xebc   :  { %6714 = vmatprep.subr.mxu0 %v7351_v0 }
 0xebd   :  { %v2758_v17 = vmul.f32 1.442695, %v2757_v16 }
 0xebe   :  { %v2922_v18 = vpop.xlane.xlu0 %2921 }
 0xebf   :  { %7115 = vpow2.f32 %v2758_v17  ;;  %v2923_v19 = vsub.f32 %v2919_v41, %v2922_v18 }
 0xec1   :  { %v2924_v21 = vmul.f32 1.442695, %v2923_v19 }
 0xec3   :  { %7117 = vpow2.f32 %v2924_v21 }
 0xec8   :  { %v7114_v23 = vpop.eup %7113 }
 0xec9   :  { %v2594_v24 = vsel %vm418_vm3, %v7114_v23, 0.0 }
 0xeca   :  { %2595 = vadd.xlane.f32.xlu0 %v2594_v24 }
 0xecc   :  { %v7116_v25 = vpop.eup %7115 }
 0xecd   :  { %v2760_v26 = vsel %vm418_vm3, %v7116_v25, 0.0 }
 0xece   :  { %2761 = vadd.xlane.f32.xlu1 %v2760_v26 }
 0xed0   :  { %v7118_v22 = vpop.eup %7117 }
 0xed1   :  { %v2926_v27 = vsel %vm418_vm3, %v7118_v22, 0.0 }
 0xed2   :  { %2927 = vadd.xlane.f32.xlu0 %v2926_v27 }
 0xedf   :  { %2765 = vrot.lane.b32.xlu1 %v7948_v1, %s7358_s12 }
 0xee3   :  { %2931 = vrot.lane.b32.xlu1 %v7948_v1, %s7359_s16 }
 0xee8   :  { %2599 = vrot.lane.b32.xlu0 %v7948_v1, %s7353_s13 }
 0xeeb   :  { %v2430_v28 = vpop.xlane.xlu1 %2429 }
 0xeec   :  { %7119 = vrcp.f32 %v2430_v28 }
 0xef9   :  { %v7120_v29 = vpop.eup %7119 }
 0xefa   :  { %v2432_v30 = vmul.f32 %v7120_v29, %v7112_v50 }
 0xefc   :  { %6707 = vmatmul.mubr.msk.f32.vlgmr.msra.gmra.mxu0 %vm418_vm3, %v2432_v30 }
 0xefd   :  { %6716 = vmatprep.mubr.msk.f32.mxu0 %vm7352_vm0, %v7351_v0 }
 0xf53   :  { %v2596_v33 = vpop.xlane.xlu0 %2595 }
 0xf54   :  { %7121 = vrcp.f32 %v2596_v33 }
 0xf57   :  { %v2762_v34 = vpop.xlane.xlu1 %2761 }
 0xf58   :  { %7123 = vrcp.f32 %v2762_v34 }
 0xf5b   :  { %v2928_v35 = vpop.xlane.xlu0 %2927  ;;  %v2766_v1 = vpop.permute.xlu1 %2765 }
 0xf5c   :  { %7125 = vrcp.f32 %v2928_v35 }
 0xf5f   :  { %v2600_v36 = vpop.permute.xlu0 %2599  ;;  %v2932_v46 = vpop.permute.xlu1 %2931 }
 0xf60   :  { %6715 = vmatpush3.msra.mxu0 %v2600_v36 }
 0xf61   :  { %v7122_v38 = vpop.eup %7121  ;;  %6724 = vmatprep.subr.mxu0 %v7351_v0 }
 0xf62   :  { %v2598_v41 = vmul.f32 %v7122_v38, %v7114_v23 }
 0xf64   :  { %6717 = vmatmul.mubr.msk.f32.vlgmr.msra.gmra.mxu0 %vm418_vm3, %v2598_v41  ;;  %v8043_v41 = vld [vmem:[%s8476_s30 + $0x8] sm:$0xff] }
 0xf65   :  { %v7124_v42 = vpop.eup %7123  ;;  %6725 = vmatpush3.msra.mxu0 %v2766_v1  ;;  %6726 = vmatprep.mubr.msk.f32.mxu0 %vm7352_vm0, %v7351_v0 }
 0xf66   :  { %6734 = vmatprep.subr.mxu0 %v7351_v0  ;;  %v2764_v44 = vmul.f32 %v7124_v42, %v7116_v25  ;;  %v8046_v42 = vld [vmem:[%s8476_s30] sm:$0xff] }
 0xf68   :  { %6727 = vmatmul.mubr.msk.f32.vlgmr.msra.gmra.mxu0 %vm418_vm3, %v2764_v44  ;;  %v8053_v44 = vld [vmem:[%s8477_s1 + $0x38] sm:$0xff] }
 0xf69   :  { %v7126_v47 = vpop.eup %7125  ;;  %6735 = vmatpush3.msra.mxu0 %v2932_v46  ;;  %6736 = vmatprep.mubr.msk.f32.mxu0 %vm7352_vm0, %v7351_v0  ;;  %v8056_v46 = vld [vmem:[%s8477_s1 + $0x30] sm:$0xff] }
 0xf6a   :  { %v2930_v49 = vmul.f32 %v7126_v47, %v7118_v22  ;;  %6746 = vmatprep.subr.mxu0 %v7351_v0  ;;  %v8036_v22 = vld [vmem:[%s8475_s25] ss:$0 sm:$0xff]  ;;  %v8061_v47 = vld [vmem:[%s8477_s1 + $0x28] sm:$0xff] }
 0xf6c   :  { %6737 = vmatmul.mubr.msk.f32.vlgmr.msra.gmra.mxu0 %vm418_vm3, %v2930_v49  ;;  %v8066_v49 = vld [vmem:[%s8477_s1 + $0x20] sm:$0xff] }
 0xf6d   :  { %6750 = vmatprep.mubr.msk.f32.mxu0 %vm7352_vm0, %v7351_v0  ;;  %6747 = vmatpush3.msra.mxu0 %v8043_v41 }
 0xf6e   :  { %6748 = vmatprep.subr.mxu0 %v7351_v0 }
 0xf6f   :  { %6749 = vmatpush3.msra.mxu0 %v8046_v42 }
 0xf70   :  { %6772 = vmatprep.subr.mxu0 %v7351_v0 }
 0xfbc   :  { %v2505_v50 = vpop.f32.mrf.mxu0 }
 0xfbe   :  { %v6708_v54 = vpop.f32.mrf.mxu0 }
0x1024   :  { %v2671_v12 = vpop.f32.mrf.mxu0 }
0x1025   :  { %3008 = vrot.lane.b32.xlu0 %v2671_v12, %s7364_s9 }
0x1026   :  { %v6718_v13 = vpop.f32.mrf.mxu0 }
0x1028   :  { %v2837_v15 = vpop.f32.mrf.mxu0 }
0x1029   :  { %3012 = vrot.lane.b32.xlu1 %v2837_v15, %s7365_s17 }
0x102a   :  { %v6728_v16 = vpop.f32.mrf.mxu0 }
0x102c   :  { %v3003_v17 = vpop.f32.mrf.mxu0 }
0x102d   :  { %3016 = vrot.lane.b32.xlu0 %v3003_v17, %s7366_s28 }
0x102e   :  { %v6738_v18 = vpop.f32.mrf.mxu0 }
0x102f   :  { %v6279_v18 = vld [vmem:[%s7376_s5 + $0x8] sm:$0xff]  ;;  %s8479_s5 = sld [smem:[#allocation33_spill]] }
0x1097   :  { %v3009_v19 = vpop.permute.xlu0 %3008 }
0x1098   :  { %v3019_v23 = vsel %vm342_vm2, %v2505_v50, %v3009_v19  ;;  %v8071_v50 = vld [vmem:[%s8477_s1 + $0x18] sm:$0xff] }
0x109b   :  { %v3013_v21 = vpop.permute.xlu1 %3012 }
0x109c   :  { %v3020_v24 = vsel %vm418_vm3, %v3019_v23, %v3013_v21  ;;  %v8085_v21 = vadd.f32 %v6279_v18, %v7688_v4  ;;  %v8098_v4 = vld [vmem:[%s8477_s1 + $0x10] sm:$0xff] }
0x109f   :  { %v3017_v25 = vpop.permute.xlu0 %3016 }
0x10a0   :  { %v3021_v26 = vsel %vm1018_vm4, %v3020_v24, %v3017_v25 }
0x10a1   :  { %6744 = vmatmul.mubr.msk.f32.vlgmr.msra.gmra.mxu1 %vm265_vm1, %v3021_v26 }
0x10a2   :  { %6769 = vmatprep.mubr.msk.f32.mxu1 %vm7352_vm0, %v7351_v0  ;;  %6754 = vmatpush3.msra.mxu1 %v8053_v44 }
0x10a3   :  { %6755 = vmatprep.subr.mxu1 %v7351_v0 }
0x10a4   :  { %6756 = vmatpush3.msra.mxu1 %v8056_v46 }
0x10a5   :  { %6757 = vmatprep.subr.mxu1 %v7351_v0 }
0x10a6   :  { %6758 = vmatpush3.msra.mxu1 %v8061_v47 }
0x10a7   :  { %6759 = vmatprep.subr.mxu1 %v7351_v0 }
0x10a8   :  { %6760 = vmatpush3.msra.mxu1 %v8066_v49 }
0x10a9   :  { %6761 = vmatprep.subr.mxu1 %v7351_v0 }
0x10aa   :  { %6762 = vmatpush3.msra.mxu1 %v8071_v50 }
0x10ab   :  { %6763 = vmatprep.subr.mxu1 %v7351_v0 }
0x10ac   :  { %6764 = vmatpush3.msra.mxu1 %v8098_v4 }
0x10ad   :  { %6765 = vmatprep.subr.mxu1 %v7351_v0 }
0x1161   :  { %v3097_v27 = vpop.f32.mrf.mxu1 }
0x1162   :  { %v3098_v28 = vadd.f32 %v8036_v22, %v3097_v27 }
0x1163   :  { %v6745_v29 = vpop.f32.mrf.mxu1 }
0x1164   :  { %v3101_v30 = vadd.f32 %v3098_v28, %v7936_v61 }
0x1166   :  { %v3104_v33 = vsel %vm265_vm1, %v3101_v30, 0.0 }
0x1167   :  { %3105 = vadd.xlane.f32.xlu1 %v3104_v33 }
0x11f0   :  { %v3106_v34 = vpop.xlane.xlu1 %3105 }
0x11f1   :  { %v3107_v35 = vmul.f32 0.0625, %v3106_v34 }
0x11f3   :  { %v3108_v36 = vsub.f32 %v3101_v30, %v3107_v35 }
0x11f5   :  { %v3109_v38 = vmul.f32 %v3108_v36, %v3108_v36 }
0x11f7   :  { %v3110_v1 = vsel %vm265_vm1, %v3109_v38, 0.0 }
0x11f8   :  { %3111 = vadd.xlane.f32.xlu0 %v3110_v1 }
0x1281   :  { %v3112_v54 = vpop.xlane.xlu0 %3111 }
0x1282   :  { %v3113_v12 = vmul.f32 0.06666667, %v3112_v54 }
0x1284   :  { %v3114_v13 = vadd.f32 1e-05, %v3113_v12 }
0x1286   :  { %7127 = vrsqrt.f32 %v3114_v13 }
0x1293   :  { %v7128_v15 = vpop.eup %7127 }
0x1294   :  { %v3116_v16 = vmul.f32 %v7128_v15, %v3108_v36 }
0x1296   :  { %v3123_v17 = vmul.f32 %v7917_v48, %v3116_v16  ;;  %v8107_v48 = vld [vmem:[%s8477_s1] sm:$0xff] }
0x1298   :  { %v8080_v19 = vadd.f32 %v7924_v52, %v3123_v17 }
0x129a   :  { %6751 = vmatmul.mubr.msk.f32.vlgmr.msra.gmra.mxu0 %vm265_vm1, %v8080_v19 }
0x129b   :  { %6773 = vmatpush3.msra.mxu0 %v7693_v7  ;;  %6776 = vmatprep.mubr.msk.f32.mxu0 %vm7352_vm0, %v7351_v0  ;;  %v8103_v7 = vld [vmem:[%s8477_s1 + $0x8] sm:$0xff] }
0x129c   :  { %6774 = vmatprep.subr.mxu0 %v7351_v0  ;;  %6766 = vmatpush3.msra.mxu1 %v8103_v7 }
0x129d   :  { %6775 = vmatpush3.msra.mxu0 %v7697_v8  ;;  %6767 = vmatprep.subr.mxu1 %v7351_v0  ;;  %v8113_v8 = vld [vmem:[%s8478_s29] ss:$0 sm:$0xff] }
0x129e   :  { %6777 = vmatmul.mubr.msk.f32.vlgmr.msra.gmra.mxu0 %vm265_vm1, %v8085_v21  ;;  %6779 = vmatprep.subr.mxu0 %v7351_v0 }
0x129f   :  { %6781 = vmatprep.mubr.msk.f32.mxu0 %vm7352_vm0, %v7351_v0  ;;  %6768 = vmatpush3.msra.mxu1 %v8107_v48 }
0x12a0   :  { %6794 = vmatprep.subr.mxu1 %v7351_v0 }
0x135a   :  { %v3218_v52 = vpop.f32.mrf.mxu0 }
0x135b   :  { %v3219_v23 = vadd.f32 %v8113_v8, %v3218_v52 }
0x135c   :  { %v6752_v24 = vpop.f32.mrf.mxu0 }
0x135d   :  { %v3222_v25 = vmax.f32 %v3219_v23, 0.0 }
0x135e   :  { %v3387_v26 = vpop.f32.mrf.mxu0 }
0x135f   :  { %v8117_v27 = vadd.f32 %v7720_v20, %v3387_v26  ;;  %6770 = vmatmul.mubr.msk.f32.vlgmr.msra.gmra.mxu1 %vm2074_vm5, %v3222_v25 }
0x1360   :  { %v6778_v28 = vpop.f32.mrf.mxu0  ;;  %6796 = vmatprep.mubr.msk.f32.mxu1 %vm7352_vm0, %v7351_v0 }
0x1361   :  { %3392 = vrot.lane.b32.xlu0 %v8117_v27, %s7354_s3  ;;  %6780 = vmatpush3.xpose.msk.msra.mxu0 %vm342_vm2, %v8117_v27 }
0x1362   :  { %6784 = vmatprep.subr.mxu0 %v7351_v0 }
0x1365   :  { %3558 = vrot.lane.b32.xlu0 %v8117_v27, %s7356_s14 }
0x1369   :  { %3556 = vrot.lane.b32.xlu0 %v8117_v27, %s7353_s13 }
0x136d   :  { %3722 = vrot.lane.b32.xlu0 %v8117_v27, %s7358_s12 }
0x1371   :  { %3888 = vrot.lane.b32.xlu0 %v8117_v27, %s7359_s16 }
0x13d3   :  { %v3393_v20 = vpop.permute.xlu0 %3392 }
0x13d4   :  { %6782 = vmatmul.mubr.msk.f32.vlgmr.msra.gmra.mxu0 %vm342_vm2, %v3393_v20 }
0x13d5   :  { %6786 = vmatprep.mubr.msk.f32.mxu0 %vm7352_vm0, %v7351_v0 }
0x13d7   :  { %v3559_v17 = vpop.permute.xlu0 %3558 }
0x13db   :  { %v3557_v23 = vpop.permute.xlu0 %3556 }
0x13df   :  { %v3723_v25 = vpop.permute.xlu0 %3722 }
0x13e3   :  { %v3889_v28 = vpop.permute.xlu0 %3888 }
0x141f   :  { %v8138_v29 = vpop.f32.mrf.mxu1 }
0x1421   :  { %v6771_v30 = vpop.f32.mrf.mxu1 }
0x1494   :  { %v3464_v33 = vpop.f32.mrf.mxu0 }
0x1495   :  { %v3468_v34 = vmul.f32 0.5, %v3464_v33 }
0x1496   :  { %v6783_v35 = vpop.f32.mrf.mxu0 }
0x1497   :  { %v3469_v36 = vsel %vm418_vm3, %v3468_v34, -inf }
0x1498   :  { %3470 = vmax.xlane.f32.xlu1 %v3469_v36 }
0x14a9   :  { %3480 = vrot.lane.b32.xlu1 %v8117_v27, %s7361_s22 }
0x1521   :  { %v3471_v38 = vpop.xlane.xlu1 %3470 }
0x1522   :  { %v3472_v1 = vsub.f32 %v3468_v34, %v3471_v38 }
0x1524   :  { %v3473_v54 = vmul.f32 1.442695, %v3472_v1 }
0x1525   :  { %v3481_v12 = vpop.permute.xlu1 %3480 }
0x1526   :  { %7129 = vpow2.f32 %v3473_v54  ;;  %6785 = vmatpush3.msra.mxu0 %v3481_v12 }
0x1527   :  { %6789 = vmatprep.subr.mxu0 %v7351_v0 }
0x1533   :  { %v7130_v13 = vpop.eup %7129 }
0x1534   :  { %v3475_v15 = vsel %vm418_vm3, %v7130_v13, 0.0 }
0x1535   :  { %3476 = vadd.xlane.f32.xlu1 %v3475_v15 }
0x1546   :  { %3724 = vrot.lane.b32.xlu1 %v8117_v27, %s7355_s8 }
0x154a   :  { %3890 = vrot.lane.b32.xlu1 %v8117_v27, %s7357_s6 }
0x15be   :  { %v3477_v16 = vpop.xlane.xlu1 %3476 }
0x15bf   :  { %7131 = vrcp.f32 %v3477_v16 }
0x15c2   :  { %v3725_v24 = vpop.permute.xlu1 %3724 }
0x15c6   :  { %v3891_v26 = vpop.permute.xlu1 %3890 }
0x15cc   :  { %v7132_v18 = vpop.eup %7131 }
0x15cd   :  { %v3479_v52 = vmul.f32 %v7132_v18, %v7130_v13 }
0x15cf   :  { %6787 = vmatmul.mubr.msk.f32.vlgmr.msra.gmra.mxu0 %vm418_vm3, %v3479_v52 }
0x15d0   :  { %6790 = vmatpush3.xpose.msk.msra.mxu0 %vm342_vm2, %v3559_v17  ;;  %6791 = vmatprep.mubr.msk.f32.mxu0 %vm7352_vm0, %v7351_v0 }
0x15d1   :  { %6799 = vmatprep.subr.mxu0 %v7351_v0 }
0x15d3   :  { %6792 = vmatmul.mubr.msk.f32.vlgmr.msra.gmra.mxu0 %vm342_vm2, %v3557_v23 }
0x15d4   :  { %6800 = vmatpush3.xpose.msk.msra.mxu0 %vm342_vm2, %v3725_v24  ;;  %6801 = vmatprep.mubr.msk.f32.mxu0 %vm7352_vm0, %v7351_v0 }
0x15d5   :  { %6809 = vmatprep.subr.mxu0 %v7351_v0 }
0x15d7   :  { %6802 = vmatmul.mubr.msk.f32.vlgmr.msra.gmra.mxu0 %vm342_vm2, %v3723_v25 }
0x15d8   :  { %6810 = vmatpush3.xpose.msk.msra.mxu0 %vm342_vm2, %v3891_v26  ;;  %6811 = vmatprep.mubr.msk.f32.mxu0 %vm7352_vm0, %v7351_v0 }
0x15d9   :  { %6819 = vmatprep.subr.mxu0 %v7351_v0 }
0x15db   :  { %6812 = vmatmul.mubr.msk.f32.vlgmr.msra.gmra.mxu0 %vm342_vm2, %v3889_v28 }
0x15dc   :  { %6820 = vmatpush3.msra.mxu0 %v7802_v39  ;;  %6823 = vmatprep.mubr.msk.f32.mxu0 %vm7352_vm0, %v7351_v0 }
0x15dd   :  { %6821 = vmatprep.subr.mxu0 %v7351_v0 }
0x15de   :  { %6822 = vmatpush3.msra.mxu0 %v7807_v40 }
0x15df   :  { %6833 = vmatprep.subr.mxu0 %v7351_v0 }
0x168f   :  { %v8171_v20 = vpop.f32.mrf.mxu0 }
0x1691   :  { %v6788_v30 = vpop.f32.mrf.mxu0 }
0x1693   :  { %v3630_v33 = vpop.f32.mrf.mxu0 }
0x1694   :  { %v3634_v34 = vmul.f32 0.5, %v3630_v33 }
0x1695   :  { %v6793_v35 = vpop.f32.mrf.mxu0 }
0x1696   :  { %v3635_v36 = vsel %vm418_vm3, %v3634_v34, -inf }
0x1697   :  { %3636 = vmax.xlane.f32.xlu1 %v3635_v36  ;;  %v3796_v38 = vpop.f32.mrf.mxu0 }
0x1698   :  { %v3800_v39 = vmul.f32 0.5, %v3796_v38 }
0x1699   :  { %v6803_v1 = vpop.f32.mrf.mxu0 }
0x169a   :  { %v3801_v54 = vsel %vm418_vm3, %v3800_v39, -inf }
0x169b   :  { %3802 = vmax.xlane.f32.xlu0 %v3801_v54  ;;  %v3962_v12 = vpop.f32.mrf.mxu0 }
0x169c   :  { %v3966_v13 = vmul.f32 0.5, %v3962_v12 }
0x169d   :  { %v6813_v40 = vpop.f32.mrf.mxu0 }
0x169e   :  { %v3967_v15 = vsel %vm418_vm3, %v3966_v13, -inf }
0x169f   :  { %3968 = vmax.xlane.f32.xlu0 %v3967_v15 }
0x1720   :  { %v3637_v16 = vpop.xlane.xlu1 %3636 }
0x1721   :  { %v3638_v17 = vsub.f32 %v3634_v34, %v3637_v16 }
0x1723   :  { %v3639_v18 = vmul.f32 1.442695, %v3638_v17 }
0x1724   :  { %v3803_v52 = vpop.xlane.xlu0 %3802 }
0x1725   :  { %7133 = vpow2.f32 %v3639_v18  ;;  %v3804_v23 = vsub.f32 %v3800_v39, %v3803_v52 }
0x1727   :  { %v3805_v24 = vmul.f32 1.442695, %v3804_v23 }
0x1728   :  { %v3969_v33 = vpop.xlane.xlu0 %3968 }
0x1729   :  { %7135 = vpow2.f32 %v3805_v24  ;;  %v3970_v34 = vsub.f32 %v3966_v13, %v3969_v33 }
0x172b   :  { %v3971_v35 = vmul.f32 1.442695, %v3970_v34 }
0x172d   :  { %7137 = vpow2.f32 %v3971_v35 }
0x1732   :  { %v7134_v25 = vpop.eup %7133 }
0x1733   :  { %v3641_v26 = vsel %vm418_vm3, %v7134_v25, 0.0 }
0x1734   :  { %3642 = vadd.xlane.f32.xlu1 %v3641_v26 }
0x1736   :  { %v7136_v28 = vpop.eup %7135 }
0x1737   :  { %v3807_v30 = vsel %vm418_vm3, %v7136_v28, 0.0 }
0x1738   :  { %3808 = vadd.xlane.f32.xlu0 %v3807_v30 }
0x173a   :  { %v7138_v36 = vpop.eup %7137 }
0x173b   :  { %v3973_v38 = vsel %vm418_vm3, %v7138_v36, 0.0 }
0x1745   :  { %3812 = vrot.lane.b32.xlu1 %v8117_v27, %s7362_s23 }
0x174e   :  { %3646 = vrot.lane.b32.xlu0 %v8117_v27, %s7360_s18  ;;  %s8486_s18 = sld [smem:[#allocation42_spill]] }
0x1769   :  { %3974 = vadd.xlane.f32.xlu1 %v3973_v38 }
0x177a   :  { %3978 = vrot.lane.b32.xlu1 %v8117_v27, %s7363_s26 }
0x17bd   :  { %v3643_v39 = vpop.xlane.xlu1 %3642 }
0x17be   :  { %7139 = vrcp.f32 %v3643_v39 }
0x17c1   :  { %v3809_v1 = vpop.xlane.xlu0 %3808  ;;  %v3813_v13 = vpop.permute.xlu1 %3812 }
0x17c2   :  { %7141 = vrcp.f32 %v3809_v1 }
0x17c5   :  { %v3647_v54 = vpop.permute.xlu0 %3646 }
0x17c6   :  { %6795 = vmatpush3.msra.mxu1 %v3647_v54 }
0x17c7   :  { %6804 = vmatprep.subr.mxu1 %v7351_v0 }
0x17cb   :  { %v7140_v12 = vpop.eup %7139 }
0x17cc   :  { %v3645_v40 = vmul.f32 %v7140_v12, %v7134_v25 }
0x17ce   :  { %6797 = vmatmul.mubr.msk.f32.vlgmr.msra.gmra.mxu1 %vm418_vm3, %v3645_v40 }
0x17cf   :  { %v7142_v15 = vpop.eup %7141  ;;  %6805 = vmatpush3.msra.mxu1 %v3813_v13  ;;  %6806 = vmatprep.mubr.msk.f32.mxu1 %vm7352_vm0, %v7351_v0 }
0x17d0   :  { %v3811_v16 = vmul.f32 %v7142_v15, %v7136_v28  ;;  %6814 = vmatprep.subr.mxu1 %v7351_v0 }
0x17d2   :  { %6807 = vmatmul.mubr.msk.f32.vlgmr.msra.gmra.mxu1 %vm418_vm3, %v3811_v16 }
0x17d3   :  { %6816 = vmatprep.mubr.msk.f32.mxu1 %vm7352_vm0, %v7351_v0 }
0x17f2   :  { %v3975_v27 = vpop.xlane.xlu1 %3974 }
0x17f3   :  { %7143 = vrcp.f32 %v3975_v27 }
0x17f6   :  { %v3979_v17 = vpop.permute.xlu1 %3978 }
0x17f7   :  { %6815 = vmatpush3.msra.mxu1 %v3979_v17 }
0x17f8   :  { %6826 = vmatprep.subr.mxu1 %v7351_v0 }
0x1800   :  { %v7144_v18 = vpop.eup %7143 }
0x1801   :  { %v3977_v52 = vmul.f32 %v7144_v18, %v7138_v36 }
0x1803   :  { %6817 = vmatmul.mubr.msk.f32.vlgmr.msra.gmra.mxu1 %vm418_vm3, %v3977_v52 }
0x1804   :  { %6827 = vmatpush3.msra.mxu1 %v7827_v3  ;;  %6830 = vmatprep.mubr.msk.f32.mxu1 %vm7352_vm0, %v7351_v0 }
0x1805   :  { %6828 = vmatprep.subr.mxu1 %v7351_v0 }
0x1806   :  { %6829 = vmatpush3.msra.mxu1 %v7831_v37 }
0x1807   :  { %6852 = vmatprep.subr.mxu1 %v7351_v0 }
0x188e   :  { %v3718_v23 = vpop.f32.mrf.mxu1 }
0x188f   :  { %4055 = vrot.lane.b32.xlu0 %v3718_v23, %s7364_s9 }
0x1890   :  { %v6798_v24 = vpop.f32.mrf.mxu1 }
0x1892   :  { %v3884_v25 = vpop.f32.mrf.mxu1 }
0x1893   :  { %4059 = vrot.lane.b32.xlu1 %v3884_v25, %s7365_s17 }
0x1894   :  { %v6808_v26 = vpop.f32.mrf.mxu1 }
0x18c3   :  { %v4050_v28 = vpop.f32.mrf.mxu1 }
0x18c4   :  { %4063 = vrot.lane.b32.xlu0 %v4050_v28, %s7366_s28 }
0x18c5   :  { %v6818_v3 = vpop.f32.mrf.mxu1 }
0x1901   :  { %v4056_v30 = vpop.permute.xlu0 %4055 }
0x1902   :  { %v4066_v34 = vsel %vm342_vm2, %v8171_v20, %v4056_v30 }
0x1905   :  { %v4060_v33 = vpop.permute.xlu1 %4059 }
0x1906   :  { %v4067_v37 = vsel %vm418_vm3, %v4066_v34, %v4060_v33 }
0x1936   :  { %v4064_v35 = vpop.permute.xlu0 %4063 }
0x1937   :  { %v4068_v36 = vsel %vm1018_vm4, %v4067_v37, %v4064_v35 }
0x1938   :  { %6824 = vmatmul.mubr.msk.f32.vlgmr.msra.gmra.mxu0 %vm265_vm1, %v4068_v36 }
0x1939   :  { %6834 = vmatpush3.msra.mxu0 %v7836_v55  ;;  %6849 = vmatprep.mubr.msk.f32.mxu0 %vm7352_vm0, %v7351_v0 }
0x193a   :  { %6835 = vmatprep.subr.mxu0 %v7351_v0 }
0x193b   :  { %6836 = vmatpush3.msra.mxu0 %v7839_v56 }
0x193c   :  { %6837 = vmatprep.subr.mxu0 %v7351_v0 }
0x193d   :  { %6838 = vmatpush3.msra.mxu0 %v7845_v57 }
0x193e   :  { %6839 = vmatprep.subr.mxu0 %v7351_v0 }
0x193f   :  { %6840 = vmatpush3.msra.mxu0 %v7850_v58 }
0x1940   :  { %6841 = vmatprep.subr.mxu0 %v7351_v0 }
0x1941   :  { %6842 = vmatpush3.msra.mxu0 %v7855_v59 }
0x1942   :  { %6843 = vmatprep.subr.mxu0 %v7351_v0 }
0x1943   :  { %6844 = vmatpush3.msra.mxu0 %v7870_v2 }
0x1944   :  { %6845 = vmatprep.subr.mxu0 %v7351_v0 }
0x1945   :  { %6846 = vmatpush3.msra.mxu0 %v7875_v5 }
0x1946   :  { %6847 = vmatprep.subr.mxu0 %v7351_v0 }
0x1947   :  { %6848 = vmatpush3.msra.mxu0 %v7879_v6 }
0x1948   :  { %6876 = vmatprep.subr.mxu0 %v7351_v0 }
0x19f8   :  { %v4144_v55 = vpop.f32.mrf.mxu0 }
0x19f9   :  { %v4145_v56 = vadd.f32 %v7862_v60, %v4144_v55 }
0x19fa   :  { %v6825_v57 = vpop.f32.mrf.mxu0 }
0x19fb   :  { %v4148_v58 = vadd.f32 %v4145_v56, %v8085_v21 }
0x19fd   :  { %6831 = vmatmul.mubr.msk.f32.vlgmr.msra.gmra.mxu1 %vm265_vm1, %v4148_v58 }
0x19fe   :  { %6853 = vmatpush3.msra.mxu1 %v7900_v31  ;;  %6856 = vmatprep.mubr.msk.f32.mxu1 %vm7352_vm0, %v7351_v0 }
0x19ff   :  { %6854 = vmatprep.subr.mxu1 %v7351_v0 }
0x1a00   :  { %6855 = vmatpush3.msra.mxu1 %v7904_v32 }
0x1a01   :  { %6859 = vmatprep.subr.mxu1 %v7351_v0 }
0x1abd   :  { %v4236_v59 = vpop.f32.mrf.mxu1 }
0x1abe   :  { %v4237_v2 = vadd.f32 %v7885_v9, %v4236_v59 }
0x1abf   :  { %v6832_v60 = vpop.f32.mrf.mxu1 }
0x1ac0   :  { %v4240_v5 = vmax.f32 %v4237_v2, 0.0 }
0x1ac2   :  { %6850 = vmatmul.mubr.msk.f32.vlgmr.msra.gmra.mxu0 %vm2074_vm5, %v4240_v5 }
0x1ac3   :  { %6878 = vmatprep.mubr.msk.f32.mxu0 %vm7352_vm0, %v7351_v0 }
0x1b82   :  { %v4316_v6 = vpop.f32.mrf.mxu0 }
0x1b83   :  { %v4317_v31 = vadd.f32 %v7892_v14, %v4316_v6 }
0x1b84   :  { %v6851_v21 = vpop.f32.mrf.mxu0 }
0x1b85   :  { %v4320_v20 = vadd.f32 %v4317_v31, %v4148_v58 }
0x1b87   :  { %v4323_v38 = vsel %vm265_vm1, %v4320_v20, 0.0 }
0x1b88   :  { %4324 = vadd.xlane.f32.xlu1 %v4323_v38 }
0x1c11   :  { %v4325_v32 = vpop.xlane.xlu1 %4324 }
0x1c12   :  { %v4326_v39 = vmul.f32 0.0625, %v4325_v32 }
0x1c14   :  { %v4327_v1 = vsub.f32 %v4320_v20, %v4326_v39 }
0x1c16   :  { %v4328_v54 = vmul.f32 %v4327_v1, %v4327_v1 }
0x1c18   :  { %v4329_v9 = vsel %vm265_vm1, %v4328_v54, 0.0 }
0x1c19   :  { %4330 = vadd.xlane.f32.xlu0 %v4329_v9 }
0x1ca2   :  { %v4331_v12 = vpop.xlane.xlu0 %4330 }
0x1ca3   :  { %v4332_v40 = vmul.f32 0.06666667, %v4331_v12 }
0x1ca5   :  { %v4333_v13 = vadd.f32 1e-05, %v4332_v40 }
0x1ca7   :  { %7145 = vrsqrt.f32 %v4333_v13 }
0x1cb4   :  { %v7146_v15 = vpop.eup %7145 }
0x1cb5   :  { %v4335_v16 = vmul.f32 %v7146_v15, %v4327_v1 }
0x1cb7   :  { %v4342_v14 = vmul.f32 %v7910_v43, %v4335_v16 }
0x1cb9   :  { %v4349_v27 = vadd.f32 %v7913_v45, %v4342_v14 }
0x1cbb   :  { %6857 = vmatmul.mubr.msk.f32.vlgmr.msra.gmra.mxu1 %vm265_vm1, %v4349_v27 }
0x1cbc   :  { %6860 = vmatpush3.msra.mxu1 %v7921_v51  ;;  %6863 = vmatprep.mubr.msk.f32.mxu1 %vm7352_vm0, %v7351_v0 }
0x1cbd   :  { %6861 = vmatprep.subr.mxu1 %v7351_v0 }
0x1cbe   :  { %6862 = vmatpush3.msra.mxu1 %v7928_v53 }
0x1cbf   :  { %6864 = vmatmul.mubr.msk.f32.vlgmr.msra.gmra.mxu1 %vm265_vm1, %v7936_v61  ;;  %6866 = vmatprep.subr.mxu1 %v7351_v0 }
0x1cc0   :  { %6868 = vmatprep.mubr.msk.f32.mxu1 %vm7352_vm0, %v7351_v0 }
0x1d7b   :  { %v4434_v43 = vpop.f32.mrf.mxu1 }
0x1d7c   :  { %v8257_v45 = vadd.f32 %v7945_v62, %v4434_v43 }
0x1d7d   :  { %v6858_v51 = vpop.f32.mrf.mxu1 }
0x1d7e   :  { %4680 = vrot.lane.b32.xlu0 %v8257_v45, %s7356_s14  ;;  %6867 = vmatpush3.xpose.msk.msra.mxu1 %vm342_vm2, %v8257_v45 }
0x1d7f   :  { %v4510_v53 = vpop.f32.mrf.mxu1  ;;  %6871 = vmatprep.subr.mxu1 %v7351_v0 }
0x1d80   :  { %v4511_v17 = vadd.f32 %v7951_v11, %v4510_v53 }
0x1d81   :  { %v6865_v18 = vpop.f32.mrf.mxu1 }
0x1d82   :  { %4844 = vrot.lane.b32.xlu0 %v4511_v17, %s7355_s8  ;;  %4678 = vrot.lane.b32.xlu1 %v4511_v17, %s7356_s14  ;;  %s8483_s14 = sld [smem:[#allocation37_spill]] }
0x1d83   :  { %6869 = vmatmul.mubr.msk.f32.vlgmr.msra.gmra.mxu1 %vm342_vm2, %v4511_v17 }
0x1d84   :  { %6873 = vmatprep.mubr.msk.f32.mxu1 %vm7352_vm0, %v7351_v0 }
0x1d86   :  { %5010 = vrot.lane.b32.xlu0 %v4511_v17, %s7357_s6  ;;  %4846 = vrot.lane.b32.xlu1 %v8257_v45, %s7355_s8  ;;  %s8482_s8 = sld [smem:[#allocation41_spill]] }
0x1d8a   :  { %5012 = vrot.lane.b32.xlu1 %v8257_v45, %s7357_s6  ;;  %s7367_s6 = smov 64  }
0x1df0   :  { %v4681_v62 = vpop.permute.xlu0 %4680 }
0x1df1   :  { %6877 = vmatpush3.xpose.msk.msra.mxu0 %vm342_vm2, %v4681_v62 }
0x1df2   :  { %6886 = vmatprep.subr.mxu0 %v7351_v0 }
0x1df4   :  { %v4679_v11 = vpop.permute.xlu1 %4678  ;;  %v4845_v23 = vpop.permute.xlu0 %4844 }
0x1df5   :  { %6879 = vmatmul.mubr.msk.f32.vlgmr.msra.gmra.mxu0 %vm342_vm2, %v4679_v11 }
0x1df6   :  { %6888 = vmatprep.mubr.msk.f32.mxu0 %vm7352_vm0, %v7351_v0 }
0x1df8   :  { %v4847_v52 = vpop.permute.xlu1 %4846  ;;  %v5011_v25 = vpop.permute.xlu0 %5010 }
0x1df9   :  { %6887 = vmatpush3.xpose.msk.msra.mxu0 %vm342_vm2, %v4847_v52 }
0x1dfa   :  { %6896 = vmatprep.subr.mxu0 %v7351_v0 }
0x1dfc   :  { %6889 = vmatmul.mubr.msk.f32.vlgmr.msra.gmra.mxu0 %vm342_vm2, %v4845_v23  ;;  %v5013_v24 = vpop.permute.xlu1 %5012 }
0x1dfd   :  { %6897 = vmatpush3.xpose.msk.msra.mxu0 %vm342_vm2, %v5013_v24  ;;  %6898 = vmatprep.mubr.msk.f32.mxu0 %vm7352_vm0, %v7351_v0 }
0x1dfe   :  { %6906 = vmatprep.subr.mxu0 %v7351_v0 }
0x1e00   :  { %6899 = vmatmul.mubr.msk.f32.vlgmr.msra.gmra.mxu0 %vm342_vm2, %v5011_v25 }
0x1e01   :  { %6907 = vmatpush3.msra.mxu0 %v8017_v63  ;;  %6910 = vmatprep.mubr.msk.f32.mxu0 %vm7352_vm0, %v7351_v0 }
0x1e02   :  { %6908 = vmatprep.subr.mxu0 %v7351_v0 }
0x1e03   :  { %6909 = vmatpush3.msra.mxu0 %v8022_v10 }
0x1e04   :  { %6920 = vmatprep.subr.mxu0 %v7351_v0 }
0x1e43   :  { %v4586_v26 = vpop.f32.mrf.mxu1 }
0x1e44   :  { %v4590_v28 = vmul.f32 0.5, %v4586_v26 }
0x1e45   :  { %v6870_v3 = vpop.f32.mrf.mxu1 }
0x1e46   :  { %v4591_v30 = vsel %vm418_vm3, %v4590_v28, -inf }
0x1e47   :  { %4592 = vmax.xlane.f32.xlu1 %v4591_v30 }
0x1eb5   :  { %v4752_v33 = vpop.f32.mrf.mxu0 }
0x1eb6   :  { %v4756_v34 = vmul.f32 0.5, %v4752_v33 }
0x1eb7   :  { %v6880_v37 = vpop.f32.mrf.mxu0 }
0x1eb8   :  { %v4757_v63 = vsel %vm418_vm3, %v4756_v34, -inf }
0x1eb9   :  { %4758 = vmax.xlane.f32.xlu0 %v4757_v63 }
0x1ebc   :  { %v4918_v35 = vpop.f32.mrf.mxu0 }
0x1ebd   :  { %v4922_v36 = vmul.f32 0.5, %v4918_v35 }
0x1ebe   :  { %v6890_v55 = vpop.f32.mrf.mxu0 }
0x1ebf   :  { %v4923_v56 = vsel %vm418_vm3, %v4922_v36, -inf }
0x1ec0   :  { %4924 = vmax.xlane.f32.xlu0 %v4923_v56  ;;  %v5084_v10 = vpop.f32.mrf.mxu0 }
0x1ec1   :  { %v5088_v57 = vmul.f32 0.5, %v5084_v10 }
0x1ec2   :  { %v6900_v58 = vpop.f32.mrf.mxu0 }
0x1ec3   :  { %v5089_v59 = vsel %vm418_vm3, %v5088_v57, -inf }
0x1ec4   :  { %5090 = vmax.xlane.f32.xlu1 %v5089_v59 }
0x1ed0   :  { %v4593_v2 = vpop.xlane.xlu1 %4592 }
0x1ed1   :  { %v4594_v60 = vsub.f32 %v4590_v28, %v4593_v2 }
0x1ed3   :  { %v4595_v5 = vmul.f32 1.442695, %v4594_v60 }
0x1ed5   :  { %7147 = vpow2.f32 %v4595_v5  ;;  %4768 = vrot.lane.b32.xlu1 %v8257_v45, %s7353_s13  ;;  %s8480_s13 = sld [smem:[#allocation36_spill]] }
0x1ee2   :  { %v7148_v6 = vpop.eup %7147 }
0x1ee3   :  { %v4597_v31 = vsel %vm418_vm3, %v7148_v6, 0.0 }
0x1ee4   :  { %4598 = vadd.xlane.f32.xlu0 %v4597_v31 }
0x1efa   :  { %4602 = vrot.lane.b32.xlu0 %v8257_v45, %s7354_s3  ;;  %s8481_s3 = sld [smem:[#allocation38_spill]] }
0x1f42   :  { %v4759_v21 = vpop.xlane.xlu0 %4758 }
0x1f43   :  { %v4760_v20 = vsub.f32 %v4756_v34, %v4759_v21  ;;  %v6320_v21 = vld [vmem:[%s8469_s11] ss:$0 sm:$0xff] }
0x1f45   :  { %v4761_v38 = vmul.f32 1.442695, %v4760_v20 }
0x1f47   :  { %7149 = vpow2.f32 %v4761_v38  ;;  %v6321_v38 = vld [vmem:[%s8471_s19] ss:$0 sm:$0xff] }
0x1f49   :  { %v4925_v32 = vpop.xlane.xlu0 %4924 }
0x1f4a   :  { %v4926_v39 = vsub.f32 %v4922_v36, %v4925_v32 }
0x1f4c   :  { %v4927_v1 = vmul.f32 1.442695, %v4926_v39 }
0x1f4d   :  { %v5091_v54 = vpop.xlane.xlu1 %5090 }
0x1f4e   :  { %7151 = vpow2.f32 %v4927_v1  ;;  %v5092_v9 = vsub.f32 %v5088_v57, %v5091_v54 }
0x1f50   :  { %v5093_v12 = vmul.f32 1.442695, %v5092_v9 }
0x1f51   :  { %v4769_v18 = vpop.permute.xlu1 %4768 }
0x1f52   :  { %7153 = vpow2.f32 %v5093_v12 }
0x1f54   :  { %v7150_v40 = vpop.eup %7149 }
0x1f55   :  { %v4763_v13 = vsel %vm418_vm3, %v7150_v40, 0.0 }
0x1f56   :  { %4764 = vadd.xlane.f32.xlu1 %v4763_v13  ;;  %v5472_v13 = vld [vmem:[%s8480_s13] sm:$0xff] }
0x1f5b   :  { %v7152_v15 = vpop.eup %7151 }
0x1f5c   :  { %v4929_v16 = vsel %vm418_vm3, %v7152_v15, 0.0 }
0x1f5d   :  { %4930 = vadd.xlane.f32.xlu0 %v4929_v16 }
0x1f5f   :  { %v7154_v14 = vpop.eup %7153 }
0x1f60   :  { %v5095_v27 = vsel %vm418_vm3, %v7154_v14, 0.0 }
0x1f61   :  { %5096 = vadd.xlane.f32.xlu1 %v5095_v27  ;;  %v5570_v27 = vld [vmem:[%s8481_s3 + $0x30] sm:$0xff] }
0x1f6d   :  { %v4599_v43 = vpop.xlane.xlu0 %4598 }
0x1f6e   :  { %7155 = vrcp.f32 %v4599_v43  ;;  %v5569_v43 = vld [vmem:[%s8481_s3 + $0x28] sm:$0xff] }
0x1f71   :  { %v4603_v51 = vpop.permute.xlu0 %4602 }
0x1f72   :  { %6872 = vmatpush3.msra.mxu1 %v4603_v51  ;;  %4934 = vrot.lane.b32.xlu1 %v8257_v45, %s7358_s12  ;;  %v5568_v51 = vld [vmem:[%s8481_s3 + $0x20] sm:$0xff]  ;;  %s8484_s12 = sld [smem:[#allocation39_spill]] }
0x1f73   :  { %5100 = vrot.lane.b32.xlu0 %v8257_v45, %s7359_s16  ;;  %6881 = vmatprep.subr.mxu1 %v7351_v0  ;;  %s8485_s16 = sld [smem:[#allocation40_spill]] }
0x1f7b   :  { %v7156_v53 = vpop.eup %7155 }
0x1f7c   :  { %v4601_v17 = vmul.f32 %v7156_v53, %v7148_v6  ;;  %v5567_v53 = vld [vmem:[%s8481_s3 + $0x18] sm:$0xff] }
0x1f7e   :  { %6874 = vmatmul.mubr.msk.f32.vlgmr.msra.gmra.mxu1 %vm418_vm3, %v4601_v17  ;;  %v5566_v17 = vld [vmem:[%s8481_s3 + $0x10] sm:$0xff] }
0x1f7f   :  { %6882 = vmatpush3.msra.mxu1 %v4769_v18  ;;  %6883 = vmatprep.mubr.msk.f32.mxu1 %vm7352_vm0, %v7351_v0  ;;  %v5565_v18 = vld [vmem:[%s8481_s3 + $0x8] sm:$0xff] }
0x1f80   :  { %6891 = vmatprep.subr.mxu1 %v7351_v0 }
0x1fdf   :  { %v4765_v62 = vpop.xlane.xlu1 %4764 }
0x1fe0   :  { %7157 = vrcp.f32 %v4765_v62  ;;  %v5564_v62 = vld [vmem:[%s8481_s3] sm:$0xff] }
0x1fe6   :  { %v4931_v11 = vpop.xlane.xlu0 %4930 }
0x1fe7   :  { %7159 = vrcp.f32 %v4931_v11  ;;  %v5879_v11 = vld [vmem:[%s8482_s8 + $0x38] sm:$0xff] }
0x1fea   :  { %v5097_v52 = vpop.xlane.xlu1 %5096  ;;  %v5101_v28 = vpop.permute.xlu0 %5100 }
0x1feb   :  { %7161 = vrcp.f32 %v5097_v52  ;;  %v6326_v52 = vld [vmem:[%s8483_s14] ss:$0 sm:$0xff] }
0x1fed   :  { %v7158_v45 = vpop.eup %7157 }
0x1fee   :  { %v4935_v23 = vpop.permute.xlu1 %4934  ;;  %v4767_v24 = vmul.f32 %v7158_v45, %v7150_v40 }
0x1ff0   :  { %6884 = vmatmul.mubr.msk.f32.vlgmr.msra.gmra.mxu1 %vm418_vm3, %v4767_v24 }
0x1ff1   :  { %6892 = vmatpush3.msra.mxu1 %v4935_v23  ;;  %6893 = vmatprep.mubr.msk.f32.mxu1 %vm7352_vm0, %v7351_v0 }
0x1ff2   :  { %6901 = vmatprep.subr.mxu1 %v7351_v0 }
0x1ff4   :  { %v7160_v25 = vpop.eup %7159 }
0x1ff5   :  { %v4933_v26 = vmul.f32 %v7160_v25, %v7152_v15 }
0x1ff7   :  { %6894 = vmatmul.mubr.msk.f32.vlgmr.msra.gmra.mxu1 %vm418_vm3, %v4933_v26 }
0x1ff8   :  { %v7162_v3 = vpop.eup %7161  ;;  %6902 = vmatpush3.msra.mxu1 %v5101_v28  ;;  %6903 = vmatprep.mubr.msk.f32.mxu1 %vm7352_vm0, %v7351_v0 }
0x1ff9   :  { %v5099_v30 = vmul.f32 %v7162_v3, %v7154_v14  ;;  %6913 = vmatprep.subr.mxu1 %v7351_v0  ;;  %v5878_v3 = vld [vmem:[%s8482_s8 + $0x30] sm:$0xff] }
0x1ffb   :  { %6904 = vmatmul.mubr.msk.f32.vlgmr.msra.gmra.mxu1 %vm418_vm3, %v5099_v30  ;;  %v5877_v30 = vld [vmem:[%s8482_s8 + $0x28] sm:$0xff] }
0x1ffc   :  { %6914 = vmatpush3.msra.mxu1 %v8043_v41  ;;  %6917 = vmatprep.mubr.msk.f32.mxu1 %vm7352_vm0, %v7351_v0 }
0x1ffd   :  { %6915 = vmatprep.subr.mxu1 %v7351_v0 }
0x1ffe   :  { %6916 = vmatpush3.msra.mxu1 %v8046_v42 }
0x203e   :  { %v4674_v33 = vpop.f32.mrf.mxu1 }
0x2040   :  { %v6875_v34 = vpop.f32.mrf.mxu1 }
0x2041   :  { %v5875_v34 = vld [vmem:[%s8482_s8 + $0x18] sm:$0xff] }
0x20b0   :  { %v4840_v37 = vpop.f32.mrf.mxu1 }
0x20b1   :  { %5177 = vrot.lane.b32.xlu1 %v4840_v37, %s7364_s9  ;;  %v5874_v37 = vld [vmem:[%s8482_s8 + $0x10] sm:$0xff] }
0x20b2   :  { %v6885_v63 = vpop.f32.mrf.mxu1 }
0x20b3   :  { %v5873_v63 = vld [vmem:[%s8482_s8 + $0x8] sm:$0xff] }
0x20b7   :  { %v5006_v35 = vpop.f32.mrf.mxu1 }
0x20b8   :  { %5181 = vrot.lane.b32.xlu0 %v5006_v35, %s7365_s17  ;;  %v5872_v35 = vld [vmem:[%s8482_s8] sm:$0xff] }
0x20b9   :  { %v6895_v36 = vpop.f32.mrf.mxu1 }
0x20ba   :  { %v5663_v36 = vld [vmem:[%s8484_s12 + $0x8] sm:$0xff] }
0x20bb   :  { %v5172_v55 = vpop.f32.mrf.mxu1 }
0x20bc   :  { %5185 = vrot.lane.b32.xlu1 %v5172_v55, %s7366_s28  ;;  %v5662_v55 = vld [vmem:[%s8484_s12] sm:$0xff] }
0x20bd   :  { %v6905_v41 = vpop.f32.mrf.mxu1 }
0x2123   :  { %v5178_v56 = vpop.permute.xlu1 %5177 }
0x2124   :  { %v5188_v57 = vsel %vm342_vm2, %v4674_v33, %v5178_v56  ;;  %v5876_v33 = vld [vmem:[%s8482_s8 + $0x20] sm:$0xff] }
0x212a   :  { %v5182_v10 = vpop.permute.xlu0 %5181 }
0x212b   :  { %v5189_v42 = vsel %vm418_vm3, %v5188_v57, %v5182_v10  ;;  %v6329_v10 = vld [vmem:[#allocation2] ss:$0 sm:$0xff] }
0x212e   :  { %v5186_v58 = vpop.permute.xlu1 %5185 }
0x212f   :  { %v5190_v59 = vsel %vm1018_vm4, %v5189_v42, %v5186_v58 }
0x2130   :  { %6911 = vmatmul.mubr.msk.f32.vlgmr.msra.gmra.mxu0 %vm265_vm1, %v5190_v59 }
0x2131   :  { %6921 = vmatpush3.msra.mxu0 %v8053_v44  ;;  %6936 = vmatprep.mubr.msk.f32.mxu0 %vm7352_vm0, %v7351_v0 }
0x2132   :  { %6922 = vmatprep.subr.mxu0 %v7351_v0 }
0x2133   :  { %6923 = vmatpush3.msra.mxu0 %v8056_v46 }
0x2134   :  { %6924 = vmatprep.subr.mxu0 %v7351_v0 }
0x2135   :  { %6925 = vmatpush3.msra.mxu0 %v8061_v47 }
0x2136   :  { %6926 = vmatprep.subr.mxu0 %v7351_v0 }
0x2137   :  { %6927 = vmatpush3.msra.mxu0 %v8066_v49 }
0x2138   :  { %6928 = vmatprep.subr.mxu0 %v7351_v0 }
0x2139   :  { %6929 = vmatpush3.msra.mxu0 %v8071_v50 }
0x213a   :  { %6930 = vmatprep.subr.mxu0 %v7351_v0 }
0x213b   :  { %6931 = vmatpush3.msra.mxu0 %v8098_v4 }
0x213c   :  { %6932 = vmatprep.subr.mxu0 %v7351_v0 }
0x213d   :  { %6933 = vmatpush3.msra.mxu0 %v8103_v7 }
0x213e   :  { %6934 = vmatprep.subr.mxu0 %v7351_v0 }
0x213f   :  { %6935 = vmatpush3.msra.mxu0 %v8107_v48 }
0x2140   :  { %6965 = vmatprep.subr.mxu0 %v5663_v36 }
0x21f0   :  { %v5266_v44 = vpop.f32.mrf.mxu0 }
0x21f1   :  { %v5267_v46 = vadd.f32 %v8036_v22, %v5266_v44  ;;  %v6277_v22 = vld [vmem:[%s8479_s5] ss:$0 sm:$0xff] }
0x21f2   :  { %v6912_v47 = vpop.f32.mrf.mxu0  ;;  %v3299_v20 = vadd.f32 %v6277_v22, %v8138_v29  ;;  %v5473_v29 = vld [vmem:[%s8480_s13 + $0x8] sm:$0xff] }
0x21f3   :  { %v5270_v49 = vadd.f32 %v5267_v46, %v7936_v61  ;;  %6939 = vmatprep.subr.mxu1 %v5473_v29  ;;  %v5754_v47 = vld [vmem:[%s8485_s16] sm:$0xf] }
0x21f4   :  { %v3302_v1 = vadd.f32 %v3299_v20, %v8080_v19  ;;  %v5571_v19 = vld [vmem:[%s8481_s3 + $0x38] sm:$0xff]  ;;  %v5972_v20 = vld [vmem:[%s8486_s18] sm:$0xff] }
0x21f5   :  { %v5273_v50 = vsel %vm265_vm1, %v5270_v49, 0.0 }
0x21f6   :  { %5274 = vadd.xlane.f32.xlu0 %v5273_v50 }
0x227f   :  { %v5275_v4 = vpop.xlane.xlu0 %5274 }
0x2280   :  { %v5276_v2 = vmul.f32 0.0625, %v5275_v4  ;;  %v6332_v4 = vld [vmem:[#allocation4] ss:$0 sm:$0xff] }
0x2282   :  { %v5277_v60 = vsub.f32 %v5270_v49, %v5276_v2  ;;  %v5973_v49 = vld [vmem:[%s8486_s18 + $0x8] sm:$0xff] }
0x2284   :  { %v5278_v7 = vmul.f32 %v5277_v60, %v5277_v60 }
0x2286   :  { %v5279_v0 = vsel %vm265_vm1, %v5278_v7, 0.0  ;;  %v6339_v7 = vld [vmem:[#allocation7] ss:$0 sm:$0xff] }
0x2287   :  { %5280 = vadd.xlane.f32.xlu1 %v5279_v0 }
0x2310   :  { %v5281_v48 = vpop.xlane.xlu1 %5280 }
0x2311   :  { %v5282_v5 = vmul.f32 0.06666667, %v5281_v48 }
0x2313   :  { %v5283_v6 = vadd.f32 1e-05, %v5282_v5 }
0x2315   :  { %7163 = vrsqrt.f32 %v5283_v6 }
0x2322   :  { %v7164_v31 = vpop.eup %7163 }
0x2323   :  { %v5285_v61 = vmul.f32 %v7164_v31, %v5277_v60 }
0x2325   :  { %v5292_v32 = vmul.f32 %v6320_v21, %v5285_v61 }
0x2327   :  { %v5299_v39 = vadd.f32 %v6321_v38, %v5292_v32  ;;  %v6064_v32 = vld [vmem:[%s7581_s4] sm:$0xf] }
0x2329   :  { %6918 = vmatmul.mubr.msk.f32.vlgmr.msra.gmra.mxu1 %vm265_vm1, %v5299_v39 }
0x232a   :  { %6943 = vmatprep.mubr.msk.f32.mxu1 %vm265_vm1, %v3302_v1  ;;  %6940 = vmatpush3.msra.mxu1 %v5473_v29  ;;  %v6342_v29 = vld [vmem:[#allocation9] ss:$0 sm:$0xff] }
0x232b   :  { %6941 = vmatprep.subr.mxu1 %v5472_v13 }
0x232c   :  { %6942 = vmatpush3.msra.mxu1 %v5472_v13 }
0x232d   :  { %6946 = vmatprep.subr.mxu1 %v5571_v19 }
0x23e9   :  { %v5387_v54 = vpop.f32.mrf.mxu1 }
0x23ea   :  { %v5388_v9 = vadd.f32 %v8113_v8, %v5387_v54 }
0x23eb   :  { %v6919_v12 = vpop.f32.mrf.mxu1 }
0x23ec   :  { %v5391_v40 = vmax.f32 %v5388_v9, 0.0 }
0x23ee   :  { %6937 = vmatmul.mubr.msk.f32.vlgmr.msra.gmra.mxu0 %vm2074_vm5, %v5391_v40 }
0x23ef   :  { %6966 = vmatpush3.msra.mxu0 %v5663_v36 }
0x23f0   :  { %6967 = vmatprep.subr.mxu0 %v5662_v55 }
0x23f1   :  { %6968 = vmatpush3.msra.mxu0 %v5662_v55 }
0x23f2   :  { %6972 = vmatprep.subr.msk.mxu0 %vm5768_vm6, %v5754_v47 }
0x24ae   :  { %v5467_v15 = vpop.f32.mrf.mxu0 }
0x24af   :  { %v5468_v16 = vadd.f32 %v6277_v22, %v5467_v15 }
0x24b0   :  { %v6938_v14 = vpop.f32.mrf.mxu0 }
0x24b1   :  { %v5471_v8 = vadd.f32 %v5468_v16, %v5299_v39  ;;  %v6335_v39 = vld [vmem:[#allocation6] ss:$0 sm:$0xff] }
0x24b3   :  { %6944 = vmatmul.mubr.msk.f32.vlgmr.msra.gmra.mxu1 %vm265_vm1, %v5471_v8 }
0x24b4   :  { %6947 = vmatpush3.msra.mxu1 %v5571_v19 }
0x24b5   :  { %6948 = vmatprep.subr.mxu1 %v5570_v27 }
0x24b6   :  { %6949 = vmatpush3.msra.mxu1 %v5570_v27 }
0x24b7   :  { %6950 = vmatprep.subr.mxu1 %v5569_v43 }
0x24b8   :  { %6951 = vmatpush3.msra.mxu1 %v5569_v43 }
0x24b9   :  { %6952 = vmatprep.subr.mxu1 %v5568_v51 }
0x24ba   :  { %6953 = vmatpush3.msra.mxu1 %v5568_v51 }
0x24bb   :  { %6954 = vmatprep.subr.mxu1 %v5567_v53 }
0x24bc   :  { %6955 = vmatpush3.msra.mxu1 %v5567_v53 }
0x24bd   :  { %6956 = vmatprep.subr.mxu1 %v5566_v17 }
0x24be   :  { %6957 = vmatpush3.msra.mxu1 %v5566_v17 }
0x24bf   :  { %6958 = vmatprep.subr.mxu1 %v5565_v18 }
0x24c0   :  { %6959 = vmatpush3.msra.mxu1 %v5565_v18 }
0x24c1   :  { %6960 = vmatprep.subr.mxu1 %v5564_v62 }
0x24c2   :  { %6961 = vmatpush3.msra.mxu1 %v5564_v62 }
0x24c3   :  { %6977 = vmatprep.subr.mxu1 %v5879_v11 }
0x2573   :  { %v6945_v45 = vpop.f32.mrf.mxu1 }
0x2574   :  { %v5559_v23 = vadd.f32 %v6945_v45, %v6326_v52 }
0x2575   :  { %v5553_v24 = vpop.f32.mrf.mxu1 }
0x2576   :  { %v5563_v25 = vmax.f32 %v5559_v23, 0.0  ;;  %v5554_v26 = vadd.f32 %v6326_v52, %v5553_v24  ;;  %v6345_v24 = vld [vmem:[#allocation10] ss:$0 sm:$0xff] }
0x2578   :  { %v5562_v28 = vmax.f32 %v5554_v26, 0.0  ;;  %5889 = vrot.lane.b32.xlu1 %v5563_v25, %s7367_s6 }
0x257a   :  { %5887 = vrot.lane.b32.xlu0 %v5562_v28, %s7367_s6  ;;  %6962 = vmatprep.mubr.msk.f32.mxu1 %vm2074_vm5, %v5562_v28 }
0x257b   :  { %6963 = vmatmul.mubr.msk.f32.vlgmr.msra.gmra.mxu1 %vm2074_vm5, %v5563_v25 }
0x257c   :  { %6978 = vmatpush3.msra.mxu1 %v5879_v11 }
0x257d   :  { %6979 = vmatprep.subr.mxu1 %v5878_v3 }
0x257e   :  { %6980 = vmatpush3.msra.mxu1 %v5878_v3 }
0x257f   :  { %6981 = vmatprep.subr.mxu1 %v5877_v30 }
0x2580   :  { %6982 = vmatpush3.msra.mxu1 %v5877_v30 }
0x2581   :  { %6983 = vmatprep.subr.mxu1 %v5876_v33 }
0x2582   :  { %6984 = vmatpush3.msra.mxu1 %v5876_v33 }
0x2583   :  { %6985 = vmatprep.subr.mxu1 %v5875_v34 }
0x2584   :  { %6986 = vmatpush3.msra.mxu1 %v5875_v34 }
0x2585   :  { %6987 = vmatprep.subr.mxu1 %v5874_v37 }
0x2586   :  { %6988 = vmatpush3.msra.mxu1 %v5874_v37 }
0x2587   :  { %6989 = vmatprep.subr.mxu1 %v5873_v63 }
0x2588   :  { %6990 = vmatpush3.msra.mxu1 %v5873_v63 }
0x2589   :  { %6991 = vmatprep.subr.mxu1 %v5872_v35 }
0x258a   :  { %6992 = vmatpush3.msra.mxu1 %v5872_v35 }
0x25ea   :  { %v5890_v56 = vpop.permute.xlu1 %5889 }
0x25ec   :  { %v5888_v41 = vpop.permute.xlu0 %5887 }
0x25ed   :  { %6993 = vmatprep.mubr.msk.f32.mxu1 %vm2074_vm5, %v5888_v41 }
0x25ee   :  { %6994 = vmatmul.mubr.msk.f32.vlgmr.msra.gmra.mxu1 %vm2074_vm5, %v5890_v56 }
0x263b   :  { %v6964_v57 = vpop.f32.mrf.mxu1 }
0x263c   :  { %v5657_v42 = vadd.f32 %v6964_v57, %v6329_v10 }
0x263d   :  { %v5651_v58 = vpop.f32.mrf.mxu1 }
0x263e   :  { %v5652_v59 = vadd.f32 %v6329_v10, %v5651_v58  ;;  %v5661_v46 = vmax.f32 %v5657_v42, 0.0 }
0x2640   :  { %v5660_v44 = vmax.f32 %v5652_v59, 0.0 }
0x2642   :  { %6969 = vmatprep.mubr.msk.f32.mxu0 %vm265_vm1, %v5660_v44 }
0x2643   :  { %6970 = vmatmul.mubr.msk.f32.vlgmr.msra.gmra.mxu0 %vm265_vm1, %v5661_v46 }
0x2644   :  { %6973 = vmatpush3.msk.msra.mxu0 %vm5768_vm6, %v5754_v47 }
0x2645   :  { %6996 = vmatprep.subr.mxu0 %v5973_v49 }
0x26ae   :  { %v6995_v50 = vpop.f32.mrf.mxu1 }
0x26af   :  { %v5967_v31 = vadd.f32 %v6995_v50, %v6339_v7 }
0x26b0   :  { %v5961_v2 = vpop.f32.mrf.mxu1 }
0x26b1   :  { %v5962_v5 = vadd.f32 %v6339_v7, %v5961_v2  ;;  %v5971_v38 = vmax.f32 %v5967_v31, 0.0 }
0x26b3   :  { %v5970_v61 = vmax.f32 %v5962_v5, 0.0 }
0x2703   :  { %v6971_v60 = vpop.f32.mrf.mxu0 }
0x2704   :  { %v5749_v0 = vadd.f32 %v6971_v60, %v6332_v4 }
0x2705   :  { %v5743_v48 = vpop.f32.mrf.mxu0 }
0x2706   :  { %v5744_v6 = vadd.f32 %v6332_v4, %v5743_v48  ;;  %v5753_v21 = vmax.f32 %v5749_v0, 0.0 }
0x2708   :  { %v5752_v22 = vmax.f32 %v5744_v6, 0.0 }
0x270a   :  { %6974 = vmatprep.mubr.msk.f32.mxu0 %vm342_vm2, %v5752_v22 }
0x270b   :  { %6975 = vmatmul.mubr.msk.f32.vlgmr.msra.gmra.mxu0 %vm342_vm2, %v5753_v21 }
0x270c   :  { %6997 = vmatpush3.msra.mxu0 %v5973_v49  ;;  %7000 = vmatprep.mubr.msk.f32.mxu0 %vm265_vm1, %v5970_v61 }
0x270d   :  { %6998 = vmatprep.subr.mxu0 %v5972_v20 }
0x270e   :  { %6999 = vmatpush3.msra.mxu0 %v5972_v20 }
0x270f   :  { %7001 = vmatmul.mubr.msk.f32.vlgmr.msra.gmra.mxu0 %vm265_vm1, %v5971_v38  ;;  %7003 = vmatprep.subr.msk.mxu0 %vm5768_vm6, %v6064_v32 }
0x2710   :  { %7004 = vmatpush3.msk.msra.mxu0 %vm5768_vm6, %v6064_v32 }
0x27cb   :  { %v6976_v1 = vpop.f32.mrf.mxu0 }
0x27cc   :  { %v5844_v54 = vadd.f32 %v6976_v1, %v6335_v39 }
0x27cd   :  { %v5838_v9 = vpop.f32.mrf.mxu0 }
0x27ce   :  { %v5839_v12 = vadd.f32 %v6335_v39, %v5838_v9  ;;  %v5851_v40 = vsel %vm5847_vm7, %v5844_v54, -inf }
0x27cf   :  { %5852 = vmax.xlane.f32.xlu1 %v5851_v40  ;;  %v7002_v13 = vpop.f32.mrf.mxu0 }
0x27d0   :  { %v5848_v19 = vsel %vm5847_vm7, %v5839_v12, -inf  ;;  %v6059_v15 = vadd.f32 %v7002_v13, %v6342_v29 }
0x27d1   :  { %v6053_v16 = vpop.f32.mrf.mxu0  ;;  %5849 = vmax.xlane.f32.xlu0 %v5848_v19 }
0x27d2   :  { %v6054_v14 = vadd.f32 %v6342_v29, %v6053_v16  ;;  %v6063_v27 = vmax.f32 %v6059_v15, 0.0 }
0x27d4   :  { %v6062_v8 = vmax.f32 %v6054_v14, 0.0 }
0x27d6   :  { %7005 = vmatprep.mubr.msk.f32.mxu0 %vm342_vm2, %v6062_v8 }
0x27d7   :  { %7006 = vmatmul.mubr.msk.f32.vlgmr.msra.gmra.mxu0 %vm342_vm2, %v6063_v27 }
0x2858   :  { %v5853_v43 = vpop.xlane.xlu1 %5852 }
0x2859   :  { %v5855_v51 = vsub.f32 %v5844_v54, %v5853_v43 }
0x285a   :  { %v5850_v53 = vpop.xlane.xlu0 %5849 }
0x285b   :  { %v5854_v17 = vsub.f32 %v5839_v12, %v5850_v53  ;;  %v5858_v18 = vmul.f32 1.442695, %v5855_v51 }
0x285d   :  { %v5856_v62 = vmul.f32 1.442695, %v5854_v17 }
0x285f   :  { %7165 = vpow2.f32 %v5856_v62 }
0x2860   :  { %7167 = vpow2.f32 %v5858_v18 }
0x286c   :  { %v7166_v11 = vpop.eup %7165 }
0x286d   :  { %v5860_v52 = vsel %vm5847_vm7, %v7166_v11, 0.0  ;;  %v7168_v45 = vpop.eup %7167 }
0x286e   :  { %5861 = vadd.xlane.f32.xlu0 %v5860_v52  ;;  %v5863_v23 = vsel %vm5847_vm7, %v7168_v45, 0.0 }
0x2872   :  { %5864 = vadd.xlane.f32.xlu0 %v5863_v23 }
0x2897   :  { %v7007_v25 = vpop.f32.mrf.mxu0 }
0x2898   :  { %v6153_v26 = vadd.f32 %v7007_v25, %v6345_v24 }
0x2899   :  { %v6147_v28 = vpop.f32.mrf.mxu0 }
0x289a   :  { %6158 = vst.msk [vmem:[%s7596_s27 + $0x8] sm:$0xff] %vm6156_vm8, %v6153_v26  ;;  %v6148_v3 = vadd.f32 %v6345_v24, %v6147_v28 }
0x289c   :  { %6157 = vst.msk [vmem:[%s7596_s27] sm:$0xff] %vm6156_vm8, %v6148_v3 }
0x28f7   :  { %v5862_v30 = vpop.xlane.xlu0 %5861 }
0x28f8   :  { %7169 = vrcp.f32 %v5862_v30 }
0x28fb   :  { %v5865_v33 = vpop.xlane.xlu0 %5864 }
0x28fc   :  { %7171 = vrcp.f32 %v5865_v33 }
0x2905   :  { %v7170_v34 = vpop.eup %7169 }
0x2906   :  { %v5867_v37 = vmul.f32 %v7170_v34, %v7166_v11 }
0x2908   :  { %5870 = vst.msk [vmem:[%s7591_s24] sm:$0xff] %vm5847_vm7, %v5867_v37 }
0x2909   :  { %v7172_v63 = vpop.eup %7171 }
0x290a   :  { %v5869_v35 = vmul.f32 %v7172_v63, %v7168_v45 }
0x290c   :  { %5871 = vst.msk [vmem:[%s7591_s24 + $0x8] sm:$0xff] %vm5847_vm7, %v5869_v35 }
0x290d   :  { %6167 = vsyncpa [#allocation3], 1 }
0x290e   :  { %6168 = vsyncpa [#allocation5], 1 }
0x290f   :  { %6169 = vsyncpa [#allocation8], 1 }
0x2910   :  { %6170 = vsyncpa [#allocation11], 1 }

</bundles_post_ra>
